<compile_context>
chip_gen: v6e
topology: v6e:2x2x1
jax: 0.10.0
libtpu: 0.0.40
codegen_flags: <defaults>
</compile_context>

<pallas_src>
import functools

import jax
import jax.numpy as jnp
from jax.experimental import pallas as pl
from jax.experimental.pallas import tpu as pltpu


def _vmem_limit_bytes():
    """32 MiB everywhere; more on chips with large physical VMEM (v5e/v6e)."""
    try:
        cap = int(pltpu.get_tpu_info().vmem_capacity_bytes)
    except Exception:
        return 32 * 1024 * 1024
    return max(32 * 1024 * 1024, min(96 * 1024 * 1024, (cap * 3) // 4))


# ----------------------------------------------------------------------------
# Fully fused Bottleneck kernel (one grid step per batch element).
# ----------------------------------------------------------------------------
def _bottleneck_kernel(x_ref, w1_ref, s1_ref, b1_ref, w2_ref, s2_ref, b2_ref,
                       w3_ref, s3_ref, b3_ref, ca1_ref, ca2_ref, saw_ref,
                       out_ref, o1_pad, patches, stats):
    _, H, W, C4 = out_ref.shape
    P = w1_ref.shape[1]
    HW = H * W
    bf = jnp.bfloat16

    # ---- input / residual: read once (f32) ---------------------------------
    xin = x_ref[0]                                          # (H, W, C4) f32

    # ---- conv1 (1x1) + bn1 + relu : bf16 MXU operands, f32 acc/epilogue ----
    o1 = jnp.dot(xin.reshape(HW, C4).astype(bf), w1_ref[...],
                 preferred_element_type=jnp.float32)        # (HW, P)
    o1 = jnp.maximum(o1 * s1_ref[...] + b1_ref[...], 0.0).astype(bf)

    # ---- conv2 (3x3, pad=1) + bn2 + relu ------------------------------------
    # Write o1 into a bf16 padded VMEM buffer; only the 1-px halo ring is
    # zeroed (the interior is fully overwritten every grid step).
    zr = jnp.zeros((1, W + 2, P), bf)
    zc = jnp.zeros((H + 2, 1, P), bf)
    o1_pad[0:1, :, :] = zr
    o1_pad[H + 1:H + 2, :, :] = zr
    o1_pad[:, 0:1, :] = zc
    o1_pad[:, W + 1:W + 2, :] = zc
    o1_pad[1:1 + H, 1:1 + W, :] = o1.reshape(H, W, P)

    # In-VMEM im2col: one (HW, 9P) bf16 patch buffer -> a single MXU matmul
    # with K = 9P (instead of 9 underfilled K=P matmuls).
    o1p = o1_pad[...]                                       # (H+2, W+2, P) bf16
    for t in range(9):
        di, dj = t // 3, t % 3
        patches[:, t * P:(t + 1) * P] = (
            o1p[di:di + H, dj:dj + W, :].reshape(HW, P))
    o2 = jnp.dot(patches[...], w2_ref[...],
                 preferred_element_type=jnp.float32)        # (HW, P)
    o2 = jnp.maximum(o2 * s2_ref[...] + b2_ref[...], 0.0).astype(bf)

    # ---- conv3 (1x1) + bn3 : bf16 MXU operands, f32 accumulation ------------
    o3 = jnp.dot(o2, w3_ref[...], preferred_element_type=jnp.float32)
    o3 = o3 * s3_ref[...] + b3_ref[...]                     # (HW, C4) f32

    # ---- channel attention: avg+max pool, shared FC run once on (2, C4) ----
    pooled = jnp.concatenate(
        [jnp.mean(o3, axis=0, keepdims=True),
         jnp.max(o3, axis=0, keepdims=True)], axis=0)       # (2, C4)
    hfc = jnp.maximum(
        jnp.dot(pooled, ca1_ref[...], preferred_element_type=jnp.float32),
        0.0)
    yfc = jnp.dot(hfc, ca2_ref[...], preferred_element_type=jnp.float32)
    ca = jax.nn.sigmoid(yfc[0:1, :] + yfc[1:2, :])          # (1, C4)
    o_ca = o3 * ca                                          # (HW, C4)
    o_ca3 = o_ca.reshape(H, W, C4)

    # ---- spatial-attention stats: lane-dense (2, H+6, W+6) VMEM scratch -----
    # Only the 3-px halo ring is zeroed; the interior is overwritten below.
    zrow = jnp.zeros((2, 3, W + 6), jnp.float32)
    zcol = jnp.zeros((2, H + 6, 3), jnp.float32)
    stats[:, 0:3, :] = zrow
    stats[:, H + 3:H + 6, :] = zrow
    stats[:, :, 0:3] = zcol
    stats[:, :, W + 3:W + 6] = zcol
    stats[0, 3:3 + H, 3:3 + W] = jnp.mean(o_ca3, axis=2)    # (H, W)
    stats[1, 3:3 + H, 3:3 + W] = jnp.max(o_ca3, axis=2)     # (H, W)
    st = stats[...]
    mp = st[0]                                              # (H+6, W+6)
    xp = st[1]

    # ---- 7x7 spatial conv: VPU weighted sum over shifted lane-dense windows -
    sa = jnp.zeros((H, W), jnp.float32)
    for t in range(49):
        di, dj = t // 7, t % 7
        sa = sa + (mp[di:di + H, dj:dj + W] * saw_ref[2 * t]
                   + xp[di:di + H, dj:dj + W] * saw_ref[2 * t + 1])
    sa = jax.nn.sigmoid(sa)                                 # (H, W)

    # ---- epilogue: relu(out_ca * sa + residual) -----------------------------
    out = jnp.maximum(o_ca3 * sa.reshape(H, W, 1) + xin, 0.0)
    out_ref[0] = out.astype(out_ref.dtype)


def fused_bottleneck(x, w1, s1, b1, w2, s2, b2, w3, s3, b3, ca1, ca2, sa_w):
    n, h, w, c4 = x.shape
    p_ch = w1.shape[1]
    cr = ca1.shape[1]
    hw = h * w

    flops = n * (2 * hw * c4 * p_ch            # conv1
                 + 2 * hw * 9 * p_ch * p_ch    # conv2
                 + 2 * hw * p_ch * c4          # conv3
                 + 8 * c4 * cr                 # CA FC
                 + 4 * 49 * hw                 # SA conv
                 + 10 * hw * c4)               # elementwise epilogues
    transcendentals = n * (c4 + hw)
    bytes_accessed = int(
        sum(a.size * a.dtype.itemsize for a in
            (x, w1, s1, b1, w2, s2, b2, w3, s3, b3, ca1, ca2, sa_w))
        + n * hw * c4 * 4)

    return pl.pallas_call(
        _bottleneck_kernel,
        out_shape=jax.ShapeDtypeStruct((n, h, w, c4), jnp.float32),
        grid=(n,),
        in_specs=[
            pl.BlockSpec((1, h, w, c4), lambda i: (i, 0, 0, 0)),   # x / residual
            pl.BlockSpec((c4, p_ch), lambda i: (0, 0)),            # w1
            pl.BlockSpec((1, p_ch), lambda i: (0, 0)),             # bn1 scale
            pl.BlockSpec((1, p_ch), lambda i: (0, 0)),             # bn1 bias
            pl.BlockSpec((9 * p_ch, p_ch), lambda i: (0, 0)),      # w2 (im2col)
            pl.BlockSpec((1, p_ch), lambda i: (0, 0)),             # bn2 scale
            pl.BlockSpec((1, p_ch), lambda i: (0, 0)),             # bn2 bias
            pl.BlockSpec((p_ch, c4), lambda i: (0, 0)),            # w3
            pl.BlockSpec((1, c4), lambda i: (0, 0)),               # bn3 scale
            pl.BlockSpec((1, c4), lambda i: (0, 0)),               # bn3 bias
            pl.BlockSpec((c4, cr), lambda i: (0, 0)),              # CA fc1
            pl.BlockSpec((cr, c4), lambda i: (0, 0)),              # CA fc2
            pl.BlockSpec(memory_space=pltpu.MemorySpace.SMEM),     # SA weights
        ],
        out_specs=pl.BlockSpec((1, h, w, c4), lambda i: (i, 0, 0, 0)),
        scratch_shapes=[
            pltpu.VMEM((h + 2, w + 2, p_ch), jnp.bfloat16),        # padded o1
            pltpu.VMEM((h * w, 9 * p_ch), jnp.bfloat16),           # im2col buf
            pltpu.VMEM((2, h + 6, w + 6), jnp.float32),            # SA stats
        ],
        compiler_params=pltpu.CompilerParams(
            dimension_semantics=("parallel",),
            vmem_limit_bytes=_vmem_limit_bytes()),
        cost_estimate=pl.CostEstimate(
            flops=int(flops), transcendentals=int(transcendentals),
            bytes_accessed=bytes_accessed),
    )(x, w1, s1, b1, w2, s2, b2, w3, s3, b3, ca1, ca2, sa_w)


# ----------------------------------------------------------------------------
# JAX glue: im2col is ONLY used by the pure-JAX reference.
# ----------------------------------------------------------------------------
def im2col(x_nhwc, k, pad):
    n, h, w, c = x_nhwc.shape
    xp = jnp.pad(x_nhwc, ((0, 0), (pad, pad), (pad, pad), (0, 0)))
    cols = []
    for i in range(k):
        for j in range(k):
            cols.append(xp[:, i:i + h, j:j + w, :])
    patches = jnp.concatenate(cols, axis=-1)
    return patches.reshape(n * h * w, k * k * c)


# ----------------------------------------------------------------------------
# Parameter construction (deterministic, synthetic, inference-mode BN folded)
# ----------------------------------------------------------------------------
def make_params(key, inplanes, planes):
    c4 = planes * 4
    keys = jax.random.split(key, 16)

    def winit(k, shape, fan_in):
        return jax.random.normal(k, shape, jnp.float32) / jnp.sqrt(fan_in)

    def bn(k, c):
        k1, k2, k3, k4 = jax.random.split(k, 4)
        gamma = 0.5 + jax.random.uniform(k1, (c,), jnp.float32)
        beta = 0.1 * jax.random.normal(k2, (c,), jnp.float32)
        rmean = 0.1 * jax.random.normal(k3, (c,), jnp.float32)
        rvar = 0.5 + jax.random.uniform(k4, (c,), jnp.float32)
        scale = gamma / jnp.sqrt(rvar + 1e-5)
        bias = beta - rmean * scale
        return scale.reshape(1, c), bias.reshape(1, c)

    cr = c4 // 16
    p = {}
    p["w1"] = winit(keys[0], (inplanes, planes), inplanes)              # 1x1
    p["bn1_scale"], p["bn1_bias"] = bn(keys[1], planes)
    p["w2"] = winit(keys[2], (3, 3, planes, planes), 9 * planes)        # 3x3
    p["bn2_scale"], p["bn2_bias"] = bn(keys[3], planes)
    p["w3"] = winit(keys[4], (planes, c4), planes)                      # 1x1
    p["bn3_scale"], p["bn3_bias"] = bn(keys[5], c4)
    p["ca_w1"] = winit(keys[6], (c4, cr), c4)                           # fc1
    p["ca_w2"] = winit(keys[7], (cr, c4), cr)                           # fc2
    p["sa_w"] = winit(keys[8], (7, 7, 2, 1), 7 * 7 * 2)                 # 7x7
    return p


# ----------------------------------------------------------------------------
# Bottleneck forward (stride=1, downsample=None)
# ----------------------------------------------------------------------------
def bottleneck_forward(x_nchw, p):
    n, cin, h, w = x_nchw.shape
    planes = p["w1"].shape[1]
    c4 = planes * 4
    assert cin == c4, "stride=1 / downsample=None requires inplanes == planes*4"
    bf = jnp.bfloat16

    x_nhwc = jnp.transpose(x_nchw, (0, 2, 3, 1)).astype(jnp.float32)

    out_nhwc = fused_bottleneck(
        x_nhwc,
        p["w1"].astype(bf), p["bn1_scale"], p["bn1_bias"],
        p["w2"].reshape(9 * planes, planes).astype(bf),
        p["bn2_scale"], p["bn2_bias"],
        p["w3"].astype(bf), p["bn3_scale"], p["bn3_bias"],
        p["ca_w1"], p["ca_w2"],
        p["sa_w"].reshape(-1))

    return jnp.transpose(out_nhwc, (0, 3, 1, 2))


# ----------------------------------------------------------------------------
# Pure-JAX reference mirroring the same math (and the same intentional bf16
# MXU operand casts) for validation.
# ----------------------------------------------------------------------------
def bottleneck_reference(x_nchw, p):
    n, cin, h, w = x_nchw.shape
    planes = p["w1"].shape[1]
    c4 = planes * 4
    m = n * h * w
    bf = jnp.bfloat16

    x_nhwc = jnp.transpose(x_nchw, (0, 2, 3, 1)).astype(jnp.float32)
    x_flat = x_nhwc.reshape(m, cin)
    residual = x_flat

    o1 = jnp.maximum(
        jnp.dot(x_flat.astype(bf), p["w1"].astype(bf),
                preferred_element_type=jnp.float32)
        * p["bn1_scale"] + p["bn1_bias"], 0.0).astype(bf)

    patches = im2col(o1.reshape(n, h, w, planes), 3, 1)
    o2 = jnp.maximum(
        jnp.dot(patches, p["w2"].reshape(9 * planes, planes).astype(bf),
                preferred_element_type=jnp.float32)
        * p["bn2_scale"] + p["bn2_bias"], 0.0).astype(bf)

    o3 = (jnp.dot(o2, p["w3"].astype(bf), preferred_element_type=jnp.float32)
          * p["bn3_scale"] + p["bn3_bias"])

    o3_nhc = o3.reshape(n, h * w, c4)
    avg = jnp.mean(o3_nhc, axis=1, keepdims=True)
    mx = jnp.max(o3_nhc, axis=1, keepdims=True)

    def fc(v):
        return jnp.maximum(v @ p["ca_w1"], 0.0) @ p["ca_w2"]

    ca = jax.nn.sigmoid(fc(avg) + fc(mx))
    o_ca = o3_nhc * ca

    ch_mean = jnp.mean(o_ca, axis=2, keepdims=True)
    ch_max = jnp.max(o_ca, axis=2, keepdims=True)
    stats = jnp.concatenate([ch_mean, ch_max], axis=2).reshape(n, h, w, 2)
    sa = jax.nn.sigmoid(im2col(stats, 7, 3) @ p["sa_w"].reshape(98, 1))

    out = jnp.maximum(o_ca.reshape(m, c4) * sa + residual, 0.0)
    return jnp.transpose(out.reshape(n, h, w, c4), (0, 3, 1, 2))


if __name__ == "__main__":
    # Bottleneck(inplanes=64, planes=16, stride=1, downsample=None):
    # residual add requires inplanes == planes*4; ChannelAttention hard-codes
    # the //16 reduction in its fc.
    n, h, w = 2, 16, 16
    planes = 16
    inplanes = planes * 4

    key = jax.random.PRNGKey(0)
    kx, kp = jax.random.split(key)
    x = jax.random.normal(kx, (n, inplanes, h, w), jnp.float32)
    params = make_params(kp, inplanes, planes)

    fwd = jax.jit(bottleneck_forward)
    out = jax.block_until_ready(fwd(x, params))
    ref = jax.block_until_ready(bottleneck_reference(x, params))

    assert out.shape == (n, inplanes, h, w)
    assert bool(jnp.all(jnp.isfinite(out)))
    err = float(jnp.max(jnp.abs(out - ref)))
    # bf16 MXU operands (intended optimization) with f32 accumulation/epilogue:
    # both paths use the same casts, so agreement is tight.
    assert bool(jnp.allclose(out, ref, atol=5e-3, rtol=5e-3)), err
    print("KERNEL_OK")
</pallas_src>

<mosaic_0001>
module attributes {stable_mosaic.version = 11 : i64} {
  func.func @_bottleneck_kernel(%arg0: i32, %arg1: memref<1x16x16x64xf32, #tpu.memory_space<vmem>>, %arg2: memref<64x16xbf16, #tpu.memory_space<vmem>>, %arg3: memref<1x16xf32, #tpu.memory_space<vmem>>, %arg4: memref<1x16xf32, #tpu.memory_space<vmem>>, %arg5: memref<144x16xbf16, #tpu.memory_space<vmem>>, %arg6: memref<1x16xf32, #tpu.memory_space<vmem>>, %arg7: memref<1x16xf32, #tpu.memory_space<vmem>>, %arg8: memref<16x64xbf16, #tpu.memory_space<vmem>>, %arg9: memref<1x64xf32, #tpu.memory_space<vmem>>, %arg10: memref<1x64xf32, #tpu.memory_space<vmem>>, %arg11: memref<64x4xf32, #tpu.memory_space<vmem>>, %arg12: memref<4x64xf32, #tpu.memory_space<vmem>>, %arg13: memref<98xf32, #tpu.memory_space<smem>>, %arg14: memref<1x16x16x64xf32, #tpu.memory_space<vmem>>, %arg15: memref<18x18x16xbf16, #tpu.memory_space<vmem>>, %arg16: memref<256x144xbf16, #tpu.memory_space<vmem>>, %arg17: memref<2x22x22xf32, #tpu.memory_space<vmem>>) attributes {dimension_semantics = [#tpu.dimension_semantics<parallel>], iteration_bounds = array<i64: 2>, scalar_prefetch = 0 : i64, scratch_operands = 3 : i64, tpu.core_type = #tpu.core_type<tc>, window_params = [{transform_indices = @transform_0, window_bounds = array<i64: 1, 16, 16, 64>}, {pipeline_mode = #tpu.pipeline_mode<synchronous>, transform_indices = @transform_1, window_bounds = array<i64: 64, 16>}, {pipeline_mode = #tpu.pipeline_mode<synchronous>, transform_indices = @transform_2, window_bounds = array<i64: 1, 16>}, {pipeline_mode = #tpu.pipeline_mode<synchronous>, transform_indices = @transform_3, window_bounds = array<i64: 1, 16>}, {pipeline_mode = #tpu.pipeline_mode<synchronous>, transform_indices = @transform_4, window_bounds = array<i64: 144, 16>}, {pipeline_mode = #tpu.pipeline_mode<synchronous>, transform_indices = @transform_5, window_bounds = array<i64: 1, 16>}, {pipeline_mode = #tpu.pipeline_mode<synchronous>, transform_indices = @transform_6, window_bounds = array<i64: 1, 16>}, {pipeline_mode = #tpu.pipeline_mode<synchronous>, transform_indices = @transform_7, window_bounds = array<i64: 16, 64>}, {pipeline_mode = #tpu.pipeline_mode<synchronous>, transform_indices = @transform_8, window_bounds = array<i64: 1, 64>}, {pipeline_mode = #tpu.pipeline_mode<synchronous>, transform_indices = @transform_9, window_bounds = array<i64: 1, 64>}, {pipeline_mode = #tpu.pipeline_mode<synchronous>, transform_indices = @transform_10, window_bounds = array<i64: 64, 4>}, {pipeline_mode = #tpu.pipeline_mode<synchronous>, transform_indices = @transform_11, window_bounds = array<i64: 4, 64>}, {transform_indices = @transform_12, window_bounds = array<i64: 98>}, {transform_indices = @transform_13, window_bounds = array<i64: 1, 16, 16, 64>}]} {
    %c0 = arith.constant 0 : index
    %c0_0 = arith.constant 0 : index
    %c0_1 = arith.constant 0 : index
    %c0_2 = arith.constant 0 : index
    %0 = vector.load %arg1[%c0, %c0_0, %c0_1, %c0_2] : memref<1x16x16x64xf32, #tpu.memory_space<vmem>>, vector<1x16x16x64xf32>
    %1 = vector.shape_cast %0 : vector<1x16x16x64xf32> to vector<16x16x64xf32>
    %2 = vector.shape_cast %1 : vector<16x16x64xf32> to vector<256x64xf32>
    %3 = arith.truncf %2 : vector<256x64xf32> to vector<256x64xbf16>
    %c0_3 = arith.constant 0 : index
    %c0_4 = arith.constant 0 : index
    %4 = vector.load %arg2[%c0_3, %c0_4] : memref<64x16xbf16, #tpu.memory_space<vmem>>, vector<64x16xbf16>
    %cst = arith.constant dense<0.000000e+00> : vector<256x16xf32>
    %5 = tpu.matmul %3, %4, %cst {dimension_numbers = #tpu.dot_dimension_numbers<[1], [0], [0], [1], [0, 0, 1, 1], [], []>} : vector<256x64xbf16>, vector<64x16xbf16>, vector<256x16xf32> -> vector<256x16xf32>
    %c0_5 = arith.constant 0 : index
    %c0_6 = arith.constant 0 : index
    %6 = vector.load %arg3[%c0_5, %c0_6] : memref<1x16xf32, #tpu.memory_space<vmem>>, vector<1x16xf32>
    %7 = vector.broadcast %6 : vector<1x16xf32> to vector<256x16xf32>
    %8 = arith.mulf %5, %7 : vector<256x16xf32>
    %c0_7 = arith.constant 0 : index
    %c0_8 = arith.constant 0 : index
    %9 = vector.load %arg4[%c0_7, %c0_8] : memref<1x16xf32, #tpu.memory_space<vmem>>, vector<1x16xf32>
    %10 = vector.broadcast %9 : vector<1x16xf32> to vector<256x16xf32>
    %11 = arith.addf %8, %10 : vector<256x16xf32>
    %cst_9 = arith.constant 0.000000e+00 : f32
    %12 = vector.broadcast %cst_9 : f32 to vector<256x16xf32>
    %13 = arith.maximumf %11, %12 : vector<256x16xf32>
    %14 = arith.truncf %13 : vector<256x16xf32> to vector<256x16xbf16>
    %cst_10 = arith.constant 0.000000e+00 : bf16
    %15 = vector.broadcast %cst_10 : bf16 to vector<1x18x16xbf16>
    %cst_11 = arith.constant 0.000000e+00 : bf16
    %16 = vector.broadcast %cst_11 : bf16 to vector<18x1x16xbf16>
    %c0_12 = arith.constant 0 : index
    %c0_13 = arith.constant 0 : index
    %c0_14 = arith.constant 0 : index
    %17 = vector.load %arg15[%c0_12, %c0_13, %c0_14] : memref<18x18x16xbf16, #tpu.memory_space<vmem>>, vector<1x18x16xbf16>
    tpu.vector_store %arg15[%c0_12, %c0_13, %c0_14], %15 {strides = array<i32>} : memref<18x18x16xbf16, #tpu.memory_space<vmem>>, vector<1x18x16xbf16>,
    %c17 = arith.constant 17 : index
    %c0_15 = arith.constant 0 : index
    %c0_16 = arith.constant 0 : index
    %18 = vector.load %arg15[%c17, %c0_15, %c0_16] : memref<18x18x16xbf16, #tpu.memory_space<vmem>>, vector<1x18x16xbf16>
    tpu.vector_store %arg15[%c17, %c0_15, %c0_16], %15 {strides = array<i32>} : memref<18x18x16xbf16, #tpu.memory_space<vmem>>, vector<1x18x16xbf16>,
    %c0_17 = arith.constant 0 : index
    %c0_18 = arith.constant 0 : index
    %c0_19 = arith.constant 0 : index
    %19 = vector.load %arg15[%c0_17, %c0_18, %c0_19] : memref<18x18x16xbf16, #tpu.memory_space<vmem>>, vector<18x1x16xbf16>
    tpu.vector_store %arg15[%c0_17, %c0_18, %c0_19], %16 {strides = array<i32>} : memref<18x18x16xbf16, #tpu.memory_space<vmem>>, vector<18x1x16xbf16>,
    %c0_20 = arith.constant 0 : index
    %c17_21 = arith.constant 17 : index
    %c0_22 = arith.constant 0 : index
    %20 = vector.load %arg15[%c0_20, %c17_21, %c0_22] : memref<18x18x16xbf16, #tpu.memory_space<vmem>>, vector<18x1x16xbf16>
    tpu.vector_store %arg15[%c0_20, %c17_21, %c0_22], %16 {strides = array<i32>} : memref<18x18x16xbf16, #tpu.memory_space<vmem>>, vector<18x1x16xbf16>,
    %21 = vector.shape_cast %14 : vector<256x16xbf16> to vector<16x16x16xbf16>
    %c1 = arith.constant 1 : index
    %c1_23 = arith.constant 1 : index
    %c0_24 = arith.constant 0 : index
    %22 = vector.load %arg15[%c1, %c1_23, %c0_24] : memref<18x18x16xbf16, #tpu.memory_space<vmem>>, vector<16x16x16xbf16>
    tpu.vector_store %arg15[%c1, %c1_23, %c0_24], %21 {strides = array<i32>} : memref<18x18x16xbf16, #tpu.memory_space<vmem>>, vector<16x16x16xbf16>,
    %c0_25 = arith.constant 0 : index
    %c0_26 = arith.constant 0 : index
    %c0_27 = arith.constant 0 : index
    %23 = vector.load %arg15[%c0_25, %c0_26, %c0_27] : memref<18x18x16xbf16, #tpu.memory_space<vmem>>, vector<18x18x16xbf16>
    %24 = vector.extract_strided_slice %23 {offsets = [0, 0, 0], sizes = [16, 16, 16], strides = [1, 1, 1]} : vector<18x18x16xbf16> to vector<16x16x16xbf16>
    %25 = vector.shape_cast %24 : vector<16x16x16xbf16> to vector<256x16xbf16>
    %c0_28 = arith.constant 0 : index
    %c0_29 = arith.constant 0 : index
    %26 = vector.load %arg16[%c0_28, %c0_29] : memref<256x144xbf16, #tpu.memory_space<vmem>>, vector<256x16xbf16>
    tpu.vector_store %arg16[%c0_28, %c0_29], %25 {strides = array<i32>} : memref<256x144xbf16, #tpu.memory_space<vmem>>, vector<256x16xbf16>,
    %27 = vector.extract_strided_slice %23 {offsets = [0, 1, 0], sizes = [16, 16, 16], strides = [1, 1, 1]} : vector<18x18x16xbf16> to vector<16x16x16xbf16>
    %28 = vector.shape_cast %27 : vector<16x16x16xbf16> to vector<256x16xbf16>
    %c0_30 = arith.constant 0 : index
    %c16 = arith.constant 16 : index
    %29 = vector.load %arg16[%c0_30, %c16] : memref<256x144xbf16, #tpu.memory_space<vmem>>, vector<256x16xbf16>
    tpu.vector_store %arg16[%c0_30, %c16], %28 {strides = array<i32>} : memref<256x144xbf16, #tpu.memory_space<vmem>>, vector<256x16xbf16>,
    %30 = vector.extract_strided_slice %23 {offsets = [0, 2, 0], sizes = [16, 16, 16], strides = [1, 1, 1]} : vector<18x18x16xbf16> to vector<16x16x16xbf16>
    %31 = vector.shape_cast %30 : vector<16x16x16xbf16> to vector<256x16xbf16>
    %c0_31 = arith.constant 0 : index
    %c32 = arith.constant 32 : index
    %32 = vector.load %arg16[%c0_31, %c32] : memref<256x144xbf16, #tpu.memory_space<vmem>>, vector<256x16xbf16>
    tpu.vector_store %arg16[%c0_31, %c32], %31 {strides = array<i32>} : memref<256x144xbf16, #tpu.memory_space<vmem>>, vector<256x16xbf16>,
    %33 = vector.extract_strided_slice %23 {offsets = [1, 0, 0], sizes = [16, 16, 16], strides = [1, 1, 1]} : vector<18x18x16xbf16> to vector<16x16x16xbf16>
    %34 = vector.shape_cast %33 : vector<16x16x16xbf16> to vector<256x16xbf16>
    %c0_32 = arith.constant 0 : index
    %c48 = arith.constant 48 : index
    %35 = vector.load %arg16[%c0_32, %c48] : memref<256x144xbf16, #tpu.memory_space<vmem>>, vector<256x16xbf16>
    tpu.vector_store %arg16[%c0_32, %c48], %34 {strides = array<i32>} : memref<256x144xbf16, #tpu.memory_space<vmem>>, vector<256x16xbf16>,
    %36 = vector.extract_strided_slice %23 {offsets = [1, 1, 0], sizes = [16, 16, 16], strides = [1, 1, 1]} : vector<18x18x16xbf16> to vector<16x16x16xbf16>
    %37 = vector.shape_cast %36 : vector<16x16x16xbf16> to vector<256x16xbf16>
    %c0_33 = arith.constant 0 : index
    %c64 = arith.constant 64 : index
    %38 = vector.load %arg16[%c0_33, %c64] : memref<256x144xbf16, #tpu.memory_space<vmem>>, vector<256x16xbf16>
    tpu.vector_store %arg16[%c0_33, %c64], %37 {strides = array<i32>} : memref<256x144xbf16, #tpu.memory_space<vmem>>, vector<256x16xbf16>,
    %39 = vector.extract_strided_slice %23 {offsets = [1, 2, 0], sizes = [16, 16, 16], strides = [1, 1, 1]} : vector<18x18x16xbf16> to vector<16x16x16xbf16>
    %40 = vector.shape_cast %39 : vector<16x16x16xbf16> to vector<256x16xbf16>
    %c0_34 = arith.constant 0 : index
    %c80 = arith.constant 80 : index
    %41 = vector.load %arg16[%c0_34, %c80] : memref<256x144xbf16, #tpu.memory_space<vmem>>, vector<256x16xbf16>
    tpu.vector_store %arg16[%c0_34, %c80], %40 {strides = array<i32>} : memref<256x144xbf16, #tpu.memory_space<vmem>>, vector<256x16xbf16>,
    %42 = vector.extract_strided_slice %23 {offsets = [2, 0, 0], sizes = [16, 16, 16], strides = [1, 1, 1]} : vector<18x18x16xbf16> to vector<16x16x16xbf16>
    %43 = vector.shape_cast %42 : vector<16x16x16xbf16> to vector<256x16xbf16>
    %c0_35 = arith.constant 0 : index
    %c96 = arith.constant 96 : index
    %44 = vector.load %arg16[%c0_35, %c96] : memref<256x144xbf16, #tpu.memory_space<vmem>>, vector<256x16xbf16>
    tpu.vector_store %arg16[%c0_35, %c96], %43 {strides = array<i32>} : memref<256x144xbf16, #tpu.memory_space<vmem>>, vector<256x16xbf16>,
    %45 = vector.extract_strided_slice %23 {offsets = [2, 1, 0], sizes = [16, 16, 16], strides = [1, 1, 1]} : vector<18x18x16xbf16> to vector<16x16x16xbf16>
    %46 = vector.shape_cast %45 : vector<16x16x16xbf16> to vector<256x16xbf16>
    %c0_36 = arith.constant 0 : index
    %c112 = arith.constant 112 : index
    %47 = vector.load %arg16[%c0_36, %c112] : memref<256x144xbf16, #tpu.memory_space<vmem>>, vector<256x16xbf16>
    tpu.vector_store %arg16[%c0_36, %c112], %46 {strides = array<i32>} : memref<256x144xbf16, #tpu.memory_space<vmem>>, vector<256x16xbf16>,
    %48 = vector.extract_strided_slice %23 {offsets = [2, 2, 0], sizes = [16, 16, 16], strides = [1, 1, 1]} : vector<18x18x16xbf16> to vector<16x16x16xbf16>
    %49 = vector.shape_cast %48 : vector<16x16x16xbf16> to vector<256x16xbf16>
    %c0_37 = arith.constant 0 : index
    %c128 = arith.constant 128 : index
    %50 = vector.load %arg16[%c0_37, %c128] : memref<256x144xbf16, #tpu.memory_space<vmem>>, vector<256x16xbf16>
    tpu.vector_store %arg16[%c0_37, %c128], %49 {strides = array<i32>} : memref<256x144xbf16, #tpu.memory_space<vmem>>, vector<256x16xbf16>,
    %c0_38 = arith.constant 0 : index
    %c0_39 = arith.constant 0 : index
    %51 = vector.load %arg16[%c0_38, %c0_39] : memref<256x144xbf16, #tpu.memory_space<vmem>>, vector<256x144xbf16>
    %c0_40 = arith.constant 0 : index
    %c0_41 = arith.constant 0 : index
    %52 = vector.load %arg5[%c0_40, %c0_41] : memref<144x16xbf16, #tpu.memory_space<vmem>>, vector<144x16xbf16>
    %cst_42 = arith.constant dense<0.000000e+00> : vector<256x16xf32>
    %53 = tpu.matmul %51, %52, %cst_42 {dimension_numbers = #tpu.dot_dimension_numbers<[1], [0], [0], [1], [0, 0, 1, 1], [], []>} : vector<256x144xbf16>, vector<144x16xbf16>, vector<256x16xf32> -> vector<256x16xf32>
    %c0_43 = arith.constant 0 : index
    %c0_44 = arith.constant 0 : index
    %54 = vector.load %arg6[%c0_43, %c0_44] : memref<1x16xf32, #tpu.memory_space<vmem>>, vector<1x16xf32>
    %55 = vector.broadcast %54 : vector<1x16xf32> to vector<256x16xf32>
    %56 = arith.mulf %53, %55 : vector<256x16xf32>
    %c0_45 = arith.constant 0 : index
    %c0_46 = arith.constant 0 : index
    %57 = vector.load %arg7[%c0_45, %c0_46] : memref<1x16xf32, #tpu.memory_space<vmem>>, vector<1x16xf32>
    %58 = vector.broadcast %57 : vector<1x16xf32> to vector<256x16xf32>
    %59 = arith.addf %56, %58 : vector<256x16xf32>
    %cst_47 = arith.constant 0.000000e+00 : f32
    %60 = vector.broadcast %cst_47 : f32 to vector<256x16xf32>
    %61 = arith.maximumf %59, %60 : vector<256x16xf32>
    %62 = arith.truncf %61 : vector<256x16xf32> to vector<256x16xbf16>
    %c0_48 = arith.constant 0 : index
    %c0_49 = arith.constant 0 : index
    %63 = vector.load %arg8[%c0_48, %c0_49] : memref<16x64xbf16, #tpu.memory_space<vmem>>, vector<16x64xbf16>
    %cst_50 = arith.constant dense<0.000000e+00> : vector<256x64xf32>
    %64 = tpu.matmul %62, %63, %cst_50 {dimension_numbers = #tpu.dot_dimension_numbers<[1], [0], [0], [1], [0, 0, 1, 1], [], []>} : vector<256x16xbf16>, vector<16x64xbf16>, vector<256x64xf32> -> vector<256x64xf32>
    %c0_51 = arith.constant 0 : index
    %c0_52 = arith.constant 0 : index
    %65 = vector.load %arg9[%c0_51, %c0_52] : memref<1x64xf32, #tpu.memory_space<vmem>>, vector<1x64xf32>
    %66 = vector.broadcast %65 : vector<1x64xf32> to vector<256x64xf32>
    %67 = arith.mulf %64, %66 : vector<256x64xf32>
    %c0_53 = arith.constant 0 : index
    %c0_54 = arith.constant 0 : index
    %68 = vector.load %arg10[%c0_53, %c0_54] : memref<1x64xf32, #tpu.memory_space<vmem>>, vector<1x64xf32>
    %69 = vector.broadcast %68 : vector<1x64xf32> to vector<256x64xf32>
    %70 = arith.addf %67, %69 : vector<256x64xf32>
    %cst_55 = arith.constant dense<0.000000e+00> : vector<64xf32>
    %71 = vector.multi_reduction <add>, %70, %cst_55 [0] : vector<256x64xf32> to vector<64xf32>
    %72 = vector.shape_cast %71 : vector<64xf32> to vector<1x64xf32>
    %cst_56 = arith.constant 2.560000e+02 : f32
    %73 = vector.broadcast %cst_56 : f32 to vector<1x64xf32>
    %74 = arith.divf %72, %73 : vector<1x64xf32>
    %cst_57 = arith.constant dense<0xFF800000> : vector<64xf32>
    %75 = vector.multi_reduction <maximumf>, %70, %cst_57 [0] : vector<256x64xf32> to vector<64xf32>
    %76 = vector.shape_cast %75 : vector<64xf32> to vector<1x64xf32>
    %77 = tpu.concatenate %74, %76 in 0 : vector<1x64xf32>, vector<1x64xf32> -> vector<2x64xf32>
    %c0_58 = arith.constant 0 : index
    %c0_59 = arith.constant 0 : index
    %78 = vector.load %arg11[%c0_58, %c0_59] : memref<64x4xf32, #tpu.memory_space<vmem>>, vector<64x4xf32>
    %cst_60 = arith.constant dense<0.000000e+00> : vector<2x4xf32>
    %79 = tpu.matmul %77, %78, %cst_60 {dimension_numbers = #tpu.dot_dimension_numbers<[1], [0], [0], [1], [0, 0, 1, 1], [], []>} : vector<2x64xf32>, vector<64x4xf32>, vector<2x4xf32> -> vector<2x4xf32>
    %cst_61 = arith.constant 0.000000e+00 : f32
    %80 = vector.broadcast %cst_61 : f32 to vector<2x4xf32>
    %81 = arith.maximumf %79, %80 : vector<2x4xf32>
    %c0_62 = arith.constant 0 : index
    %c0_63 = arith.constant 0 : index
    %82 = vector.load %arg12[%c0_62, %c0_63] : memref<4x64xf32, #tpu.memory_space<vmem>>, vector<4x64xf32>
    %cst_64 = arith.constant dense<0.000000e+00> : vector<2x64xf32>
    %83 = tpu.matmul %81, %82, %cst_64 {dimension_numbers = #tpu.dot_dimension_numbers<[1], [0], [0], [1], [0, 0, 1, 1], [], []>} : vector<2x4xf32>, vector<4x64xf32>, vector<2x64xf32> -> vector<2x64xf32>
    %84 = vector.extract_strided_slice %83 {offsets = [0, 0], sizes = [1, 64], strides = [1, 1]} : vector<2x64xf32> to vector<1x64xf32>
    %85 = vector.extract_strided_slice %83 {offsets = [1, 0], sizes = [1, 64], strides = [1, 1]} : vector<2x64xf32> to vector<1x64xf32>
    %86 = arith.addf %84, %85 : vector<1x64xf32>
    %87 = arith.negf %86 : vector<1x64xf32>
    %88 = math.exp %87 : vector<1x64xf32>
    %cst_65 = arith.constant 1.000000e+00 : f32
    %89 = vector.broadcast %cst_65 : f32 to vector<1x64xf32>
    %90 = arith.addf %89, %88 : vector<1x64xf32>
    %91 = arith.divf %89, %90 : vector<1x64xf32>
    %92 = vector.broadcast %91 : vector<1x64xf32> to vector<256x64xf32>
    %93 = arith.mulf %70, %92 : vector<256x64xf32>
    %94 = vector.shape_cast %93 : vector<256x64xf32> to vector<16x16x64xf32>
    %cst_66 = arith.constant 0.000000e+00 : f32
    %95 = vector.broadcast %cst_66 : f32 to vector<2x3x22xf32>
    %cst_67 = arith.constant 0.000000e+00 : f32
    %96 = vector.broadcast %cst_67 : f32 to vector<2x22x3xf32>
    %c0_68 = arith.constant 0 : index
    %c0_69 = arith.constant 0 : index
    %c0_70 = arith.constant 0 : index
    %97 = vector.load %arg17[%c0_68, %c0_69, %c0_70] : memref<2x22x22xf32, #tpu.memory_space<vmem>>, vector<2x3x22xf32>
    tpu.vector_store %arg17[%c0_68, %c0_69, %c0_70], %95 {strides = array<i32>} : memref<2x22x22xf32, #tpu.memory_space<vmem>>, vector<2x3x22xf32>,
    %c0_71 = arith.constant 0 : index
    %c19 = arith.constant 19 : index
    %c0_72 = arith.constant 0 : index
    %98 = vector.load %arg17[%c0_71, %c19, %c0_72] : memref<2x22x22xf32, #tpu.memory_space<vmem>>, vector<2x3x22xf32>
    tpu.vector_store %arg17[%c0_71, %c19, %c0_72], %95 {strides = array<i32>} : memref<2x22x22xf32, #tpu.memory_space<vmem>>, vector<2x3x22xf32>,
    %c0_73 = arith.constant 0 : index
    %c0_74 = arith.constant 0 : index
    %c0_75 = arith.constant 0 : index
    %99 = vector.load %arg17[%c0_73, %c0_74, %c0_75] : memref<2x22x22xf32, #tpu.memory_space<vmem>>, vector<2x22x3xf32>
    tpu.vector_store %arg17[%c0_73, %c0_74, %c0_75], %96 {strides = array<i32>} : memref<2x22x22xf32, #tpu.memory_space<vmem>>, vector<2x22x3xf32>,
    %c0_76 = arith.constant 0 : index
    %c0_77 = arith.constant 0 : index
    %c19_78 = arith.constant 19 : index
    %100 = vector.load %arg17[%c0_76, %c0_77, %c19_78] : memref<2x22x22xf32, #tpu.memory_space<vmem>>, vector<2x22x3xf32>
    tpu.vector_store %arg17[%c0_76, %c0_77, %c19_78], %96 {strides = array<i32>} : memref<2x22x22xf32, #tpu.memory_space<vmem>>, vector<2x22x3xf32>,
    %cst_79 = arith.constant dense<0.000000e+00> : vector<16x16xf32>
    %101 = vector.multi_reduction <add>, %94, %cst_79 [2] : vector<16x16x64xf32> to vector<16x16xf32>
    %cst_80 = arith.constant 6.400000e+01 : f32
    %102 = vector.broadcast %cst_80 : f32 to vector<16x16xf32>
    %103 = arith.divf %101, %102 : vector<16x16xf32>
    %c0_81 = arith.constant 0 : index
    %c3 = arith.constant 3 : index
    %c3_82 = arith.constant 3 : index
    %104 = vector.load %arg17[%c0_81, %c3, %c3_82] : memref<2x22x22xf32, #tpu.memory_space<vmem>>, vector<1x16x16xf32>
    %105 = vector.shape_cast %104 : vector<1x16x16xf32> to vector<16x16xf32>
    %106 = vector.shape_cast %103 : vector<16x16xf32> to vector<1x16x16xf32>
    tpu.vector_store %arg17[%c0_81, %c3, %c3_82], %106 {strides = array<i32>} : memref<2x22x22xf32, #tpu.memory_space<vmem>>, vector<1x16x16xf32>,
    %cst_83 = arith.constant dense<0xFF800000> : vector<16x16xf32>
    %107 = vector.multi_reduction <maximumf>, %94, %cst_83 [2] : vector<16x16x64xf32> to vector<16x16xf32>
    %c1_84 = arith.constant 1 : index
    %c3_85 = arith.constant 3 : index
    %c3_86 = arith.constant 3 : index
    %108 = vector.load %arg17[%c1_84, %c3_85, %c3_86] : memref<2x22x22xf32, #tpu.memory_space<vmem>>, vector<1x16x16xf32>
    %109 = vector.shape_cast %108 : vector<1x16x16xf32> to vector<16x16xf32>
    %110 = vector.shape_cast %107 : vector<16x16xf32> to vector<1x16x16xf32>
    tpu.vector_store %arg17[%c1_84, %c3_85, %c3_86], %110 {strides = array<i32>} : memref<2x22x22xf32, #tpu.memory_space<vmem>>, vector<1x16x16xf32>,
    %c0_87 = arith.constant 0 : index
    %c0_88 = arith.constant 0 : index
    %c0_89 = arith.constant 0 : index
    %111 = vector.load %arg17[%c0_87, %c0_88, %c0_89] : memref<2x22x22xf32, #tpu.memory_space<vmem>>, vector<2x22x22xf32>
    %112 = vector.extract_strided_slice %111 {offsets = [0, 0, 0], sizes = [1, 22, 22], strides = [1, 1, 1]} : vector<2x22x22xf32> to vector<1x22x22xf32>
    %113 = vector.shape_cast %112 : vector<1x22x22xf32> to vector<22x22xf32>
    %114 = vector.extract_strided_slice %111 {offsets = [1, 0, 0], sizes = [1, 22, 22], strides = [1, 1, 1]} : vector<2x22x22xf32> to vector<1x22x22xf32>
    %115 = vector.shape_cast %114 : vector<1x22x22xf32> to vector<22x22xf32>
    %cst_90 = arith.constant 0.000000e+00 : f32
    %116 = vector.broadcast %cst_90 : f32 to vector<16x16xf32>
    %117 = vector.extract_strided_slice %113 {offsets = [0, 0], sizes = [16, 16], strides = [1, 1]} : vector<22x22xf32> to vector<16x16xf32>
    %c0_91 = arith.constant 0 : index
    %118 = memref.load %arg13[%c0_91] : memref<98xf32, #tpu.memory_space<smem>>
    %119 = vector.broadcast %118 : f32 to vector<16x16xf32>
    %120 = arith.mulf %117, %119 : vector<16x16xf32>
    %121 = vector.extract_strided_slice %115 {offsets = [0, 0], sizes = [16, 16], strides = [1, 1]} : vector<22x22xf32> to vector<16x16xf32>
    %c1_92 = arith.constant 1 : index
    %122 = memref.load %arg13[%c1_92] : memref<98xf32, #tpu.memory_space<smem>>
    %123 = vector.broadcast %122 : f32 to vector<16x16xf32>
    %124 = arith.mulf %121, %123 : vector<16x16xf32>
    %125 = arith.addf %120, %124 : vector<16x16xf32>
    %126 = arith.addf %116, %125 : vector<16x16xf32>
    %127 = vector.extract_strided_slice %113 {offsets = [0, 1], sizes = [16, 16], strides = [1, 1]} : vector<22x22xf32> to vector<16x16xf32>
    %c2 = arith.constant 2 : index
    %128 = memref.load %arg13[%c2] : memref<98xf32, #tpu.memory_space<smem>>
    %129 = vector.broadcast %128 : f32 to vector<16x16xf32>
    %130 = arith.mulf %127, %129 : vector<16x16xf32>
    %131 = vector.extract_strided_slice %115 {offsets = [0, 1], sizes = [16, 16], strides = [1, 1]} : vector<22x22xf32> to vector<16x16xf32>
    %c3_93 = arith.constant 3 : index
    %132 = memref.load %arg13[%c3_93] : memref<98xf32, #tpu.memory_space<smem>>
    %133 = vector.broadcast %132 : f32 to vector<16x16xf32>
    %134 = arith.mulf %131, %133 : vector<16x16xf32>
    %135 = arith.addf %130, %134 : vector<16x16xf32>
    %136 = arith.addf %126, %135 : vector<16x16xf32>
    %137 = vector.extract_strided_slice %113 {offsets = [0, 2], sizes = [16, 16], strides = [1, 1]} : vector<22x22xf32> to vector<16x16xf32>
    %c4 = arith.constant 4 : index
    %138 = memref.load %arg13[%c4] : memref<98xf32, #tpu.memory_space<smem>>
    %139 = vector.broadcast %138 : f32 to vector<16x16xf32>
    %140 = arith.mulf %137, %139 : vector<16x16xf32>
    %141 = vector.extract_strided_slice %115 {offsets = [0, 2], sizes = [16, 16], strides = [1, 1]} : vector<22x22xf32> to vector<16x16xf32>
    %c5 = arith.constant 5 : index
    %142 = memref.load %arg13[%c5] : memref<98xf32, #tpu.memory_space<smem>>
    %143 = vector.broadcast %142 : f32 to vector<16x16xf32>
    %144 = arith.mulf %141, %143 : vector<16x16xf32>
    %145 = arith.addf %140, %144 : vector<16x16xf32>
    %146 = arith.addf %136, %145 : vector<16x16xf32>
    %147 = vector.extract_strided_slice %113 {offsets = [0, 3], sizes = [16, 16], strides = [1, 1]} : vector<22x22xf32> to vector<16x16xf32>
    %c6 = arith.constant 6 : index
    %148 = memref.load %arg13[%c6] : memref<98xf32, #tpu.memory_space<smem>>
    %149 = vector.broadcast %148 : f32 to vector<16x16xf32>
    %150 = arith.mulf %147, %149 : vector<16x16xf32>
    %151 = vector.extract_strided_slice %115 {offsets = [0, 3], sizes = [16, 16], strides = [1, 1]} : vector<22x22xf32> to vector<16x16xf32>
    %c7 = arith.constant 7 : index
    %152 = memref.load %arg13[%c7] : memref<98xf32, #tpu.memory_space<smem>>
    %153 = vector.broadcast %152 : f32 to vector<16x16xf32>
    %154 = arith.mulf %151, %153 : vector<16x16xf32>
    %155 = arith.addf %150, %154 : vector<16x16xf32>
    %156 = arith.addf %146, %155 : vector<16x16xf32>
    %157 = vector.extract_strided_slice %113 {offsets = [0, 4], sizes = [16, 16], strides = [1, 1]} : vector<22x22xf32> to vector<16x16xf32>
    %c8 = arith.constant 8 : index
    %158 = memref.load %arg13[%c8] : memref<98xf32, #tpu.memory_space<smem>>
    %159 = vector.broadcast %158 : f32 to vector<16x16xf32>
    %160 = arith.mulf %157, %159 : vector<16x16xf32>
    %161 = vector.extract_strided_slice %115 {offsets = [0, 4], sizes = [16, 16], strides = [1, 1]} : vector<22x22xf32> to vector<16x16xf32>
    %c9 = arith.constant 9 : index
    %162 = memref.load %arg13[%c9] : memref<98xf32, #tpu.memory_space<smem>>
    %163 = vector.broadcast %162 : f32 to vector<16x16xf32>
    %164 = arith.mulf %161, %163 : vector<16x16xf32>
    %165 = arith.addf %160, %164 : vector<16x16xf32>
    %166 = arith.addf %156, %165 : vector<16x16xf32>
    %167 = vector.extract_strided_slice %113 {offsets = [0, 5], sizes = [16, 16], strides = [1, 1]} : vector<22x22xf32> to vector<16x16xf32>
    %c10 = arith.constant 10 : index
    %168 = memref.load %arg13[%c10] : memref<98xf32, #tpu.memory_space<smem>>
    %169 = vector.broadcast %168 : f32 to vector<16x16xf32>
    %170 = arith.mulf %167, %169 : vector<16x16xf32>
    %171 = vector.extract_strided_slice %115 {offsets = [0, 5], sizes = [16, 16], strides = [1, 1]} : vector<22x22xf32> to vector<16x16xf32>
    %c11 = arith.constant 11 : index
    %172 = memref.load %arg13[%c11] : memref<98xf32, #tpu.memory_space<smem>>
    %173 = vector.broadcast %172 : f32 to vector<16x16xf32>
    %174 = arith.mulf %171, %173 : vector<16x16xf32>
    %175 = arith.addf %170, %174 : vector<16x16xf32>
    %176 = arith.addf %166, %175 : vector<16x16xf32>
    %177 = vector.extract_strided_slice %113 {offsets = [0, 6], sizes = [16, 16], strides = [1, 1]} : vector<22x22xf32> to vector<16x16xf32>
    %c12 = arith.constant 12 : index
    %178 = memref.load %arg13[%c12] : memref<98xf32, #tpu.memory_space<smem>>
    %179 = vector.broadcast %178 : f32 to vector<16x16xf32>
    %180 = arith.mulf %177, %179 : vector<16x16xf32>
    %181 = vector.extract_strided_slice %115 {offsets = [0, 6], sizes = [16, 16], strides = [1, 1]} : vector<22x22xf32> to vector<16x16xf32>
    %c13 = arith.constant 13 : index
    %182 = memref.load %arg13[%c13] : memref<98xf32, #tpu.memory_space<smem>>
    %183 = vector.broadcast %182 : f32 to vector<16x16xf32>
    %184 = arith.mulf %181, %183 : vector<16x16xf32>
    %185 = arith.addf %180, %184 : vector<16x16xf32>
    %186 = arith.addf %176, %185 : vector<16x16xf32>
    %187 = vector.extract_strided_slice %113 {offsets = [1, 0], sizes = [16, 16], strides = [1, 1]} : vector<22x22xf32> to vector<16x16xf32>
    %c14 = arith.constant 14 : index
    %188 = memref.load %arg13[%c14] : memref<98xf32, #tpu.memory_space<smem>>
    %189 = vector.broadcast %188 : f32 to vector<16x16xf32>
    %190 = arith.mulf %187, %189 : vector<16x16xf32>
    %191 = vector.extract_strided_slice %115 {offsets = [1, 0], sizes = [16, 16], strides = [1, 1]} : vector<22x22xf32> to vector<16x16xf32>
    %c15 = arith.constant 15 : index
    %192 = memref.load %arg13[%c15] : memref<98xf32, #tpu.memory_space<smem>>
    %193 = vector.broadcast %192 : f32 to vector<16x16xf32>
    %194 = arith.mulf %191, %193 : vector<16x16xf32>
    %195 = arith.addf %190, %194 : vector<16x16xf32>
    %196 = arith.addf %186, %195 : vector<16x16xf32>
    %197 = vector.extract_strided_slice %113 {offsets = [1, 1], sizes = [16, 16], strides = [1, 1]} : vector<22x22xf32> to vector<16x16xf32>
    %c16_94 = arith.constant 16 : index
    %198 = memref.load %arg13[%c16_94] : memref<98xf32, #tpu.memory_space<smem>>
    %199 = vector.broadcast %198 : f32 to vector<16x16xf32>
    %200 = arith.mulf %197, %199 : vector<16x16xf32>
    %201 = vector.extract_strided_slice %115 {offsets = [1, 1], sizes = [16, 16], strides = [1, 1]} : vector<22x22xf32> to vector<16x16xf32>
    %c17_95 = arith.constant 17 : index
    %202 = memref.load %arg13[%c17_95] : memref<98xf32, #tpu.memory_space<smem>>
    %203 = vector.broadcast %202 : f32 to vector<16x16xf32>
    %204 = arith.mulf %201, %203 : vector<16x16xf32>
    %205 = arith.addf %200, %204 : vector<16x16xf32>
    %206 = arith.addf %196, %205 : vector<16x16xf32>
    %207 = vector.extract_strided_slice %113 {offsets = [1, 2], sizes = [16, 16], strides = [1, 1]} : vector<22x22xf32> to vector<16x16xf32>
    %c18 = arith.constant 18 : index
    %208 = memref.load %arg13[%c18] : memref<98xf32, #tpu.memory_space<smem>>
    %209 = vector.broadcast %208 : f32 to vector<16x16xf32>
    %210 = arith.mulf %207, %209 : vector<16x16xf32>
    %211 = vector.extract_strided_slice %115 {offsets = [1, 2], sizes = [16, 16], strides = [1, 1]} : vector<22x22xf32> to vector<16x16xf32>
    %c19_96 = arith.constant 19 : index
    %212 = memref.load %arg13[%c19_96] : memref<98xf32, #tpu.memory_space<smem>>
    %213 = vector.broadcast %212 : f32 to vector<16x16xf32>
    %214 = arith.mulf %211, %213 : vector<16x16xf32>
    %215 = arith.addf %210, %214 : vector<16x16xf32>
    %216 = arith.addf %206, %215 : vector<16x16xf32>
    %217 = vector.extract_strided_slice %113 {offsets = [1, 3], sizes = [16, 16], strides = [1, 1]} : vector<22x22xf32> to vector<16x16xf32>
    %c20 = arith.constant 20 : index
    %218 = memref.load %arg13[%c20] : memref<98xf32, #tpu.memory_space<smem>>
    %219 = vector.broadcast %218 : f32 to vector<16x16xf32>
    %220 = arith.mulf %217, %219 : vector<16x16xf32>
    %221 = vector.extract_strided_slice %115 {offsets = [1, 3], sizes = [16, 16], strides = [1, 1]} : vector<22x22xf32> to vector<16x16xf32>
    %c21 = arith.constant 21 : index
    %222 = memref.load %arg13[%c21] : memref<98xf32, #tpu.memory_space<smem>>
    %223 = vector.broadcast %222 : f32 to vector<16x16xf32>
    %224 = arith.mulf %221, %223 : vector<16x16xf32>
    %225 = arith.addf %220, %224 : vector<16x16xf32>
    %226 = arith.addf %216, %225 : vector<16x16xf32>
    %227 = vector.extract_strided_slice %113 {offsets = [1, 4], sizes = [16, 16], strides = [1, 1]} : vector<22x22xf32> to vector<16x16xf32>
    %c22 = arith.constant 22 : index
    %228 = memref.load %arg13[%c22] : memref<98xf32, #tpu.memory_space<smem>>
    %229 = vector.broadcast %228 : f32 to vector<16x16xf32>
    %230 = arith.mulf %227, %229 : vector<16x16xf32>
    %231 = vector.extract_strided_slice %115 {offsets = [1, 4], sizes = [16, 16], strides = [1, 1]} : vector<22x22xf32> to vector<16x16xf32>
    %c23 = arith.constant 23 : index
    %232 = memref.load %arg13[%c23] : memref<98xf32, #tpu.memory_space<smem>>
    %233 = vector.broadcast %232 : f32 to vector<16x16xf32>
    %234 = arith.mulf %231, %233 : vector<16x16xf32>
    %235 = arith.addf %230, %234 : vector<16x16xf32>
    %236 = arith.addf %226, %235 : vector<16x16xf32>
    %237 = vector.extract_strided_slice %113 {offsets = [1, 5], sizes = [16, 16], strides = [1, 1]} : vector<22x22xf32> to vector<16x16xf32>
    %c24 = arith.constant 24 : index
    %238 = memref.load %arg13[%c24] : memref<98xf32, #tpu.memory_space<smem>>
    %239 = vector.broadcast %238 : f32 to vector<16x16xf32>
    %240 = arith.mulf %237, %239 : vector<16x16xf32>
    %241 = vector.extract_strided_slice %115 {offsets = [1, 5], sizes = [16, 16], strides = [1, 1]} : vector<22x22xf32> to vector<16x16xf32>
    %c25 = arith.constant 25 : index
    %242 = memref.load %arg13[%c25] : memref<98xf32, #tpu.memory_space<smem>>
    %243 = vector.broadcast %242 : f32 to vector<16x16xf32>
    %244 = arith.mulf %241, %243 : vector<16x16xf32>
    %245 = arith.addf %240, %244 : vector<16x16xf32>
    %246 = arith.addf %236, %245 : vector<16x16xf32>
    %247 = vector.extract_strided_slice %113 {offsets = [1, 6], sizes = [16, 16], strides = [1, 1]} : vector<22x22xf32> to vector<16x16xf32>
    %c26 = arith.constant 26 : index
    %248 = memref.load %arg13[%c26] : memref<98xf32, #tpu.memory_space<smem>>
    %249 = vector.broadcast %248 : f32 to vector<16x16xf32>
    %250 = arith.mulf %247, %249 : vector<16x16xf32>
    %251 = vector.extract_strided_slice %115 {offsets = [1, 6], sizes = [16, 16], strides = [1, 1]} : vector<22x22xf32> to vector<16x16xf32>
    %c27 = arith.constant 27 : index
    %252 = memref.load %arg13[%c27] : memref<98xf32, #tpu.memory_space<smem>>
    %253 = vector.broadcast %252 : f32 to vector<16x16xf32>
    %254 = arith.mulf %251, %253 : vector<16x16xf32>
    %255 = arith.addf %250, %254 : vector<16x16xf32>
    %256 = arith.addf %246, %255 : vector<16x16xf32>
    %257 = vector.extract_strided_slice %113 {offsets = [2, 0], sizes = [16, 16], strides = [1, 1]} : vector<22x22xf32> to vector<16x16xf32>
    %c28 = arith.constant 28 : index
    %258 = memref.load %arg13[%c28] : memref<98xf32, #tpu.memory_space<smem>>
    %259 = vector.broadcast %258 : f32 to vector<16x16xf32>
    %260 = arith.mulf %257, %259 : vector<16x16xf32>
    %261 = vector.extract_strided_slice %115 {offsets = [2, 0], sizes = [16, 16], strides = [1, 1]} : vector<22x22xf32> to vector<16x16xf32>
    %c29 = arith.constant 29 : index
    %262 = memref.load %arg13[%c29] : memref<98xf32, #tpu.memory_space<smem>>
    %263 = vector.broadcast %262 : f32 to vector<16x16xf32>
    %264 = arith.mulf %261, %263 : vector<16x16xf32>
    %265 = arith.addf %260, %264 : vector<16x16xf32>
    %266 = arith.addf %256, %265 : vector<16x16xf32>
    %267 = vector.extract_strided_slice %113 {offsets = [2, 1], sizes = [16, 16], strides = [1, 1]} : vector<22x22xf32> to vector<16x16xf32>
    %c30 = arith.constant 30 : index
    %268 = memref.load %arg13[%c30] : memref<98xf32, #tpu.memory_space<smem>>
    %269 = vector.broadcast %268 : f32 to vector<16x16xf32>
    %270 = arith.mulf %267, %269 : vector<16x16xf32>
    %271 = vector.extract_strided_slice %115 {offsets = [2, 1], sizes = [16, 16], strides = [1, 1]} : vector<22x22xf32> to vector<16x16xf32>
    %c31 = arith.constant 31 : index
    %272 = memref.load %arg13[%c31] : memref<98xf32, #tpu.memory_space<smem>>
    %273 = vector.broadcast %272 : f32 to vector<16x16xf32>
    %274 = arith.mulf %271, %273 : vector<16x16xf32>
    %275 = arith.addf %270, %274 : vector<16x16xf32>
    %276 = arith.addf %266, %275 : vector<16x16xf32>
    %277 = vector.extract_strided_slice %113 {offsets = [2, 2], sizes = [16, 16], strides = [1, 1]} : vector<22x22xf32> to vector<16x16xf32>
    %c32_97 = arith.constant 32 : index
    %278 = memref.load %arg13[%c32_97] : memref<98xf32, #tpu.memory_space<smem>>
    %279 = vector.broadcast %278 : f32 to vector<16x16xf32>
    %280 = arith.mulf %277, %279 : vector<16x16xf32>
    %281 = vector.extract_strided_slice %115 {offsets = [2, 2], sizes = [16, 16], strides = [1, 1]} : vector<22x22xf32> to vector<16x16xf32>
    %c33 = arith.constant 33 : index
    %282 = memref.load %arg13[%c33] : memref<98xf32, #tpu.memory_space<smem>>
    %283 = vector.broadcast %282 : f32 to vector<16x16xf32>
    %284 = arith.mulf %281, %283 : vector<16x16xf32>
    %285 = arith.addf %280, %284 : vector<16x16xf32>
    %286 = arith.addf %276, %285 : vector<16x16xf32>
    %287 = vector.extract_strided_slice %113 {offsets = [2, 3], sizes = [16, 16], strides = [1, 1]} : vector<22x22xf32> to vector<16x16xf32>
    %c34 = arith.constant 34 : index
    %288 = memref.load %arg13[%c34] : memref<98xf32, #tpu.memory_space<smem>>
    %289 = vector.broadcast %288 : f32 to vector<16x16xf32>
    %290 = arith.mulf %287, %289 : vector<16x16xf32>
    %291 = vector.extract_strided_slice %115 {offsets = [2, 3], sizes = [16, 16], strides = [1, 1]} : vector<22x22xf32> to vector<16x16xf32>
    %c35 = arith.constant 35 : index
    %292 = memref.load %arg13[%c35] : memref<98xf32, #tpu.memory_space<smem>>
    %293 = vector.broadcast %292 : f32 to vector<16x16xf32>
    %294 = arith.mulf %291, %293 : vector<16x16xf32>
    %295 = arith.addf %290, %294 : vector<16x16xf32>
    %296 = arith.addf %286, %295 : vector<16x16xf32>
    %297 = vector.extract_strided_slice %113 {offsets = [2, 4], sizes = [16, 16], strides = [1, 1]} : vector<22x22xf32> to vector<16x16xf32>
    %c36 = arith.constant 36 : index
    %298 = memref.load %arg13[%c36] : memref<98xf32, #tpu.memory_space<smem>>
    %299 = vector.broadcast %298 : f32 to vector<16x16xf32>
    %300 = arith.mulf %297, %299 : vector<16x16xf32>
    %301 = vector.extract_strided_slice %115 {offsets = [2, 4], sizes = [16, 16], strides = [1, 1]} : vector<22x22xf32> to vector<16x16xf32>
    %c37 = arith.constant 37 : index
    %302 = memref.load %arg13[%c37] : memref<98xf32, #tpu.memory_space<smem>>
    %303 = vector.broadcast %302 : f32 to vector<16x16xf32>
    %304 = arith.mulf %301, %303 : vector<16x16xf32>
    %305 = arith.addf %300, %304 : vector<16x16xf32>
    %306 = arith.addf %296, %305 : vector<16x16xf32>
    %307 = vector.extract_strided_slice %113 {offsets = [2, 5], sizes = [16, 16], strides = [1, 1]} : vector<22x22xf32> to vector<16x16xf32>
    %c38 = arith.constant 38 : index
    %308 = memref.load %arg13[%c38] : memref<98xf32, #tpu.memory_space<smem>>
    %309 = vector.broadcast %308 : f32 to vector<16x16xf32>
    %310 = arith.mulf %307, %309 : vector<16x16xf32>
    %311 = vector.extract_strided_slice %115 {offsets = [2, 5], sizes = [16, 16], strides = [1, 1]} : vector<22x22xf32> to vector<16x16xf32>
    %c39 = arith.constant 39 : index
    %312 = memref.load %arg13[%c39] : memref<98xf32, #tpu.memory_space<smem>>
    %313 = vector.broadcast %312 : f32 to vector<16x16xf32>
    %314 = arith.mulf %311, %313 : vector<16x16xf32>
    %315 = arith.addf %310, %314 : vector<16x16xf32>
    %316 = arith.addf %306, %315 : vector<16x16xf32>
    %317 = vector.extract_strided_slice %113 {offsets = [2, 6], sizes = [16, 16], strides = [1, 1]} : vector<22x22xf32> to vector<16x16xf32>
    %c40 = arith.constant 40 : index
    %318 = memref.load %arg13[%c40] : memref<98xf32, #tpu.memory_space<smem>>
    %319 = vector.broadcast %318 : f32 to vector<16x16xf32>
    %320 = arith.mulf %317, %319 : vector<16x16xf32>
    %321 = vector.extract_strided_slice %115 {offsets = [2, 6], sizes = [16, 16], strides = [1, 1]} : vector<22x22xf32> to vector<16x16xf32>
    %c41 = arith.constant 41 : index
    %322 = memref.load %arg13[%c41] : memref<98xf32, #tpu.memory_space<smem>>
    %323 = vector.broadcast %322 : f32 to vector<16x16xf32>
    %324 = arith.mulf %321, %323 : vector<16x16xf32>
    %325 = arith.addf %320, %324 : vector<16x16xf32>
    %326 = arith.addf %316, %325 : vector<16x16xf32>
    %327 = vector.extract_strided_slice %113 {offsets = [3, 0], sizes = [16, 16], strides = [1, 1]} : vector<22x22xf32> to vector<16x16xf32>
    %c42 = arith.constant 42 : index
    %328 = memref.load %arg13[%c42] : memref<98xf32, #tpu.memory_space<smem>>
    %329 = vector.broadcast %328 : f32 to vector<16x16xf32>
    %330 = arith.mulf %327, %329 : vector<16x16xf32>
    %331 = vector.extract_strided_slice %115 {offsets = [3, 0], sizes = [16, 16], strides = [1, 1]} : vector<22x22xf32> to vector<16x16xf32>
    %c43 = arith.constant 43 : index
    %332 = memref.load %arg13[%c43] : memref<98xf32, #tpu.memory_space<smem>>
    %333 = vector.broadcast %332 : f32 to vector<16x16xf32>
    %334 = arith.mulf %331, %333 : vector<16x16xf32>
    %335 = arith.addf %330, %334 : vector<16x16xf32>
    %336 = arith.addf %326, %335 : vector<16x16xf32>
    %337 = vector.extract_strided_slice %113 {offsets = [3, 1], sizes = [16, 16], strides = [1, 1]} : vector<22x22xf32> to vector<16x16xf32>
    %c44 = arith.constant 44 : index
    %338 = memref.load %arg13[%c44] : memref<98xf32, #tpu.memory_space<smem>>
    %339 = vector.broadcast %338 : f32 to vector<16x16xf32>
    %340 = arith.mulf %337, %339 : vector<16x16xf32>
    %341 = vector.extract_strided_slice %115 {offsets = [3, 1], sizes = [16, 16], strides = [1, 1]} : vector<22x22xf32> to vector<16x16xf32>
    %c45 = arith.constant 45 : index
    %342 = memref.load %arg13[%c45] : memref<98xf32, #tpu.memory_space<smem>>
    %343 = vector.broadcast %342 : f32 to vector<16x16xf32>
    %344 = arith.mulf %341, %343 : vector<16x16xf32>
    %345 = arith.addf %340, %344 : vector<16x16xf32>
    %346 = arith.addf %336, %345 : vector<16x16xf32>
    %347 = vector.extract_strided_slice %113 {offsets = [3, 2], sizes = [16, 16], strides = [1, 1]} : vector<22x22xf32> to vector<16x16xf32>
    %c46 = arith.constant 46 : index
    %348 = memref.load %arg13[%c46] : memref<98xf32, #tpu.memory_space<smem>>
    %349 = vector.broadcast %348 : f32 to vector<16x16xf32>
    %350 = arith.mulf %347, %349 : vector<16x16xf32>
    %351 = vector.extract_strided_slice %115 {offsets = [3, 2], sizes = [16, 16], strides = [1, 1]} : vector<22x22xf32> to vector<16x16xf32>
    %c47 = arith.constant 47 : index
    %352 = memref.load %arg13[%c47] : memref<98xf32, #tpu.memory_space<smem>>
    %353 = vector.broadcast %352 : f32 to vector<16x16xf32>
    %354 = arith.mulf %351, %353 : vector<16x16xf32>
    %355 = arith.addf %350, %354 : vector<16x16xf32>
    %356 = arith.addf %346, %355 : vector<16x16xf32>
    %357 = vector.extract_strided_slice %113 {offsets = [3, 3], sizes = [16, 16], strides = [1, 1]} : vector<22x22xf32> to vector<16x16xf32>
    %c48_98 = arith.constant 48 : index
    %358 = memref.load %arg13[%c48_98] : memref<98xf32, #tpu.memory_space<smem>>
    %359 = vector.broadcast %358 : f32 to vector<16x16xf32>
    %360 = arith.mulf %357, %359 : vector<16x16xf32>
    %361 = vector.extract_strided_slice %115 {offsets = [3, 3], sizes = [16, 16], strides = [1, 1]} : vector<22x22xf32> to vector<16x16xf32>
    %c49 = arith.constant 49 : index
    %362 = memref.load %arg13[%c49] : memref<98xf32, #tpu.memory_space<smem>>
    %363 = vector.broadcast %362 : f32 to vector<16x16xf32>
    %364 = arith.mulf %361, %363 : vector<16x16xf32>
    %365 = arith.addf %360, %364 : vector<16x16xf32>
    %366 = arith.addf %356, %365 : vector<16x16xf32>
    %367 = vector.extract_strided_slice %113 {offsets = [3, 4], sizes = [16, 16], strides = [1, 1]} : vector<22x22xf32> to vector<16x16xf32>
    %c50 = arith.constant 50 : index
    %368 = memref.load %arg13[%c50] : memref<98xf32, #tpu.memory_space<smem>>
    %369 = vector.broadcast %368 : f32 to vector<16x16xf32>
    %370 = arith.mulf %367, %369 : vector<16x16xf32>
    %371 = vector.extract_strided_slice %115 {offsets = [3, 4], sizes = [16, 16], strides = [1, 1]} : vector<22x22xf32> to vector<16x16xf32>
    %c51 = arith.constant 51 : index
    %372 = memref.load %arg13[%c51] : memref<98xf32, #tpu.memory_space<smem>>
    %373 = vector.broadcast %372 : f32 to vector<16x16xf32>
    %374 = arith.mulf %371, %373 : vector<16x16xf32>
    %375 = arith.addf %370, %374 : vector<16x16xf32>
    %376 = arith.addf %366, %375 : vector<16x16xf32>
    %377 = vector.extract_strided_slice %113 {offsets = [3, 5], sizes = [16, 16], strides = [1, 1]} : vector<22x22xf32> to vector<16x16xf32>
    %c52 = arith.constant 52 : index
    %378 = memref.load %arg13[%c52] : memref<98xf32, #tpu.memory_space<smem>>
    %379 = vector.broadcast %378 : f32 to vector<16x16xf32>
    %380 = arith.mulf %377, %379 : vector<16x16xf32>
    %381 = vector.extract_strided_slice %115 {offsets = [3, 5], sizes = [16, 16], strides = [1, 1]} : vector<22x22xf32> to vector<16x16xf32>
    %c53 = arith.constant 53 : index
    %382 = memref.load %arg13[%c53] : memref<98xf32, #tpu.memory_space<smem>>
    %383 = vector.broadcast %382 : f32 to vector<16x16xf32>
    %384 = arith.mulf %381, %383 : vector<16x16xf32>
    %385 = arith.addf %380, %384 : vector<16x16xf32>
    %386 = arith.addf %376, %385 : vector<16x16xf32>
    %387 = vector.extract_strided_slice %113 {offsets = [3, 6], sizes = [16, 16], strides = [1, 1]} : vector<22x22xf32> to vector<16x16xf32>
    %c54 = arith.constant 54 : index
    %388 = memref.load %arg13[%c54] : memref<98xf32, #tpu.memory_space<smem>>
    %389 = vector.broadcast %388 : f32 to vector<16x16xf32>
    %390 = arith.mulf %387, %389 : vector<16x16xf32>
    %391 = vector.extract_strided_slice %115 {offsets = [3, 6], sizes = [16, 16], strides = [1, 1]} : vector<22x22xf32> to vector<16x16xf32>
    %c55 = arith.constant 55 : index
    %392 = memref.load %arg13[%c55] : memref<98xf32, #tpu.memory_space<smem>>
    %393 = vector.broadcast %392 : f32 to vector<16x16xf32>
    %394 = arith.mulf %391, %393 : vector<16x16xf32>
    %395 = arith.addf %390, %394 : vector<16x16xf32>
    %396 = arith.addf %386, %395 : vector<16x16xf32>
    %397 = vector.extract_strided_slice %113 {offsets = [4, 0], sizes = [16, 16], strides = [1, 1]} : vector<22x22xf32> to vector<16x16xf32>
    %c56 = arith.constant 56 : index
    %398 = memref.load %arg13[%c56] : memref<98xf32, #tpu.memory_space<smem>>
    %399 = vector.broadcast %398 : f32 to vector<16x16xf32>
    %400 = arith.mulf %397, %399 : vector<16x16xf32>
    %401 = vector.extract_strided_slice %115 {offsets = [4, 0], sizes = [16, 16], strides = [1, 1]} : vector<22x22xf32> to vector<16x16xf32>
    %c57 = arith.constant 57 : index
    %402 = memref.load %arg13[%c57] : memref<98xf32, #tpu.memory_space<smem>>
    %403 = vector.broadcast %402 : f32 to vector<16x16xf32>
    %404 = arith.mulf %401, %403 : vector<16x16xf32>
    %405 = arith.addf %400, %404 : vector<16x16xf32>
    %406 = arith.addf %396, %405 : vector<16x16xf32>
    %407 = vector.extract_strided_slice %113 {offsets = [4, 1], sizes = [16, 16], strides = [1, 1]} : vector<22x22xf32> to vector<16x16xf32>
    %c58 = arith.constant 58 : index
    %408 = memref.load %arg13[%c58] : memref<98xf32, #tpu.memory_space<smem>>
    %409 = vector.broadcast %408 : f32 to vector<16x16xf32>
    %410 = arith.mulf %407, %409 : vector<16x16xf32>
    %411 = vector.extract_strided_slice %115 {offsets = [4, 1], sizes = [16, 16], strides = [1, 1]} : vector<22x22xf32> to vector<16x16xf32>
    %c59 = arith.constant 59 : index
    %412 = memref.load %arg13[%c59] : memref<98xf32, #tpu.memory_space<smem>>
    %413 = vector.broadcast %412 : f32 to vector<16x16xf32>
    %414 = arith.mulf %411, %413 : vector<16x16xf32>
    %415 = arith.addf %410, %414 : vector<16x16xf32>
    %416 = arith.addf %406, %415 : vector<16x16xf32>
    %417 = vector.extract_strided_slice %113 {offsets = [4, 2], sizes = [16, 16], strides = [1, 1]} : vector<22x22xf32> to vector<16x16xf32>
    %c60 = arith.constant 60 : index
    %418 = memref.load %arg13[%c60] : memref<98xf32, #tpu.memory_space<smem>>
    %419 = vector.broadcast %418 : f32 to vector<16x16xf32>
    %420 = arith.mulf %417, %419 : vector<16x16xf32>
    %421 = vector.extract_strided_slice %115 {offsets = [4, 2], sizes = [16, 16], strides = [1, 1]} : vector<22x22xf32> to vector<16x16xf32>
    %c61 = arith.constant 61 : index
    %422 = memref.load %arg13[%c61] : memref<98xf32, #tpu.memory_space<smem>>
    %423 = vector.broadcast %422 : f32 to vector<16x16xf32>
    %424 = arith.mulf %421, %423 : vector<16x16xf32>
    %425 = arith.addf %420, %424 : vector<16x16xf32>
    %426 = arith.addf %416, %425 : vector<16x16xf32>
    %427 = vector.extract_strided_slice %113 {offsets = [4, 3], sizes = [16, 16], strides = [1, 1]} : vector<22x22xf32> to vector<16x16xf32>
    %c62 = arith.constant 62 : index
    %428 = memref.load %arg13[%c62] : memref<98xf32, #tpu.memory_space<smem>>
    %429 = vector.broadcast %428 : f32 to vector<16x16xf32>
    %430 = arith.mulf %427, %429 : vector<16x16xf32>
    %431 = vector.extract_strided_slice %115 {offsets = [4, 3], sizes = [16, 16], strides = [1, 1]} : vector<22x22xf32> to vector<16x16xf32>
    %c63 = arith.constant 63 : index
    %432 = memref.load %arg13[%c63] : memref<98xf32, #tpu.memory_space<smem>>
    %433 = vector.broadcast %432 : f32 to vector<16x16xf32>
    %434 = arith.mulf %431, %433 : vector<16x16xf32>
    %435 = arith.addf %430, %434 : vector<16x16xf32>
    %436 = arith.addf %426, %435 : vector<16x16xf32>
    %437 = vector.extract_strided_slice %113 {offsets = [4, 4], sizes = [16, 16], strides = [1, 1]} : vector<22x22xf32> to vector<16x16xf32>
    %c64_99 = arith.constant 64 : index
    %438 = memref.load %arg13[%c64_99] : memref<98xf32, #tpu.memory_space<smem>>
    %439 = vector.broadcast %438 : f32 to vector<16x16xf32>
    %440 = arith.mulf %437, %439 : vector<16x16xf32>
    %441 = vector.extract_strided_slice %115 {offsets = [4, 4], sizes = [16, 16], strides = [1, 1]} : vector<22x22xf32> to vector<16x16xf32>
    %c65 = arith.constant 65 : index
    %442 = memref.load %arg13[%c65] : memref<98xf32, #tpu.memory_space<smem>>
    %443 = vector.broadcast %442 : f32 to vector<16x16xf32>
    %444 = arith.mulf %441, %443 : vector<16x16xf32>
    %445 = arith.addf %440, %444 : vector<16x16xf32>
    %446 = arith.addf %436, %445 : vector<16x16xf32>
    %447 = vector.extract_strided_slice %113 {offsets = [4, 5], sizes = [16, 16], strides = [1, 1]} : vector<22x22xf32> to vector<16x16xf32>
    %c66 = arith.constant 66 : index
    %448 = memref.load %arg13[%c66] : memref<98xf32, #tpu.memory_space<smem>>
    %449 = vector.broadcast %448 : f32 to vector<16x16xf32>
    %450 = arith.mulf %447, %449 : vector<16x16xf32>
    %451 = vector.extract_strided_slice %115 {offsets = [4, 5], sizes = [16, 16], strides = [1, 1]} : vector<22x22xf32> to vector<16x16xf32>
    %c67 = arith.constant 67 : index
    %452 = memref.load %arg13[%c67] : memref<98xf32, #tpu.memory_space<smem>>
    %453 = vector.broadcast %452 : f32 to vector<16x16xf32>
    %454 = arith.mulf %451, %453 : vector<16x16xf32>
    %455 = arith.addf %450, %454 : vector<16x16xf32>
    %456 = arith.addf %446, %455 : vector<16x16xf32>
    %457 = vector.extract_strided_slice %113 {offsets = [4, 6], sizes = [16, 16], strides = [1, 1]} : vector<22x22xf32> to vector<16x16xf32>
    %c68 = arith.constant 68 : index
    %458 = memref.load %arg13[%c68] : memref<98xf32, #tpu.memory_space<smem>>
    %459 = vector.broadcast %458 : f32 to vector<16x16xf32>
    %460 = arith.mulf %457, %459 : vector<16x16xf32>
    %461 = vector.extract_strided_slice %115 {offsets = [4, 6], sizes = [16, 16], strides = [1, 1]} : vector<22x22xf32> to vector<16x16xf32>
    %c69 = arith.constant 69 : index
    %462 = memref.load %arg13[%c69] : memref<98xf32, #tpu.memory_space<smem>>
    %463 = vector.broadcast %462 : f32 to vector<16x16xf32>
    %464 = arith.mulf %461, %463 : vector<16x16xf32>
    %465 = arith.addf %460, %464 : vector<16x16xf32>
    %466 = arith.addf %456, %465 : vector<16x16xf32>
    %467 = vector.extract_strided_slice %113 {offsets = [5, 0], sizes = [16, 16], strides = [1, 1]} : vector<22x22xf32> to vector<16x16xf32>
    %c70 = arith.constant 70 : index
    %468 = memref.load %arg13[%c70] : memref<98xf32, #tpu.memory_space<smem>>
    %469 = vector.broadcast %468 : f32 to vector<16x16xf32>
    %470 = arith.mulf %467, %469 : vector<16x16xf32>
    %471 = vector.extract_strided_slice %115 {offsets = [5, 0], sizes = [16, 16], strides = [1, 1]} : vector<22x22xf32> to vector<16x16xf32>
    %c71 = arith.constant 71 : index
    %472 = memref.load %arg13[%c71] : memref<98xf32, #tpu.memory_space<smem>>
    %473 = vector.broadcast %472 : f32 to vector<16x16xf32>
    %474 = arith.mulf %471, %473 : vector<16x16xf32>
    %475 = arith.addf %470, %474 : vector<16x16xf32>
    %476 = arith.addf %466, %475 : vector<16x16xf32>
    %477 = vector.extract_strided_slice %113 {offsets = [5, 1], sizes = [16, 16], strides = [1, 1]} : vector<22x22xf32> to vector<16x16xf32>
    %c72 = arith.constant 72 : index
    %478 = memref.load %arg13[%c72] : memref<98xf32, #tpu.memory_space<smem>>
    %479 = vector.broadcast %478 : f32 to vector<16x16xf32>
    %480 = arith.mulf %477, %479 : vector<16x16xf32>
    %481 = vector.extract_strided_slice %115 {offsets = [5, 1], sizes = [16, 16], strides = [1, 1]} : vector<22x22xf32> to vector<16x16xf32>
    %c73 = arith.constant 73 : index
    %482 = memref.load %arg13[%c73] : memref<98xf32, #tpu.memory_space<smem>>
    %483 = vector.broadcast %482 : f32 to vector<16x16xf32>
    %484 = arith.mulf %481, %483 : vector<16x16xf32>
    %485 = arith.addf %480, %484 : vector<16x16xf32>
    %486 = arith.addf %476, %485 : vector<16x16xf32>
    %487 = vector.extract_strided_slice %113 {offsets = [5, 2], sizes = [16, 16], strides = [1, 1]} : vector<22x22xf32> to vector<16x16xf32>
    %c74 = arith.constant 74 : index
    %488 = memref.load %arg13[%c74] : memref<98xf32, #tpu.memory_space<smem>>
    %489 = vector.broadcast %488 : f32 to vector<16x16xf32>
    %490 = arith.mulf %487, %489 : vector<16x16xf32>
    %491 = vector.extract_strided_slice %115 {offsets = [5, 2], sizes = [16, 16], strides = [1, 1]} : vector<22x22xf32> to vector<16x16xf32>
    %c75 = arith.constant 75 : index
    %492 = memref.load %arg13[%c75] : memref<98xf32, #tpu.memory_space<smem>>
    %493 = vector.broadcast %492 : f32 to vector<16x16xf32>
    %494 = arith.mulf %491, %493 : vector<16x16xf32>
    %495 = arith.addf %490, %494 : vector<16x16xf32>
    %496 = arith.addf %486, %495 : vector<16x16xf32>
    %497 = vector.extract_strided_slice %113 {offsets = [5, 3], sizes = [16, 16], strides = [1, 1]} : vector<22x22xf32> to vector<16x16xf32>
    %c76 = arith.constant 76 : index
    %498 = memref.load %arg13[%c76] : memref<98xf32, #tpu.memory_space<smem>>
    %499 = vector.broadcast %498 : f32 to vector<16x16xf32>
    %500 = arith.mulf %497, %499 : vector<16x16xf32>
    %501 = vector.extract_strided_slice %115 {offsets = [5, 3], sizes = [16, 16], strides = [1, 1]} : vector<22x22xf32> to vector<16x16xf32>
    %c77 = arith.constant 77 : index
    %502 = memref.load %arg13[%c77] : memref<98xf32, #tpu.memory_space<smem>>
    %503 = vector.broadcast %502 : f32 to vector<16x16xf32>
    %504 = arith.mulf %501, %503 : vector<16x16xf32>
    %505 = arith.addf %500, %504 : vector<16x16xf32>
    %506 = arith.addf %496, %505 : vector<16x16xf32>
    %507 = vector.extract_strided_slice %113 {offsets = [5, 4], sizes = [16, 16], strides = [1, 1]} : vector<22x22xf32> to vector<16x16xf32>
    %c78 = arith.constant 78 : index
    %508 = memref.load %arg13[%c78] : memref<98xf32, #tpu.memory_space<smem>>
    %509 = vector.broadcast %508 : f32 to vector<16x16xf32>
    %510 = arith.mulf %507, %509 : vector<16x16xf32>
    %511 = vector.extract_strided_slice %115 {offsets = [5, 4], sizes = [16, 16], strides = [1, 1]} : vector<22x22xf32> to vector<16x16xf32>
    %c79 = arith.constant 79 : index
    %512 = memref.load %arg13[%c79] : memref<98xf32, #tpu.memory_space<smem>>
    %513 = vector.broadcast %512 : f32 to vector<16x16xf32>
    %514 = arith.mulf %511, %513 : vector<16x16xf32>
    %515 = arith.addf %510, %514 : vector<16x16xf32>
    %516 = arith.addf %506, %515 : vector<16x16xf32>
    %517 = vector.extract_strided_slice %113 {offsets = [5, 5], sizes = [16, 16], strides = [1, 1]} : vector<22x22xf32> to vector<16x16xf32>
    %c80_100 = arith.constant 80 : index
    %518 = memref.load %arg13[%c80_100] : memref<98xf32, #tpu.memory_space<smem>>
    %519 = vector.broadcast %518 : f32 to vector<16x16xf32>
    %520 = arith.mulf %517, %519 : vector<16x16xf32>
    %521 = vector.extract_strided_slice %115 {offsets = [5, 5], sizes = [16, 16], strides = [1, 1]} : vector<22x22xf32> to vector<16x16xf32>
    %c81 = arith.constant 81 : index
    %522 = memref.load %arg13[%c81] : memref<98xf32, #tpu.memory_space<smem>>
    %523 = vector.broadcast %522 : f32 to vector<16x16xf32>
    %524 = arith.mulf %521, %523 : vector<16x16xf32>
    %525 = arith.addf %520, %524 : vector<16x16xf32>
    %526 = arith.addf %516, %525 : vector<16x16xf32>
    %527 = vector.extract_strided_slice %113 {offsets = [5, 6], sizes = [16, 16], strides = [1, 1]} : vector<22x22xf32> to vector<16x16xf32>
    %c82 = arith.constant 82 : index
    %528 = memref.load %arg13[%c82] : memref<98xf32, #tpu.memory_space<smem>>
    %529 = vector.broadcast %528 : f32 to vector<16x16xf32>
    %530 = arith.mulf %527, %529 : vector<16x16xf32>
    %531 = vector.extract_strided_slice %115 {offsets = [5, 6], sizes = [16, 16], strides = [1, 1]} : vector<22x22xf32> to vector<16x16xf32>
    %c83 = arith.constant 83 : index
    %532 = memref.load %arg13[%c83] : memref<98xf32, #tpu.memory_space<smem>>
    %533 = vector.broadcast %532 : f32 to vector<16x16xf32>
    %534 = arith.mulf %531, %533 : vector<16x16xf32>
    %535 = arith.addf %530, %534 : vector<16x16xf32>
    %536 = arith.addf %526, %535 : vector<16x16xf32>
    %537 = vector.extract_strided_slice %113 {offsets = [6, 0], sizes = [16, 16], strides = [1, 1]} : vector<22x22xf32> to vector<16x16xf32>
    %c84 = arith.constant 84 : index
    %538 = memref.load %arg13[%c84] : memref<98xf32, #tpu.memory_space<smem>>
    %539 = vector.broadcast %538 : f32 to vector<16x16xf32>
    %540 = arith.mulf %537, %539 : vector<16x16xf32>
    %541 = vector.extract_strided_slice %115 {offsets = [6, 0], sizes = [16, 16], strides = [1, 1]} : vector<22x22xf32> to vector<16x16xf32>
    %c85 = arith.constant 85 : index
    %542 = memref.load %arg13[%c85] : memref<98xf32, #tpu.memory_space<smem>>
    %543 = vector.broadcast %542 : f32 to vector<16x16xf32>
    %544 = arith.mulf %541, %543 : vector<16x16xf32>
    %545 = arith.addf %540, %544 : vector<16x16xf32>
    %546 = arith.addf %536, %545 : vector<16x16xf32>
    %547 = vector.extract_strided_slice %113 {offsets = [6, 1], sizes = [16, 16], strides = [1, 1]} : vector<22x22xf32> to vector<16x16xf32>
    %c86 = arith.constant 86 : index
    %548 = memref.load %arg13[%c86] : memref<98xf32, #tpu.memory_space<smem>>
    %549 = vector.broadcast %548 : f32 to vector<16x16xf32>
    %550 = arith.mulf %547, %549 : vector<16x16xf32>
    %551 = vector.extract_strided_slice %115 {offsets = [6, 1], sizes = [16, 16], strides = [1, 1]} : vector<22x22xf32> to vector<16x16xf32>
    %c87 = arith.constant 87 : index
    %552 = memref.load %arg13[%c87] : memref<98xf32, #tpu.memory_space<smem>>
    %553 = vector.broadcast %552 : f32 to vector<16x16xf32>
    %554 = arith.mulf %551, %553 : vector<16x16xf32>
    %555 = arith.addf %550, %554 : vector<16x16xf32>
    %556 = arith.addf %546, %555 : vector<16x16xf32>
    %557 = vector.extract_strided_slice %113 {offsets = [6, 2], sizes = [16, 16], strides = [1, 1]} : vector<22x22xf32> to vector<16x16xf32>
    %c88 = arith.constant 88 : index
    %558 = memref.load %arg13[%c88] : memref<98xf32, #tpu.memory_space<smem>>
    %559 = vector.broadcast %558 : f32 to vector<16x16xf32>
    %560 = arith.mulf %557, %559 : vector<16x16xf32>
    %561 = vector.extract_strided_slice %115 {offsets = [6, 2], sizes = [16, 16], strides = [1, 1]} : vector<22x22xf32> to vector<16x16xf32>
    %c89 = arith.constant 89 : index
    %562 = memref.load %arg13[%c89] : memref<98xf32, #tpu.memory_space<smem>>
    %563 = vector.broadcast %562 : f32 to vector<16x16xf32>
    %564 = arith.mulf %561, %563 : vector<16x16xf32>
    %565 = arith.addf %560, %564 : vector<16x16xf32>
    %566 = arith.addf %556, %565 : vector<16x16xf32>
    %567 = vector.extract_strided_slice %113 {offsets = [6, 3], sizes = [16, 16], strides = [1, 1]} : vector<22x22xf32> to vector<16x16xf32>
    %c90 = arith.constant 90 : index
    %568 = memref.load %arg13[%c90] : memref<98xf32, #tpu.memory_space<smem>>
    %569 = vector.broadcast %568 : f32 to vector<16x16xf32>
    %570 = arith.mulf %567, %569 : vector<16x16xf32>
    %571 = vector.extract_strided_slice %115 {offsets = [6, 3], sizes = [16, 16], strides = [1, 1]} : vector<22x22xf32> to vector<16x16xf32>
    %c91 = arith.constant 91 : index
    %572 = memref.load %arg13[%c91] : memref<98xf32, #tpu.memory_space<smem>>
    %573 = vector.broadcast %572 : f32 to vector<16x16xf32>
    %574 = arith.mulf %571, %573 : vector<16x16xf32>
    %575 = arith.addf %570, %574 : vector<16x16xf32>
    %576 = arith.addf %566, %575 : vector<16x16xf32>
    %577 = vector.extract_strided_slice %113 {offsets = [6, 4], sizes = [16, 16], strides = [1, 1]} : vector<22x22xf32> to vector<16x16xf32>
    %c92 = arith.constant 92 : index
    %578 = memref.load %arg13[%c92] : memref<98xf32, #tpu.memory_space<smem>>
    %579 = vector.broadcast %578 : f32 to vector<16x16xf32>
    %580 = arith.mulf %577, %579 : vector<16x16xf32>
    %581 = vector.extract_strided_slice %115 {offsets = [6, 4], sizes = [16, 16], strides = [1, 1]} : vector<22x22xf32> to vector<16x16xf32>
    %c93 = arith.constant 93 : index
    %582 = memref.load %arg13[%c93] : memref<98xf32, #tpu.memory_space<smem>>
    %583 = vector.broadcast %582 : f32 to vector<16x16xf32>
    %584 = arith.mulf %581, %583 : vector<16x16xf32>
    %585 = arith.addf %580, %584 : vector<16x16xf32>
    %586 = arith.addf %576, %585 : vector<16x16xf32>
    %587 = vector.extract_strided_slice %113 {offsets = [6, 5], sizes = [16, 16], strides = [1, 1]} : vector<22x22xf32> to vector<16x16xf32>
    %c94 = arith.constant 94 : index
    %588 = memref.load %arg13[%c94] : memref<98xf32, #tpu.memory_space<smem>>
    %589 = vector.broadcast %588 : f32 to vector<16x16xf32>
    %590 = arith.mulf %587, %589 : vector<16x16xf32>
    %591 = vector.extract_strided_slice %115 {offsets = [6, 5], sizes = [16, 16], strides = [1, 1]} : vector<22x22xf32> to vector<16x16xf32>
    %c95 = arith.constant 95 : index
    %592 = memref.load %arg13[%c95] : memref<98xf32, #tpu.memory_space<smem>>
    %593 = vector.broadcast %592 : f32 to vector<16x16xf32>
    %594 = arith.mulf %591, %593 : vector<16x16xf32>
    %595 = arith.addf %590, %594 : vector<16x16xf32>
    %596 = arith.addf %586, %595 : vector<16x16xf32>
    %597 = vector.extract_strided_slice %113 {offsets = [6, 6], sizes = [16, 16], strides = [1, 1]} : vector<22x22xf32> to vector<16x16xf32>
    %c96_101 = arith.constant 96 : index
    %598 = memref.load %arg13[%c96_101] : memref<98xf32, #tpu.memory_space<smem>>
    %599 = vector.broadcast %598 : f32 to vector<16x16xf32>
    %600 = arith.mulf %597, %599 : vector<16x16xf32>
    %601 = vector.extract_strided_slice %115 {offsets = [6, 6], sizes = [16, 16], strides = [1, 1]} : vector<22x22xf32> to vector<16x16xf32>
    %c97 = arith.constant 97 : index
    %602 = memref.load %arg13[%c97] : memref<98xf32, #tpu.memory_space<smem>>
    %603 = vector.broadcast %602 : f32 to vector<16x16xf32>
    %604 = arith.mulf %601, %603 : vector<16x16xf32>
    %605 = arith.addf %600, %604 : vector<16x16xf32>
    %606 = arith.addf %596, %605 : vector<16x16xf32>
    %607 = arith.negf %606 : vector<16x16xf32>
    %608 = math.exp %607 : vector<16x16xf32>
    %cst_102 = arith.constant 1.000000e+00 : f32
    %609 = vector.broadcast %cst_102 : f32 to vector<16x16xf32>
    %610 = arith.addf %609, %608 : vector<16x16xf32>
    %611 = arith.divf %609, %610 : vector<16x16xf32>
    %612 = vector.shape_cast %611 : vector<16x16xf32> to vector<16x16x1xf32>
    %613 = vector.broadcast %612 : vector<16x16x1xf32> to vector<16x16x64xf32>
    %614 = arith.mulf %94, %613 : vector<16x16x64xf32>
    %615 = arith.addf %614, %1 : vector<16x16x64xf32>
    %cst_103 = arith.constant 0.000000e+00 : f32
    %616 = vector.broadcast %cst_103 : f32 to vector<16x16x64xf32>
    %617 = arith.maximumf %615, %616 : vector<16x16x64xf32>
    %c0_104 = arith.constant 0 : index
    %c0_105 = arith.constant 0 : index
    %c0_106 = arith.constant 0 : index
    %c0_107 = arith.constant 0 : index
    %618 = vector.load %arg14[%c0_104, %c0_105, %c0_106, %c0_107] : memref<1x16x16x64xf32, #tpu.memory_space<vmem>>, vector<1x16x16x64xf32>
    %619 = vector.shape_cast %618 : vector<1x16x16x64xf32> to vector<16x16x64xf32>
    %620 = vector.shape_cast %617 : vector<16x16x64xf32> to vector<1x16x16x64xf32>
    tpu.vector_store %arg14[%c0_104, %c0_105, %c0_106, %c0_107], %620 {strides = array<i32>} : memref<1x16x16x64xf32, #tpu.memory_space<vmem>>, vector<1x16x16x64xf32>,
    return
  }
  func.func @transform_0(%arg0: i32) -> (i32, i32, i32, i32) {
    %c0_i32 = arith.constant 0 : i32
    %c0_i32_0 = arith.constant 0 : i32
    %c0_i32_1 = arith.constant 0 : i32
    %c0_i32_2 = arith.constant 0 : i32
    return %arg0, %c0_i32, %c0_i32_0, %c0_i32_1 : i32, i32, i32, i32
  }
  func.func @transform_1(%arg0: i32) -> (i32, i32) {
    %c0_i32 = arith.constant 0 : i32
    %c0_i32_0 = arith.constant 0 : i32
    %c0_i32_1 = arith.constant 0 : i32
    return %c0_i32, %c0_i32_0 : i32, i32
  }
  func.func @transform_2(%arg0: i32) -> (i32, i32) {
    %c0_i32 = arith.constant 0 : i32
    %c0_i32_0 = arith.constant 0 : i32
    %c0_i32_1 = arith.constant 0 : i32
    return %c0_i32, %c0_i32_0 : i32, i32
  }
  func.func @transform_3(%arg0: i32) -> (i32, i32) {
    %c0_i32 = arith.constant 0 : i32
    %c0_i32_0 = arith.constant 0 : i32
    %c0_i32_1 = arith.constant 0 : i32
    return %c0_i32, %c0_i32_0 : i32, i32
  }
  func.func @transform_4(%arg0: i32) -> (i32, i32) {
    %c0_i32 = arith.constant 0 : i32
    %c0_i32_0 = arith.constant 0 : i32
    %c0_i32_1 = arith.constant 0 : i32
    return %c0_i32, %c0_i32_0 : i32, i32
  }
  func.func @transform_5(%arg0: i32) -> (i32, i32) {
    %c0_i32 = arith.constant 0 : i32
    %c0_i32_0 = arith.constant 0 : i32
    %c0_i32_1 = arith.constant 0 : i32
    return %c0_i32, %c0_i32_0 : i32, i32
  }
  func.func @transform_6(%arg0: i32) -> (i32, i32) {
    %c0_i32 = arith.constant 0 : i32
    %c0_i32_0 = arith.constant 0 : i32
    %c0_i32_1 = arith.constant 0 : i32
    return %c0_i32, %c0_i32_0 : i32, i32
  }
  func.func @transform_7(%arg0: i32) -> (i32, i32) {
    %c0_i32 = arith.constant 0 : i32
    %c0_i32_0 = arith.constant 0 : i32
    %c0_i32_1 = arith.constant 0 : i32
    return %c0_i32, %c0_i32_0 : i32, i32
  }
  func.func @transform_8(%arg0: i32) -> (i32, i32) {
    %c0_i32 = arith.constant 0 : i32
    %c0_i32_0 = arith.constant 0 : i32
    %c0_i32_1 = arith.constant 0 : i32
    return %c0_i32, %c0_i32_0 : i32, i32
  }
  func.func @transform_9(%arg0: i32) -> (i32, i32) {
    %c0_i32 = arith.constant 0 : i32
    %c0_i32_0 = arith.constant 0 : i32
    %c0_i32_1 = arith.constant 0 : i32
    return %c0_i32, %c0_i32_0 : i32, i32
  }
  func.func @transform_10(%arg0: i32) -> (i32, i32) {
    %c0_i32 = arith.constant 0 : i32
    %c0_i32_0 = arith.constant 0 : i32
    %c0_i32_1 = arith.constant 0 : i32
    return %c0_i32, %c0_i32_0 : i32, i32
  }
  func.func @transform_11(%arg0: i32) -> (i32, i32) {
    %c0_i32 = arith.constant 0 : i32
    %c0_i32_0 = arith.constant 0 : i32
    %c0_i32_1 = arith.constant 0 : i32
    return %c0_i32, %c0_i32_0 : i32, i32
  }
  func.func @transform_12(%arg0: i32) -> i32 {
    %c0_i32 = arith.constant 0 : i32
    %c0_i32_0 = arith.constant 0 : i32
    return %c0_i32 : i32
  }
  func.func @transform_13(%arg0: i32) -> (i32, i32, i32, i32) {
    %c0_i32 = arith.constant 0 : i32
    %c0_i32_0 = arith.constant 0 : i32
    %c0_i32_1 = arith.constant 0 : i32
    %c0_i32_2 = arith.constant 0 : i32
    return %arg0, %c0_i32, %c0_i32_0, %c0_i32_1 : i32, i32, i32, i32
  }
}

</mosaic_0001>

<bundles_post_ra>
// kernel: bottleneck_forward.1
= control target key start
LH: loop header
LB: loop body
LE: loop exit
PB: predicated region body
PF: predicated region fallthrough
CT: control target
= control target key end

     0   :  { %s11926_s0 = inlined_call_operand.hbm [shape: f32[2,16,16,64], index: 0, kind: input, shape index: {}]   ;;  %s11927_s1 = inlined_call_operand.vmem [shape: bf16[64,16], index: 1, kind: input, shape index: {}]   ;;  %s11928_s2 = inlined_call_operand.vmem [shape: f32[1,16], index: 2, kind: input, shape index: {}]   ;;  %s11929_s3 = inlined_call_operand.vmem [shape: f32[1,16], index: 3, kind: input, shape index: {}]   ;;  %s11930_s4 = inlined_call_operand.vmem [shape: bf16[144,16], index: 4, kind: input, shape index: {}]   ;;  %s11931_s5 = inlined_call_operand.vmem [shape: f32[1,16], index: 5, kind: input, shape index: {}]   ;;  %s11932_s6 = inlined_call_operand.vmem [shape: f32[1,16], index: 6, kind: input, shape index: {}]   ;;  %s11933_s7 = inlined_call_operand.vmem [shape: bf16[16,64], index: 7, kind: input, shape index: {}]   ;;  %s11934_s8 = inlined_call_operand.vmem [shape: f32[1,64], index: 8, kind: input, shape index: {}]   ;;  %s11935_s9 = inlined_call_operand.vmem [shape: f32[1,64], index: 9, kind: input, shape index: {}]   ;;  %s11936_s10 = inlined_call_operand.vmem [shape: f32[64,4], index: 10, kind: input, shape index: {}]   ;;  %s11937_s11 = inlined_call_operand.vmem [shape: f32[4,64], index: 11, kind: input, shape index: {}]   ;;  %s11938_s12 = inlined_call_operand.vmem [shape: f32[98], index: 12, kind: input, shape index: {}]   ;;  %s11939_s13 = inlined_call_operand.hbm [shape: f32[2,16,16,64], index: 13, kind: output, shape index: {}]  }
   0x1   :  { %12007 = sst [smem:[#allocation48_spill]] %s11926_s0 }
   0x2   :  { %12008 = sst [smem:[#allocation49_spill]] %s11927_s1 }
   0x3   :  { %12009 = sst [smem:[#allocation50_spill]] %s11928_s2 }
   0x4   :  { %12010 = sst [smem:[#allocation51_spill]] %s11929_s3 }
   0x5   :  { %12011 = sst [smem:[#allocation52_spill]] %s11930_s4 }
   0x6   :  { %12012 = sst [smem:[#allocation53_spill]] %s11931_s5 }
   0x7   :  { %12013 = sst [smem:[#allocation54_spill]] %s11938_s12 }
   0x8   :  { %12014 = sst [smem:[#allocation55_spill]] %s11939_s13 }
   0x9   :  { %18 = vsyncpa [#allocation6], 0 }
   0xa   :  { %20 = vsyncpa [#allocation6 + $0x1], 0 }
   0xb   :  { %21 = vsyncpa [#allocation8], 0 }
   0xc   :  { %22 = vsyncpa [#allocation7], 0 }
   0xd   :  { %24 = vsyncpa [#allocation7 + $0x1], 0  ;;  %s7672_s25 = smov 0   ;;  %s7674_s26 = smov 0  }
   0xe   :  { %s7676_s27 = smov 0   ;;  %s7678_s28 = smov 0  }
   0xf LB: > { %12015 = sst [smem:[#allocation14_spill]] %s7565_s25  ;;  %s7693_s29 = sadd.s32 4294967295, %s7577_s28   ;;  %s7577_s28 = sphi %s7678_s28, %s12157_s28   ;;  %s7573_s27 = sphi %s7676_s27, %s12159_s27   ;;  %s7569_s26 = sphi %s7674_s26, %s12161_s26   ;;  %s7565_s25 = sphi %s7672_s25, %s12160_s25  }
  0x10   : > { %12016 = sst [smem:[#allocation15_spill]] %s7573_s27  ;;  %s6828_s30 = sadd.s32 4294967294, %s7577_s28  }
  0x11   : > { %s7697_s14 = sadd.s32 1, %s7577_s28   ;;  %s37_s15 = sadd.s32 1, %s7573_s27 }
  0x12   : > { %12017 = sst [smem:[#allocation16_spill]] %s7697_s14  ;;  %s34_s16 = ssub.s32 %s7577_s28, %s7697_s14 }
  0x13   : > { %p44_p0 = scmp.ne.s32.totalorder %s7573_s27, %s7569_s26  ;;  %p35_p1 = scmp.eq.s32.totalorder %s34_s16, 0 }
  0x14   : > { %p45_p2 = scmp.eq.s32.totalorder %s7577_s28, 0  ;;  %p50_p3 = scmp.ne.s32.totalorder %s7569_s26, %s7565_s25 }
  0x15   : > { %p11941_p4 = scmp.eq.s32.totalorder %s7693_s29, 0  ;;  %p326_p7 = scmp.eq.s32.totalorder %s7693_s29, 1 }
  0x16   : > { %s7709_s17 = scalar_select %p35_p1, %s7573_s27, %s37_s15  }
  0x17   : > { %p7711_p5 = por %p45_p2, %p44_p0  ;;  %p7717_p6 = por %p11941_p4, %p50_p3 }
  0x18   : > { %12018 = sst [smem:[#allocation17_spill]] %s7709_s17  ;;  %p332_p8 = scmp.eq.s32.totalorder %s6828_s30, 1 }
  0x19   : > { %s12020_s19 = scalar_select %p7717_p6, 1, 0 }
  0x1a   : > { %p6829_p9 = scmp.ge.s32.totalorder %s7577_s28, 1  ;;  %p339_p10 = scmp.lt.s32.totalorder %s7577_s28, 3 }
  0x1b   : > { %p7724_p11 = por %p326_p7, %p44_p0  ;;  %p7728_p12 = por %p332_p8, %p50_p3 }
  0x1c   : > { %p7732_p13 = pnand %p6829_p9, %p339_p10  ;;  %s12026_s12 = sld [smem:[#allocation54_spill]] }
  0x1d   : > { %s12021_s20 = scalar_select %p7724_p11, 1, 0 }
  0x1e   : > { %s12023_s21 = scalar_select %p7728_p12, 1, 0 }
  0x1f   : > { %12022 = sst [smem:[#allocation18_spill]] %s12021_s20  ;;  %p7285_p1 = pneg %p7732_p13 }
  0x20   : > { %12024 = sst [smem:[#allocation19_spill]] %s12023_s21  ;;  %p7298_p2 = scmp.lt.s32.totalorder %s7577_s28, 2 }
  0x21   : > { %s12025_s22 = scalar_select %p7732_p13, 1, 0 }
  0x22   : > { %s385_s15 = sshll.u32 %s12026_s12, 4  ;;  %p7745_p7 = pnand %p7285_p1, %p11941_p4  ;;  %s386_s15 = int_to_ptr.vmem [resolvable:$true] %s385_s15 }
  0x23   : > { %s396_s16 = sand.u32 1, %s7573_s27   ;;  %p7752_p3 = pnand %p7298_p2, %p7711_p5 }
  0x24   : > { %s6832_s23 = sshll.u32 %s396_s16, 8  ;;  %s7466_s24 = scalar_lea.vmem %s386_s15, 16 }
  0x25   : > { %p7467_p8 = scmp.ne.s32.totalorder %s386_s15, %s7466_s24  ;;  %p7468_p9 = pneg %p7745_p7 }
  0x26   : > { %p7474_p12 = scmp.lt.s32.totalorder %s386_s15, %s386_s15  ;;  %p7475_p11 = scmp.lt.s32.totalorder %s7466_s24, %s7466_s24 }
  0x27   : > { %p7469_p10 = pnand %p7468_p9, %p7467_p8 }
  0x28   : > { %p7476_p1 = por %p7475_p11, %p7474_p12 }
  0x29   : > { %p7470_p0 = pneg %p7469_p10 }
  0x2b   : > { %p7477_p4 = pnand %p7476_p1, %p7470_p0 }
  0x2d   : > { %7480 = shalt.err (!%p7477_p4)
}
  0x2e   : > { %s7579_s12 = smov [#allocation9]   ;;  %s7097_s18 = sshll.u32 %s7577_s28, 12 }
  0x2f   : > { %7288 = dma.vmem_to_smem (!%p7745_p7), %s386_s15, 16, %s7579_s12, [#allocation8]  }
  0x30   : > { %s400_s27 = scalar_lea.vmem [#allocation5], %s6832_s23  ;;  %s12029_s0 = sld [smem:[#allocation48_spill]] }
  0x31   : > { %s407_s14 = sshll.u32 %s400_s27, 4  ;;  %s7768_s24 = scalar_lea.sflag [#allocation6], %s396_s16  ;;  %s7766_s14 = int_to_ptr.vmem [resolvable:$true] %s407_s14 }
  0x32   : > { %p7483_p5 = pneg %p7752_p3 }
  0x36   : > { %s7764_s13 = scalar_lea.hbm %s12029_s0, %s7097_s18  ;;  %s7486_s15 = scalar_lea.hbm %s12029_s0, 8192 }
  0x37   : > { %s7481_s20 = scalar_lea.hbm %s7764_s13, 4096  ;;  %p7487_p0 = scmp.lt.s32.totalorder %s7764_s13, %s12029_s0 }
  0x38   : > { %p7482_p4 = scmp.ne.s32.totalorder %s7764_s13, %s7481_s20  ;;  %p7488_p2 = scmp.lt.s32.totalorder %s7486_s15, %s7481_s20 }
  0x3a   : > { %p7484_p11 = pnand %p7483_p5, %p7482_p4  ;;  %p7489_p7 = por %p7488_p2, %p7487_p0 }
  0x3c   : > { %p7485_p12 = pneg %p7484_p11 }
  0x3e   : > { %p7490_p8 = pnand %p7489_p7, %p7485_p12 }
  0x40   : > { %7493 = shalt.err (!%p7490_p8)
}
  0x41   : > { %s7494_s30 = scalar_lea.vmem %s7766_s14, 4096  ;;  %s7580_s16 = smov [#allocation5]  }
  0x42   : > { %p7495_p9 = scmp.ne.s32.totalorder %s7766_s14, %s7494_s30  ;;  %s7499_s23 = sshll.u32 %s7580_s16, 4  ;;  %s7500_s23 = int_to_ptr.vmem [resolvable:$false] %s7499_s23 }
  0x43   : > { %s7501_s18 = scalar_lea.vmem %s7500_s23, 8192  ;;  %p7502_p4 = scmp.lt.s32.totalorder %s7766_s14, %s7500_s23 }
  0x44   : > { %p7497_p10 = pnand %p7495_p9, %p7483_p5  ;;  %p7503_p11 = scmp.lt.s32.totalorder %s7501_s18, %s7494_s30 }
  0x46   : > { %p7498_p1 = pneg %p7497_p10  ;;  %p7504_p6 = por %p7503_p11, %p7502_p4 }
  0x48   : > { %p7505_p13 = pnand %p7504_p6, %p7498_p1 }
  0x4a   : > { %7508 = shalt.err (!%p7505_p13)
}
  0x4b   : > { %s7581_s20 = smov 128   ;;  %s7582_s12 = smov 8  }
  0x4c   : > { %7292 = dma.hbm_to_vmem [thread:$0]  (!%p7752_p3), %s7764_s13, 4096, %s7766_s14, %s7768_s24, %s7581_s20, %s7581_s20, %s7582_s12  }
  0x4d   : > { %p12030_p5 = scmp.ne.s32.totalorder %s12025_s22, 0 }
  0x4f   : > { %419 = sbr.rel (%p12030_p5) target bundleno = 2554 (0x9fa), region = 72 }
  0x54   : > { %s7792_s27 = sand.u32 1, %s7569_s26   ;;  %p12031_p6 = scmp.ne.s32.totalorder %s12020_s19, 0 }
  0x55   : > { %s12004_s15 = sshll.u32 %s7792_s27, 8  ;;  %s422_s25 = scalar_lea.sflag [#allocation6], %s7792_s27 }
  0x56   : > { %s7798_s21 = scalar_lea.vmem [#allocation5], %s12004_s15 }
  0x57   : > { %7552 = dma.done.wait (%p12031_p6), %s422_s25, 4096  }
  0x58   : > { %7554 = vsyncadd (%p12031_p6), %s422_s25, 4294963200  ;;  %p12032_p13 = scmp.eq.s32.totalorder %s7693_s29, 0 }
  0x5a   : > { %7556 = dma.done.wait (%p12032_p13), [#allocation8], 16   ;;  %p12033_p3 = pmov %p12032_p13 }
  0x5c   : > { %7558 = vsyncadd (%p12033_p3), [#allocation8], 4294967280 }
  0x5d   : > { %434 = sfence }
  0x5e   : > { %s12034_s1 = sld [smem:[#allocation49_spill]]  ;;  %v474_v3 = vld [vmem:[%s7798_s21] sm:$0xff]  ;;  %v475_v4 = vld [vmem:[%s7798_s21 + $0x8] sm:$0xff]  ;;  %vm554_vm0 = vcmask 523264   ;;  %v476_v7 = vld [vmem:[%s7798_s21 + $0x10] sm:$0xff]  ;;  %vm890_vm1 = vcmask 125952  }
  0x5f   : > { %v506_v5 = vpack.c.bf16 %v475_v4, %v474_v3  ;;  %v477_v8 = vld [vmem:[%s7798_s21 + $0x18] sm:$0xff]  ;;  %v478_v9 = vld [vmem:[%s7798_s21 + $0x20] sm:$0xff]  ;;  %v479_v10 = vld [vmem:[%s7798_s21 + $0x28] sm:$0xff]  ;;  %vm893_vm2 = vcmask 122880   ;;  %v7583_v34 = vmov 0   ;;  %s7584_s23 = smov 16  }
  0x60   : > { %v507_v11 = vpack.c.bf16 %v477_v8, %v476_v7  ;;  %v508_v12 = vpack.c.bf16 %v479_v10, %v478_v9  ;;  %v480_v13 = vld [vmem:[%s7798_s21 + $0x30] sm:$0xff]  ;;  %v481_v14 = vld [vmem:[%s7798_s21 + $0x38] sm:$0xff]  ;;  %v482_v15 = vld [vmem:[%s7798_s21 + $0x40] sm:$0xff]  ;;  %892 = vst.msk [vmem:[#allocation2 + $0x4] sm:$0xf] %vm890_vm1, %v7583_v34  ;;  %3497 = vmatprep.subr.bf16.mxu1 %v7583_v34  ;;  %vm11974_vm10 = vcmask 1042432  }
  0x61   : > { %7187 = vmatprep.mubr.msk.bf16.mxu0 %vm554_vm0, %v506_v5  ;;  %v483_v16 = vld [vmem:[%s7798_s21 + $0x48] sm:$0xff]  ;;  %v509_v17 = vpack.c.bf16 %v481_v14, %v480_v13  ;;  %v484_v19 = vld [vmem:[%s7798_s21 + $0x50] sm:$0xff]  ;;  %v485_v20 = vld [vmem:[%s7798_s21 + $0x58] sm:$0xff]  ;;  %894 = vst.msk [vmem:[#allocation2 + $0x8] sm:$0x1] %vm893_vm2, %v7583_v34  ;;  %vm2180_vm11 = vcmask 1046532  }
  0x62   : > { %v510_v18 = vpack.c.bf16 %v483_v16, %v482_v15  ;;  %v486_v21 = vld [vmem:[%s7798_s21 + $0x60] sm:$0xff]  ;;  %v487_v22 = vld [vmem:[%s7798_s21 + $0x68] sm:$0xff]  ;;  %v511_v23 = vpack.c.bf16 %v485_v20, %v484_v19  ;;  %v488_v25 = vld [vmem:[%s7798_s21 + $0x70] sm:$0xff]  ;;  %891 = vst.msk [vmem:[#allocation2] sm:$0xf] %vm890_vm1, %v7583_v34  ;;  %s7585_s18 = smov 32  }
  0x63   : > { %v512_v24 = vpack.c.bf16 %v487_v22, %v486_v21  ;;  %v489_v26 = vld [vmem:[%s7798_s21 + $0x78] sm:$0xff]  ;;  %v490_v27 = vld [vmem:[%s7798_s21 + $0x80] sm:$0xff]  ;;  %v491_v28 = vld [vmem:[%s7798_s21 + $0x88] sm:$0xff]  ;;  %896 = vst.msk [vmem:[#allocation2 + $0xcc] sm:$0xf] %vm890_vm1, %v7583_v34  ;;  %s12043_s2 = sld [smem:[#allocation50_spill]] }
  0x64   : > { %v7354_v0 = vld [vmem:[%s12034_s1 + $0x18] sm:$0xff]   ;;  %v7355_v1 = vld [vmem:[%s12034_s1 + $0x10] sm:$0xff]   ;;  %v7356_v2 = vld [vmem:[%s12034_s1 + $0x8] sm:$0xff]   ;;  %v513_v29 = vpack.c.bf16 %v489_v26, %v488_v25  ;;  %v514_v30 = vpack.c.bf16 %v491_v28, %v490_v27  ;;  %897 = vst.msk [vmem:[#allocation2 + $0xd0] sm:$0xf] %vm890_vm1, %v7583_v34  ;;  %s12044_s3 = sld [smem:[#allocation51_spill]] }
  0x65   : > { %7179 = vmatprep.subr.bf16.mxu0 %v7354_v0  ;;  %v7357_v6 = vld [vmem:[%s12034_s1] sm:$0xff]   ;;  %v492_v31 = vld [vmem:[%s7798_s21 + $0x90] sm:$0xff]  ;;  %898 = vst.msk [vmem:[#allocation2 + $0xd4] sm:$0x1] %vm893_vm2, %v7583_v34  ;;  %vm900_vm3 = vsmask.f32 256  ;;  %vm7893_vm12 = vmor %vm11974_vm10, %vm2180_vm11 }
  0x66   : > { %7180 = vmatpush3.bf16.msra.mxu0 %v7354_v0  ;;  %v493_v32 = vld [vmem:[%s7798_s21 + $0x98] sm:$0xff]  ;;  %vm956_vm4 = vsmask.f32 7938  ;;  %vm7862_vm5 = vmand %vm893_vm2, %vm900_vm3  ;;  %v908_v41 = vld [vmem:[#allocation2 + $0x18] sm:$0x1]  ;;  %vm2098_vm13 = vcmask 257152  }
  0x67   : > { %7181 = vmatprep.subr.bf16.mxu0 %v7355_v1  ;;  %v515_v33 = vpack.c.bf16 %v493_v32, %v492_v31  ;;  %vm7867_vm6 = vmand %vm893_vm2, %vm956_vm4  ;;  %v909_v42 = vsel %vm7862_vm5, 0, %v908_v41  ;;  %v1530_v43 = vld [vmem:[#allocation2 + $0x4] sm:$0xf]  ;;  %v905_v44 = vld [vmem:[#allocation2 + $0xc] sm:$0x1]  ;;  %vm2390_vm14 = vcmask 388352  }
  0x68   : > { %v958_v37 = vld [vmem:[#allocation2 + $0x8] sm:$0x1]  ;;  %910 = vst [vmem:[#allocation2 + $0x18] sm:$0x1] %v909_v42  ;;  %v1628_v45 = vshll.u32 %v1530_v43, 16  ;;  %v1632_v46 = vshrl.u32 %v1530_v43, 16  ;;  %vm7966_vm2 = vmand %vm890_vm1, %vm956_vm4 }
  0x69   : > { %v959_v38 = vsel %vm7867_vm6, 0, %v958_v37  ;;  %v902_v39 = vld [vmem:[#allocation2] sm:$0x1]  ;;  %1584 = vst.msk [vmem:[#allocation3 + $0x8] sm:$0xf] %vm890_vm1, %v1530_v43  ;;  %v906_v47 = vsel %vm7862_vm5, 0, %v905_v44 }
  0x6a   : > { %7182 = vmatpush3.bf16.msra.mxu0 %v7355_v1  ;;  %960 = vst [vmem:[#allocation2 + $0x8] sm:$0x1] %v959_v38  ;;  %v903_v40 = vsel %vm7862_vm5, 0, %v902_v39  ;;  %907 = vst [vmem:[#allocation2 + $0xc] sm:$0x1] %v906_v47  ;;  %v1630_v49 = vrot.slane %v1628_v45, 5 }
  0x6b   : > { %7183 = vmatprep.subr.bf16.mxu0 %v7356_v2  ;;  %904 = vst [vmem:[#allocation2] sm:$0x1] %v903_v40  ;;  %v964_v48 = vld [vmem:[#allocation2 + $0x20] sm:$0x1]  ;;  %v1634_v50 = vrot.slane %v1632_v46, 4  ;;  %v494_v20 = vld [vmem:[%s7798_s21 + $0xa0] sm:$0xff] }
  0x6c   : > { %v965_v51 = vsel %vm7867_vm6, 0, %v964_v48  ;;  %v961_v56 = vld [vmem:[#allocation2 + $0x14] sm:$0x1]  ;;  %vm1615_vm7 = vsmask.f32 3328  ;;  %v496_v22 = vld [vmem:[%s7798_s21 + $0xb0] sm:$0xff] }
  0x6d   : > { %966 = vst [vmem:[#allocation2 + $0x20] sm:$0x1] %v965_v51  ;;  %v1635_v53 = vor.u32 %v1634_v50, %v1630_v49  ;;  %v962_v59 = vsel %vm7867_vm6, 0, %v961_v56  ;;  %vm1616_vm8 = vsmask.f32 7440  ;;  %v495_v21 = vld [vmem:[%s7798_s21 + $0xa8] sm:$0xff] }
  0x6e   : > { %7184 = vmatpush3.bf16.msra.mxu0 %v7356_v2  ;;  %963 = vst [vmem:[#allocation2 + $0x14] sm:$0x1] %v962_v59  ;;  %vm7885_vm9 = vmor %vm1615_vm7, %vm1616_vm8  ;;  %v911_v13 = vld [vmem:[#allocation2 + $0x24] sm:$0x1]  ;;  %v970_v16 = vld [vmem:[#allocation2 + $0x38] sm:$0x1] }
  0x6f   : > { %7185 = vmatprep.subr.bf16.mxu0 %v7357_v6  ;;  %v1636_v60 = vrot.slane %v1635_v53, 4  ;;  %v912_v15 = vsel %vm7862_vm5, 0, %v911_v13  ;;  %v920_v26 = vld [vmem:[#allocation2 + $0x48] sm:$0x1]  ;;  %v917_v28 = vld [vmem:[#allocation2 + $0x3c] sm:$0x1] }
  0x70   : > { %913 = vst [vmem:[#allocation2 + $0x24] sm:$0x1] %v912_v15  ;;  %v921_v27 = vsel %vm7862_vm5, 0, %v920_v26  ;;  %v973_v32 = vld [vmem:[#allocation2 + $0x44] sm:$0x1]  ;;  %v498_v37 = vld [vmem:[%s7798_s21 + $0xc0] sm:$0xff] }
  0x71   : > { %v1531_v52 = vld [vmem:[#allocation2 + $0x8] sm:$0x1]  ;;  %922 = vst [vmem:[#allocation2 + $0x48] sm:$0x1] %v921_v27  ;;  %v499_v38 = vld [vmem:[%s7798_s21 + $0xc8] sm:$0xff]  ;;  %v500_v39 = vld [vmem:[%s7798_s21 + $0xd0] sm:$0xff] }
  0x72   : > { %7186 = vmatpush3.bf16.msra.mxu0 %v7357_v6  ;;  %v1638_v54 = vshll.u32 %v1531_v52, 16  ;;  %v1529_v55 = vld [vmem:[#allocation2] sm:$0xf]  ;;  %v2184_v6 = vrot.slane %v1530_v43, 5  ;;  %v2187_v10 = vrot.slane %v1531_v52, 5  ;;  %v518_v40 = vpack.c.bf16 %v499_v38, %v498_v37  ;;  %s7586_s14 = smov 96  }
  0x73   : > { %v1619_v57 = vshrl.u32 %v1529_v55, 16  ;;  %v1622_v58 = vshll.u32 %v1529_v55, 16  ;;  %1583 = vst.msk [vmem:[#allocation3] sm:$0xf] %vm890_vm1, %v1529_v55  ;;  %v6893_v4 = vrot.slane %v1529_v55, 9  ;;  %v501_v41 = vld [vmem:[%s7798_s21 + $0xd8] sm:$0xff] }
  0x74   : > { %v1640_v62 = vrot.slane %v1638_v54, 5  ;;  %v2186_v9 = vrot.slane %v2184_v6, 4  ;;  %v519_v42 = vpack.c.bf16 %v501_v41, %v500_v39  ;;  %v926_v43 = vld [vmem:[#allocation2 + $0x60] sm:$0x1]  ;;  %v923_v45 = vld [vmem:[#allocation2 + $0x54] sm:$0x1] }
  0x75   : > { %7188 = vmatmul.mubr.msk.bf16.vlgmr.msra.gmra.mxu0 %vm554_vm0, %v507_v11  ;;  %v1621_v63 = vrot.slane %v1619_v57, 4  ;;  %v1624_v0 = vrot.slane %v1622_v58, 5  ;;  %v2185_v8 = vsel %vm7893_vm12, %v6893_v4, %v2184_v6  ;;  %v914_v11 = vld [vmem:[#allocation2 + $0x30] sm:$0x1]  ;;  %v927_v44 = vsel %vm7862_vm5, 0, %v926_v43  ;;  %s7587_s17 = smov 48  }
  0x76   : > { %7191 = vmatprep.mubr.msk.bf16.mxu0 %vm554_vm0, %v508_v12  ;;  %v1641_v1 = vsel %vm7885_vm9, %v1636_v60, %v1640_v62  ;;  %2294 = vrot.lane.b32.xlu1 %v2185_v8, %s7585_s18  ;;  %v915_v12 = vsel %vm7862_vm5, 0, %v914_v11  ;;  %v2188_v14 = vsel %vm7893_vm12, %v2186_v9, %v2187_v10  ;;  %928 = vst [vmem:[#allocation2 + $0x60] sm:$0x1] %v927_v44  ;;  %v982_v46 = vld [vmem:[#allocation2 + $0x68] sm:$0x1]  ;;  %v924_v47 = vsel %vm7862_vm5, 0, %v923_v45 }
  0x77   : > { %v1625_v2 = vor.u32 %v1624_v0, %v1621_v63  ;;  %2004 = vrot.lane.b32.xlu0 %v1641_v1, %s7584_s23  ;;  %916 = vst [vmem:[#allocation2 + $0x30] sm:$0x1] %v915_v12  ;;  %v983_v48 = vsel %vm7867_vm6, 0, %v982_v46  ;;  %925 = vst [vmem:[#allocation2 + $0x54] sm:$0x1] %v924_v47  ;;  %s7588_s22 = smov 80  }
  0x78   : > { %984 = vst [vmem:[#allocation2 + $0x68] sm:$0x1] %v983_v48  ;;  %v7948_v51 = vld [vmem:[%s12044_s3] ss:$0 sm:$0xff]  ;;  %v979_v52 = vld [vmem:[#allocation2 + $0x5c] sm:$0x1] }
  0x79   : > { %v1626_v3 = vrot.slane %v1625_v2, 4  ;;  %v980_v54 = vsel %vm7867_vm6, 0, %v979_v52  ;;  %vm1092_vm15 = vsmask.f32 4368  ;;  %v1428_v44 = vld [vmem:[#allocation2 + $0x20] sm:$0x1] }
  0x7a   : > { %2296 = vrot.lane.b32.xlu1 %v2188_v14, %s7585_s18  ;;  %981 = vst [vmem:[#allocation2 + $0x5c] sm:$0x1] %v980_v54  ;;  %vm7978_vm4 = vmor %vm900_vm3, %vm1092_vm15  ;;  %s12049_s4 = sld [smem:[#allocation52_spill]]  ;;  %s7589_s20 = smov 112   ;;  %vm2521_vm3 = vcmask 519552   ;;  %vm2674_vm7 = vcmask 650752  }
  0x7b   : > { %v1631_v7 = vsel %vm7885_vm9, %v1626_v3, %v1630_v49  ;;  %v7943_v49 = vld [vmem:[%s12043_s2] ss:$0 sm:$0xff]  ;;  %s7590_s24 = smov 64   ;;  %vm2811_vm8 = vcmask 781952   ;;  %vm2942_vm11 = vcmask 913152   ;;  %vm3095_vm15 = vcmask 1044352  }
  0x7c   : > { %2002 = vrot.lane.b32.xlu0 %v1631_v7, %s7584_s23  ;;  %vm3448_vm10 = vcmask 130048   ;;  %s12076_s5 = sld [smem:[#allocation53_spill]]  ;;  %s12005_s0 = smov 127  }
  0x7d   : > { %7192 = vmatmul.mubr.msk.bf16.gmra.mxu0 %vm554_vm0, %v509_v17  ;;  %v971_v17 = vsel %vm7867_vm6, 0, %v970_v16  ;;  %s10629_s12 = sld [smem:[#allocation9 + $0x2]] }
  0x7e   : > { %7195 = vmatprep.mubr.msk.bf16.mxu0 %vm554_vm0, %v510_v18  ;;  %972 = vst [vmem:[#allocation2 + $0x38] sm:$0x1] %v971_v17  ;;  %v967_v18 = vld [vmem:[#allocation2 + $0x2c] sm:$0x1]  ;;  %s10636_s25 = sld [smem:[#allocation9 + $0x4]] }
  0x7f   : > { %v968_v19 = vsel %vm7867_vm6, 0, %v967_v18  ;;  %s10642_s13 = sld [smem:[#allocation9 + $0x3]] }
  0x80   : > { %969 = vst [vmem:[#allocation2 + $0x2c] sm:$0x1] %v968_v19  ;;  %s10648_s19 = sld [smem:[#allocation9 + $0x6]] }
  0x81   : > { %s10680_s30 = sld [smem:[#allocation9 + $0x14]] }
  0x82   : > { %s10685_s16 = sld [smem:[#allocation9 + $0x9]] }
  0x83   : > { %s10689_s15 = sld [smem:[#allocation9 + $0x16]] }
  0x84   : > { %s10711_s1 = sld [smem:[#allocation9 + $0x11]] }
  0x85   : > { %7196 = vmatmul.mubr.msk.bf16.gmra.mxu0 %vm554_vm0, %v511_v23  ;;  %v516_v23 = vpack.c.bf16 %v495_v21, %v494_v20  ;;  %v1424_v20 = vld [vmem:[#allocation2 + $0x18] sm:$0xf] }
  0x86   : > { %7199 = vmatprep.mubr.msk.bf16.mxu0 %vm554_vm0, %v512_v24  ;;  %v497_v24 = vld [vmem:[%s7798_s21 + $0xb8] sm:$0xff] }
  0x87   : > { %v517_v25 = vpack.c.bf16 %v497_v24, %v496_v22 }
  0x8d   : > { %7200 = vmatmul.mubr.msk.bf16.gmra.mxu0 %vm554_vm0, %v513_v29  ;;  %v976_v29 = vld [vmem:[#allocation2 + $0x50] sm:$0x1] }
  0x8e   : > { %7203 = vmatprep.mubr.msk.bf16.mxu0 %vm554_vm0, %v514_v30  ;;  %v918_v30 = vsel %vm7862_vm5, 0, %v917_v28  ;;  %v977_v31 = vsel %vm7867_vm6, 0, %v976_v29 }
  0x8f   : > { %919 = vst [vmem:[#allocation2 + $0x3c] sm:$0x1] %v918_v30  ;;  %978 = vst [vmem:[#allocation2 + $0x50] sm:$0x1] %v977_v31  ;;  %v1417_v31 = vld [vmem:[#allocation2 + $0xc] sm:$0xf] }
  0x95   : > { %7204 = vmatmul.mubr.msk.bf16.gmra.mxu0 %vm554_vm0, %v515_v33  ;;  %v974_v33 = vsel %vm7867_vm6, 0, %v973_v32 }
  0x96   : > { %7207 = vmatprep.mubr.msk.bf16.mxu0 %vm554_vm0, %v516_v23  ;;  %975 = vst [vmem:[#allocation2 + $0x44] sm:$0x1] %v974_v33 }
  0x9d   : > { %7208 = vmatmul.mubr.msk.bf16.gmra.mxu0 %vm554_vm0, %v517_v25 }
  0x9e   : > { %7211 = vmatprep.mubr.msk.bf16.mxu0 %vm554_vm0, %v518_v40 }
  0xa5   : > { %7212 = vmatmul.mubr.msk.bf16.gmra.mxu0 %vm554_vm0, %v519_v42 }
  0xe8   : > { %v2295_v8 = vpop.permute.xlu1 %2294 }
  0xe9   : > { %v2005_v58 = vpop.permute.xlu0 %2004 }
  0xea   : > { %2100 = vst.msk [vmem:[#allocation3 + $0x8] sm:$0xf] %vm2098_vm13, %v2005_v58 }
  0xec   : > { %v2297_v26 = vpop.permute.xlu1 %2296 }
  0xed   : > { %2392 = vst.msk [vmem:[#allocation3 + $0x8] sm:$0xf] %vm2390_vm14, %v2297_v26 }
  0xee   : > { %v2003_v6 = vpop.permute.xlu0 %2002 }
  0xef   : > { %2099 = vst.msk [vmem:[#allocation3] sm:$0xf] %vm2098_vm13, %v2003_v6 }
  0xf0   : > { %2391 = vst.msk [vmem:[#allocation3] sm:$0xf] %vm2390_vm14, %v2295_v8  ;;  %v1438_v8 = vld [vmem:[#allocation2 + $0x30] sm:$0xf] }
 0x135   : > { %v7189_v50 = vpop.f32.mrf.mxu0 }
 0x136   : > { %v773_v53 = vmul.f32 %v7189_v50, %v7943_v49 }
 0x137   : > { %v637_v55 = vpop.f32.mrf.mxu0 }
 0x138   : > { %v812_v56 = vadd.f32 %v7948_v51, %v773_v53  ;;  %v771_v57 = vmul.f32 %v7943_v49, %v637_v55 }
 0x139   : > { %v7190_v59 = vpop.f32.mrf.mxu0 }
 0x13a   : > { %v844_v60 = vmax.f32 %v812_v56, 0.0  ;;  %v810_v62 = vadd.f32 %v7948_v51, %v771_v57  ;;  %v774_v63 = vmul.f32 %v7190_v59, %v7943_v49 }
 0x13b   : > { %v640_v0 = vpop.f32.mrf.mxu0 }
 0x13c   : > { %v7100_v1 = vpack.c.bf16 %v844_v60, %v844_v60  ;;  %v842_v2 = vmax.f32 %v810_v62, 0.0  ;;  %v813_v3 = vadd.f32 %v7948_v51, %v774_v63  ;;  %v772_v4 = vmul.f32 %v7943_v49, %v640_v0  ;;  %v1421_v63 = vld [vmem:[#allocation2 + $0x14] sm:$0x1] }
 0x13d   : > { %v7193_v7 = vpop.f32.mrf.mxu0 }
 0x13e   : > { %v1112_v9 = vshrl.u32 %v7100_v1, 16  ;;  %v7098_v10 = vpack.c.bf16 %v842_v2, %v842_v2  ;;  %v845_v11 = vmax.f32 %v813_v3, 0.0  ;;  %v811_v12 = vadd.f32 %v7948_v51, %v772_v4 }
 0x13f   : > { %v777_v13 = vmul.f32 %v7193_v7, %v7943_v49  ;;  %v653_v14 = vpop.f32.mrf.mxu0  ;;  %v1115_v16 = vshll.u32 %v7100_v1, 16 }
 0x140   : > { %v1114_v15 = vrot.slane %v1112_v9, 7  ;;  %v1095_v17 = vshrl.u32 %v7098_v10, 16  ;;  %v7101_v18 = vpack.c.bf16 %v845_v11, %v845_v11  ;;  %v1098_v21 = vshll.u32 %v7098_v10, 16 }
 0x141   : > { %v843_v22 = vmax.f32 %v811_v12, 0.0  ;;  %v816_v23 = vadd.f32 %v7948_v51, %v777_v13  ;;  %v775_v24 = vmul.f32 %v7943_v49, %v653_v14  ;;  %v7194_v25 = vpop.f32.mrf.mxu0 }
 0x142   : > { %v1117_v27 = vor.u32 %v1115_v16, %v1114_v15  ;;  %v1118_v28 = vrot.slane %v1114_v15, 4  ;;  %v1097_v29 = vrot.slane %v1095_v17, 7  ;;  %v1120_v30 = vshrl.u32 %v7101_v18, 16 }
 0x143   : > { %v1123_v32 = vshll.u32 %v7101_v18, 16  ;;  %v7099_v33 = vpack.c.bf16 %v843_v22, %v843_v22  ;;  %v848_v37 = vmax.f32 %v816_v23, 0.0  ;;  %v814_v38 = vadd.f32 %v7948_v51, %v775_v24  ;;  %v656_v50 = vpop.f32.mrf.mxu0  ;;  %v1431_v23 = vld [vmem:[#allocation2 + $0x24] sm:$0xf] }
 0x144   : > { %v1425_v39 = vsel %vm7966_vm2, %v1117_v27, %v1424_v20  ;;  %v1100_v40 = vor.u32 %v1098_v21, %v1097_v29  ;;  %v1101_v41 = vrot.slane %v1097_v29, 4  ;;  %v1122_v42 = vrot.slane %v1120_v30, 7 }
 0x145   : > { %1426 = vst [vmem:[#allocation2 + $0x18] sm:$0xf] %v1425_v39  ;;  %v1103_v45 = vshrl.u32 %v7099_v33, 16  ;;  %v1106_v46 = vshll.u32 %v7099_v33, 16  ;;  %v7104_v47 = vpack.c.bf16 %v848_v37, %v848_v37  ;;  %v846_v48 = vmax.f32 %v814_v38, 0.0  ;;  %v7197_v7 = vpop.f32.mrf.mxu0 }
 0x146   : > { %v1418_v52 = vsel %vm7966_vm2, %v1100_v40, %v1417_v31  ;;  %v1125_v53 = vor.u32 %v1123_v32, %v1122_v42  ;;  %v1127_v54 = vrot.slane %v1122_v42, 4  ;;  %v778_v55 = vmul.f32 %v7194_v25, %v7943_v49 }
 0x147   : > { %1419 = vst [vmem:[#allocation2 + $0xc] sm:$0xf] %v1418_v52  ;;  %v1105_v56 = vrot.slane %v1103_v45, 7  ;;  %v1146_v57 = vshrl.u32 %v7104_v47, 16  ;;  %v1149_v58 = vshll.u32 %v7104_v47, 16  ;;  %v7102_v59 = vpack.c.bf16 %v846_v48, %v846_v48  ;;  %v669_v32 = vpop.f32.mrf.mxu0 }
 0x148   : > { %v1126_v60 = vsel %vm7978_vm4, %v1118_v28, %v1125_v53  ;;  %v1429_v62 = vsel %vm7862_vm5, %v1127_v54, %v1428_v44  ;;  %v817_v0 = vadd.f32 %v7948_v51, %v778_v55  ;;  %v776_v1 = vmul.f32 %v7943_v49, %v656_v50 }
 0x149   : > { %1427 = vst.msk [vmem:[#allocation2 + $0x1c] sm:$0xf] %vm890_vm1, %v1126_v60  ;;  %1430 = vst [vmem:[#allocation2 + $0x20] sm:$0x1] %v1429_v62  ;;  %v1108_v2 = vor.u32 %v1106_v46, %v1105_v56  ;;  %v1110_v3 = vrot.slane %v1105_v56, 4  ;;  %v1148_v4 = vrot.slane %v1146_v57, 7  ;;  %v781_v12 = vmul.f32 %v7197_v7, %v7943_v49 }
 0x14a   : > { %v1129_v6 = vshrl.u32 %v7102_v59, 16  ;;  %v1132_v9 = vshll.u32 %v7102_v59, 16  ;;  %v849_v10 = vmax.f32 %v817_v0, 0.0  ;;  %v815_v11 = vadd.f32 %v7948_v51, %v776_v1  ;;  %v1435_v62 = vld [vmem:[#allocation2 + $0x2c] sm:$0x1] }
 0x14b   : > { %v1109_v13 = vsel %vm7978_vm4, %v1101_v41, %v1108_v2  ;;  %v1422_v14 = vsel %vm7862_vm5, %v1110_v3, %v1421_v63  ;;  %v1151_v15 = vor.u32 %v1149_v58, %v1148_v4  ;;  %v820_v21 = vadd.f32 %v7948_v51, %v781_v12  ;;  %v1442_v41 = vld [vmem:[#allocation2 + $0x38] sm:$0x1]  ;;  %v7198_v58 = vpop.f32.mrf.mxu0 }
 0x14c   : > { %1420 = vst.msk [vmem:[#allocation2 + $0x10] sm:$0xf] %vm890_vm1, %v1109_v13  ;;  %1423 = vst [vmem:[#allocation2 + $0x14] sm:$0x1] %v1422_v14  ;;  %v7999_v16 = vrot.slane %v1129_v6, 7  ;;  %v7105_v17 = vpack.c.bf16 %v849_v10, %v849_v10  ;;  %v847_v18 = vmax.f32 %v815_v11, 0.0  ;;  %v779_v3 = vmul.f32 %v7943_v49, %v669_v32 }
 0x14d   : > { %v1535_v20 = vld [vmem:[#allocation2 + $0x18] sm:$0xf]  ;;  %v1439_v22 = vsel %vm7966_vm2, %v1151_v15, %v1438_v8  ;;  %v1152_v28 = vrot.slane %v1148_v4, 4  ;;  %v852_v40 = vmax.f32 %v820_v21, 0.0  ;;  %v672_v10 = vpop.f32.mrf.mxu0  ;;  %v1452_v21 = vld [vmem:[#allocation2 + $0x48] sm:$0xf] }
 0x14e   : > { %2846 = vrot.lane.b32.xlu0 %v1535_v20, %s7586_s14  ;;  %1587 = vst.msk [vmem:[#allocation3 + $0x20] sm:$0xf] %vm890_vm1, %v1535_v20  ;;  %1440 = vst [vmem:[#allocation2 + $0x30] sm:$0xf] %v1439_v22  ;;  %v1134_v24 = vor.u32 %v1132_v9, %v7999_v16  ;;  %v1154_v25 = vshrl.u32 %v7105_v17, 16  ;;  %v1157_v26 = vshll.u32 %v7105_v17, 16  ;;  %v7103_v29 = vpack.c.bf16 %v847_v18, %v847_v18 }
 0x14f   : > { %v8007_v27 = vld [vmem:[#allocation2 + $0xc] sm:$0xf]  ;;  %v6895_v30 = vrot.slane %v1535_v20, 9  ;;  %v1667_v31 = vshrl.u32 %v1535_v20, 16  ;;  %v1670_v46 = vshll.u32 %v1535_v20, 16  ;;  %v1135_v47 = vrot.slane %v7999_v16, 4 }
 0x150   : > { %1585 = vst.msk [vmem:[#allocation3 + $0x10] sm:$0xf] %vm890_vm1, %v8007_v27  ;;  %v1432_v33 = vsel %vm7966_vm2, %v1134_v24, %v1431_v23  ;;  %v1156_v37 = vrot.slane %v1154_v25, 7  ;;  %v8013_v38 = vld [vmem:[#allocation2 + $0x1c] sm:$0xf]  ;;  %v1137_v42 = vshrl.u32 %v7103_v29, 16  ;;  %v7108_v57 = vpack.c.bf16 %v852_v40, %v852_v40 }
 0x151   : > { %v8015_v39 = vld [vmem:[#allocation2 + $0x20] sm:$0x1]  ;;  %1433 = vst [vmem:[#allocation2 + $0x24] sm:$0xf] %v1432_v33  ;;  %v1140_v44 = vshll.u32 %v7103_v29, 16  ;;  %2848 = vrot.lane.b32.xlu1 %v8013_v38, %s7586_s14  ;;  %v2198_v45 = vrot.slane %v8013_v38, 5  ;;  %v818_v17 = vadd.f32 %v7948_v51, %v779_v3  ;;  %v782_v18 = vmul.f32 %v7198_v58, %v7943_v49 }
 0x152   : > { %2429 = vrot.lane.b32.xlu0 %v1535_v20, %s7587_s17  ;;  %1588 = vst.msk [vmem:[#allocation3 + $0x28] sm:$0xf] %vm890_vm1, %v8013_v38  ;;  %v1159_v48 = vor.u32 %v1157_v26, %v1156_v37  ;;  %v1161_v50 = vrot.slane %v1156_v37, 4  ;;  %v2201_v52 = vrot.slane %v8015_v39, 5  ;;  %v1139_v53 = vrot.slane %v1137_v42, 7 }
 0x153   : > { %v2199_v54 = vsel %vm7893_vm12, %v6895_v30, %v2198_v45  ;;  %v8027_v55 = vld [vmem:[#allocation2 + $0x10] sm:$0xf]  ;;  %v2200_v56 = vrot.slane %v2198_v45, 4  ;;  %v1669_v4 = vrot.slane %v1667_v31, 4  ;;  %v1672_v6 = vrot.slane %v1670_v46, 5  ;;  %v8091_v46 = vpop.f32.mrf.mxu0 }
 0x154   : > { %v1160_v59 = vsel %vm7978_vm4, %v1152_v28, %v1159_v48  ;;  %v1443_v60 = vsel %vm7862_vm5, %v1161_v50, %v1442_v41  ;;  %3168 = vst.msk [vmem:[#allocation3 + $0x4] sm:$0xf] %vm890_vm1, %v2199_v54  ;;  %1586 = vst.msk [vmem:[#allocation3 + $0x18] sm:$0xf] %vm890_vm1, %v8027_v55  ;;  %v1142_v63 = vor.u32 %v1140_v44, %v1139_v53  ;;  %v1144_v0 = vrot.slane %v1139_v53, 4 }
 0x155   : > { %1441 = vst.msk [vmem:[#allocation2 + $0x34] sm:$0xf] %vm890_vm1, %v1160_v59  ;;  %1444 = vst [vmem:[#allocation2 + $0x38] sm:$0x1] %v1443_v60  ;;  %2431 = vrot.lane.b32.xlu1 %v8013_v38, %s7587_s17  ;;  %v2202_v1 = vsel %vm7893_vm12, %v2200_v56, %v2201_v52  ;;  %v8043_v2 = vld [vmem:[#allocation2 + $0x30] sm:$0xf]  ;;  %v1673_v20 = vor.u32 %v1672_v6, %v1669_v4  ;;  %v780_v22 = vmul.f32 %v7943_v49, %v672_v10 }
 0x156   : > { %2425 = vrot.lane.b32.xlu0 %v8007_v27, %s7587_s17  ;;  %3169 = vst.msk [vmem:[#allocation3 + $0xc] sm:$0xf] %vm890_vm1, %v2202_v1  ;;  %1591 = vst.msk [vmem:[#allocation3 + $0x40] sm:$0xf] %vm890_vm1, %v8043_v2  ;;  %v1143_v7 = vsel %vm7978_vm4, %v1135_v47, %v1142_v63  ;;  %v1436_v8 = vsel %vm7862_vm5, %v1144_v0, %v1435_v62  ;;  %v1180_v9 = vshrl.u32 %v7108_v57, 16  ;;  %v2191_v11 = vrot.slane %v8027_v55, 5 }
 0x157   : > { %1434 = vst.msk [vmem:[#allocation2 + $0x28] sm:$0xf] %vm890_vm1, %v1143_v7  ;;  %1437 = vst [vmem:[#allocation2 + $0x2c] sm:$0x1] %v1436_v8  ;;  %v1676_v12 = vshll.u32 %v8013_v38, 16  ;;  %v1183_v13 = vshll.u32 %v7108_v57, 16  ;;  %v821_v26 = vadd.f32 %v7948_v51, %v782_v18  ;;  %v819_v32 = vadd.f32 %v7948_v51, %v780_v22 }
 0x158   : > { %v8056_v14 = vld [vmem:[#allocation2 + $0x24] sm:$0xf]  ;;  %v1680_v15 = vshrl.u32 %v8013_v38, 16  ;;  %v8062_v16 = vrot.slane %v1180_v9, 7  ;;  %v8069_v23 = vld [vmem:[#allocation2 + $0x14] sm:$0x1]  ;;  %v685_v9 = vpop.f32.mrf.mxu0 }
 0x159   : > { %2427 = vrot.lane.b32.xlu1 %v8027_v55, %s7587_s17  ;;  %1589 = vst.msk [vmem:[#allocation3 + $0x30] sm:$0xf] %vm890_vm1, %v8056_v14  ;;  %v850_v25 = vmax.f32 %v818_v17, 0.0  ;;  %v2193_v28 = vrot.slane %v2191_v11, 4  ;;  %v6894_v29 = vrot.slane %v8007_v27, 9  ;;  %v8074_v30 = vrot.slane %v1676_v12, 5 }
 0x15a   : > { %2719 = vrot.lane.b32.xlu0 %v2199_v54, %s7588_s22  ;;  %v1185_v24 = vor.u32 %v1183_v13, %v8062_v16  ;;  %v8083_v33 = vrot.slane %v1680_v15, 4  ;;  %v853_v40 = vmax.f32 %v821_v26, 0.0  ;;  %v2194_v41 = vrot.slane %v8069_v23, 5  ;;  %v1445_v58 = vld [vmem:[#allocation2 + $0x3c] sm:$0xf] }
 0x15b   : > { %v7106_v38 = vpack.c.bf16 %v850_v25, %v850_v25  ;;  %v8088_v42 = vrot.slane %v1673_v20, 4  ;;  %v851_v44 = vmax.f32 %v819_v32, 0.0  ;;  %v1643_v45 = vshrl.u32 %v8007_v27, 16  ;;  %v1456_v4 = vld [vmem:[#allocation2 + $0x50] sm:$0x1] }
 0x15c   : > { %v8076_v31 = vld [vmem:[#allocation2 + $0x34] sm:$0xf]  ;;  %v1453_v37 = vsel %vm7966_vm2, %v1185_v24, %v1452_v21  ;;  %v7109_v50 = vpack.c.bf16 %v853_v40, %v853_v40  ;;  %v1646_v53 = vshll.u32 %v8007_v27, 16  ;;  %v8100_v56 = vsel %vm7893_vm12, %v6894_v29, %v2191_v11  ;;  %v8110_v0 = vld [vmem:[#allocation2 + $0x38] sm:$0x1]  ;;  %v7202_v40 = vpop.f32.mrf.mxu0 }
 0x15d   : > { %2721 = vrot.lane.b32.xlu1 %v2202_v1, %s7588_s22  ;;  %1592 = vst.msk [vmem:[#allocation3 + $0x48] sm:$0xf] %vm890_vm1, %v8076_v31  ;;  %1454 = vst [vmem:[#allocation2 + $0x48] sm:$0xf] %v1453_v37  ;;  %v1163_v47 = vshrl.u32 %v7106_v38, 16  ;;  %v1166_v48 = vshll.u32 %v7106_v38, 16  ;;  %v7107_v59 = vpack.c.bf16 %v851_v44, %v851_v44  ;;  %v1683_v27 = vor.u32 %v8083_v33, %v8074_v30 }
 0x15e   : > { %2302 = vrot.lane.b32.xlu0 %v2199_v54, %s7585_s18  ;;  %v8093_v52 = vld [vmem:[#allocation2 + $0x28] sm:$0xf]  ;;  %v2195_v54 = vsel %vm7893_vm12, %v2193_v28, %v2194_v41  ;;  %v1686_v57 = vshll.u32 %v8015_v39, 16  ;;  %v1188_v62 = vshrl.u32 %v7109_v50, 16  ;;  %v1191_v63 = vshll.u32 %v7109_v50, 16  ;;  %v7358_v28 = vld [vmem:[%s12049_s4 + $0x38] sm:$0xff]  }
 0x15f   : > { %1590 = vst.msk [vmem:[#allocation3 + $0x38] sm:$0xf] %vm890_vm1, %v8093_v52  ;;  %v1165_v60 = vrot.slane %v1163_v47, 7  ;;  %v1186_v3 = vrot.slane %v8062_v16, 4  ;;  %v1171_v6 = vshrl.u32 %v7107_v59, 16  ;;  %v1174_v7 = vshll.u32 %v7107_v59, 16  ;;  %3498 = vmatpush1.bf16.msra.mxu1 %v7358_v28 }
 0x160   : > { %v6897_v8 = vrot.slane %v8043_v2, 9  ;;  %v1190_v10 = vrot.slane %v1188_v62, 7  ;;  %v1449_v11 = vld [vmem:[#allocation2 + $0x44] sm:$0x1]  ;;  %v1645_v12 = vrot.slane %v1643_v45, 4  ;;  %v1648_v13 = vrot.slane %v1646_v53, 5  ;;  %3499 = vmatprep.subr.bf16.mxu1 %v7583_v34 }
 0x161   : > { %2304 = vrot.lane.b32.xlu1 %v2202_v1, %s7585_s18  ;;  %v1168_v1 = vor.u32 %v1166_v48, %v1165_v60  ;;  %v1169_v15 = vrot.slane %v1165_v60, 4  ;;  %v1173_v17 = vrot.slane %v1171_v6, 7  ;;  %v2212_v18 = vrot.slane %v8076_v31, 5  ;;  %v8116_v21 = vld [vmem:[#allocation2 + $0x2c] sm:$0x1]  ;;  %v7359_v62 = vld [vmem:[%s12049_s4 + $0x30] sm:$0xff]  }
 0x162   : > { %2854 = vrot.lane.b32.xlu0 %v8043_v2, %s7586_s14  ;;  %v2215_v20 = vrot.slane %v8110_v0, 5  ;;  %v1193_v22 = vor.u32 %v1191_v63, %v1190_v10  ;;  %v1195_v24 = vrot.slane %v1190_v10, 4  ;;  %v2205_v26 = vrot.slane %v8093_v52, 5 }
 0x163   : > { %v1446_v16 = vsel %vm7966_vm2, %v1168_v1, %v1445_v58  ;;  %v1176_v29 = vor.u32 %v1174_v7, %v1173_v17  ;;  %v1178_v32 = vrot.slane %v1173_v17, 4  ;;  %v1652_v37 = vshll.u32 %v8027_v55, 16  ;;  %3500 = vmatpush1.bf16.msra.mxu1 %v7359_v62 }
 0x164   : > { %v8123_v25 = vld [vmem:[#allocation2 + $0x48] sm:$0xf]  ;;  %1447 = vst [vmem:[#allocation2 + $0x3c] sm:$0xf] %v1446_v16  ;;  %v8132_v38 = vsel %vm7893_vm12, %v6897_v8, %v2212_v18  ;;  %v1194_v41 = vsel %vm7978_vm4, %v1186_v3, %v1193_v22  ;;  %v1457_v44 = vsel %vm7862_vm5, %v1195_v24, %v1456_v4  ;;  %v2214_v45 = vrot.slane %v2212_v18, 4  ;;  %v688_v4 = vpop.f32.mrf.mxu0  ;;  %3501 = vmatprep.subr.bf16.mxu1 %v7583_v34 }
 0x165   : > { %2717 = vrot.lane.b32.xlu1 %v2195_v54, %s7588_s22  ;;  %1595 = vst.msk [vmem:[#allocation3 + $0x60] sm:$0xf] %vm890_vm1, %v8123_v25  ;;  %3172 = vst.msk [vmem:[#allocation3 + $0x24] sm:$0xf] %vm890_vm1, %v8132_v38  ;;  %v2207_v47 = vrot.slane %v2205_v26, 4  ;;  %v1177_v48 = vsel %vm7978_vm4, %v1169_v15, %v1176_v29  ;;  %v1450_v50 = vsel %vm7862_vm5, %v1178_v32, %v1449_v11  ;;  %v2208_v53 = vrot.slane %v8116_v21, 5 }
 0x166   : > { %2437 = vrot.lane.b32.xlu0 %v8043_v2, %s7587_s17  ;;  %1455 = vst.msk [vmem:[#allocation2 + $0x4c] sm:$0xf] %vm890_vm1, %v1194_v41  ;;  %1458 = vst [vmem:[#allocation2 + $0x50] sm:$0x1] %v1457_v44  ;;  %v6896_v58 = vrot.slane %v8056_v14, 9  ;;  %v1649_v59 = vor.u32 %v1648_v13, %v1645_v12  ;;  %v8156_v60 = vsel %vm7893_vm12, %v2214_v45, %v2215_v20  ;;  %v1656_v63 = vshrl.u32 %v8027_v55, 16 }
 0x167   : > { %1448 = vst.msk [vmem:[#allocation2 + $0x40] sm:$0xf] %vm890_vm1, %v1177_v48  ;;  %1451 = vst [vmem:[#allocation2 + $0x44] sm:$0x1] %v1450_v50  ;;  %v8176_v6 = vsel %vm7885_vm9, %v8088_v42, %v8074_v30  ;;  %v1684_v55 = vrot.slane %v1683_v27, 4  ;;  %v785_v7 = vmul.f32 %v8091_v46, %v7943_v49  ;;  %v1688_v8 = vrot.slane %v1686_v57, 5 }
 0x168   : > { %3173 = vst.msk [vmem:[#allocation3 + $0x2c] sm:$0xf] %vm890_vm1, %v8156_v60  ;;  %v8170_v3 = vsel %vm7893_vm12, %v6896_v58, %v2205_v26  ;;  %v8189_v1 = vrot.slane %v1652_v37, 5  ;;  %v783_v42 = vmul.f32 %v7943_v49, %v685_v9  ;;  %v786_v30 = vmul.f32 %v7202_v40, %v7943_v49  ;;  %v7360_v9 = vld [vmem:[%s12049_s4 + $0x28] sm:$0xff]   ;;  %v7361_v48 = vld [vmem:[%s12049_s4 + $0x20] sm:$0xff]  }
 0x169   : > { %2300 = vrot.lane.b32.xlu1 %v2195_v54, %s7585_s18  ;;  %v8166_v54 = vsel %vm7893_vm12, %v2207_v47, %v2208_v53  ;;  %3170 = vst.msk [vmem:[#allocation3 + $0x14] sm:$0xf] %vm890_vm1, %v8170_v3  ;;  %v1650_v33 = vrot.slane %v1649_v59, 4  ;;  %v824_v46 = vadd.f32 %v7948_v51, %v785_v7  ;;  %v784_v57 = vmul.f32 %v7943_v49, %v688_v4 }
 0x16a   : > { %2715 = vrot.lane.b32.xlu0 %v8100_v56, %s7588_s22  ;;  %3171 = vst.msk [vmem:[#allocation3 + $0x1c] sm:$0xf] %vm890_vm1, %v8166_v54  ;;  %v1691_v27 = vshrl.u32 %v8056_v14, 16  ;;  %v8206_v10 = vrot.slane %v1656_v63, 4  ;;  %v822_v11 = vadd.f32 %v7948_v51, %v783_v42  ;;  %v825_v12 = vadd.f32 %v7948_v51, %v786_v30  ;;  %3502 = vmatpush1.bf16.msra.mxu1 %v7360_v9 }
 0x16b   : > { %v8199_v39 = vld [vmem:[#allocation2 + $0x3c] sm:$0xf]  ;;  %v1694_v13 = vshll.u32 %v8056_v14, 16  ;;  %v8215_v15 = vsel %vm7885_vm9, %v1684_v55, %v1688_v8  ;;  %v856_v18 = vmax.f32 %v824_v46, 0.0  ;;  %v823_v20 = vadd.f32 %v7948_v51, %v784_v57  ;;  %3503 = vmatprep.subr.bf16.mxu1 %v7583_v34  ;;  %v1466_v46 = vld [vmem:[#allocation2 + $0x60] sm:$0xf] }
 0x16c   : > { %1593 = vst.msk [vmem:[#allocation3 + $0x50] sm:$0xf] %vm890_vm1, %v8199_v39  ;;  %v1693_v16 = vrot.slane %v1691_v27, 4  ;;  %v1662_v22 = vshll.u32 %v8069_v23, 16  ;;  %v854_v24 = vmax.f32 %v822_v11, 0.0  ;;  %v857_v26 = vmax.f32 %v825_v12, 0.0  ;;  %v8254_v12 = vpop.f32.mrf.mxu0 }
 0x16d   : > { %2856 = vrot.lane.b32.xlu1 %v8076_v31, %s7586_s14  ;;  %v8217_v17 = vld [vmem:[#allocation2 + $0x4c] sm:$0xf]  ;;  %v1696_v29 = vrot.slane %v1694_v13, 5  ;;  %v8233_v32 = vsel %vm7885_vm9, %v1650_v33, %v8189_v1  ;;  %v7112_v37 = vpack.c.bf16 %v856_v18, %v856_v18  ;;  %v855_v40 = vmax.f32 %v823_v20, 0.0  ;;  %v7362_v33 = vld [vmem:[%s12049_s4 + $0x18] sm:$0xff]  }
 0x16e   : > { %2999 = vrot.lane.b32.xlu0 %v8176_v6, %s7589_s20  ;;  %1596 = vst.msk [vmem:[#allocation3 + $0x68] sm:$0xf] %vm890_vm1, %v8217_v17  ;;  %v8223_v28 = vld [vmem:[#allocation2 + $0x40] sm:$0xf]  ;;  %v1700_v41 = vshll.u32 %v8093_v52, 16  ;;  %v1659_v44 = vor.u32 %v8206_v10, %v8189_v1  ;;  %v7110_v45 = vpack.c.bf16 %v854_v24, %v854_v24  ;;  %3504 = vmatpush1.bf16.msra.mxu1 %v7361_v48  ;;  %v1704_v9 = vshrl.u32 %v8093_v52, 16 }
 0x16f   : > { %1594 = vst.msk [vmem:[#allocation3 + $0x58] sm:$0xf] %vm890_vm1, %v8223_v28  ;;  %v1697_v47 = vor.u32 %v1696_v29, %v1693_v16  ;;  %v1214_v50 = vshrl.u32 %v7112_v37, 16  ;;  %v1217_v53 = vshll.u32 %v7112_v37, 16  ;;  %v7111_v58 = vpack.c.bf16 %v855_v40, %v855_v40  ;;  %3505 = vmatprep.subr.bf16.mxu1 %v7583_v34  ;;  %v1459_v20 = vld [vmem:[#allocation2 + $0x54] sm:$0xf] }
 0x170   : > { %v8243_v59 = vrot.slane %v1700_v41, 5  ;;  %v1197_v62 = vshrl.u32 %v7110_v45, 16  ;;  %v1200_v63 = vshll.u32 %v7110_v45, 16  ;;  %v1710_v11 = vshll.u32 %v8116_v21, 16  ;;  %v1470_v16 = vld [vmem:[#allocation2 + $0x68] sm:$0x1] }
 0x171   : > { %2439 = vrot.lane.b32.xlu1 %v8076_v31, %s7587_s17  ;;  %v1216_v7 = vrot.slane %v1214_v50, 7  ;;  %v1205_v8 = vshrl.u32 %v7111_v58, 16  ;;  %v1208_v42 = vshll.u32 %v7111_v58, 16  ;;  %v1698_v30 = vrot.slane %v1697_v47, 4  ;;  %v1463_v45 = vld [vmem:[#allocation2 + $0x5c] sm:$0x1] }
 0x172   : > { %2298 = vrot.lane.b32.xlu0 %v8100_v56, %s7585_s18  ;;  %v7113_v56 = vpack.c.bf16 %v857_v26, %v857_v26  ;;  %v1199_v57 = vrot.slane %v1197_v62, 7  ;;  %3506 = vmatpush1.bf16.msra.mxu1 %v7362_v33  ;;  %v1706_v48 = vrot.slane %v1704_v9, 4  ;;  %v8268_v50 = vld [vmem:[#allocation2 + $0x50] sm:$0x1]  ;;  %v1712_v62 = vrot.slane %v1710_v11, 5  ;;  %v502_v9 = vld [vmem:[%s7798_s21 + $0xe0] sm:$0xff] }
 0x173   : > { %v1219_v13 = vor.u32 %v1217_v53, %v1216_v7  ;;  %v1220_v18 = vrot.slane %v1216_v7, 4  ;;  %v1207_v24 = vrot.slane %v1205_v8, 7  ;;  %v8260_v26 = vsel %vm7885_vm9, %v1698_v30, %v8243_v59  ;;  %3507 = vmatprep.subr.bf16.mxu1 %v7583_v34  ;;  %v7363_v30 = vld [vmem:[%s12049_s4 + $0x10] sm:$0xff]  }
 0x174   : > { %v1222_v4 = vshrl.u32 %v7113_v56, 16  ;;  %v1225_v55 = vshll.u32 %v7113_v56, 16  ;;  %v1202_v29 = vor.u32 %v1200_v63, %v1199_v57  ;;  %v1203_v37 = vrot.slane %v1199_v57, 4  ;;  %v8276_v63 = vld [vmem:[#allocation2 + $0x44] sm:$0x1]  ;;  %v503_v11 = vld [vmem:[%s7798_s21 + $0xe8] sm:$0xff] }
 0x175   : > { %3001 = vrot.lane.b32.xlu1 %v8215_v15, %s7589_s20  ;;  %v1467_v21 = vsel %vm7966_vm2, %v1219_v13, %v1466_v46  ;;  %v1210_v56 = vor.u32 %v1208_v42, %v1207_v24  ;;  %v1212_v47 = vrot.slane %v1207_v24, 4  ;;  %v1707_v8 = vor.u32 %v1706_v48, %v8243_v59  ;;  %v504_v24 = vld [vmem:[%s7798_s21 + $0xf0] sm:$0xff] }
 0x176   : > { %2582 = vrot.lane.b32.xlu0 %v8176_v6, %s7590_s24  ;;  %v1224_v27 = vrot.slane %v1222_v4, 7  ;;  %1468 = vst [vmem:[#allocation2 + $0x60] sm:$0xf] %v1467_v21  ;;  %v1460_v53 = vsel %vm7966_vm2, %v1202_v29, %v1459_v20  ;;  %v8278_v4 = vpop.f32.mrf.mxu0  ;;  %v6899_v42 = vrot.slane %v8123_v25, 9  ;;  %v8294_v33 = vrot.slane %v1659_v44, 4  ;;  %v505_v29 = vld [vmem:[%s7798_s21 + $0xf8] sm:$0xff]  ;;  %3508 = vmatpush1.bf16.msra.mxu1 %v7363_v30 }
 0x177   : > { %1461 = vst [vmem:[#allocation2 + $0x54] sm:$0xf] %v1460_v53  ;;  %v1464_v7 = vsel %vm7862_vm5, %v1212_v47, %v1463_v45  ;;  %v2226_v46 = vrot.slane %v8217_v17, 5  ;;  %v2229_v59 = vrot.slane %v8268_v50, 5  ;;  %v2219_v57 = vrot.slane %v8223_v28, 5  ;;  %3509 = vmatprep.subr.bf16.mxu1 %v7583_v34 }
 0x178   : > { %v1227_v40 = vor.u32 %v1225_v55, %v1224_v27  ;;  %v1229_v41 = vrot.slane %v1224_v27, 4  ;;  %v1211_v55 = vsel %vm7978_vm4, %v1203_v37, %v1210_v56  ;;  %1465 = vst [vmem:[#allocation2 + $0x5c] sm:$0x1] %v1464_v7  ;;  %v1708_v1 = vrot.slane %v1707_v8, 4  ;;  %v932_v21 = vld [vmem:[#allocation2 + $0x78] sm:$0x1] }
 0x179   : > { %2584 = vrot.lane.b32.xlu1 %v8215_v15, %s7590_s24  ;;  %1462 = vst.msk [vmem:[#allocation2 + $0x58] sm:$0xf] %vm890_vm1, %v1211_v55  ;;  %v2222_v10 = vrot.slane %v8276_v63, 5  ;;  %v6898_v44 = vrot.slane %v8199_v39, 9  ;;  %v1763_v27 = vshrl.u32 %v8123_v25, 16  ;;  %v8311_v13 = vsel %vm7893_vm12, %v6899_v42, %v2226_v46 }
 0x17a   : > { %2010 = vrot.lane.b32.xlu0 %v8176_v6, %s7584_s23  ;;  %v1228_v58 = vsel %vm7978_vm4, %v1220_v18, %v1227_v40  ;;  %v1471_v6 = vsel %vm7862_vm5, %v1229_v41, %v1470_v16  ;;  %v2228_v18 = vrot.slane %v2226_v46, 4  ;;  %v2221_v20 = vrot.slane %v2219_v57, 4  ;;  %3176 = vst.msk [vmem:[#allocation3 + $0x44] sm:$0xf] %vm890_vm1, %v8311_v13  ;;  %v929_v56 = vld [vmem:[#allocation2 + $0x6c] sm:$0x1] }
 0x17b   : > { %1469 = vst.msk [vmem:[#allocation2 + $0x64] sm:$0xf] %vm890_vm1, %v1228_v58  ;;  %1472 = vst [vmem:[#allocation2 + $0x68] sm:$0x1] %v1471_v6  ;;  %v1766_v16 = vshll.u32 %v8123_v25, 16  ;;  %v8318_v37 = vsel %vm7885_vm9, %v1708_v1, %v1712_v62  ;;  %v8324_v40 = vsel %vm7893_vm12, %v6898_v44, %v2219_v57  ;;  %v1765_v41 = vrot.slane %v1763_v27, 4 }
 0x17c   : > { %v1772_v45 = vshll.u32 %v8217_v17, 16  ;;  %v8330_v47 = vsel %vm7893_vm12, %v2228_v18, %v2229_v59  ;;  %v8334_v48 = vsel %vm7893_vm12, %v2221_v20, %v2222_v10  ;;  %3174 = vst.msk [vmem:[#allocation3 + $0x34] sm:$0xf] %vm890_vm1, %v8324_v40  ;;  %v520_v58 = vpack.c.bf16 %v503_v11, %v502_v9  ;;  %v988_v6 = vld [vmem:[#allocation2 + $0x80] sm:$0x1] }
 0x17d   : > { %2012 = vrot.lane.b32.xlu1 %v8215_v15, %s7584_s23  ;;  %v7206_v15 = vpop.f32.mrf.mxu0  ;;  %v1768_v53 = vrot.slane %v1766_v16, 5  ;;  %v985_v62 = vld [vmem:[#allocation2 + $0x74] sm:$0x1]  ;;  %3177 = vst.msk [vmem:[#allocation3 + $0x4c] sm:$0xf] %vm890_vm1, %v8330_v47  ;;  %v521_v8 = vpack.c.bf16 %v505_v29, %v504_v24  ;;  %v1776_v42 = vshrl.u32 %v8217_v17, 16  ;;  %v789_v57 = vmul.f32 %v8254_v12, %v7943_v49 }
 0x17e   : > { %2850 = vrot.lane.b32.xlu0 %v8056_v14, %s7586_s14  ;;  %v8344_v55 = vld [vmem:[#allocation2 + $0x60] sm:$0xf]  ;;  %3175 = vst.msk [vmem:[#allocation3 + $0x3c] sm:$0xf] %vm890_vm1, %v8334_v48  ;;  %v1774_v7 = vrot.slane %v1772_v45, 5  ;;  %v1782_v30 = vshll.u32 %v8268_v50, 16  ;;  %7215 = vmatprep.mubr.msk.bf16.mxu0 %vm554_vm0, %v520_v58  ;;  %v787_v50 = vmul.f32 %v7943_v49, %v8278_v4  ;;  %v790_v11 = vmul.f32 %v7206_v15, %v7943_v49 }
 0x17f   : > { %1599 = vst.msk [vmem:[#allocation3 + $0x80] sm:$0xf] %vm890_vm1, %v8344_v55  ;;  %v1769_v46 = vor.u32 %v1768_v53, %v1765_v41  ;;  %v933_v1 = vsel %vm7862_vm5, 0, %v932_v21  ;;  %v8362_v10 = vld [vmem:[#allocation2 + $0x54] sm:$0xf]  ;;  %v704_v44 = vpop.f32.mrf.mxu0  ;;  %7216 = vmatmul.mubr.msk.bf16.gmra.mxu0 %vm554_vm0, %v521_v8  ;;  %v1778_v27 = vrot.slane %v1776_v42, 4  ;;  %v828_v20 = vadd.f32 %v7948_v51, %v789_v57 }
 0x180   : > { %v1784_v9 = vrot.slane %v1782_v30, 5  ;;  %934 = vst [vmem:[#allocation2 + $0x78] sm:$0x1] %v933_v1  ;;  %1597 = vst.msk [vmem:[#allocation3 + $0x70] sm:$0xf] %vm890_vm1, %v8362_v10  ;;  %v930_v12 = vsel %vm7862_vm5, 0, %v929_v56  ;;  %v826_v16 = vadd.f32 %v7948_v51, %v787_v50  ;;  %v829_v15 = vadd.f32 %v7948_v51, %v790_v11 }
 0x181   : > { %2852 = vrot.lane.b32.xlu1 %v8093_v52, %s7586_s14  ;;  %v8374_v18 = vld [vmem:[#allocation2 + $0x58] sm:$0xf]  ;;  %v1770_v4 = vrot.slane %v1769_v46, 4  ;;  %931 = vst [vmem:[#allocation2 + $0x6c] sm:$0x1] %v930_v12  ;;  %v989_v24 = vsel %vm7867_vm6, 0, %v988_v6  ;;  %v1779_v29 = vor.u32 %v1778_v27, %v1774_v7  ;;  %v788_v41 = vmul.f32 %v7943_v49, %v704_v44 }
 0x182   : > { %2433 = vrot.lane.b32.xlu0 %v8056_v14, %s7587_s17  ;;  %v7364_v14 = vld [vmem:[%s12049_s4 + $0x8] sm:$0xff]   ;;  %v8355_v59 = vld [vmem:[#allocation2 + $0x64] sm:$0xf]  ;;  %1598 = vst.msk [vmem:[#allocation3 + $0x78] sm:$0xf] %vm890_vm1, %v8374_v18  ;;  %v986_v45 = vsel %vm7867_vm6, 0, %v985_v62 }
 0x183   : > { %1600 = vst.msk [vmem:[#allocation3 + $0x88] sm:$0xf] %vm890_vm1, %v8355_v59  ;;  %3510 = vmatpush1.bf16.msra.mxu1 %v7364_v14  ;;  %990 = vst [vmem:[#allocation2 + $0x80] sm:$0x1] %v989_v24  ;;  %v7365_v21 = vld [vmem:[%s12049_s4] sm:$0xff]   ;;  %v1664_v56 = vrot.slane %v1662_v22, 5  ;;  %v8398_v53 = vsel %vm7885_vm9, %v1770_v4, %v1774_v7  ;;  %v827_v49 = vadd.f32 %v7948_v51, %v788_v41 }
 0x184   : > { %3511 = vmatprep.subr.bf16.mxu1 %v7583_v34  ;;  %v858_v58 = vmax.f32 %v826_v16, 0.0  ;;  %987 = vst [vmem:[#allocation2 + $0x74] sm:$0x1] %v986_v45  ;;  %v1780_v6 = vrot.slane %v1779_v29, 4  ;;  %v861_v8 = vmax.f32 %v829_v15, 0.0  ;;  %v7366_v62 = vld [vmem:[%s12049_s4 + $0x40] sm:$0xff]  }
 0x185   : > { %2435 = vrot.lane.b32.xlu1 %v8093_v52, %s7587_s17  ;;  %v860_v52 = vmax.f32 %v828_v20, 0.0  ;;  %v1665_v23 = vsel %vm7885_vm9, %v8294_v33, %v1664_v56  ;;  %v859_v30 = vmax.f32 %v827_v49, 0.0  ;;  %v1715_v56 = vshrl.u32 %v8043_v2, 16  ;;  %s10727_s4 = sld [smem:[#allocation9 + $0x13]] }
 0x186   : > { %2578 = vrot.lane.b32.xlu0 %v8233_v32, %s7590_s24  ;;  %v7114_v42 = vpack.c.bf16 %v858_v58, %v858_v58  ;;  %v8413_v51 = vsel %vm7885_vm9, %v1780_v6, %v1784_v9  ;;  %v7117_v7 = vpack.c.bf16 %v861_v8, %v861_v8 }
 0x187   : > { %3512 = vmatpush1.bf16.msra.mxu1 %v7365_v21  ;;  %v7116_v22 = vpack.c.bf16 %v860_v52, %v860_v52  ;;  %v7115_v44 = vpack.c.bf16 %v859_v30, %v859_v30  ;;  %v1480_v27 = vld [vmem:[#allocation2 + $0x78] sm:$0xf]  ;;  %v1718_v52 = vshll.u32 %v8043_v2, 16  ;;  %v1717_v30 = vrot.slane %v1715_v56, 4 }
 0x188   : > { %3527 = vmatprep.subr.bf16.mxu1 %v7583_v34  ;;  %v1231_v57 = vshrl.u32 %v7114_v42, 16  ;;  %v1234_v1 = vshll.u32 %v7114_v42, 16  ;;  %v1256_v33 = vshrl.u32 %v7117_v7, 16  ;;  %v1259_v50 = vshll.u32 %v7117_v7, 16  ;;  %v8439_v7 = vld [vmem:[#allocation2 + $0x5c] sm:$0x1] }
 0x189   : > { %2580 = vrot.lane.b32.xlu1 %v1665_v23, %s7590_s24  ;;  %v1248_v14 = vshrl.u32 %v7116_v22, 16  ;;  %v1251_v46 = vshll.u32 %v7116_v22, 16  ;;  %v1239_v11 = vshrl.u32 %v7115_v44, 16  ;;  %v1242_v4 = vshll.u32 %v7115_v44, 16  ;;  %v8433_v22 = vld [vmem:[#allocation2 + $0x68] sm:$0x1] }
 0x18a   : > { %2006 = vrot.lane.b32.xlu0 %v8233_v32, %s7584_s23  ;;  %v1233_v12 = vrot.slane %v1231_v57, 7  ;;  %v1473_v32 = vld [vmem:[#allocation2 + $0x6c] sm:$0xf]  ;;  %v1258_v9 = vrot.slane %v1256_v33, 7  ;;  %v1484_v29 = vld [vmem:[#allocation2 + $0x80] sm:$0x1] }
 0x18b   : > { %3528 = vmatpush2.bf16.msra.mxu1 %v7366_v62  ;;  %v1250_v34 = vrot.slane %v1248_v14, 7  ;;  %v1241_v21 = vrot.slane %v1239_v11, 7  ;;  %v1477_v8 = vld [vmem:[#allocation2 + $0x74] sm:$0x1]  ;;  %v1720_v14 = vrot.slane %v1718_v52, 5  ;;  %v2240_v57 = vrot.slane %v8355_v59, 5 }
 0x18c   : > { %v1236_v24 = vor.u32 %v1234_v1, %v1233_v12  ;;  %v1237_v15 = vrot.slane %v1233_v12, 4  ;;  %v1261_v41 = vor.u32 %v1259_v50, %v1258_v9  ;;  %v1263_v45 = vrot.slane %v1258_v9, 4 }
 0x18d   : > { %2008 = vrot.lane.b32.xlu1 %v1665_v23, %s7584_s23  ;;  %v1253_v20 = vor.u32 %v1251_v46, %v1250_v34  ;;  %v1254_v16 = vrot.slane %v1250_v34, 4  ;;  %v1244_v62 = vor.u32 %v1242_v4, %v1241_v21  ;;  %v1246_v23 = vrot.slane %v1241_v21, 4 }
 0x18e   : > { %2727 = vrot.lane.b32.xlu0 %v8132_v38, %s7588_s22  ;;  %v1474_v6 = vsel %vm7966_vm2, %v1236_v24, %v1473_v32  ;;  %v1485_v2 = vsel %vm7862_vm5, %v1263_v45, %v1484_v29  ;;  %v6901_v46 = vrot.slane %v8344_v55, 9  ;;  %v2243_v1 = vrot.slane %v8433_v22, 5 }
 0x18f   : > { %v1481_v58 = vsel %vm7966_vm2, %v1253_v20, %v1480_v27  ;;  %1475 = vst [vmem:[#allocation2 + $0x6c] sm:$0xf] %v1474_v6  ;;  %v1262_v49 = vsel %vm7978_vm4, %v1254_v16, %v1261_v41  ;;  %1486 = vst [vmem:[#allocation2 + $0x80] sm:$0x1] %v1485_v2  ;;  %v1478_v42 = vsel %vm7862_vm5, %v1246_v23, %v1477_v8  ;;  %v2233_v33 = vrot.slane %v8374_v18, 5 }
 0x190   : > { %1482 = vst [vmem:[#allocation2 + $0x78] sm:$0xf] %v1481_v58  ;;  %1483 = vst.msk [vmem:[#allocation2 + $0x7c] sm:$0xf] %vm890_vm1, %v1262_v49  ;;  %v8452_v50 = vsel %vm7893_vm12, %v6901_v46, %v2240_v57  ;;  %v2242_v44 = vrot.slane %v2240_v57, 4  ;;  %v2236_v34 = vrot.slane %v8439_v7, 5  ;;  %v1721_v12 = vor.u32 %v1720_v14, %v1717_v30 }
 0x191   : > { %2729 = vrot.lane.b32.xlu1 %v8156_v60, %s7588_s22  ;;  %1479 = vst [vmem:[#allocation2 + $0x74] sm:$0x1] %v1478_v42  ;;  %3180 = vst.msk [vmem:[#allocation3 + $0x64] sm:$0xf] %vm890_vm1, %v8452_v50  ;;  %v2235_v27 = vrot.slane %v2233_v33, 4  ;;  %v1724_v32 = vshll.u32 %v8076_v31, 16 }
 0x192   : > { %2310 = vrot.lane.b32.xlu0 %v8132_v38, %s7585_s18  ;;  %v1245_v38 = vsel %vm7978_vm4, %v1237_v15, %v1244_v62  ;;  %v1728_v9 = vshrl.u32 %v8076_v31, 16  ;;  %v8462_v11 = vsel %vm7893_vm12, %v2242_v44, %v2243_v1  ;;  %v1722_v29 = vrot.slane %v1721_v12, 4  ;;  %v938_v44 = vld [vmem:[#allocation2 + $0x90] sm:$0x1] }
 0x193   : > { %1476 = vst.msk [vmem:[#allocation2 + $0x70] sm:$0xf] %vm890_vm1, %v1245_v38  ;;  %3181 = vst.msk [vmem:[#allocation3 + $0x6c] sm:$0xf] %vm890_vm1, %v8462_v11  ;;  %v8476_v31 = vsel %vm7893_vm12, %v2235_v27, %v2236_v34  ;;  %v1726_v15 = vrot.slane %v1724_v32, 5  ;;  %v1734_v58 = vshll.u32 %v8110_v0, 16 }
 0x194   : > { %3179 = vst.msk [vmem:[#allocation3 + $0x5c] sm:$0xf] %vm890_vm1, %v8476_v31  ;;  %v1730_v41 = vrot.slane %v1728_v9, 4  ;;  %v939_v34 = vsel %vm7862_vm5, 0, %v938_v44  ;;  %v8560_v27 = vld [vmem:[%s12044_s3] ss:$0 sm:$0xff] }
 0x195   : > { %2312 = vrot.lane.b32.xlu1 %v8156_v60, %s7585_s18  ;;  %v6900_v60 = vrot.slane %v8362_v10, 9  ;;  %v1736_v57 = vrot.slane %v1734_v58, 5  ;;  %940 = vst [vmem:[#allocation2 + $0x90] sm:$0x1] %v939_v34  ;;  %v935_v9 = vld [vmem:[#allocation2 + $0x84] sm:$0x1] }
 0x196   : > { %2862 = vrot.lane.b32.xlu0 %v8123_v25, %s7586_s14  ;;  %v8484_v24 = vld [vmem:[#allocation2 + $0x6c] sm:$0xf]  ;;  %v8504_v56 = vld [vmem:[#allocation2 + $0x80] sm:$0x1]  ;;  %v1731_v2 = vor.u32 %v1730_v41, %v1726_v15 }
 0x197   : > { %v8464_v4 = vld [vmem:[#allocation2 + $0x78] sm:$0xf]  ;;  %v8480_v20 = vsel %vm7893_vm12, %v6900_v60, %v2233_v33  ;;  %v8482_v16 = vld [vmem:[#allocation2 + $0x7c] sm:$0xf]  ;;  %1601 = vst.msk [vmem:[#allocation3 + $0x90] sm:$0xf] %vm890_vm1, %v8484_v24  ;;  %v7209_v33 = vpop.f32.mrf.mxu0 }
 0x198   : > { %1603 = vst.msk [vmem:[#allocation3 + $0xa0] sm:$0xf] %vm890_vm1, %v8464_v4  ;;  %3178 = vst.msk [vmem:[#allocation3 + $0x54] sm:$0xf] %vm890_vm1, %v8480_v20  ;;  %v6903_v45 = vrot.slane %v8464_v4, 9  ;;  %v2254_v21 = vrot.slane %v8482_v16, 5 }
 0x199   : > { %2725 = vrot.lane.b32.xlu1 %v8166_v54, %s7588_s22  ;;  %1604 = vst.msk [vmem:[#allocation3 + $0xa8] sm:$0xf] %vm890_vm1, %v8482_v16  ;;  %12050 = vst [vmem:[#allocation20_spill] sm:$0xff] %v8504_v56  ;;  %v6902_v52 = vrot.slane %v8484_v24, 9  ;;  %v2257_v6 = vrot.slane %v8504_v56, 5  ;;  %v1732_v46 = vrot.slane %v1731_v2, 4  ;;  %v717_v32 = vpop.f32.mrf.mxu0 }
 0x19a   : > { %2445 = vrot.lane.b32.xlu0 %v8123_v25, %s7587_s17  ;;  %v8494_v25 = vld [vmem:[#allocation2 + $0x70] sm:$0xf]  ;;  %v1558_v49 = vld [vmem:[#allocation2 + $0x74] sm:$0x1]  ;;  %v8514_v62 = vsel %vm7893_vm12, %v6903_v45, %v2254_v21  ;;  %v2256_v23 = vrot.slane %v2254_v21, 4  ;;  %v936_v45 = vsel %vm7862_vm5, 0, %v935_v9 }
 0x19b   : > { %1602 = vst.msk [vmem:[#allocation3 + $0x98] sm:$0xf] %vm890_vm1, %v8494_v25  ;;  %v2247_v8 = vrot.slane %v8494_v25, 5  ;;  %3184 = vst.msk [vmem:[#allocation3 + $0x84] sm:$0xf] %vm890_vm1, %v8514_v62  ;;  %v2250_v42 = vrot.slane %v1558_v49, 5  ;;  %v1737_v1 = vsel %vm7885_vm9, %v1732_v46, %v1736_v57 }
 0x19c   : > { %v8527_v30 = vsel %vm7893_vm12, %v2256_v23, %v2257_v6  ;;  %937 = vst [vmem:[#allocation2 + $0x84] sm:$0x1] %v936_v45  ;;  %v1494_v46 = vld [vmem:[#allocation2 + $0x90] sm:$0xf] }
 0x19d   : > { %2308 = vrot.lane.b32.xlu1 %v8166_v54, %s7585_s18  ;;  %v1727_v54 = vsel %vm7885_vm9, %v1722_v29, %v1726_v15  ;;  %v8523_v0 = vsel %vm7893_vm12, %v6902_v52, %v2247_v8  ;;  %v2249_v38 = vrot.slane %v2247_v8, 4  ;;  %3185 = vst.msk [vmem:[#allocation3 + $0x8c] sm:$0xf] %vm890_vm1, %v8527_v30  ;;  %v994_v29 = vld [vmem:[#allocation2 + $0x98] sm:$0x1]  ;;  %v7210_v52 = vpop.f32.mrf.mxu0 }
 0x19e   : > { %2723 = vrot.lane.b32.xlu0 %v8170_v3, %s7588_s22  ;;  %12051 = vst [vmem:[#allocation21_spill] sm:$0xff] %v8523_v0  ;;  %3182 = vst.msk [vmem:[#allocation3 + $0x74] sm:$0xf] %vm890_vm1, %v8523_v0  ;;  %v995_v21 = vsel %vm7867_vm6, 0, %v994_v29 }
 0x19f   : > { %v8535_v14 = vsel %vm7893_vm12, %v2249_v38, %v2250_v42  ;;  %996 = vst [vmem:[#allocation2 + $0x98] sm:$0x1] %v995_v21  ;;  %v720_v38 = vpop.f32.mrf.mxu0  ;;  %v991_v42 = vld [vmem:[#allocation2 + $0x8c] sm:$0x1] }
 0x1a0   : > { %12052 = vst [vmem:[#allocation22_spill] sm:$0xff] %v8535_v14  ;;  %3183 = vst.msk [vmem:[#allocation3 + $0x7c] sm:$0xf] %vm890_vm1, %v8535_v14 }
 0x1a1   : > { %2864 = vrot.lane.b32.xlu1 %v8217_v17, %s7586_s14 }
 0x1a2   : > { %3007 = vrot.lane.b32.xlu0 %v1727_v54, %s7589_s20 }
 0x1a5   : > { %2447 = vrot.lane.b32.xlu1 %v8217_v17, %s7587_s17 }
 0x1a6   : > { %2306 = vrot.lane.b32.xlu0 %v8170_v3, %s7585_s18  ;;  %v8552_v3 = vld [vmem:[%s12043_s2] ss:$0 sm:$0xff] }
 0x1a7   : > { %v793_v17 = vmul.f32 %v8552_v3, %v7209_v33  ;;  %v791_v41 = vmul.f32 %v8552_v3, %v717_v32  ;;  %v794_v49 = vmul.f32 %v8552_v3, %v7210_v52  ;;  %v792_v57 = vmul.f32 %v8552_v3, %v720_v38  ;;  %v1487_v52 = vld [vmem:[#allocation2 + $0x84] sm:$0xf] }
 0x1a9   : > { %3009 = vrot.lane.b32.xlu1 %v1737_v1, %s7589_s20  ;;  %v832_v60 = vadd.f32 %v8560_v27, %v793_v17  ;;  %v830_v8 = vadd.f32 %v8560_v27, %v791_v41  ;;  %v833_v23 = vadd.f32 %v8560_v27, %v794_v49  ;;  %v831_v34 = vadd.f32 %v8560_v27, %v792_v57 }
 0x1aa   : > { %2590 = vrot.lane.b32.xlu0 %v1727_v54, %s7590_s24 }
 0x1ab   : > { %v864_v12 = vmax.f32 %v832_v60, 0.0  ;;  %v862_v2 = vmax.f32 %v830_v8, 0.0  ;;  %v865_v17 = vmax.f32 %v833_v23, 0.0  ;;  %v863_v29 = vmax.f32 %v831_v34, 0.0 }
 0x1ad   : > { %2592 = vrot.lane.b32.xlu1 %v1737_v1, %s7590_s24  ;;  %v7120_v15 = vpack.c.bf16 %v864_v12, %v864_v12  ;;  %v7118_v44 = vpack.c.bf16 %v862_v2, %v862_v2  ;;  %v7121_v9 = vpack.c.bf16 %v865_v17, %v865_v17  ;;  %v1498_v2 = vld [vmem:[#allocation2 + $0x98] sm:$0x1] }
 0x1ae   : > { %2018 = vrot.lane.b32.xlu0 %v1727_v54, %s7584_s23 }
 0x1af   : > { %v1282_v58 = vshrl.u32 %v7120_v15, 16  ;;  %v1285_v6 = vshll.u32 %v7120_v15, 16  ;;  %v1265_v12 = vshrl.u32 %v7118_v44, 16  ;;  %v1268_v32 = vshll.u32 %v7118_v44, 16 }
 0x1b0   : > { %v1290_v41 = vshrl.u32 %v7121_v9, 16  ;;  %v1293_v45 = vshll.u32 %v7121_v9, 16 }
 0x1b1   : > { %2020 = vrot.lane.b32.xlu1 %v1737_v1, %s7584_s23  ;;  %v1284_v54 = vrot.slane %v1282_v58, 7  ;;  %v992_v1 = vsel %vm7867_vm6, 0, %v991_v42  ;;  %v1267_v15 = vrot.slane %v1265_v12, 7  ;;  %v7119_v58 = vpack.c.bf16 %v863_v29, %v863_v29 }
 0x1b2   : > { %2858 = vrot.lane.b32.xlu0 %v8199_v39, %s7586_s14  ;;  %993 = vst [vmem:[#allocation2 + $0x8c] sm:$0x1] %v992_v1  ;;  %v1292_v49 = vrot.slane %v1290_v41, 7 }
 0x1b3   : > { %v1287_v33 = vor.u32 %v1285_v6, %v1284_v54  ;;  %v1288_v6 = vrot.slane %v1284_v54, 4  ;;  %v1270_v8 = vor.u32 %v1268_v32, %v1267_v15  ;;  %v1273_v23 = vshrl.u32 %v7119_v58, 16 }
 0x1b4   : > { %v1276_v38 = vshll.u32 %v7119_v58, 16  ;;  %v1297_v57 = vrot.slane %v1292_v49, 4  ;;  %v1271_v54 = vrot.slane %v1267_v15, 4 }
 0x1b5   : > { %2860 = vrot.lane.b32.xlu1 %v8223_v28, %s7586_s14  ;;  %v1495_v60 = vsel %vm7966_vm2, %v1287_v33, %v1494_v46  ;;  %v1488_v42 = vsel %vm7966_vm2, %v1270_v8, %v1487_v52  ;;  %v1295_v46 = vor.u32 %v1293_v45, %v1292_v49  ;;  %v1275_v44 = vrot.slane %v1273_v23, 7 }
 0x1b6   : > { %2441 = vrot.lane.b32.xlu0 %v8199_v39, %s7587_s17  ;;  %1496 = vst [vmem:[#allocation2 + $0x90] sm:$0xf] %v1495_v60  ;;  %1489 = vst [vmem:[#allocation2 + $0x84] sm:$0xf] %v1488_v42  ;;  %v1499_v17 = vsel %vm7862_vm5, %v1297_v57, %v1498_v2  ;;  %v1739_v23 = vshrl.u32 %v8199_v39, 16 }
 0x1b7   : > { %1500 = vst [vmem:[#allocation2 + $0x98] sm:$0x1] %v1499_v17  ;;  %v1278_v60 = vor.u32 %v1276_v38, %v1275_v44  ;;  %v1280_v12 = vrot.slane %v1275_v44, 4  ;;  %v1742_v38 = vshll.u32 %v8199_v39, 16  ;;  %v1748_v17 = vshll.u32 %v8223_v28, 16 }
 0x1b9   : > { %2443 = vrot.lane.b32.xlu1 %v8223_v28, %s7587_s17  ;;  %v1491_v34 = vld [vmem:[#allocation2 + $0x8c] sm:$0x1]  ;;  %v1279_v29 = vsel %vm7978_vm4, %v1271_v54, %v1278_v60  ;;  %v1744_v44 = vrot.slane %v1742_v38, 5  ;;  %v1752_v60 = vshrl.u32 %v8223_v28, 16  ;;  %v941_v38 = vld [vmem:[#allocation2 + $0x9c] sm:$0x1] }
 0x1ba   : > { %3003 = vrot.lane.b32.xlu0 %v8260_v26, %s7589_s20  ;;  %v1492_v15 = vsel %vm7862_vm5, %v1280_v12, %v1491_v34  ;;  %1490 = vst.msk [vmem:[#allocation2 + $0x88] sm:$0xf] %vm890_vm1, %v1279_v29  ;;  %v944_v12 = vld [vmem:[#allocation2 + $0xa8] sm:$0x1]  ;;  %v942_v28 = vsel %vm7862_vm5, 0, %v941_v38 }
 0x1bb   : > { %1493 = vst [vmem:[#allocation2 + $0x8c] sm:$0x1] %v1492_v15  ;;  %943 = vst [vmem:[#allocation2 + $0x9c] sm:$0x1] %v942_v28 }
 0x1bd   : > { %3005 = vrot.lane.b32.xlu1 %v8318_v37, %s7589_s20  ;;  %v8632_v45 = vld [vmem:[#allocation2 + $0x84] sm:$0xf]  ;;  %v8674_v42 = vld [vmem:[#allocation2 + $0x90] sm:$0xf] }
 0x1be   : > { %2586 = vrot.lane.b32.xlu0 %v8260_v26, %s7590_s24  ;;  %12053 = vst [vmem:[#allocation23_spill] sm:$0xff] %v8632_v45  ;;  %1605 = vst.msk [vmem:[#allocation3 + $0xb0] sm:$0xf] %vm890_vm1, %v8632_v45  ;;  %v6904_v34 = vrot.slane %v8632_v45, 9  ;;  %v1567_v38 = vld [vmem:[#allocation2 + $0x98] sm:$0x1] }
 0x1bf   : > { %12055 = vst [vmem:[#allocation25_spill] sm:$0xff] %v8674_v42  ;;  %1607 = vst.msk [vmem:[#allocation3 + $0xc0] sm:$0xf] %vm890_vm1, %v8674_v42  ;;  %v6905_v28 = vrot.slane %v8674_v42, 9 }
 0x1c0   : > { %v8592_v21 = vpop.permute.xlu0 %2846 }
 0x1c1   : > { %2588 = vrot.lane.b32.xlu1 %v8318_v37, %s7590_s24 }
 0x1c2   : > { %2014 = vrot.lane.b32.xlu0 %v8260_v26, %s7584_s23  ;;  %v1296_v26 = vsel %vm7978_vm4, %v1288_v6, %v1295_v46  ;;  %v8652_v6 = vld [vmem:[#allocation2 + $0x88] sm:$0xf] }
 0x1c3   : > { %v8602_v33 = vpop.permute.xlu1 %2848  ;;  %1497 = vst.msk [vmem:[#allocation2 + $0x94] sm:$0xf] %vm890_vm1, %v1296_v26  ;;  %12054 = vst [vmem:[#allocation24_spill] sm:$0xff] %v8652_v6  ;;  %v2261_v29 = vrot.slane %v8652_v6, 5 }
 0x1c4   : > { %v8600_v1 = vpop.permute.xlu0 %2429  ;;  %1606 = vst.msk [vmem:[#allocation3 + $0xb8] sm:$0xf] %vm890_vm1, %v8652_v6 }
 0x1c5   : > { %2016 = vrot.lane.b32.xlu1 %v8318_v37, %s7584_s23  ;;  %v8711_v6 = vsel %vm7893_vm12, %v6904_v34, %v2261_v29 }
 0x1c6   : > { %2735 = vrot.lane.b32.xlu0 %v8311_v13, %s7588_s22  ;;  %12059 = vst [vmem:[#allocation29_spill] sm:$0xff] %v8711_v6  ;;  %3186 = vst.msk [vmem:[#allocation3 + $0x94] sm:$0xf] %vm890_vm1, %v8711_v6 }
 0x1c7   : > { %v8613_v9 = vpop.permute.xlu1 %2431 }
 0x1c8   : > { %v2426_v32 = vpop.permute.xlu0 %2425 }
 0x1c9   : > { %2522 = vst.msk [vmem:[#allocation3] sm:$0xf] %vm2521_vm3, %v2426_v32  ;;  %2737 = vrot.lane.b32.xlu1 %v8330_v47, %s7588_s22  ;;  %v8697_v32 = vld [vmem:[#allocation2 + $0x8c] sm:$0x1] }
 0x1ca   : > { %2318 = vrot.lane.b32.xlu0 %v8311_v13, %s7585_s18  ;;  %v8682_v54 = vld [vmem:[#allocation2 + $0x94] sm:$0xf]  ;;  %12058 = vst [vmem:[#allocation28_spill] sm:$0xff] %v8697_v32 }
 0x1cb   : > { %v2428_v41 = vpop.permute.xlu1 %2427  ;;  %12056 = vst [vmem:[#allocation26_spill] sm:$0xff] %v8682_v54  ;;  %1608 = vst.msk [vmem:[#allocation3 + $0xc8] sm:$0xf] %vm890_vm1, %v8682_v54  ;;  %v2268_v0 = vrot.slane %v8682_v54, 5 }
 0x1cc   : > { %v8625_v37 = vpop.permute.xlu0 %2719  ;;  %2523 = vst.msk [vmem:[#allocation3 + $0x8] sm:$0xf] %vm2521_vm3, %v2428_v41  ;;  %v7213_v41 = vpop.f32.mrf.mxu0 }
 0x1cd   : > { %2320 = vrot.lane.b32.xlu1 %v8330_v47, %s7585_s18  ;;  %v797_v45 = vmul.f32 %v8552_v3, %v7213_v41 }
 0x1ce   : > { %2870 = vrot.lane.b32.xlu0 %v8344_v55, %s7586_s14 }
 0x1cf   : > { %v8638_v52 = vpop.permute.xlu1 %2721  ;;  %v836_v41 = vadd.f32 %v8560_v27, %v797_v45 }
 0x1d0   : > { %v8636_v13 = vpop.permute.xlu0 %2302 }
 0x1d1   : > { %2733 = vrot.lane.b32.xlu1 %v8334_v48, %s7588_s22  ;;  %v868_v45 = vmax.f32 %v836_v41, 0.0 }
 0x1d2   : > { %2453 = vrot.lane.b32.xlu0 %v8344_v55, %s7587_s17 }
 0x1d3   : > { %v8644_v58 = vpop.permute.xlu1 %2304 }
 0x1d4   : > { %v8646_v47 = vpop.permute.xlu0 %2854 }
 0x1d5   : > { %2316 = vrot.lane.b32.xlu1 %v8334_v48, %s7585_s18 }
 0x1d6   : > { %2731 = vrot.lane.b32.xlu0 %v8324_v40, %s7588_s22 }
 0x1d7   : > { %v8656_v8 = vpop.permute.xlu1 %2717 }
 0x1d8   : > { %v8658_v49 = vpop.permute.xlu0 %2437 }
 0x1d9   : > { %2872 = vrot.lane.b32.xlu1 %v8355_v59, %s7586_s14 }
 0x1da   : > { %3015 = vrot.lane.b32.xlu0 %v8398_v53, %s7589_s20 }
 0x1db   : > { %v8664_v2 = vpop.permute.xlu1 %2300 }
 0x1dc   : > { %v8666_v48 = vpop.permute.xlu0 %2715 }
 0x1dd   : > { %2455 = vrot.lane.b32.xlu1 %v8355_v59, %s7587_s17 }
 0x1de   : > { %2314 = vrot.lane.b32.xlu0 %v8324_v40, %s7585_s18  ;;  %v1741_v40 = vrot.slane %v1739_v23, 4  ;;  %v945_v23 = vsel %vm7862_vm5, 0, %v944_v12  ;;  %v1754_v12 = vrot.slane %v1752_v60, 4  ;;  %v1758_v60 = vshll.u32 %v8276_v63, 16 }
 0x1df   : > { %v8678_v57 = vpop.permute.xlu1 %2856  ;;  %946 = vst [vmem:[#allocation2 + $0xa8] sm:$0x1] %v945_v23  ;;  %v733_v23 = vpop.f32.mrf.mxu0 }
 0x1e0   : > { %v8676_v46 = vpop.permute.xlu0 %2999  ;;  %v1745_v15 = vor.u32 %v1744_v44, %v1741_v40  ;;  %v2264_v40 = vrot.slane %v8697_v32, 5  ;;  %v1750_v44 = vrot.slane %v1748_v17, 5  ;;  %v795_v34 = vmul.f32 %v8552_v3, %v733_v23  ;;  %v997_v23 = vld [vmem:[#allocation2 + $0xa4] sm:$0x1] }
 0x1e1   : > { %3017 = vrot.lane.b32.xlu1 %v8413_v51, %s7589_s20  ;;  %v7214_v42 = vpop.f32.mrf.mxu0  ;;  %v998_v41 = vsel %vm7867_vm6, 0, %v997_v23 }
 0x1e2   : > { %2598 = vrot.lane.b32.xlu0 %v8398_v53, %s7590_s24  ;;  %v1746_v17 = vrot.slane %v1745_v15, 4  ;;  %v7124_v15 = vpack.c.bf16 %v868_v45, %v868_v45  ;;  %999 = vst [vmem:[#allocation2 + $0xa4] sm:$0x1] %v998_v41 }
 0x1e3   : > { %v8692_v26 = vpop.permute.xlu1 %2439  ;;  %v736_v23 = vpop.f32.mrf.mxu0 }
 0x1e4   : > { %v8690_v39 = vpop.permute.xlu0 %2298  ;;  %12057 = vst [vmem:[#allocation27_spill] sm:$0xff] %v8692_v26  ;;  %v1000_v26 = vld [vmem:[#allocation2 + $0xb0] sm:$0x1]  ;;  %v1319_v45 = vshll.u32 %v7124_v15, 16 }
 0x1e5   : > { %2600 = vrot.lane.b32.xlu1 %v8413_v51, %s7590_s24  ;;  %v1001_v63 = vsel %vm7867_vm6, 0, %v1000_v26  ;;  %v8752_v26 = vsel %vm7893_vm12, %v6905_v28, %v2268_v0 }
 0x1e6   : > { %2026 = vrot.lane.b32.xlu0 %v8398_v53, %s7584_s23  ;;  %v2263_v53 = vrot.slane %v2261_v29, 4  ;;  %1002 = vst [vmem:[#allocation2 + $0xb0] sm:$0x1] %v1001_v63  ;;  %12061 = vst [vmem:[#allocation31_spill] sm:$0xff] %v8752_v26 }
 0x1e7   : > { %v8715_v14 = vpop.permute.xlu1 %3001  ;;  %3188 = vst.msk [vmem:[#allocation3 + $0xa4] sm:$0xf] %vm890_vm1, %v8752_v26  ;;  %v1501_v26 = vld [vmem:[#allocation2 + $0x9c] sm:$0xf] }
 0x1e8   : > { %v8713_v56 = vpop.permute.xlu0 %2582  ;;  %v8728_v29 = vsel %vm7893_vm12, %v2263_v53, %v2264_v40  ;;  %v2271_v53 = vrot.slane %v1567_v38, 5  ;;  %v1755_v40 = vor.u32 %v1754_v12, %v1750_v44  ;;  %v2270_v12 = vrot.slane %v2268_v0, 4 }
 0x1e9   : > { %2028 = vrot.lane.b32.xlu1 %v8413_v51, %s7584_s23  ;;  %12060 = vst [vmem:[#allocation30_spill] sm:$0xff] %v8728_v29  ;;  %3187 = vst.msk [vmem:[#allocation3 + $0x9c] sm:$0xf] %vm890_vm1, %v8728_v29  ;;  %v834_v51 = vadd.f32 %v8560_v27, %v795_v34  ;;  %v1316_v34 = vshrl.u32 %v7124_v15, 16  ;;  %v1751_v0 = vsel %vm7885_vm9, %v1746_v17, %v1750_v44  ;;  %v1760_v15 = vrot.slane %v1758_v60, 5 }
 0x1ea   : > { %2866 = vrot.lane.b32.xlu0 %v8362_v10, %s7586_s14  ;;  %v8762_v63 = vsel %vm7893_vm12, %v2270_v12, %v2271_v53  ;;  %v1756_v28 = vrot.slane %v1755_v40, 4  ;;  %v1508_v53 = vld [vmem:[#allocation2 + $0xa8] sm:$0xf] }
 0x1eb   : > { %v8734_v32 = vpop.permute.xlu1 %2584  ;;  %v866_v38 = vmax.f32 %v834_v51, 0.0  ;;  %12062 = vst [vmem:[#allocation32_spill] sm:$0xff] %v8762_v63  ;;  %v1318_v41 = vrot.slane %v1316_v34, 7  ;;  %3189 = vst.msk [vmem:[#allocation3 + $0xac] sm:$0xf] %vm890_vm1, %v8762_v63 }
 0x1ec   : > { %v2011_v6 = vpop.permute.xlu0 %2010 }
 0x1ed   : > { %2103 = vst.msk [vmem:[#allocation3 + $0x20] sm:$0xf] %vm2098_vm13, %v2011_v6  ;;  %2868 = vrot.lane.b32.xlu1 %v8374_v18, %s7586_s14  ;;  %v798_v6 = vmul.f32 %v8552_v3, %v7214_v42  ;;  %v7122_v54 = vpack.c.bf16 %v866_v38, %v866_v38  ;;  %v796_v42 = vmul.f32 %v8552_v3, %v736_v23 }
 0x1ee   : > { %2395 = vst.msk [vmem:[#allocation3 + $0x20] sm:$0xf] %vm2390_vm14, %v8636_v13  ;;  %2449 = vrot.lane.b32.xlu0 %v8362_v10, %s7587_s17  ;;  %v1321_v17 = vor.u32 %v1319_v45, %v1318_v41 }
 0x1ef   : > { %v2013_v29 = vpop.permute.xlu1 %2012  ;;  %v837_v51 = vadd.f32 %v8560_v27, %v798_v6  ;;  %v1299_v38 = vshrl.u32 %v7122_v54, 16  ;;  %v835_v44 = vadd.f32 %v8560_v27, %v796_v42 }
 0x1f0   : > { %v8756_v13 = vpop.permute.xlu0 %2850  ;;  %2104 = vst.msk [vmem:[#allocation3 + $0x28] sm:$0xf] %vm2098_vm13, %v2013_v29  ;;  %v1302_v29 = vshll.u32 %v7122_v54, 16  ;;  %v1509_v63 = vsel %vm7966_vm2, %v1321_v17, %v1508_v53 }
 0x1f1   : > { %2396 = vst.msk [vmem:[#allocation3 + $0x28] sm:$0xf] %vm2390_vm14, %v8644_v58  ;;  %2451 = vrot.lane.b32.xlu1 %v8374_v18, %s7587_s17  ;;  %v869_v6 = vmax.f32 %v837_v51, 0.0  ;;  %v1301_v12 = vrot.slane %v1299_v38, 7  ;;  %v867_v23 = vmax.f32 %v835_v44, 0.0  ;;  %v1761_v58 = vsel %vm7885_vm9, %v1756_v28, %v1760_v15 }
 0x1f2   : > { %3011 = vrot.lane.b32.xlu0 %v1751_v0, %s7589_s20  ;;  %1510 = vst [vmem:[#allocation2 + $0xa8] sm:$0xf] %v1509_v63  ;;  %v1322_v44 = vrot.slane %v1318_v41, 4  ;;  %v1512_v63 = vld [vmem:[#allocation2 + $0xb0] sm:$0x1] }
 0x1f3   : > { %v8775_v40 = vpop.permute.xlu1 %2852  ;;  %v7125_v34 = vpack.c.bf16 %v869_v6, %v869_v6  ;;  %v1304_v54 = vor.u32 %v1302_v29, %v1301_v12  ;;  %v7123_v42 = vpack.c.bf16 %v867_v23, %v867_v23 }
 0x1f4   : > { %v2434_v60 = vpop.permute.xlu0 %2433 }
 0x1f5   : > { %2526 = vst.msk [vmem:[#allocation3 + $0x20] sm:$0xf] %vm2521_vm3, %v2434_v60  ;;  %3013 = vrot.lane.b32.xlu1 %v1761_v58, %s7589_s20  ;;  %v1324_v45 = vshrl.u32 %v7125_v34, 16  ;;  %v1327_v51 = vshll.u32 %v7125_v34, 16  ;;  %v1502_v28 = vsel %vm7966_vm2, %v1304_v54, %v1501_v26  ;;  %v1307_v53 = vshrl.u32 %v7123_v42, 16 }
 0x1f6   : > { %2594 = vrot.lane.b32.xlu0 %v1751_v0, %s7590_s24  ;;  %1503 = vst [vmem:[#allocation2 + $0x9c] sm:$0xf] %v1502_v28  ;;  %v1310_v29 = vshll.u32 %v7123_v42, 16  ;;  %v1305_v26 = vrot.slane %v1301_v12, 4  ;;  %v1830_v28 = vshll.u32 %v8433_v22, 16 }
 0x1f7   : > { %v2436_v6 = vpop.permute.xlu1 %2435  ;;  %v1326_v15 = vrot.slane %v1324_v45, 7  ;;  %v1309_v60 = vrot.slane %v1307_v53, 7 }
 0x1f8   : > { %v2579_v38 = vpop.permute.xlu0 %2578  ;;  %2527 = vst.msk [vmem:[#allocation3 + $0x28] sm:$0xf] %vm2521_vm3, %v2436_v6  ;;  %v1832_v22 = vrot.slane %v1830_v28, 5 }
 0x1f9   : > { %2675 = vst.msk [vmem:[#allocation3] sm:$0xf] %vm2674_vm7, %v2579_v38  ;;  %2596 = vrot.lane.b32.xlu1 %v1761_v58, %s7590_s24  ;;  %v1329_v41 = vor.u32 %v1327_v51, %v1326_v15  ;;  %v1331_v17 = vrot.slane %v1326_v15, 4  ;;  %v1314_v12 = vrot.slane %v1309_v60, 4 }
 0x1fa   : > { %2812 = vst.msk [vmem:[#allocation3] sm:$0xf] %vm2811_vm8, %v8666_v48  ;;  %2022 = vrot.lane.b32.xlu0 %v1751_v0, %s7584_s23  ;;  %v1505_v0 = vld [vmem:[#allocation2 + $0xa4] sm:$0x1] }
 0x1fb   : > { %2943 = vst.msk [vmem:[#allocation3] sm:$0xf] %vm2942_vm11, %v8592_v21  ;;  %v2581_v23 = vpop.permute.xlu1 %2580  ;;  %v1330_v54 = vsel %vm7978_vm4, %v1322_v44, %v1329_v41  ;;  %v1513_v48 = vsel %vm7862_vm5, %v1331_v17, %v1512_v63  ;;  %v1312_v21 = vor.u32 %v1310_v29, %v1309_v60  ;;  %v8899_v17 = vld [vmem:[#allocation2 + $0xa8] sm:$0xf] }
 0x1fc   : > { %3096 = vst.msk [vmem:[#allocation3] sm:$0xf] %vm3095_vm15, %v8676_v46  ;;  %v2007_v34 = vpop.permute.xlu0 %2006  ;;  %1514 = vst [vmem:[#allocation2 + $0xb0] sm:$0x1] %v1513_v48  ;;  %v1955_v5 = vshrl.u32 %v8899_v17, 16 }
 0x1fd   : > { %2101 = vst.msk [vmem:[#allocation3 + $0x10] sm:$0xf] %vm2098_vm13, %v2007_v34  ;;  %2024 = vrot.lane.b32.xlu1 %v1761_v58, %s7584_s23  ;;  %v1313_v46 = vsel %vm7978_vm4, %v1305_v26, %v1312_v21  ;;  %v1787_v34 = vshrl.u32 %v8362_v10, 16  ;;  %v1800_v21 = vshrl.u32 %v8374_v18, 16 }
 0x1fe   : > { %2676 = vst.msk [vmem:[#allocation3 + $0x8] sm:$0xf] %vm2674_vm7, %v2581_v23  ;;  %2743 = vrot.lane.b32.xlu0 %v8452_v50, %s7588_s22  ;;  %v1790_v23 = vshll.u32 %v8362_v10, 16 }
 0x1ff   : > { %1511 = vst.msk [vmem:[#allocation2 + $0xac] sm:$0xf] %vm890_vm1, %v1330_v54  ;;  %v2009_v58 = vpop.permute.xlu1 %2008  ;;  %1504 = vst.msk [vmem:[#allocation2 + $0xa0] sm:$0xf] %vm890_vm1, %v1313_v46 }
 0x200   : > { %2393 = vst.msk [vmem:[#allocation3 + $0x10] sm:$0xf] %vm2390_vm14, %v8690_v39  ;;  %v1506_v39 = vsel %vm7862_vm5, %v1314_v12, %v1505_v0  ;;  %v1796_v0 = vshll.u32 %v8374_v18, 16 }
 0x201   : > { %2813 = vst.msk [vmem:[#allocation3 + $0x8] sm:$0xf] %vm2811_vm8, %v8656_v8  ;;  %v8822_v8 = vpop.permute.xlu0 %2727  ;;  %1507 = vst [vmem:[#allocation2 + $0xa4] sm:$0x1] %v1506_v39  ;;  %2745 = vrot.lane.b32.xlu1 %v8462_v11, %s7588_s22 }
 0x202   : > { %2524 = vst.msk [vmem:[#allocation3 + $0x10] sm:$0xf] %vm2521_vm3, %v8600_v1  ;;  %v1811_v1 = vshrl.u32 %v8344_v55, 16  ;;  %2326 = vrot.lane.b32.xlu0 %v8452_v50, %s7585_s18 }
 0x203   : > { %2944 = vst.msk [vmem:[#allocation3 + $0x8] sm:$0xf] %vm2942_vm11, %v8602_v33  ;;  %v1814_v33 = vshll.u32 %v8344_v55, 16  ;;  %v8844_v55 = vpop.permute.xlu1 %2729 }
 0x204   : > { %2677 = vst.msk [vmem:[#allocation3 + $0x10] sm:$0xf] %vm2674_vm7, %v8713_v56 }
 0x205   : > { %3097 = vst.msk [vmem:[#allocation3 + $0x8] sm:$0xf] %vm3095_vm15, %v8715_v14  ;;  %v8842_v56 = vpop.permute.xlu0 %2310  ;;  %v1813_v14 = vrot.slane %v1811_v1, 4  ;;  %2328 = vrot.lane.b32.xlu1 %v8462_v11, %s7585_s18  ;;  %v1792_v1 = vrot.slane %v1790_v23, 5  ;;  %v1802_v23 = vrot.slane %v1800_v21, 4 }
 0x206   : > { %2814 = vst.msk [vmem:[#allocation3 + $0x10] sm:$0xf] %vm2811_vm8, %v8625_v37  ;;  %v1816_v37 = vrot.slane %v1814_v33, 5  ;;  %2878 = vrot.lane.b32.xlu0 %v8464_v4, %s7586_s14  ;;  %v8909_v54 = vld [vmem:[#allocation2 + $0xac] sm:$0xf]  ;;  %v6907_v33 = vrot.slane %v8899_v17, 9 }
 0x207   : > { %2102 = vst.msk [vmem:[#allocation3 + $0x18] sm:$0xf] %vm2098_vm13, %v2009_v58  ;;  %v1789_v58 = vrot.slane %v1787_v34, 4  ;;  %v1798_v34 = vrot.slane %v1796_v0, 5  ;;  %v1006_v21 = vld [vmem:[#allocation2 + $0xc8] sm:$0x1] }
 0x208   : > { %2945 = vst.msk [vmem:[#allocation3 + $0x10] sm:$0xf] %vm2942_vm11, %v8756_v13  ;;  %v1820_v13 = vshll.u32 %v8355_v59, 16  ;;  %v8917_v48 = vld [vmem:[#allocation2 + $0xa4] sm:$0x1] }
 0x209   : > { %2394 = vst.msk [vmem:[#allocation3 + $0x18] sm:$0xf] %vm2390_vm14, %v8664_v2  ;;  %v8854_v2 = vpop.permute.xlu1 %2312  ;;  %2741 = vrot.lane.b32.xlu1 %v8476_v31, %s7588_s22 }
 0x20a   : > { %2525 = vst.msk [vmem:[#allocation3 + $0x18] sm:$0xf] %vm2521_vm3, %v8613_v9  ;;  %v7369_v9 = vld [vmem:[#allocation3 + $0x4] ss:$8 sps:$4 sm:$0xff]   ;;  %2461 = vrot.lane.b32.xlu0 %v8464_v4, %s7587_s17  ;;  %v1822_v42 = vrot.slane %v1820_v13, 5 }
 0x20b   : > { %2678 = vst.msk [vmem:[#allocation3 + $0x18] sm:$0xf] %vm2674_vm7, %v8734_v32  ;;  %v8856_v32 = vpop.permute.xlu0 %2862  ;;  %6952 = vmatprep.mubr.msk.bf16.mxu1 %vm3448_vm10, %v7369_v9  ;;  %v2278_v9 = vrot.slane %v8917_v48, 5 }
 0x20c   : > { %2815 = vst.msk [vmem:[#allocation3 + $0x18] sm:$0xf] %vm2811_vm8, %v8638_v52  ;;  %v7367_v50 = vld [vmem:[#allocation3] ss:$8 sps:$4 sm:$0xff]   ;;  %v1817_v52 = vor.u32 %v1816_v37, %v1813_v14  ;;  %v2282_v14 = vrot.slane %v8909_v54, 5 }
 0x20d   : > { %2946 = vst.msk [vmem:[#allocation3 + $0x18] sm:$0xf] %vm2942_vm11, %v8775_v40  ;;  %v1824_v40 = vshrl.u32 %v8355_v59, 16  ;;  %3530 = vmatmul.mubr.bf16.vlgmr.msra.gmra.mxu1 %v7367_v50  ;;  %v8865_v11 = vpop.permute.xlu1 %2725  ;;  %2324 = vrot.lane.b32.xlu1 %v8476_v31, %s7585_s18  ;;  %v8873_v59 = vld [vmem:[#allocation2 + $0x9c] sm:$0xf] }
 0x20e   : > { %v1818_v51 = vrot.slane %v1817_v52, 4  ;;  %2739 = vrot.lane.b32.xlu0 %v8480_v20, %s7588_s22  ;;  %1609 = vst.msk [vmem:[#allocation3 + $0xd0] sm:$0xf] %vm890_vm1, %v8873_v59  ;;  %v8887_v31 = vld [vmem:[#allocation2 + $0xa0] sm:$0xf]  ;;  %v6906_v10 = vrot.slane %v8873_v59, 9 }
 0x20f   : > { %v8867_v45 = vpop.permute.xlu0 %2445  ;;  %v1826_v38 = vrot.slane %v1824_v40, 4  ;;  %1610 = vst.msk [vmem:[#allocation3 + $0xd8] sm:$0xf] %vm890_vm1, %v8887_v31  ;;  %1611 = vst.msk [vmem:[#allocation3 + $0xe0] sm:$0xf] %vm890_vm1, %v8899_v17  ;;  %v2275_v12 = vrot.slane %v8887_v31, 5 }
 0x210   : > { %v1823_v15 = vsel %vm7885_vm9, %v1818_v51, %v1822_v42  ;;  %1612 = vst.msk [vmem:[#allocation3 + $0xe8] sm:$0xf] %vm890_vm1, %v8909_v54  ;;  %v950_v37 = vld [vmem:[#allocation2 + $0xc0] sm:$0x1]  ;;  %v8934_v52 = vld [vmem:[#allocation2 + $0xb0] sm:$0x1] }
 0x211   : > { %v8877_v6 = vpop.permute.xlu1 %2308  ;;  %v1827_v63 = vor.u32 %v1826_v38, %v1822_v42  ;;  %2880 = vrot.lane.b32.xlu1 %v8482_v16, %s7586_s14  ;;  %v8931_v50 = vsel %vm7893_vm12, %v6906_v10, %v2275_v12  ;;  %v2277_v18 = vrot.slane %v2275_v12, 4  ;;  %v951_v13 = vsel %vm7862_vm5, 0, %v950_v37  ;;  %v947_v40 = vld [vmem:[#allocation2 + $0xb4] sm:$0x1] }
 0x212   : > { %3023 = vrot.lane.b32.xlu0 %v1823_v15, %s7589_s20  ;;  %3190 = vst.msk [vmem:[#allocation3 + $0xb4] sm:$0xf] %vm890_vm1, %v8931_v50  ;;  %952 = vst [vmem:[#allocation2 + $0xc0] sm:$0x1] %v951_v13  ;;  %v948_v51 = vsel %vm7862_vm5, 0, %v947_v40  ;;  %v8950_v38 = vsel %vm7893_vm12, %v6907_v33, %v2282_v14  ;;  %v1806_v12 = vshll.u32 %v8439_v7, 16  ;;  %v1803_v33 = vor.u32 %v1802_v23, %v1798_v34 }
 0x213   : > { %v8879_v44 = vpop.permute.xlu0 %2723  ;;  %v1828_v41 = vrot.slane %v1827_v63, 4  ;;  %v8946_v42 = vsel %vm7893_vm12, %v2277_v18, %v2278_v9  ;;  %949 = vst [vmem:[#allocation2 + $0xb4] sm:$0x1] %v948_v51  ;;  %3192 = vst.msk [vmem:[#allocation3 + $0xc4] sm:$0xf] %vm890_vm1, %v8950_v38  ;;  %v2284_v63 = vrot.slane %v2282_v14, 4 }
 0x214   : > { %3191 = vst.msk [vmem:[#allocation3 + $0xbc] sm:$0xf] %vm890_vm1, %v8946_v42  ;;  %v1804_v9 = vrot.slane %v1803_v33, 4  ;;  %v1808_v13 = vrot.slane %v1806_v12, 5 }
 0x215   : > { %v8893_v29 = vpop.permute.xlu1 %2864  ;;  %2463 = vrot.lane.b32.xlu1 %v8482_v16, %s7587_s17 }
 0x216   : > { %2322 = vrot.lane.b32.xlu0 %v8480_v20, %s7585_s18  ;;  %v1833_v20 = vsel %vm7885_vm9, %v1828_v41, %v1832_v22  ;;  %v2285_v41 = vrot.slane %v8934_v52, 5  ;;  %v1793_v22 = vor.u32 %v1792_v1, %v1789_v58  ;;  %v1003_v1 = vld [vmem:[#allocation2 + $0xbc] sm:$0x1]  ;;  %v1809_v51 = vsel %vm7885_vm9, %v1804_v9, %v1808_v13 }
 0x217   : > { %v8891_v53 = vpop.permute.xlu0 %3007  ;;  %v1004_v14 = vsel %vm7867_vm6, 0, %v1003_v1  ;;  %v12065_v1 = vld [vmem:[#allocation22_spill] sm:$0xff] }
 0x218   : > { %v8967_v10 = vsel %vm7893_vm12, %v2284_v63, %v2285_v41  ;;  %1005 = vst [vmem:[#allocation2 + $0xbc] sm:$0x1] %v1004_v14  ;;  %v1862_v63 = vshll.u32 %v8464_v4, 16 }
 0x219   : > { %v8905_v60 = vpop.permute.xlu1 %2447  ;;  %3025 = vrot.lane.b32.xlu1 %v1833_v20, %s7589_s20  ;;  %3193 = vst.msk [vmem:[#allocation3 + $0xcc] sm:$0xf] %vm890_vm1, %v8967_v10 }
 0x21a   : > { %2606 = vrot.lane.b32.xlu0 %v1823_v15, %s7590_s24  ;;  %v1864_v23 = vrot.slane %v1862_v63, 5 }
 0x21b   : > { %v8903_v26 = vpop.permute.xlu0 %2306 }
 0x21d   : > { %v8925_v39 = vpop.permute.xlu1 %3009  ;;  %2608 = vrot.lane.b32.xlu1 %v1833_v20, %s7590_s24 }
 0x21e   : > { %2034 = vrot.lane.b32.xlu0 %v1823_v15, %s7584_s23 }
 0x21f   : > { %v8923_v46 = vpop.permute.xlu0 %2590 }
 0x221   : > { %v8952_v15 = vpop.permute.xlu1 %2592  ;;  %2036 = vrot.lane.b32.xlu1 %v1833_v20, %s7584_s23  ;;  %v1007_v20 = vsel %vm7867_vm6, 0, %v1006_v21 }
 0x222   : > { %2874 = vrot.lane.b32.xlu0 %v8484_v24, %s7586_s14  ;;  %1008 = vst [vmem:[#allocation2 + $0xc8] sm:$0x1] %v1007_v20  ;;  %v12066_v20 = vld [vmem:[#allocation20_spill] sm:$0xff] }
 0x223   : > { %v2019_v28 = vpop.permute.xlu0 %2018  ;;  %v1878_v14 = vshll.u32 %v12066_v20, 16 }
 0x224   : > { %2107 = vst.msk [vmem:[#allocation3 + $0x40] sm:$0xf] %vm2098_vm13, %v2019_v28  ;;  %v1859_v28 = vshrl.u32 %v8464_v4, 16 }
 0x225   : > { %2399 = vst.msk [vmem:[#allocation3 + $0x40] sm:$0xf] %vm2390_vm14, %v8842_v56  ;;  %v2021_v0 = vpop.permute.xlu1 %2020  ;;  %v1794_v56 = vrot.slane %v1793_v22, 4  ;;  %2876 = vrot.lane.b32.xlu1 %v8494_v25, %s7586_s14 }
 0x226   : > { %2108 = vst.msk [vmem:[#allocation3 + $0x48] sm:$0xf] %vm2098_vm13, %v2021_v0  ;;  %2457 = vrot.lane.b32.xlu0 %v8484_v24, %s7587_s17 }
 0x227   : > { %v8972_v58 = vpop.permute.xlu0 %2858  ;;  %2400 = vst.msk [vmem:[#allocation3 + $0x48] sm:$0xf] %vm2390_vm14, %v8854_v2  ;;  %v1799_v18 = vsel %vm7885_vm9, %v1794_v56, %v1798_v34  ;;  %v1861_v34 = vrot.slane %v1859_v28, 4 }
 0x229   : > { %v8985_v37 = vpop.permute.xlu1 %2860  ;;  %2459 = vrot.lane.b32.xlu1 %v8494_v25, %s7587_s17  ;;  %v1865_v0 = vor.u32 %v1864_v23, %v1861_v34 }
 0x22a   : > { %3019 = vrot.lane.b32.xlu0 %v1799_v18, %s7589_s20 }
 0x22b   : > { %v2442_v7 = vpop.permute.xlu0 %2441 }
 0x22c   : > { %2530 = vst.msk [vmem:[#allocation3 + $0x40] sm:$0xf] %vm2521_vm3, %v2442_v7  ;;  %v1835_v7 = vshrl.u32 %v8484_v24, 16 }
 0x22d   : > { %v2444_v40 = vpop.permute.xlu1 %2443  ;;  %3021 = vrot.lane.b32.xlu1 %v1809_v51, %s7589_s20 }
 0x22e   : > { %2531 = vst.msk [vmem:[#allocation3 + $0x48] sm:$0xf] %vm2521_vm3, %v2444_v40  ;;  %2602 = vrot.lane.b32.xlu0 %v1799_v18, %s7590_s24  ;;  %v1880_v40 = vrot.slane %v1878_v14, 5 }
 0x22f   : > { %v3004_v2 = vpop.permute.xlu0 %3003 }
 0x230   : > { %3098 = vst.msk [vmem:[#allocation3 + $0x10] sm:$0xf] %vm3095_vm15, %v3004_v2 }
 0x231   : > { %v3006_v22 = vpop.permute.xlu1 %3005  ;;  %2604 = vrot.lane.b32.xlu1 %v1809_v51, %s7590_s24 }
 0x232   : > { %3099 = vst.msk [vmem:[#allocation3 + $0x18] sm:$0xf] %vm3095_vm15, %v3006_v22  ;;  %2030 = vrot.lane.b32.xlu0 %v1799_v18, %s7584_s23  ;;  %v1838_v18 = vshll.u32 %v8484_v24, 16 }
 0x233   : > { %v2587_v41 = vpop.permute.xlu0 %2586 }
 0x234   : > { %2679 = vst.msk [vmem:[#allocation3 + $0x20] sm:$0xf] %vm2674_vm7, %v2587_v41  ;;  %v1840_v28 = vrot.slane %v1838_v18, 5  ;;  %v1848_v41 = vshrl.u32 %v8494_v25, 16 }
 0x235   : > { %2816 = vst.msk [vmem:[#allocation3 + $0x20] sm:$0xf] %vm2811_vm8, %v8879_v44  ;;  %v2589_v12 = vpop.permute.xlu1 %2588  ;;  %2032 = vrot.lane.b32.xlu1 %v1809_v51, %s7584_s23  ;;  %v1837_v51 = vrot.slane %v1835_v7, 4 }
 0x236   : > { %2947 = vst.msk [vmem:[#allocation3 + $0x20] sm:$0xf] %vm2942_vm11, %v8646_v47  ;;  %2751 = vrot.lane.b32.xlu0 %v8514_v62, %s7588_s22  ;;  %v1868_v47 = vshll.u32 %v8482_v16, 16 }
 0x237   : > { %3100 = vst.msk [vmem:[#allocation3 + $0x20] sm:$0xf] %vm3095_vm15, %v8891_v53  ;;  %v2015_v4 = vpop.permute.xlu0 %2014  ;;  %v7370_v53 = vld [vmem:[#allocation3 + $0x14] ss:$8 sps:$4 sm:$0xff]  }
 0x238   : > { %2105 = vst.msk [vmem:[#allocation3 + $0x30] sm:$0xf] %vm2098_vm13, %v2015_v4  ;;  %6953 = vmatprep.mubr.msk.bf16.mxu1 %vm3448_vm10, %v7370_v53 }
 0x239   : > { %2680 = vst.msk [vmem:[#allocation3 + $0x28] sm:$0xf] %vm2674_vm7, %v2589_v12  ;;  %v2017_v44 = vpop.permute.xlu1 %2016  ;;  %2753 = vrot.lane.b32.xlu1 %v8527_v30, %s7588_s22 }
 0x23a   : > { %2397 = vst.msk [vmem:[#allocation3 + $0x30] sm:$0xf] %vm2390_vm14, %v8903_v26  ;;  %v7372_v26 = vld [vmem:[#allocation3 + $0x10] ss:$8 sps:$4 sm:$0xff]  }
 0x23b   : > { %2817 = vst.msk [vmem:[#allocation3 + $0x28] sm:$0xf] %vm2811_vm8, %v8865_v11  ;;  %v9029_v11 = vpop.permute.xlu0 %2735  ;;  %3538 = vmatmul.mubr.bf16.gmra.mxu1 %v7372_v26 }
 0x23c   : > { %2528 = vst.msk [vmem:[#allocation3 + $0x30] sm:$0xf] %vm2521_vm3, %v8658_v49  ;;  %v1866_v49 = vrot.slane %v1865_v0, 4 }
 0x23d   : > { %2948 = vst.msk [vmem:[#allocation3 + $0x28] sm:$0xf] %vm2942_vm11, %v8678_v57  ;;  %v1872_v57 = vshrl.u32 %v8482_v16, 16  ;;  %2749 = vrot.lane.b32.xlu1 %v12065_v1, %s7588_s22 }
 0x23e   : > { %2681 = vst.msk [vmem:[#allocation3 + $0x30] sm:$0xf] %vm2674_vm7, %v8923_v46  ;;  %v12063_v46 = vld [vmem:[#allocation21_spill] sm:$0xff] }
 0x23f   : > { %3101 = vst.msk [vmem:[#allocation3 + $0x28] sm:$0xf] %vm3095_vm15, %v8925_v39  ;;  %2747 = vrot.lane.b32.xlu0 %v12063_v46, %s7588_s22  ;;  %v12064_v39 = vld [vmem:[#allocation27_spill] sm:$0xff]  ;;  %v9048_v16 = vpop.permute.xlu0 %2318  ;;  %v1874_v21 = vrot.slane %v1872_v57, 4  ;;  %v7217_v63 = vpop.f32.mrf.mxu0  ;;  %v1850_v57 = vrot.slane %v1848_v41, 4 }
 0x240   : > { %2818 = vst.msk [vmem:[#allocation3 + $0x30] sm:$0xf] %vm2811_vm8, %v8822_v8  ;;  %v1870_v8 = vrot.slane %v1868_v47, 5  ;;  %v801_v24 = vmul.f32 %v8552_v3, %v7217_v63  ;;  %v1841_v47 = vor.u32 %v1840_v28, %v1837_v51 }
 0x241   : > { %2106 = vst.msk [vmem:[#allocation3 + $0x38] sm:$0xf] %vm2098_vm13, %v2017_v44  ;;  %2336 = vrot.lane.b32.xlu1 %v8527_v30, %s7585_s18  ;;  %v1844_v30 = vshll.u32 %v8494_v25, 16  ;;  %v749_v22 = vpop.f32.mrf.mxu0 }
 0x242   : > { %2949 = vst.msk [vmem:[#allocation3 + $0x30] sm:$0xf] %vm2942_vm11, %v8972_v58  ;;  %v9050_v58 = vpop.permute.xlu1 %2737  ;;  %v840_v4 = vadd.f32 %v8560_v27, %v801_v24  ;;  %v799_v12 = vmul.f32 %v8552_v3, %v749_v22  ;;  %v1842_v20 = vrot.slane %v1841_v47, 4 }
 0x243   : > { %2398 = vst.msk [vmem:[#allocation3 + $0x38] sm:$0xf] %vm2390_vm14, %v8877_v6  ;;  %v1871_v6 = vsel %vm7885_vm9, %v1866_v49, %v1870_v8  ;;  %v9063_v33 = vpop.permute.xlu0 %2870  ;;  %v7218_v44 = vpop.f32.mrf.mxu0  ;;  %v1846_v49 = vrot.slane %v1844_v30, 5 }
 0x244   : > { %2529 = vst.msk [vmem:[#allocation3 + $0x38] sm:$0xf] %vm2521_vm3, %v12064_v39  ;;  %3031 = vrot.lane.b32.xlu0 %v1871_v6, %s7589_s20  ;;  %v872_v53 = vmax.f32 %v840_v4, 0.0  ;;  %v838_v25 = vadd.f32 %v8560_v27, %v799_v12  ;;  %v802_v26 = vmul.f32 %v8552_v3, %v7218_v44  ;;  %v12067_v3 = vld [vmem:[#allocation23_spill] sm:$0xff] }
 0x245   : > { %2682 = vst.msk [vmem:[#allocation3 + $0x38] sm:$0xf] %vm2674_vm7, %v8952_v15  ;;  %v7373_v15 = vld [vmem:[#allocation3 + $0x24] ss:$8 sps:$4 sm:$0xff]   ;;  %2332 = vrot.lane.b32.xlu1 %v12065_v1, %s7585_s18  ;;  %v1847_v12 = vsel %vm7885_vm9, %v1842_v20, %v1846_v49  ;;  %v1883_v47 = vshrl.u32 %v12067_v3, 16  ;;  %v1886_v44 = vshll.u32 %v12067_v3, 16 }
 0x246   : > { %2819 = vst.msk [vmem:[#allocation3 + $0x38] sm:$0xf] %vm2811_vm8, %v8844_v55  ;;  %v9061_v56 = vpop.permute.xlu1 %2320  ;;  %6954 = vmatprep.mubr.msk.bf16.mxu1 %vm3448_vm10, %v7373_v15  ;;  %v1875_v55 = vor.u32 %v1874_v21, %v1870_v8  ;;  %v7128_v21 = vpack.c.bf16 %v872_v53, %v872_v53  ;;  %v870_v1 = vmax.f32 %v838_v25, 0.0  ;;  %v841_v15 = vadd.f32 %v8560_v27, %v802_v26  ;;  %v7425_v27 = vld [vmem:[%s12044_s3] ss:$0 sm:$0xff]  ;;  %s10724_s3 = sld [smem:[#allocation9 + $0x22]] }
 0x247   : > { %2950 = vst.msk [vmem:[#allocation3 + $0x38] sm:$0xf] %vm2942_vm11, %v8985_v37  ;;  %v7375_v37 = vld [vmem:[#allocation3 + $0x20] ss:$8 sps:$4 sm:$0xff]   ;;  %v9075_v13 = vpop.permute.xlu0 %2453 }
 0x248   : > { %2330 = vrot.lane.b32.xlu0 %v12063_v46, %s7585_s18  ;;  %3546 = vmatmul.mubr.bf16.gmra.mxu1 %v7375_v37  ;;  %v1876_v2 = vrot.slane %v1875_v55, 4  ;;  %v752_v46 = vpop.f32.mrf.mxu0  ;;  %v1350_v14 = vshrl.u32 %v7128_v21, 16  ;;  %v1353_v7 = vshll.u32 %v7128_v21, 16  ;;  %v7126_v18 = vpack.c.bf16 %v870_v1, %v870_v1  ;;  %v1522_v53 = vld [vmem:[#allocation2 + $0xc0] sm:$0xf] }
 0x249   : > { %v873_v37 = vmax.f32 %v841_v15, 0.0  ;;  %v1515_v15 = vld [vmem:[#allocation2 + $0xb4] sm:$0xf] }
 0x24a   : > { %v9073_v9 = vpop.permute.xlu1 %2733  ;;  %v1881_v0 = vsel %vm7885_vm9, %v1876_v2, %v1880_v40  ;;  %v1851_v2 = vor.u32 %v1850_v57, %v1846_v49  ;;  %v7424_v40 = vld [vmem:[#allocation2 + $0x74] sm:$0x1]  ;;  %v1352_v30 = vrot.slane %v1350_v14, 7  ;;  %v1333_v41 = vshrl.u32 %v7126_v18, 16 }
 0x24b   : > { %v9085_v23 = vpop.permute.xlu0 %2731  ;;  %3033 = vrot.lane.b32.xlu1 %v1881_v0, %s7589_s20  ;;  %v1854_v51 = vshll.u32 %v7424_v40, 16  ;;  %v1336_v22 = vshll.u32 %v7126_v18, 16  ;;  %v7129_v4 = vpack.c.bf16 %v873_v37, %v873_v37  ;;  %v1885_v40 = vrot.slane %v1883_v47, 4 }
 0x24c   : > { %2614 = vrot.lane.b32.xlu0 %v1871_v6, %s7590_s24  ;;  %v1355_v26 = vor.u32 %v1353_v7, %v1352_v30  ;;  %v1335_v57 = vrot.slane %v1333_v41, 7  ;;  %v1852_v21 = vrot.slane %v1851_v2, 4  ;;  %v1356_v20 = vrot.slane %v1352_v30, 4  ;;  %v1526_v7 = vld [vmem:[#allocation2 + $0xc8] sm:$0x1] }
 0x24d   : > { %v1856_v1 = vrot.slane %v1854_v51, 5  ;;  %v12068_v51 = vld [vmem:[#allocation24_spill] sm:$0xff] }
 0x24e   : > { %v9083_v34 = vpop.permute.xlu1 %2316  ;;  %v1523_v18 = vsel %vm7966_vm2, %v1355_v26, %v1522_v53  ;;  %v1338_v37 = vor.u32 %v1336_v22, %v1335_v57  ;;  %v1892_v26 = vshll.u32 %v12068_v51, 16 }
 0x24f   : > { %v9095_v39 = vpop.permute.xlu0 %3015  ;;  %2616 = vrot.lane.b32.xlu1 %v1881_v0, %s7590_s24  ;;  %1524 = vst [vmem:[#allocation2 + $0xc0] sm:$0xf] %v1523_v18 }
 0x250   : > { %2042 = vrot.lane.b32.xlu0 %v1871_v6, %s7584_s23  ;;  %v7423_v6 = vld [vmem:[%s12043_s2] ss:$0 sm:$0xff]  ;;  %v1516_v41 = vsel %vm7966_vm2, %v1338_v37, %v1515_v15  ;;  %v1519_v15 = vld [vmem:[#allocation2 + $0xbc] sm:$0x1]  ;;  %vm4444_vm2 = vcmask 177304   ;;  %s7594_s2 = smov 126  }
 0x251   : > { %v800_v55 = vmul.f32 %v7423_v6, %v752_v46  ;;  %v1358_v46 = vshrl.u32 %v7129_v4, 16  ;;  %v1361_v6 = vshll.u32 %v7129_v4, 16  ;;  %1517 = vst [vmem:[#allocation2 + $0xb4] sm:$0xf] %v1516_v41 }
 0x252   : > { %v9097_v8 = vpop.permute.xlu1 %2872 }
 0x253   : > { %v839_v28 = vadd.f32 %v7425_v27, %v800_v55  ;;  %v9109_v63 = vpop.permute.xlu0 %2314  ;;  %2044 = vrot.lane.b32.xlu1 %v1881_v0, %s7584_s23  ;;  %v1360_v0 = vrot.slane %v1358_v46, 7  ;;  %v1888_v27 = vrot.slane %v1886_v44, 5  ;;  %v1857_v44 = vsel %vm7885_vm9, %v1852_v21, %v1856_v1 }
 0x254   : > { %2882 = vrot.lane.b32.xlu0 %v12067_v3, %s7586_s14 }
 0x255   : > { %v871_v25 = vmax.f32 %v839_v28, 0.0  ;;  %v1363_v30 = vor.u32 %v1361_v6, %v1360_v0  ;;  %v1365_v4 = vrot.slane %v1360_v0, 4  ;;  %v1896_v6 = vshrl.u32 %v12068_v51, 16 }
 0x256   : > { %v9111_v24 = vpop.permute.xlu1 %2455 }
 0x257   : > { %v7127_v55 = vpack.c.bf16 %v871_v25, %v871_v25  ;;  %v9119_v14 = vpop.permute.xlu0 %2598  ;;  %2884 = vrot.lane.b32.xlu1 %v12068_v51, %s7586_s14  ;;  %v1339_v25 = vrot.slane %v1335_v57, 4  ;;  %v1364_v46 = vsel %vm7978_vm4, %v1356_v20, %v1363_v30  ;;  %v1527_v19 = vsel %vm7862_vm5, %v1365_v4, %v1526_v7  ;;  %v9176_v4 = vld [vmem:[#allocation2 + $0xc0] sm:$0xf] }
 0x258   : > { %3027 = vrot.lane.b32.xlu0 %v1847_v12, %s7589_s20  ;;  %v1889_v57 = vor.u32 %v1888_v27, %v1885_v40  ;;  %1525 = vst.msk [vmem:[#allocation2 + $0xc4] sm:$0xf] %vm890_vm1, %v1364_v46  ;;  %1528 = vst [vmem:[#allocation2 + $0xc8] sm:$0x1] %v1527_v19  ;;  %v1898_v40 = vrot.slane %v1896_v6, 4 }
 0x259   : > { %v1341_v28 = vshrl.u32 %v7127_v55, 16  ;;  %v1344_v2 = vshll.u32 %v7127_v55, 16  ;;  %v9159_v43 = vld [vmem:[#allocation2 + $0xb4] sm:$0xf] }
 0x25a   : > { %v9121_v49 = vpop.permute.xlu1 %3017  ;;  %v1890_v0 = vrot.slane %v1889_v57, 4  ;;  %1613 = vst.msk [vmem:[#allocation3 + $0xf0] sm:$0xf] %vm890_vm1, %v9159_v43  ;;  %v6908_v30 = vrot.slane %v9159_v43, 9  ;;  %v6909_v57 = vrot.slane %v9176_v4, 9 }
 0x25b   : > { %v1343_v22 = vrot.slane %v1341_v28, 7  ;;  %v2027_v53 = vpop.permute.xlu0 %2026  ;;  %3029 = vrot.lane.b32.xlu1 %v1857_v44, %s7589_s20  ;;  %v12069_v28 = vld [vmem:[#allocation28_spill] sm:$0xff] }
 0x25c   : > { %2610 = vrot.lane.b32.xlu0 %v1847_v12, %s7590_s24  ;;  %2111 = vst.msk [vmem:[#allocation3 + $0x60] sm:$0xf] %vm2098_vm13, %v2027_v53 }
 0x25d   : > { %v1346_v55 = vor.u32 %v1344_v2, %v1343_v22  ;;  %v1348_v18 = vrot.slane %v1343_v22, 4  ;;  %2403 = vst.msk [vmem:[#allocation3 + $0x60] sm:$0xf] %vm2390_vm14, %v9048_v16  ;;  %v1894_v16 = vrot.slane %v1892_v26, 5  ;;  %v1902_v2 = vshll.u32 %v12069_v28, 16 }
 0x25e   : > { %v9130_v47 = vpop.permute.xlu1 %2600 }
 0x25f   : > { %v1347_v21 = vsel %vm7978_vm4, %v1339_v25, %v1346_v55  ;;  %v1520_v1 = vsel %vm7862_vm5, %v1348_v18, %v1519_v15  ;;  %v9150_v20 = vpop.permute.xlu0 %2866  ;;  %2612 = vrot.lane.b32.xlu1 %v1857_v44, %s7590_s24  ;;  %v9168_v7 = vsel %vm7885_vm9, %v1890_v0, %v1894_v16  ;;  %v9178_v25 = vld [vmem:[#allocation2 + $0xc4] sm:$0xf]  ;;  %v9184_v26 = vld [vmem:[#allocation2 + $0xc8] sm:$0x1]  ;;  %v1904_v18 = vrot.slane %v1902_v2, 5  ;;  %v12071_v2 = vld [vmem:[#allocation26_spill] sm:$0xff] }
 0x260   : > { %2038 = vrot.lane.b32.xlu0 %v1847_v12, %s7584_s23  ;;  %1518 = vst.msk [vmem:[#allocation2 + $0xb8] sm:$0xf] %vm890_vm1, %v1347_v21  ;;  %1521 = vst [vmem:[#allocation2 + $0xbc] sm:$0x1] %v1520_v1  ;;  %v2710_v6 = vrot.slane %v9178_v25, 5  ;;  %vm4622_vm4 = vcmask 154712  }
 0x262   : > { %v2029_v37 = vpop.permute.xlu1 %2028  ;;  %v2712_v28 = vrot.slane %v2710_v6, 4 }
 0x263   : > { %2112 = vst.msk [vmem:[#allocation3 + $0x68] sm:$0xf] %vm2098_vm13, %v2029_v37  ;;  %v2450_v12 = vpop.permute.xlu0 %2449  ;;  %2040 = vrot.lane.b32.xlu1 %v1857_v44, %s7584_s23  ;;  %v2713_v37 = vrot.slane %v9184_v26, 5 }
 0x264   : > { %2404 = vst.msk [vmem:[#allocation3 + $0x68] sm:$0xf] %vm2390_vm14, %v9061_v56  ;;  %2334 = vrot.lane.b32.xlu0 %v8514_v62, %s7585_s18  ;;  %v1899_v56 = vor.u32 %v1898_v40, %v1894_v16  ;;  %v12070_v62 = vld [vmem:[#allocation25_spill] sm:$0xff] }
 0x265   : > { %2534 = vst.msk [vmem:[#allocation3 + $0x60] sm:$0xf] %vm2521_vm3, %v2450_v12  ;;  %v1907_v41 = vshrl.u32 %v12070_v62, 16  ;;  %v1910_v44 = vshll.u32 %v12070_v62, 16 }
 0x266   : > { %v9163_v27 = vpop.permute.xlu1 %2868  ;;  %v1900_v55 = vrot.slane %v1899_v56, 4 }
 0x267   : > { %v9180_v22 = vld [vmem:[#allocation2 + $0xb8] sm:$0xf]  ;;  %v9182_v53 = vld [vmem:[#allocation2 + $0xbc] sm:$0x1]  ;;  %v3012_v46 = vpop.permute.xlu0 %3011  ;;  %2467 = vrot.lane.b32.xlu1 %v12068_v51, %s7587_s17  ;;  %v1909_v12 = vrot.slane %v1907_v41, 4  ;;  %v1912_v56 = vrot.slane %v1910_v44, 5  ;;  %v9208_v51 = vsel %vm7893_vm12, %v6909_v57, %v2710_v6 }
 0x268   : > { %3035 = vrot.lane.b32.xlu0 %v9168_v7, %s7589_s20  ;;  %1614 = vst.msk [vmem:[#allocation3 + $0xf8] sm:$0xf] %vm890_vm1, %v9180_v22  ;;  %v2289_v15 = vrot.slane %v9180_v22, 5  ;;  %v2292_v21 = vrot.slane %v9182_v53, 5  ;;  %3196 = vst.msk [vmem:[#allocation3 + $0xe4] sm:$0xf] %vm890_vm1, %v9208_v51 }
 0x269   : > { %3102 = vst.msk [vmem:[#allocation3 + $0x30] sm:$0xf] %vm3095_vm15, %v3012_v46  ;;  %v1920_v46 = vshrl.u32 %v12071_v2, 16 }
 0x26a   : > { %v2452_v19 = vpop.permute.xlu1 %2451  ;;  %v9201_v1 = vsel %vm7893_vm12, %v6908_v30, %v2289_v15  ;;  %v2291_v0 = vrot.slane %v2289_v15, 4  ;;  %v1916_v30 = vshll.u32 %v12071_v2, 16  ;;  %v1913_v15 = vor.u32 %v1912_v56, %v1909_v12 }
 0x26b   : > { %2535 = vst.msk [vmem:[#allocation3 + $0x68] sm:$0xf] %vm2521_vm3, %v2452_v19  ;;  %v2595_v16 = vpop.permute.xlu0 %2594  ;;  %v9234_v19 = vsel %vm7893_vm12, %v2712_v28, %v2713_v37  ;;  %v1922_v6 = vrot.slane %v1920_v46, 4  ;;  %v1931_v28 = vshrl.u32 %v8873_v59, 16 }
 0x26c   : > { %2465 = vrot.lane.b32.xlu0 %v12067_v3, %s7587_s17  ;;  %3194 = vst.msk [vmem:[#allocation3 + $0xd4] sm:$0xf] %vm890_vm1, %v9201_v1  ;;  %v9214_v3 = vsel %vm7885_vm9, %v1900_v55, %v1904_v18  ;;  %v9220_v41 = vsel %vm7893_vm12, %v2291_v0, %v2292_v21  ;;  %3197 = vst.msk [vmem:[#allocation3 + $0xec] sm:$0xf] %vm890_vm1, %v9234_v19  ;;  %v1918_v57 = vrot.slane %v1916_v30, 5 }
 0x26d   : > { %2683 = vst.msk [vmem:[#allocation3 + $0x40] sm:$0xf] %vm2674_vm7, %v2595_v16  ;;  %3037 = vrot.lane.b32.xlu1 %v9214_v3, %s7589_s20  ;;  %v7426_v21 = vld [vmem:[#allocation2 + $0x98] sm:$0x1]  ;;  %v1933_v46 = vrot.slane %v1931_v28, 4 }
 0x26e   : > { %v3014_v40 = vpop.permute.xlu1 %3013  ;;  %2820 = vst.msk [vmem:[#allocation3 + $0x40] sm:$0xf] %vm2811_vm8, %v9085_v23  ;;  %v1923_v18 = vor.u32 %v1922_v6, %v1918_v57 }
 0x26f   : > { %3103 = vst.msk [vmem:[#allocation3 + $0x38] sm:$0xf] %vm3095_vm15, %v3014_v40  ;;  %v2023_v23 = vpop.permute.xlu0 %2022 }
 0x270   : > { %2618 = vrot.lane.b32.xlu0 %v9168_v7, %s7590_s24  ;;  %3195 = vst.msk [vmem:[#allocation3 + $0xdc] sm:$0xf] %vm890_vm1, %v9220_v41 }
 0x271   : > { %2951 = vst.msk [vmem:[#allocation3 + $0x40] sm:$0xf] %vm2942_vm11, %v8856_v32  ;;  %2620 = vrot.lane.b32.xlu1 %v9214_v3, %s7590_s24  ;;  %v12072_v32 = vld [vmem:[#allocation29_spill] sm:$0xff] }
 0x272   : > { %3104 = vst.msk [vmem:[#allocation3 + $0x40] sm:$0xf] %vm3095_vm15, %v9095_v39  ;;  %v2597_v44 = vpop.permute.xlu1 %2596 }
 0x273   : > { %2109 = vst.msk [vmem:[#allocation3 + $0x50] sm:$0xf] %vm2098_vm13, %v2023_v23  ;;  %v9260_v39 = vpop.permute.xlu0 %2743 }
 0x274   : > { %2684 = vst.msk [vmem:[#allocation3 + $0x48] sm:$0xf] %vm2674_vm7, %v2597_v44  ;;  %2755 = vrot.lane.b32.xlu0 %v12072_v32, %s7588_s22  ;;  %v1940_v44 = vshll.u32 %v8887_v31, 16 }
 0x275   : > { %2401 = vst.msk [vmem:[#allocation3 + $0x50] sm:$0xf] %vm2390_vm14, %v9109_v63  ;;  %v7376_v63 = vld [vmem:[#allocation3 + $0x34] ss:$8 sps:$4 sm:$0xff]  }
 0x276   : > { %2821 = vst.msk [vmem:[#allocation3 + $0x48] sm:$0xf] %vm2811_vm8, %v9073_v9  ;;  %v2025_v9 = vpop.permute.xlu1 %2024  ;;  %v7378_v55 = vld [vmem:[#allocation3 + $0x30] ss:$8 sps:$4 sm:$0xff]   ;;  %6955 = vmatprep.mubr.msk.bf16.mxu1 %vm3448_vm10, %v7376_v63  ;;  %v1942_v63 = vrot.slane %v1940_v44, 5 }
 0x277   : > { %2532 = vst.msk [vmem:[#allocation3 + $0x50] sm:$0xf] %vm2521_vm3, %v8867_v45  ;;  %v1914_v45 = vrot.slane %v1913_v15, 4  ;;  %3554 = vmatmul.mubr.bf16.gmra.mxu1 %v7378_v55  ;;  %v1944_v15 = vshrl.u32 %v8887_v31, 16 }
 0x278   : > { %2952 = vst.msk [vmem:[#allocation3 + $0x48] sm:$0xf] %vm2942_vm11, %v8893_v29  ;;  %v1926_v29 = vshll.u32 %v7426_v21, 16  ;;  %2886 = vrot.lane.b32.xlu0 %v12070_v62, %s7586_s14 }
 0x279   : > { %2685 = vst.msk [vmem:[#allocation3 + $0x50] sm:$0xf] %vm2674_vm7, %v9119_v14  ;;  %v12073_v14 = vld [vmem:[#allocation30_spill] sm:$0xff]  ;;  %v1946_v55 = vrot.slane %v1944_v15, 4 }
 0x27a   : > { %3105 = vst.msk [vmem:[#allocation3 + $0x48] sm:$0xf] %vm3095_vm15, %v9121_v49  ;;  %2757 = vrot.lane.b32.xlu1 %v12073_v14, %s7588_s22  ;;  %v9280_v49 = vpop.permute.xlu1 %2745  ;;  %v1928_v37 = vrot.slane %v1926_v29, 5 }
 0x27b   : > { %2822 = vst.msk [vmem:[#allocation3 + $0x50] sm:$0xf] %vm2811_vm8, %v9029_v11  ;;  %v9278_v11 = vpop.permute.xlu0 %2326 }
 0x27c   : > { %2110 = vst.msk [vmem:[#allocation3 + $0x58] sm:$0xf] %vm2098_vm13, %v2025_v9 }
 0x27d   : > { %2953 = vst.msk [vmem:[#allocation3 + $0x50] sm:$0xf] %vm2942_vm11, %v9150_v20  ;;  %v1924_v20 = vrot.slane %v1923_v18, 4  ;;  %v12074_v18 = vld [vmem:[#allocation31_spill] sm:$0xff] }
 0x27e   : > { %2402 = vst.msk [vmem:[#allocation3 + $0x58] sm:$0xf] %vm2390_vm14, %v9083_v34  ;;  %v9286_v34 = vsel %vm7885_vm9, %v1914_v45, %v1918_v57  ;;  %2888 = vrot.lane.b32.xlu1 %v12071_v2, %s7586_s14  ;;  %v953_v57 = vld [vmem:[#allocation2 + $0xcc] sm:$0x1]  ;;  %v7397_v45 = vld [vmem:[%s11933_s7] sm:$0xff]  }
 0x27f   : > { %2533 = vst.msk [vmem:[#allocation3 + $0x58] sm:$0xf] %vm2521_vm3, %v8905_v60  ;;  %3039 = vrot.lane.b32.xlu0 %v9286_v34, %s7589_s20  ;;  %v7379_v60 = vld [vmem:[#allocation3 + $0x44] ss:$8 sps:$4 sm:$0xff]   ;;  %v9296_v0 = vpop.permute.xlu0 %2878  ;;  %7219 = vmatprep.subr.bf16.mxu0 %v7397_v45 }
 0x280   : > { %2686 = vst.msk [vmem:[#allocation3 + $0x58] sm:$0xf] %vm2674_vm7, %v9130_v47  ;;  %v9294_v47 = vpop.permute.xlu1 %2328  ;;  %6956 = vmatprep.mubr.msk.bf16.mxu1 %vm3448_vm10, %v7379_v60  ;;  %7220 = vmatpush3.bf16.msra.mxu0 %v7397_v45  ;;  %v9355_v60 = vld [vmem:[#allocation2 + $0xd0] sm:$0xf] }
 0x281   : > { %2823 = vst.msk [vmem:[#allocation3 + $0x58] sm:$0xf] %vm2811_vm8, %v9050_v58  ;;  %v9301_v58 = vsel %vm7885_vm9, %v1924_v20, %v1928_v37  ;;  %v1947_v20 = vor.u32 %v1946_v55, %v1942_v63  ;;  %v1950_v37 = vshll.u32 %v8917_v48, 16  ;;  %v3131_v36 = vrot.slane %v9355_v60, 5 }
 0x282   : > { %2954 = vst.msk [vmem:[#allocation3 + $0x58] sm:$0xf] %vm2942_vm11, %v9163_v27  ;;  %3041 = vrot.lane.b32.xlu1 %v9301_v58, %s7589_s20  ;;  %v7381_v27 = vld [vmem:[#allocation3 + $0x40] ss:$8 sps:$4 sm:$0xff]  }
 0x283   : > { %2046 = vrot.lane.b32.xlu0 %v9168_v7, %s7584_s23  ;;  %3562 = vmatmul.mubr.bf16.gmra.mxu1 %v7381_v27  ;;  %v9309_v40 = vpop.permute.xlu0 %2461  ;;  %v1934_v7 = vshll.u32 %v8873_v59, 16  ;;  %v12075_v27 = vld [vmem:[#allocation32_spill] sm:$0xff]  ;;  %v1952_v44 = vrot.slane %v1950_v37, 5 }
 0x284   : > { %v9307_v16 = vpop.permute.xlu1 %2741 }
 0x285   : > { %v1936_v23 = vrot.slane %v1934_v7, 5 }
 0x286   : > { %2048 = vrot.lane.b32.xlu1 %v9214_v3, %s7584_s23 }
 0x287   : > { %2338 = vrot.lane.b32.xlu0 %v12072_v32, %s7585_s18  ;;  %v9317_v56 = vpop.permute.xlu0 %2739  ;;  %v954_v32 = vsel %vm7862_vm5, 0, %v953_v57  ;;  %v1937_v9 = vor.u32 %v1936_v23, %v1933_v46  ;;  %v1948_v23 = vrot.slane %v1947_v20, 4  ;;  %v3133_v57 = vrot.slane %v3131_v36, 4 }
 0x288   : > { %v9315_v12 = vpop.permute.xlu1 %2324  ;;  %955 = vst [vmem:[#allocation2 + $0xcc] sm:$0x1] %v954_v32  ;;  %vm4219_vm5 = vcmask 1040384  }
 0x28a   : > { %2340 = vrot.lane.b32.xlu1 %v12073_v14, %s7585_s18  ;;  %v1938_v14 = vrot.slane %v1937_v9, 4 }
 0x28b   : > { %2469 = vrot.lane.b32.xlu0 %v12070_v62, %s7587_s17  ;;  %v9325_v30 = vpop.permute.xlu0 %3023 }
 0x28c   : > { %v9327_v3 = vpop.permute.xlu1 %2880  ;;  %v9369_v48 = vsel %vm7885_vm9, %v1938_v14, %v1942_v63 }
 0x28e   : > { %2471 = vrot.lane.b32.xlu1 %v12071_v2, %s7587_s17  ;;  %v1009_v2 = vld [vmem:[#allocation2 + $0xd4] sm:$0x1] }
 0x28f   : > { %2622 = vrot.lane.b32.xlu0 %v9286_v34, %s7590_s24  ;;  %v9335_v6 = vpop.permute.xlu0 %2322  ;;  %v1010_v21 = vsel %vm7867_vm6, 0, %v1009_v2  ;;  %v9364_v46 = vld [vmem:[#allocation2 + $0xcc] sm:$0xf]  ;;  %vm4308_vm6 = vcmask 1043456  }
 0x290   : > { %v9337_v62 = vpop.permute.xlu1 %2463  ;;  %1011 = vst [vmem:[#allocation2 + $0xd4] sm:$0x1] %v1010_v21  ;;  %v6910_v15 = vrot.slane %v9364_v46, 9 }
 0x292   : > { %2624 = vrot.lane.b32.xlu1 %v9301_v58, %s7590_s24  ;;  %v3132_v32 = vsel %vm7893_vm12, %v6910_v15, %v3131_v36 }
 0x293   : > { %2759 = vrot.lane.b32.xlu0 %v12074_v18, %s7588_s22  ;;  %v9350_v35 = vpop.permute.xlu0 %2606  ;;  %3198 = vst.msk [vmem:[#allocation3 + $0xf4] sm:$0xf] %vm890_vm1, %v3132_v32 }
 0x294   : > { %v9352_v29 = vpop.permute.xlu1 %3025 }
 0x296   : > { %2761 = vrot.lane.b32.xlu1 %v12075_v27, %s7588_s22 }
 0x297   : > { %2890 = vrot.lane.b32.xlu0 %v8873_v59, %s7586_s14  ;;  %v2035_v28 = vpop.permute.xlu0 %2034  ;;  %v9380_v9 = vld [vmem:[#allocation2 + $0xd4] sm:$0x1] }
 0x298   : > { %v9362_v7 = vpop.permute.xlu1 %2608  ;;  %2115 = vst.msk [vmem:[#allocation3 + $0x80] sm:$0xf] %vm2098_vm13, %v2035_v28  ;;  %v3134_v45 = vrot.slane %v9380_v9, 5  ;;  %v1964_v28 = vshll.u32 %v8909_v54, 16 }
 0x299   : > { %2407 = vst.msk [vmem:[#allocation3 + $0x80] sm:$0xf] %vm2390_vm14, %v9278_v11  ;;  %v9387_v11 = vsel %vm7885_vm9, %v1948_v23, %v1952_v44  ;;  %v1968_v23 = vshrl.u32 %v8909_v54, 16 }
 0x29a   : > { %2892 = vrot.lane.b32.xlu1 %v8887_v31, %s7586_s14  ;;  %v3135_v2 = vsel %vm7893_vm12, %v3133_v57, %v3134_v45  ;;  %vm4433_vm12 = vcmask 23552  }
 0x29b   : > { %3043 = vrot.lane.b32.xlu0 %v9369_v48, %s7589_s20  ;;  %v2875_v63 = vpop.permute.xlu0 %2874  ;;  %3199 = vst.msk [vmem:[#allocation3 + $0xfc] sm:$0xf] %vm890_vm1, %v3135_v2  ;;  %v1970_v15 = vrot.slane %v1968_v23, 4  ;;  %v1998_v23 = vshll.u32 %v9182_v53, 16  ;;  %v9533_v53 = vld [vmem:[%s12076_s5] ss:$0 sm:$0xff] }
 0x29c   : > { %v2037_v55 = vpop.permute.xlu1 %2036  ;;  %vm7592_vm1 = vmmov 0   ;;  %s10742_s5 = sld [smem:[#allocation9 + $0x17]] }
 0x29d   : > { %2116 = vst.msk [vmem:[#allocation3 + $0x88] sm:$0xf] %vm2098_vm13, %v2037_v55 }
 0x29e   : > { %2408 = vst.msk [vmem:[#allocation3 + $0x88] sm:$0xf] %vm2390_vm14, %v9294_v47  ;;  %3045 = vrot.lane.b32.xlu1 %v9387_v11, %s7589_s20 }
 0x29f   : > { %2050 = vrot.lane.b32.xlu0 %v9286_v34, %s7584_s23  ;;  %v2458_v21 = vpop.permute.xlu0 %2457  ;;  %v1958_v34 = vshll.u32 %v8899_v17, 16 }
 0x2a0   : > { %v9398_v14 = vpop.permute.xlu1 %2876  ;;  %2538 = vst.msk [vmem:[#allocation3 + $0x80] sm:$0xf] %vm2521_vm3, %v2458_v21  ;;  %v1979_v21 = vshrl.u32 %v9159_v43, 16 }
 0x2a1   : > { %v1960_v36 = vrot.slane %v1958_v34, 5 }
 0x2a2   : > { %2052 = vrot.lane.b32.xlu1 %v9301_v58, %s7584_s23 }
 0x2a3   : > { %2342 = vrot.lane.b32.xlu0 %v12074_v18, %s7585_s18  ;;  %v3020_v47 = vpop.permute.xlu0 %3019  ;;  %v1957_v18 = vrot.slane %v1955_v5, 4  ;;  %v1992_v5 = vshrl.u32 %v9180_v22, 16 }
 0x2a4   : > { %v2460_v20 = vpop.permute.xlu1 %2459  ;;  %3106 = vst.msk [vmem:[#allocation3 + $0x50] sm:$0xf] %vm3095_vm15, %v3020_v47 }
 0x2a5   : > { %2539 = vst.msk [vmem:[#allocation3 + $0x88] sm:$0xf] %vm2521_vm3, %v2460_v20  ;;  %v1961_v44 = vor.u32 %v1960_v36, %v1957_v18  ;;  %v1988_v20 = vshll.u32 %v9180_v22, 16 }
 0x2a6   : > { %2344 = vrot.lane.b32.xlu1 %v12075_v27, %s7585_s18 }
 0x2a7   : > { %2473 = vrot.lane.b32.xlu0 %v8873_v59, %s7587_s17  ;;  %v2603_v58 = vpop.permute.xlu0 %2602 }
 0x2a8   : > { %v3022_v37 = vpop.permute.xlu1 %3021  ;;  %2687 = vst.msk [vmem:[#allocation3 + $0x60] sm:$0xf] %vm2674_vm7, %v2603_v58  ;;  %v1990_v58 = vrot.slane %v1988_v20, 5 }
 0x2a9   : > { %3107 = vst.msk [vmem:[#allocation3 + $0x58] sm:$0xf] %vm3095_vm15, %v3022_v37  ;;  %v1994_v37 = vrot.slane %v1992_v5, 4 }
 0x2aa   : > { %2824 = vst.msk [vmem:[#allocation3 + $0x60] sm:$0xf] %vm2811_vm8, %v9317_v56  ;;  %2475 = vrot.lane.b32.xlu1 %v8887_v31, %s7587_s17  ;;  %v1966_v56 = vrot.slane %v1964_v28, 5 }
 0x2ab   : > { %2626 = vrot.lane.b32.xlu0 %v9369_v48, %s7590_s24  ;;  %2955 = vst.msk [vmem:[#allocation3 + $0x60] sm:$0xf] %vm2942_vm11, %v9063_v33  ;;  %v2031_v59 = vpop.permute.xlu0 %2030  ;;  %v1995_v28 = vor.u32 %v1994_v37, %v1990_v58 }
 0x2ac   : > { %3108 = vst.msk [vmem:[#allocation3 + $0x60] sm:$0xf] %vm3095_vm15, %v9325_v30  ;;  %v2605_v27 = vpop.permute.xlu1 %2604 }
 0x2ad   : > { %2113 = vst.msk [vmem:[#allocation3 + $0x70] sm:$0xf] %vm2098_vm13, %v2031_v59 }
 0x2ae   : > { %2688 = vst.msk [vmem:[#allocation3 + $0x68] sm:$0xf] %vm2674_vm7, %v2605_v27  ;;  %2628 = vrot.lane.b32.xlu1 %v9387_v11, %s7590_s24 }
 0x2af   : > { %2405 = vst.msk [vmem:[#allocation3 + $0x70] sm:$0xf] %vm2390_vm14, %v9335_v6  ;;  %2763 = vrot.lane.b32.xlu0 %v8931_v50, %s7588_s22  ;;  %v9445_v31 = vpop.permute.xlu0 %2751  ;;  %v1971_v6 = vor.u32 %v1970_v15, %v1966_v56  ;;  %v2000_v15 = vrot.slane %v1998_v23, 5 }
 0x2b0   : > { %2825 = vst.msk [vmem:[#allocation3 + $0x68] sm:$0xf] %vm2811_vm8, %v9307_v16  ;;  %v2033_v33 = vpop.permute.xlu1 %2032  ;;  %v7382_v16 = vld [vmem:[#allocation3 + $0x54] ss:$8 sps:$4 sm:$0xff]   ;;  %v7384_v30 = vld [vmem:[#allocation3 + $0x50] ss:$8 sps:$4 sm:$0xff]  }
 0x2b1   : > { %2536 = vst.msk [vmem:[#allocation3 + $0x70] sm:$0xf] %vm2521_vm3, %v9075_v13  ;;  %v1962_v13 = vrot.slane %v1961_v44, 4  ;;  %6957 = vmatprep.mubr.msk.bf16.mxu1 %vm3448_vm10, %v7382_v16 }
 0x2b2   : > { %2956 = vst.msk [vmem:[#allocation3 + $0x68] sm:$0xf] %vm2942_vm11, %v9097_v8  ;;  %v1974_v8 = vshll.u32 %v8934_v52, 16  ;;  %2765 = vrot.lane.b32.xlu1 %v8946_v42, %s7588_s22  ;;  %3570 = vmatmul.mubr.bf16.gmra.mxu1 %v7384_v30  ;;  %v9547_v30 = vld [vmem:[%s11932_s6] ss:$0 sm:$0xff] }
 0x2b3   : > { %2689 = vst.msk [vmem:[#allocation3 + $0x70] sm:$0xf] %vm2674_vm7, %v9350_v35  ;;  %2894 = vrot.lane.b32.xlu0 %v8899_v17, %s7586_s14  ;;  %v1972_v35 = vrot.slane %v1971_v6, 4 }
 0x2b4   : > { %3109 = vst.msk [vmem:[#allocation3 + $0x68] sm:$0xf] %vm3095_vm15, %v9352_v29  ;;  %v9463_v52 = vpop.permute.xlu1 %2753  ;;  %v1976_v29 = vrot.slane %v1974_v8, 5 }
 0x2b5   : > { %2826 = vst.msk [vmem:[#allocation3 + $0x70] sm:$0xf] %vm2811_vm8, %v9260_v39  ;;  %v2748_v39 = vpop.permute.xlu0 %2747 }
 0x2b6   : > { %2114 = vst.msk [vmem:[#allocation3 + $0x78] sm:$0xf] %vm2098_vm13, %v2033_v33  ;;  %2896 = vrot.lane.b32.xlu1 %v8909_v54, %s7586_s14 }
 0x2b7   : > { %2957 = vst.msk [vmem:[#allocation3 + $0x70] sm:$0xf] %vm2942_vm11, %v2875_v63 }
 0x2b8   : > { %2406 = vst.msk [vmem:[#allocation3 + $0x78] sm:$0xf] %vm2390_vm14, %v9315_v12  ;;  %v9469_v12 = vsel %vm7885_vm9, %v1962_v13, %v1966_v56  ;;  %v1996_v56 = vrot.slane %v1995_v28, 4 }
 0x2b9   : > { %2537 = vst.msk [vmem:[#allocation3 + $0x78] sm:$0xf] %vm2521_vm3, %v9111_v24  ;;  %3047 = vrot.lane.b32.xlu0 %v9469_v12, %s7589_s20  ;;  %v7385_v24 = vld [vmem:[#allocation3 + $0x64] ss:$8 sps:$4 sm:$0xff]   ;;  %v3032_v57 = vpop.permute.xlu0 %3031 }
 0x2ba   : > { %2690 = vst.msk [vmem:[#allocation3 + $0x78] sm:$0xf] %vm2674_vm7, %v9362_v7  ;;  %v9477_v7 = vpop.permute.xlu1 %2749  ;;  %6958 = vmatprep.mubr.msk.bf16.mxu1 %vm3448_vm10, %v7385_v24 }
 0x2bb   : > { %2827 = vst.msk [vmem:[#allocation3 + $0x78] sm:$0xf] %vm2811_vm8, %v9280_v49  ;;  %v9482_v49 = vsel %vm7885_vm9, %v1972_v35, %v1976_v29  ;;  %v7387_v32 = vld [vmem:[#allocation3 + $0x60] ss:$8 sps:$4 sm:$0xff]  }
 0x2bc   : > { %2958 = vst.msk [vmem:[#allocation3 + $0x78] sm:$0xf] %vm2942_vm11, %v9398_v14  ;;  %3049 = vrot.lane.b32.xlu1 %v9482_v49, %s7589_s20  ;;  %3578 = vmatmul.mubr.bf16.gmra.mxu1 %v7387_v32  ;;  %v1982_v14 = vshll.u32 %v9159_v43, 16 }
 0x2bd   : > { %2054 = vrot.lane.b32.xlu0 %v9369_v48, %s7584_s23  ;;  %v2331_v55 = vpop.permute.xlu0 %2330 }
 0x2be   : > { %v2337_v63 = vpop.permute.xlu1 %2336 }
 0x2c0   : > { %2056 = vrot.lane.b32.xlu1 %v9387_v11, %s7584_s23  ;;  %v1981_v11 = vrot.slane %v1979_v21, 4 }
 0x2c1   : > { %2346 = vrot.lane.b32.xlu0 %v8931_v50, %s7585_s18  ;;  %v2615_v2 = vpop.permute.xlu0 %2614  ;;  %v1984_v50 = vrot.slane %v1982_v14, 5 }
 0x2c2   : > { %v9492_v45 = vpop.permute.xlu1 %2332 }
 0x2c3   : > { %v1985_v34 = vor.u32 %v1984_v50, %v1981_v11 }
 0x2c4   : > { %2348 = vrot.lane.b32.xlu1 %v8946_v42, %s7585_s18 }
 0x2c5   : > { %2477 = vrot.lane.b32.xlu0 %v8899_v17, %s7587_s17  ;;  %v2043_v47 = vpop.permute.xlu0 %2042 }
 0x2c6   : > { %v9500_v48 = vpop.permute.xlu1 %3033  ;;  %2119 = vst.msk [vmem:[#allocation3 + $0xa0] sm:$0xf] %vm2098_vm13, %v2043_v47  ;;  %v7391_v47 = vld [vmem:[#allocation3 + $0x84] ss:$8 sps:$4 sm:$0xff]  }
 0x2c8   : > { %2479 = vrot.lane.b32.xlu1 %v8909_v54, %s7587_s17  ;;  %v1986_v54 = vrot.slane %v1985_v34, 4 }
 0x2c9   : > { %2630 = vrot.lane.b32.xlu0 %v9469_v12, %s7590_s24  ;;  %v2883_v17 = vpop.permute.xlu0 %2882 }
 0x2ca   : > { %v9509_v42 = vpop.permute.xlu1 %2616  ;;  %v9528_v44 = vsel %vm7885_vm9, %v1986_v54, %v1990_v58 }
 0x2cc   : > { %2632 = vrot.lane.b32.xlu1 %v9482_v49, %s7590_s24 }
 0x2cd   : > { %2767 = vrot.lane.b32.xlu0 %v8950_v38, %s7588_s22  ;;  %v3028_v36 = vpop.permute.xlu0 %3027  ;;  %v3531_v33 = vpop.f32.mrf.mxu1 }
 0x2ce   : > { %v2045_v18 = vpop.permute.xlu1 %2044  ;;  %3110 = vst.msk [vmem:[#allocation3 + $0x70] sm:$0xf] %vm3095_vm15, %v3028_v36  ;;  %v3665_v16 = vmul.f32 %v9533_v53, %v3531_v33 }
 0x2cf   : > { %2120 = vst.msk [vmem:[#allocation3 + $0xa8] sm:$0xf] %vm2098_vm13, %v2045_v18  ;;  %v3533_v8 = vpop.f32.mrf.mxu1  ;;  %v2574_v18 = vshll.u32 %v9184_v26, 16 }
 0x2d0   : > { %2412 = vst.msk [vmem:[#allocation3 + $0xa8] sm:$0xf] %vm2390_vm14, %v2337_v63  ;;  %2769 = vrot.lane.b32.xlu1 %v8967_v10, %s7588_s22 }
 0x2d1   : > { %2898 = vrot.lane.b32.xlu0 %v9159_v43, %s7586_s14  ;;  %v2611_v59 = vpop.permute.xlu0 %2610  ;;  %v3534_v35 = vpop.f32.mrf.mxu1 }
 0x2d2   : > { %v9523_v27 = vpop.permute.xlu1 %2884  ;;  %2691 = vst.msk [vmem:[#allocation3 + $0x80] sm:$0xf] %vm2674_vm7, %v2611_v59  ;;  %v3666_v29 = vmul.f32 %v9533_v53, %v3534_v35  ;;  %v7393_v59 = vld [vmem:[#allocation3 + $0x94] ss:$8 sps:$4 sm:$0xff]   ;;  %v2979_v35 = vshll.u32 %v9364_v46, 16 }
 0x2d3   : > { %2828 = vst.msk [vmem:[#allocation3 + $0x80] sm:$0xf] %vm2811_vm8, %v2748_v39  ;;  %v3704_v39 = vadd.f32 %v9547_v30, %v3665_v16 }
 0x2d4   : > { %2900 = vrot.lane.b32.xlu1 %v9180_v22, %s7586_s14  ;;  %2959 = vst.msk [vmem:[#allocation3 + $0x80] sm:$0xf] %vm2942_vm11, %v9296_v0  ;;  %v9553_v0 = vsel %vm7885_vm9, %v1996_v56, %v2000_v15  ;;  %v3705_v32 = vadd.f32 %v9547_v30, %v3666_v29  ;;  %v2576_v15 = vrot.slane %v2574_v18, 5 }
 0x2d5   : > { %3051 = vrot.lane.b32.xlu0 %v9528_v44, %s7589_s20  ;;  %3112 = vst.msk [vmem:[#allocation3 + $0x80] sm:$0xf] %vm3095_vm15, %v3032_v57  ;;  %v2039_v13 = vpop.permute.xlu0 %2038 }
 0x2d6   : > { %v3030_v6 = vpop.permute.xlu1 %3029  ;;  %2117 = vst.msk [vmem:[#allocation3 + $0x90] sm:$0xf] %vm2098_vm13, %v2039_v13 }
 0x2d7   : > { %3111 = vst.msk [vmem:[#allocation3 + $0x78] sm:$0xf] %vm3095_vm15, %v3030_v6 }
 0x2d8   : > { %2409 = vst.msk [vmem:[#allocation3 + $0x90] sm:$0xf] %vm2390_vm14, %v2331_v55  ;;  %3053 = vrot.lane.b32.xlu1 %v9553_v0, %s7589_s20 }
 0x2d9   : > { %2058 = vrot.lane.b32.xlu0 %v9469_v12, %s7584_s23  ;;  %2540 = vst.msk [vmem:[#allocation3 + $0x90] sm:$0xf] %vm2521_vm3, %v9309_v40  ;;  %v2335_v24 = vpop.permute.xlu0 %2334  ;;  %v3536_v12 = vpop.f32.mrf.mxu1  ;;  %v3736_v40 = vmax.f32 %v3704_v39, 0.0  ;;  %v2976_v39 = vshrl.u32 %v9364_v46, 16 }
 0x2da   : > { %2693 = vst.msk [vmem:[#allocation3 + $0x90] sm:$0xf] %vm2674_vm7, %v2615_v2  ;;  %v2613_v57 = vpop.permute.xlu1 %2612  ;;  %v7388_v2 = vld [vmem:[#allocation3 + $0x74] ss:$8 sps:$4 sm:$0xff]  }
 0x2db   : > { %2830 = vst.msk [vmem:[#allocation3 + $0x90] sm:$0xf] %vm2811_vm8, %v9445_v31  ;;  %v3737_v31 = vmax.f32 %v3705_v32, 0.0  ;;  %6959 = vmatprep.mubr.msk.bf16.mxu1 %vm3448_vm10, %v7388_v2 }
 0x2dc   : > { %2411 = vst.msk [vmem:[#allocation3 + $0xa0] sm:$0xf] %vm2390_vm14, %v2335_v24  ;;  %2060 = vrot.lane.b32.xlu1 %v9482_v49, %s7584_s23 }
 0x2dd   : > { %2692 = vst.msk [vmem:[#allocation3 + $0x88] sm:$0xf] %vm2674_vm7, %v2613_v57  ;;  %2350 = vrot.lane.b32.xlu0 %v8950_v38, %s7585_s18  ;;  %v3036_v55 = vpop.permute.xlu0 %3035  ;;  %v2558_v38 = vshll.u32 %v9176_v4, 16  ;;  %v3768_v49 = vpack.c.bf16 %v3737_v31, %v3736_v40  ;;  %v2981_v57 = vrot.slane %v2979_v35, 5 }
 0x2de   : > { %2961 = vst.msk [vmem:[#allocation3 + $0x90] sm:$0xf] %vm2942_vm11, %v2883_v17  ;;  %v2041_v63 = vpop.permute.xlu1 %2040  ;;  %v7390_v21 = vld [vmem:[#allocation3 + $0x70] ss:$8 sps:$4 sm:$0xff]  }
 0x2df   : > { %2829 = vst.msk [vmem:[#allocation3 + $0x88] sm:$0xf] %vm2811_vm8, %v9477_v7  ;;  %v2555_v7 = vshrl.u32 %v9176_v4, 16  ;;  %3586 = vmatmul.mubr.bf16.gmra.mxu1 %v7390_v21  ;;  %7221 = vmatprep.mubr.msk.bf16.mxu0 %vm3448_vm10, %v3768_v49 }
 0x2e0   : > { %2960 = vst.msk [vmem:[#allocation3 + $0x88] sm:$0xf] %vm2942_vm11, %v9327_v3  ;;  %2352 = vrot.lane.b32.xlu1 %v8967_v10, %s7585_s18  ;;  %6960 = vmatprep.mubr.msk.bf16.mxu1 %vm3448_vm10, %v7391_v47 }
 0x2e1   : > { %3113 = vst.msk [vmem:[#allocation3 + $0x88] sm:$0xf] %vm3095_vm15, %v9500_v48  ;;  %3114 = vst.msk [vmem:[#allocation3 + $0x90] sm:$0xf] %vm3095_vm15, %v3036_v55  ;;  %2481 = vrot.lane.b32.xlu0 %v9159_v43, %s7587_s17  ;;  %v2466_v14 = vpop.permute.xlu0 %2465  ;;  %v2557_v10 = vrot.slane %v2555_v7, 4  ;;  %v2560_v43 = vrot.slane %v2558_v38, 5 }
 0x2e2   : > { %2118 = vst.msk [vmem:[#allocation3 + $0x98] sm:$0xf] %vm2098_vm13, %v2041_v63  ;;  %v2468_v3 = vpop.permute.xlu1 %2467  ;;  %v7395_v63 = vld [vmem:[#allocation3 + $0xa4] ss:$8 sps:$4 sm:$0xff]   ;;  %v2995_v38 = vshll.u32 %v9380_v9, 16 }
 0x2e3   : > { %2410 = vst.msk [vmem:[#allocation3 + $0x98] sm:$0xf] %vm2390_vm14, %v9492_v45  ;;  %v2568_v45 = vshrl.u32 %v9178_v25, 16  ;;  %v2561_v5 = vor.u32 %v2560_v43, %v2557_v10 }
 0x2e4   : > { %2541 = vst.msk [vmem:[#allocation3 + $0x98] sm:$0xf] %vm2521_vm3, %v9337_v62  ;;  %2543 = vst.msk [vmem:[#allocation3 + $0xa8] sm:$0xf] %vm2521_vm3, %v2468_v3  ;;  %v2564_v62 = vshll.u32 %v9178_v25, 16  ;;  %2483 = vrot.lane.b32.xlu1 %v9180_v22, %s7587_s17 }
 0x2e5   : > { %2694 = vst.msk [vmem:[#allocation3 + $0x98] sm:$0xf] %vm2674_vm7, %v9509_v42  ;;  %2634 = vrot.lane.b32.xlu0 %v9528_v44, %s7590_s24  ;;  %v2619_v50 = vpop.permute.xlu0 %2618  ;;  %v2570_v17 = vrot.slane %v2568_v45, 4  ;;  %v2562_v58 = vrot.slane %v2561_v5, 4  ;;  %v2997_v45 = vrot.slane %v2995_v38, 5 }
 0x2e6   : > { %2831 = vst.msk [vmem:[#allocation3 + $0x98] sm:$0xf] %vm2811_vm8, %v9463_v52  ;;  %v3216_v52 = vld [vmem:[#allocation3 + $0x80] sm:$0xff]  ;;  %v3038_v11 = vpop.permute.xlu1 %3037  ;;  %v2566_v42 = vrot.slane %v2564_v62, 5 }
 0x2e7   : > { %2542 = vst.msk [vmem:[#allocation3 + $0xa0] sm:$0xf] %vm2521_vm3, %v2466_v14 }
 0x2e8   : > { %2962 = vst.msk [vmem:[#allocation3 + $0x98] sm:$0xf] %vm2942_vm11, %v9523_v27  ;;  %v3217_v48 = vld [vmem:[#allocation3 + $0x88] sm:$0xff]  ;;  %2636 = vrot.lane.b32.xlu1 %v9553_v0, %s7590_s24  ;;  %v2571_v37 = vor.u32 %v2570_v17, %v2566_v42  ;;  %v3218_v28 = vld [vmem:[#allocation3 + $0x90] sm:$0xff]  ;;  %v2567_v27 = vsel %vm7885_vm9, %v2562_v58, %v2566_v42 }
 0x2e9   : > { %v6927_v20 = vcombine.low %v3216_v52, %v3217_v48  ;;  %3115 = vst.msk [vmem:[#allocation3 + $0x98] sm:$0xf] %vm3095_vm15, %v3038_v11  ;;  %2771 = vrot.lane.b32.xlu0 %v9201_v1, %s7588_s22  ;;  %v2756_v34 = vpop.permute.xlu0 %2755 }
 0x2ea   : > { %2695 = vst.msk [vmem:[#allocation3 + $0xa0] sm:$0xf] %vm2674_vm7, %v2619_v50  ;;  %v2621_v22 = vpop.permute.xlu1 %2620  ;;  %v2572_v26 = vrot.slane %v2571_v37, 4 }
 0x2eb   : > { %3594 = vmatmul.mubr.bf16.gmra.mxu1 %v6927_v20  ;;  %2696 = vst.msk [vmem:[#allocation3 + $0xa8] sm:$0xf] %vm2674_vm7, %v2621_v22 }
 0x2ec   : > { %2832 = vst.msk [vmem:[#allocation3 + $0xa0] sm:$0xf] %vm2811_vm8, %v2756_v34  ;;  %2773 = vrot.lane.b32.xlu1 %v9220_v41, %s7588_s22  ;;  %6961 = vmatprep.mubr.msk.bf16.mxu1 %vm3448_vm10, %v7393_v59  ;;  %v2577_v13 = vsel %vm7885_vm9, %v2572_v26, %v2576_v15 }
 0x2ed   : > { %2902 = vrot.lane.b32.xlu0 %v9176_v4, %s7586_s14  ;;  %v2887_v54 = vpop.permute.xlu0 %2886 }
 0x2ee   : > { %v2758_v36 = vpop.permute.xlu1 %2757  ;;  %2963 = vst.msk [vmem:[#allocation3 + $0xa0] sm:$0xf] %vm2942_vm11, %v2887_v54 }
 0x2ef   : > { %2833 = vst.msk [vmem:[#allocation3 + $0xa8] sm:$0xf] %vm2811_vm8, %v2758_v36 }
 0x2f0   : > { %v3219_v23 = vld [vmem:[#allocation3 + $0x98] sm:$0xff]  ;;  %2904 = vrot.lane.b32.xlu1 %v9178_v25, %s7586_s14 }
 0x2f1   : > { %v6929_v56 = vcombine.low %v3218_v28, %v3219_v23  ;;  %3055 = vrot.lane.b32.xlu0 %v2567_v27, %s7589_s20  ;;  %v3040_v16 = vpop.permute.xlu0 %3039 }
 0x2f2   : > { %v2889_v33 = vpop.permute.xlu1 %2888  ;;  %3116 = vst.msk [vmem:[#allocation3 + $0xa0] sm:$0xf] %vm3095_vm15, %v3040_v16 }
 0x2f3   : > { %3602 = vmatmul.mubr.bf16.gmra.mxu1 %v6929_v56  ;;  %2964 = vst.msk [vmem:[#allocation3 + $0xa8] sm:$0xf] %vm2942_vm11, %v2889_v33 }
 0x2f4   : > { %3057 = vrot.lane.b32.xlu1 %v2577_v13, %s7589_s20  ;;  %6962 = vmatprep.mubr.msk.bf16.mxu1 %vm3448_vm10, %v7395_v63 }
 0x2f5   : > { %2062 = vrot.lane.b32.xlu0 %v9528_v44, %s7584_s23  ;;  %v2047_v8 = vpop.permute.xlu0 %2046  ;;  %v2985_v44 = vshll.u32 %v9355_v60, 16 }
 0x2f6   : > { %v3042_v6 = vpop.permute.xlu1 %3041  ;;  %2121 = vst.msk [vmem:[#allocation3 + $0xb0] sm:$0xf] %vm2098_vm13, %v2047_v8  ;;  %v7398_v8 = vld [vmem:[#allocation3 + $0xb4] ss:$8 sps:$4 sm:$0xff]  }
 0x2f7   : > { %3117 = vst.msk [vmem:[#allocation3 + $0xa8] sm:$0xf] %vm3095_vm15, %v3042_v6 }
 0x2f8   : > { %2064 = vrot.lane.b32.xlu1 %v9553_v0, %s7584_s23  ;;  %v2978_v0 = vrot.slane %v2976_v39, 4  ;;  %s10653_s23 = sld [smem:[#allocation9 + $0x5]] }
 0x2f9   : > { %2354 = vrot.lane.b32.xlu0 %v9201_v1, %s7585_s18  ;;  %v2339_v24 = vpop.permute.xlu0 %2338  ;;  %v2989_v1 = vshrl.u32 %v9355_v60, 16  ;;  %v3220_v40 = vld [vmem:[#allocation3 + $0xa0] sm:$0xff] }
 0x2fa   : > { %v2049_v29 = vpop.permute.xlu1 %2048  ;;  %2413 = vst.msk [vmem:[#allocation3 + $0xb0] sm:$0xf] %vm2390_vm14, %v2339_v24  ;;  %v2982_v2 = vor.u32 %v2981_v57, %v2978_v0 }
 0x2fb   : > { %2122 = vst.msk [vmem:[#allocation3 + $0xb8] sm:$0xf] %vm2098_vm13, %v2049_v29  ;;  %v3539_v3 = vpop.f32.mrf.mxu1 }
 0x2fc   : > { %2356 = vrot.lane.b32.xlu1 %v9220_v41, %s7585_s18  ;;  %v2991_v41 = vrot.slane %v2989_v1, 4  ;;  %v2983_v49 = vrot.slane %v2982_v2, 4  ;;  %v3667_v10 = vmul.f32 %v9533_v53, %v3539_v3  ;;  %s10659_s18 = sld [smem:[#allocation9 + $0x8]] }
 0x2fd   : > { %2485 = vrot.lane.b32.xlu0 %v9176_v4, %s7587_s17  ;;  %v2470_v32 = vpop.permute.xlu0 %2469  ;;  %v2987_v4 = vrot.slane %v2985_v44, 5  ;;  %v3541_v62 = vpop.f32.mrf.mxu1 }
 0x2fe   : > { %v2341_v12 = vpop.permute.xlu1 %2340  ;;  %v3221_v31 = vld [vmem:[#allocation3 + $0xa8] sm:$0xff]  ;;  %2544 = vst.msk [vmem:[#allocation3 + $0xb0] sm:$0xf] %vm2521_vm3, %v2470_v32  ;;  %v3706_v47 = vadd.f32 %v9547_v30, %v3667_v10 }
 0x2ff   : > { %2414 = vst.msk [vmem:[#allocation3 + $0xb8] sm:$0xf] %vm2390_vm14, %v2341_v12  ;;  %v6931_v55 = vcombine.low %v3220_v40, %v3221_v31  ;;  %v2988_v9 = vsel %vm7885_vm9, %v2983_v49, %v2987_v4  ;;  %v3542_v52 = vpop.f32.mrf.mxu1 }
 0x300   : > { %2487 = vrot.lane.b32.xlu1 %v9178_v25, %s7587_s17  ;;  %v2992_v25 = vor.u32 %v2991_v41, %v2987_v4  ;;  %v3668_v11 = vmul.f32 %v9533_v53, %v3542_v52  ;;  %v3738_v17 = vmax.f32 %v3706_v47, 0.0  ;;  %s10666_s17 = sld [smem:[#allocation9 + $0xc]] }
 0x301   : > { %2638 = vrot.lane.b32.xlu0 %v2567_v27, %s7590_s24  ;;  %3610 = vmatmul.mubr.bf16.gmra.mxu1 %v6931_v55  ;;  %v2623_v7 = vpop.permute.xlu0 %2622 }
 0x302   : > { %v2472_v21 = vpop.permute.xlu1 %2471  ;;  %2697 = vst.msk [vmem:[#allocation3 + $0xb0] sm:$0xf] %vm2674_vm7, %v2623_v7  ;;  %6963 = vmatprep.mubr.msk.bf16.mxu1 %vm3448_vm10, %v7398_v8 }
 0x303   : > { %2545 = vst.msk [vmem:[#allocation3 + $0xb8] sm:$0xf] %vm2521_vm3, %v2472_v21  ;;  %v7400_v21 = vld [vmem:[#allocation3 + $0xc4] ss:$8 sps:$4 sm:$0xff]  }
 0x304   : > { %2640 = vrot.lane.b32.xlu1 %v2577_v13, %s7590_s24  ;;  %s10678_s24 = sld [smem:[#allocation9 + $0x12]] }
 0x305   : > { %2775 = vrot.lane.b32.xlu0 %v9208_v51, %s7588_s22  ;;  %v2760_v43 = vpop.permute.xlu0 %2759  ;;  %v2993_v51 = vrot.slane %v2992_v25, 4 }
 0x306   : > { %v2625_v14 = vpop.permute.xlu1 %2624  ;;  %2834 = vst.msk [vmem:[#allocation3 + $0xb0] sm:$0xf] %vm2811_vm8, %v2760_v43 }
 0x307   : > { %2698 = vst.msk [vmem:[#allocation3 + $0xb8] sm:$0xf] %vm2674_vm7, %v2625_v14  ;;  %v2998_v20 = vsel %vm7885_vm9, %v2993_v51, %v2997_v45  ;;  %vm4304_vm9 = vcmask 31744  }
 0x308   : > { %2777 = vrot.lane.b32.xlu1 %v9234_v19, %s7588_s22  ;;  %v3544_v19 = vpop.f32.mrf.mxu1  ;;  %s10669_s22 = sld [smem:[#allocation9 + $0x7]] }
 0x309   : > { %2906 = vrot.lane.b32.xlu0 %v9364_v46, %s7586_s14  ;;  %v2891_v50 = vpop.permute.xlu0 %2890  ;;  %v3707_v46 = vadd.f32 %v9547_v30, %v3668_v11 }
 0x30a   : > { %v2762_v48 = vpop.permute.xlu1 %2761  ;;  %2965 = vst.msk [vmem:[#allocation3 + $0xb0] sm:$0xf] %vm2942_vm11, %v2891_v50  ;;  %v3547_v5 = vpop.f32.mrf.mxu1 }
 0x30b   : > { %2835 = vst.msk [vmem:[#allocation3 + $0xb8] sm:$0xf] %vm2811_vm8, %v2762_v48  ;;  %v3739_v22 = vmax.f32 %v3707_v46, 0.0  ;;  %v3669_v34 = vmul.f32 %v9533_v53, %v3547_v5 }
 0x30c   : > { %2908 = vrot.lane.b32.xlu1 %v9355_v60, %s7586_s14  ;;  %v3549_v37 = vpop.f32.mrf.mxu1  ;;  %s10662_s14 = sld [smem:[#allocation9 + $0xa]] }
 0x30d   : > { %3059 = vrot.lane.b32.xlu0 %v2988_v9, %s7589_s20  ;;  %v3044_v58 = vpop.permute.xlu0 %3043  ;;  %v3769_v60 = vpack.c.bf16 %v3739_v22, %v3738_v17  ;;  %v3708_v61 = vadd.f32 %v9547_v30, %v3669_v34 }
 0x30e   : > { %v2893_v42 = vpop.permute.xlu1 %2892  ;;  %3118 = vst.msk [vmem:[#allocation3 + $0xb0] sm:$0xf] %vm3095_vm15, %v3044_v58  ;;  %v3550_v18 = vpop.f32.mrf.mxu1 }
 0x30f   : > { %2966 = vst.msk [vmem:[#allocation3 + $0xb8] sm:$0xf] %vm2942_vm11, %v2893_v42  ;;  %v3670_v54 = vmul.f32 %v9533_v53, %v3550_v18  ;;  %7222 = vmatmul.mubr.msk.bf16.vlgmr.msra.gmra.mxu0 %vm3448_vm10, %v3769_v60  ;;  %v3740_v56 = vmax.f32 %v3708_v61, 0.0 }
 0x310   : > { %3061 = vrot.lane.b32.xlu1 %v2998_v20, %s7589_s20  ;;  %v3552_v23 = vpop.f32.mrf.mxu1  ;;  %s10672_s20 = sld [smem:[#allocation9 + $0x10]] }
 0x311   : > { %v2051_v28 = vpop.permute.xlu0 %2050  ;;  %v3709_v59 = vadd.f32 %v9547_v30, %v3670_v54 }
 0x312   : > { %v3046_v36 = vpop.permute.xlu1 %3045  ;;  %2123 = vst.msk [vmem:[#allocation3 + $0xc0] sm:$0xf] %vm2098_vm13, %v2051_v28 }
 0x313   : > { %3119 = vst.msk [vmem:[#allocation3 + $0xb8] sm:$0xf] %vm3095_vm15, %v3046_v36  ;;  %v3741_v26 = vmax.f32 %v3709_v59, 0.0 }
 0x315   : > { %v2343_v15 = vpop.permute.xlu0 %2342  ;;  %v3770_v33 = vpack.c.bf16 %v3741_v26, %v3740_v56  ;;  %v3222_v13 = vld [vmem:[#allocation3 + $0xb0] sm:$0xff] }
 0x316   : > { %v2053_v27 = vpop.permute.xlu1 %2052  ;;  %2415 = vst.msk [vmem:[#allocation3 + $0xc0] sm:$0xf] %vm2390_vm14, %v2343_v15 }
 0x317   : > { %2124 = vst.msk [vmem:[#allocation3 + $0xc8] sm:$0xf] %vm2098_vm13, %v2053_v27  ;;  %7225 = vmatprep.mubr.msk.bf16.mxu0 %vm3448_vm10, %v3770_v33  ;;  %v7402_v33 = vld [vmem:[#allocation3 + $0xd4] ss:$8 sps:$4 sm:$0xff]  }
 0x319   : > { %v2474_v39 = vpop.permute.xlu0 %2473 }
 0x31a   : > { %v2345_v16 = vpop.permute.xlu1 %2344  ;;  %v3223_v6 = vld [vmem:[#allocation3 + $0xb8] sm:$0xff]  ;;  %2546 = vst.msk [vmem:[#allocation3 + $0xc0] sm:$0xf] %vm2521_vm3, %v2474_v39 }
 0x31b   : > { %2416 = vst.msk [vmem:[#allocation3 + $0xc8] sm:$0xf] %vm2390_vm14, %v2345_v16  ;;  %v6933_v35 = vcombine.low %v3222_v13, %v3223_v6 }
 0x31d   : > { %3618 = vmatmul.mubr.bf16.gmra.mxu1 %v6933_v35  ;;  %v2627_v24 = vpop.permute.xlu0 %2626 }
 0x31e   : > { %v2476_v29 = vpop.permute.xlu1 %2475  ;;  %2699 = vst.msk [vmem:[#allocation3 + $0xc0] sm:$0xf] %vm2674_vm7, %v2627_v24  ;;  %6964 = vmatprep.mubr.msk.bf16.mxu1 %vm3448_vm10, %v7400_v21 }
 0x31f   : > { %2547 = vst.msk [vmem:[#allocation3 + $0xc8] sm:$0xf] %vm2521_vm3, %v2476_v29 }
 0x321   : > { %v2764_v1 = vpop.permute.xlu0 %2763 }
 0x322   : > { %v2629_v44 = vpop.permute.xlu1 %2628  ;;  %2836 = vst.msk [vmem:[#allocation3 + $0xc0] sm:$0xf] %vm2811_vm8, %v2764_v1 }
 0x323   : > { %2700 = vst.msk [vmem:[#allocation3 + $0xc8] sm:$0xf] %vm2674_vm7, %v2629_v44 }
 0x325   : > { %v2895_v57 = vpop.permute.xlu0 %2894 }
 0x326   : > { %v2766_v0 = vpop.permute.xlu1 %2765  ;;  %2967 = vst.msk [vmem:[#allocation3 + $0xc0] sm:$0xf] %vm2942_vm11, %v2895_v57 }
 0x327   : > { %2837 = vst.msk [vmem:[#allocation3 + $0xc8] sm:$0xf] %vm2811_vm8, %v2766_v0 }
 0x32a   : > { %v2897_v12 = vpop.permute.xlu1 %2896 }
 0x32b   : > { %2968 = vst.msk [vmem:[#allocation3 + $0xc8] sm:$0xf] %vm2942_vm11, %v2897_v12  ;;  %v3048_v32 = vpop.permute.xlu0 %3047 }
 0x32c   : > { %3120 = vst.msk [vmem:[#allocation3 + $0xc0] sm:$0xf] %vm3095_vm15, %v3048_v32 }
 0x32e   : > { %v3050_v40 = vpop.permute.xlu1 %3049 }
 0x32f   : > { %3121 = vst.msk [vmem:[#allocation3 + $0xc8] sm:$0xf] %vm3095_vm15, %v3050_v40  ;;  %v2055_v31 = vpop.permute.xlu0 %2054 }
 0x330   : > { %2125 = vst.msk [vmem:[#allocation3 + $0xd0] sm:$0xf] %vm2098_vm13, %v2055_v31 }
 0x332   : > { %v2057_v63 = vpop.permute.xlu1 %2056 }
 0x333   : > { %2126 = vst.msk [vmem:[#allocation3 + $0xd8] sm:$0xf] %vm2098_vm13, %v2057_v63  ;;  %v2347_v55 = vpop.permute.xlu0 %2346  ;;  %v3224_v41 = vld [vmem:[#allocation3 + $0xc0] sm:$0xff] }
 0x334   : > { %2417 = vst.msk [vmem:[#allocation3 + $0xd0] sm:$0xf] %vm2390_vm14, %v2347_v55  ;;  %v7404_v55 = vld [vmem:[#allocation3 + $0xe4] ss:$8 sps:$4 sm:$0xff]  }
 0x336   : > { %v2349_v4 = vpop.permute.xlu1 %2348  ;;  %v3225_v2 = vld [vmem:[#allocation3 + $0xc8] sm:$0xff] }
 0x337   : > { %2418 = vst.msk [vmem:[#allocation3 + $0xd8] sm:$0xf] %vm2390_vm14, %v2349_v4  ;;  %v2478_v7 = vpop.permute.xlu0 %2477  ;;  %v6935_v25 = vcombine.low %v3224_v41, %v3225_v2  ;;  %v3555_v3 = vpop.f32.mrf.mxu1 }
 0x338   : > { %2548 = vst.msk [vmem:[#allocation3 + $0xd0] sm:$0xf] %vm2521_vm3, %v2478_v7  ;;  %v3671_v10 = vmul.f32 %v9533_v53, %v3555_v3 }
 0x339   : > { %3626 = vmatmul.mubr.bf16.gmra.mxu1 %v6935_v25  ;;  %v3557_v62 = vpop.f32.mrf.mxu1 }
 0x33a   : > { %v2480_v38 = vpop.permute.xlu1 %2479  ;;  %v3710_v9 = vadd.f32 %v9547_v30, %v3671_v10  ;;  %6965 = vmatprep.mubr.msk.bf16.mxu1 %vm3448_vm10, %v7402_v33 }
 0x33b   : > { %2549 = vst.msk [vmem:[#allocation3 + $0xd8] sm:$0xf] %vm2521_vm3, %v2480_v38  ;;  %v2631_v49 = vpop.permute.xlu0 %2630  ;;  %v3558_v51 = vpop.f32.mrf.mxu1 }
 0x33c   : > { %2701 = vst.msk [vmem:[#allocation3 + $0xd0] sm:$0xf] %vm2674_vm7, %v2631_v49  ;;  %v3672_v52 = vmul.f32 %v9533_v53, %v3558_v51  ;;  %v3742_v46 = vmax.f32 %v3710_v9, 0.0 }
 0x33d   : > { %v3560_v47 = vpop.f32.mrf.mxu1 }
 0x33e   : > { %v2633_v14 = vpop.permute.xlu1 %2632  ;;  %v3711_v11 = vadd.f32 %v9547_v30, %v3672_v52 }
 0x33f   : > { %2702 = vst.msk [vmem:[#allocation3 + $0xd8] sm:$0xf] %vm2674_vm7, %v2633_v14  ;;  %v2768_v43 = vpop.permute.xlu0 %2767 }
 0x340   : > { %2838 = vst.msk [vmem:[#allocation3 + $0xd0] sm:$0xf] %vm2811_vm8, %v2768_v43  ;;  %v3743_v20 = vmax.f32 %v3711_v11, 0.0 }
 0x342   : > { %v2770_v45 = vpop.permute.xlu1 %2769  ;;  %v3771_v22 = vpack.c.bf16 %v3743_v20, %v3742_v46 }
 0x343   : > { %2839 = vst.msk [vmem:[#allocation3 + $0xd8] sm:$0xf] %vm2811_vm8, %v2770_v45  ;;  %v2899_v48 = vpop.permute.xlu0 %2898  ;;  %v3563_v50 = vpop.f32.mrf.mxu1 }
 0x344   : > { %2969 = vst.msk [vmem:[#allocation3 + $0xd0] sm:$0xf] %vm2942_vm11, %v2899_v48  ;;  %v3673_v5 = vmul.f32 %v9533_v53, %v3563_v50  ;;  %7226 = vmatmul.mubr.msk.bf16.gmra.mxu0 %vm3448_vm10, %v3771_v22 }
 0x345   : > { %v3565_v17 = vpop.f32.mrf.mxu1 }
 0x346   : > { %v2901_v19 = vpop.permute.xlu1 %2900  ;;  %v3712_v37 = vadd.f32 %v9547_v30, %v3673_v5 }
 0x347   : > { %2970 = vst.msk [vmem:[#allocation3 + $0xd8] sm:$0xf] %vm2942_vm11, %v2901_v19  ;;  %v3052_v42 = vpop.permute.xlu0 %3051  ;;  %v3566_v34 = vpop.f32.mrf.mxu1 }
 0x348   : > { %3122 = vst.msk [vmem:[#allocation3 + $0xd0] sm:$0xf] %vm3095_vm15, %v3052_v42  ;;  %v3674_v60 = vmul.f32 %v9533_v53, %v3566_v34  ;;  %v3744_v28 = vmax.f32 %v3712_v37, 0.0 }
 0x349   : > { %v3568_v36 = vpop.f32.mrf.mxu1 }
 0x34a   : > { %v3054_v58 = vpop.permute.xlu1 %3053  ;;  %v3713_v61 = vadd.f32 %v9547_v30, %v3674_v60  ;;  %v7406_v36 = vld [vmem:[#allocation3 + $0xf4] ss:$8 sps:$4 sm:$0xff]  }
 0x34b   : > { %3123 = vst.msk [vmem:[#allocation3 + $0xd8] sm:$0xf] %vm3095_vm15, %v3054_v58  ;;  %v2059_v18 = vpop.permute.xlu0 %2058 }
 0x34c   : > { %2127 = vst.msk [vmem:[#allocation3 + $0xe0] sm:$0xf] %vm2098_vm13, %v2059_v18  ;;  %v3745_v23 = vmax.f32 %v3713_v61, 0.0 }
 0x34e   : > { %v2061_v54 = vpop.permute.xlu1 %2060  ;;  %v3772_v27 = vpack.c.bf16 %v3745_v23, %v3744_v28 }
 0x34f   : > { %2128 = vst.msk [vmem:[#allocation3 + $0xe8] sm:$0xf] %vm2098_vm13, %v2061_v54  ;;  %v2351_v59 = vpop.permute.xlu0 %2350  ;;  %v3226_v26 = vld [vmem:[#allocation3 + $0xd0] sm:$0xff] }
 0x350   : > { %2419 = vst.msk [vmem:[#allocation3 + $0xe0] sm:$0xf] %vm2390_vm14, %v2351_v59  ;;  %7229 = vmatprep.mubr.msk.bf16.mxu0 %vm3448_vm10, %v3772_v27 }
 0x352   : > { %v2353_v56 = vpop.permute.xlu1 %2352  ;;  %v3227_v15 = vld [vmem:[#allocation3 + $0xd8] sm:$0xff] }
 0x353   : > { %2420 = vst.msk [vmem:[#allocation3 + $0xe8] sm:$0xf] %vm2390_vm14, %v2353_v56  ;;  %v2482_v16 = vpop.permute.xlu0 %2481  ;;  %v6937_v13 = vcombine.low %v3226_v26, %v3227_v15 }
 0x354   : > { %2550 = vst.msk [vmem:[#allocation3 + $0xe0] sm:$0xf] %vm2521_vm3, %v2482_v16 }
 0x355   : > { %3634 = vmatmul.mubr.bf16.gmra.mxu1 %v6937_v13 }
 0x356   : > { %v2484_v6 = vpop.permute.xlu1 %2483  ;;  %6966 = vmatprep.mubr.msk.bf16.mxu1 %vm3448_vm10, %v7404_v55 }
 0x357   : > { %2551 = vst.msk [vmem:[#allocation3 + $0xe8] sm:$0xf] %vm2521_vm3, %v2484_v6  ;;  %v2635_v8 = vpop.permute.xlu0 %2634 }
 0x358   : > { %2703 = vst.msk [vmem:[#allocation3 + $0xe0] sm:$0xf] %vm2674_vm7, %v2635_v8 }
 0x35a   : > { %v2637_v39 = vpop.permute.xlu1 %2636 }
 0x35b   : > { %2704 = vst.msk [vmem:[#allocation3 + $0xe8] sm:$0xf] %vm2674_vm7, %v2637_v39  ;;  %v2772_v35 = vpop.permute.xlu0 %2771 }
 0x35c   : > { %2840 = vst.msk [vmem:[#allocation3 + $0xe0] sm:$0xf] %vm2811_vm8, %v2772_v35 }
 0x35e   : > { %v2774_v29 = vpop.permute.xlu1 %2773 }
 0x35f   : > { %2841 = vst.msk [vmem:[#allocation3 + $0xe8] sm:$0xf] %vm2811_vm8, %v2774_v29  ;;  %v2903_v24 = vpop.permute.xlu0 %2902 }
 0x360   : > { %2971 = vst.msk [vmem:[#allocation3 + $0xe0] sm:$0xf] %vm2942_vm11, %v2903_v24 }
 0x362   : > { %v2905_v44 = vpop.permute.xlu1 %2904 }
 0x363   : > { %2972 = vst.msk [vmem:[#allocation3 + $0xe8] sm:$0xf] %vm2942_vm11, %v2905_v44  ;;  %v3056_v1 = vpop.permute.xlu0 %3055 }
 0x364   : > { %3124 = vst.msk [vmem:[#allocation3 + $0xe0] sm:$0xf] %vm3095_vm15, %v3056_v1 }
 0x366   : > { %v3058_v0 = vpop.permute.xlu1 %3057 }
 0x367   : > { %3125 = vst.msk [vmem:[#allocation3 + $0xe8] sm:$0xf] %vm3095_vm15, %v3058_v0  ;;  %v2063_v57 = vpop.permute.xlu0 %2062 }
 0x368   : > { %2129 = vst.msk [vmem:[#allocation3 + $0xf0] sm:$0xf] %vm2098_vm13, %v2063_v57 }
 0x36a   : > { %v2065_v12 = vpop.permute.xlu1 %2064 }
 0x36b   : > { %2130 = vst.msk [vmem:[#allocation3 + $0xf8] sm:$0xf] %vm2098_vm13, %v2065_v12  ;;  %v2355_v32 = vpop.permute.xlu0 %2354  ;;  %v3228_v31 = vld [vmem:[#allocation3 + $0xe0] sm:$0xff]  ;;  %vm4441_vm13 = vcmask 179352  }
 0x36c   : > { %2421 = vst.msk [vmem:[#allocation3 + $0xf0] sm:$0xf] %vm2390_vm14, %v2355_v32 }
 0x36e   : > { %v2357_v40 = vpop.permute.xlu1 %2356  ;;  %v3229_v63 = vld [vmem:[#allocation3 + $0xe8] sm:$0xff] }
 0x36f   : > { %2422 = vst.msk [vmem:[#allocation3 + $0xf8] sm:$0xf] %vm2390_vm14, %v2357_v40  ;;  %v2486_v4 = vpop.permute.xlu0 %2485  ;;  %v6939_v41 = vcombine.low %v3228_v31, %v3229_v63  ;;  %vm4436_vm14 = vcmask 21504  }
 0x370   : > { %2552 = vst.msk [vmem:[#allocation3 + $0xf0] sm:$0xf] %vm2521_vm3, %v2486_v4 }
 0x371   : > { %3642 = vmatmul.mubr.bf16.gmra.mxu1 %v6939_v41 }
 0x372   : > { %v2488_v2 = vpop.permute.xlu1 %2487  ;;  %v3571_v7 = vpop.f32.mrf.mxu1  ;;  %6967 = vmatprep.mubr.msk.bf16.mxu1 %vm3448_vm10, %v7406_v36 }
 0x373   : > { %2553 = vst.msk [vmem:[#allocation3 + $0xf8] sm:$0xf] %vm2521_vm3, %v2488_v2  ;;  %v2639_v21 = vpop.permute.xlu0 %2638  ;;  %v3675_v38 = vmul.f32 %v9533_v53, %v3571_v7  ;;  %vm4759_vm3 = vcmask 1041409  }
 0x374   : > { %2705 = vst.msk [vmem:[#allocation3 + $0xf0] sm:$0xf] %vm2674_vm7, %v2639_v21  ;;  %v3573_v3 = vpop.f32.mrf.mxu1 }
 0x375   : > { %v3714_v43 = vadd.f32 %v9547_v30, %v3675_v38 }
 0x376   : > { %v2641_v25 = vpop.permute.xlu1 %2640  ;;  %v3574_v14 = vpop.f32.mrf.mxu1 }
 0x377   : > { %2706 = vst.msk [vmem:[#allocation3 + $0xf8] sm:$0xf] %vm2674_vm7, %v2641_v25  ;;  %v2776_v49 = vpop.permute.xlu0 %2775  ;;  %v3676_v62 = vmul.f32 %v9533_v53, %v3574_v14  ;;  %v3746_v47 = vmax.f32 %v3714_v43, 0.0  ;;  %vm4761_vm7 = vcmask 1042434  }
 0x378   : > { %2842 = vst.msk [vmem:[#allocation3 + $0xf0] sm:$0xf] %vm2811_vm8, %v2776_v49  ;;  %v3576_v45 = vpop.f32.mrf.mxu1 }
 0x379   : > { %v3715_v9 = vadd.f32 %v9547_v30, %v3676_v62 }
 0x37a   : > { %v2778_v10 = vpop.permute.xlu1 %2777 }
 0x37b   : > { %2843 = vst.msk [vmem:[#allocation3 + $0xf8] sm:$0xf] %vm2811_vm8, %v2778_v10  ;;  %v2907_v51 = vpop.permute.xlu0 %2906  ;;  %v3747_v11 = vmax.f32 %v3715_v9, 0.0  ;;  %vm4763_vm8 = vcmask 1043459  }
 0x37c   : > { %2973 = vst.msk [vmem:[#allocation3 + $0xf0] sm:$0xf] %vm2942_vm11, %v2907_v51  ;;  %v3579_v52 = vpop.f32.mrf.mxu1 }
 0x37d   : > { %v3677_v50 = vmul.f32 %v9533_v53, %v3579_v52  ;;  %v3773_v20 = vpack.c.bf16 %v3747_v11, %v3746_v47 }
 0x37e   : > { %v2909_v48 = vpop.permute.xlu1 %2908  ;;  %v3581_v46 = vpop.f32.mrf.mxu1 }
 0x37f   : > { %2974 = vst.msk [vmem:[#allocation3 + $0xf8] sm:$0xf] %vm2942_vm11, %v2909_v48  ;;  %v3060_v19 = vpop.permute.xlu0 %3059  ;;  %v3716_v17 = vadd.f32 %v9547_v30, %v3677_v50  ;;  %7230 = vmatmul.mubr.msk.bf16.gmra.mxu0 %vm3448_vm10, %v3773_v20  ;;  %vm4765_vm11 = vcmask 1044484  }
 0x380   : > { %3126 = vst.msk [vmem:[#allocation3 + $0xf0] sm:$0xf] %vm3095_vm15, %v3060_v19  ;;  %v3582_v5 = vpop.f32.mrf.mxu1 }
 0x381   : > { %v3678_v22 = vmul.f32 %v9533_v53, %v3582_v5  ;;  %v3748_v37 = vmax.f32 %v3716_v17, 0.0 }
 0x382   : > { %v3062_v42 = vpop.permute.xlu1 %3061  ;;  %v3584_v34 = vpop.f32.mrf.mxu1 }
 0x383   : > { %3127 = vst.msk [vmem:[#allocation3 + $0xf8] sm:$0xf] %vm3095_vm15, %v3062_v42  ;;  %v3717_v58 = vadd.f32 %v9547_v30, %v3678_v22  ;;  %vm4767_vm15 = vcmask 1045509  }
 0x385   : > { %v3749_v60 = vmax.f32 %v3717_v58, 0.0 }
 0x387   : > { %v3774_v18 = vpack.c.bf16 %v3749_v60, %v3748_v37 }
 0x389   : > { %7233 = vmatprep.mubr.msk.bf16.mxu0 %vm3448_vm10, %v3774_v18 }
 0x38a   : > { %v7408_v61 = vld [vmem:[#allocation3 + $0xf0] ss:$8 sps:$4 sm:$0xff]  }
 0x38b   : > { %3650 = vmatmul.mubr.bf16.gmra.mxu1 %v7408_v61 }
 0x39f   : > { %v3587_v54 = vpop.f32.mrf.mxu1 }
 0x3a0   : > { %v3679_v28 = vmul.f32 %v9533_v53, %v3587_v54 }
 0x3a1   : > { %v3589_v23 = vpop.f32.mrf.mxu1 }
 0x3a2   : > { %v3718_v27 = vadd.f32 %v9547_v30, %v3679_v28 }
 0x3a3   : > { %v3590_v59 = vpop.f32.mrf.mxu1 }
 0x3a4   : > { %v3680_v56 = vmul.f32 %v9533_v53, %v3590_v59  ;;  %v3750_v16 = vmax.f32 %v3718_v27, 0.0 }
 0x3a5   : > { %v3592_v26 = vpop.f32.mrf.mxu1 }
 0x3a6   : > { %v3719_v15 = vadd.f32 %v9547_v30, %v3680_v56 }
 0x3a8   : > { %v3751_v13 = vmax.f32 %v3719_v15, 0.0 }
 0x3aa   : > { %v3775_v39 = vpack.c.bf16 %v3751_v13, %v3750_v16 }
 0x3ab   : > { %v3595_v33 = vpop.f32.mrf.mxu1 }
 0x3ac   : > { %v3681_v6 = vmul.f32 %v9533_v53, %v3595_v33  ;;  %7234 = vmatmul.mubr.msk.bf16.gmra.mxu0 %vm3448_vm10, %v3775_v39 }
 0x3ad   : > { %v3597_v8 = vpop.f32.mrf.mxu1 }
 0x3ae   : > { %v3720_v29 = vadd.f32 %v9547_v30, %v3681_v6 }
 0x3af   : > { %v3598_v35 = vpop.f32.mrf.mxu1 }
 0x3b0   : > { %v3682_v24 = vmul.f32 %v9533_v53, %v3598_v35  ;;  %v3752_v57 = vmax.f32 %v3720_v29, 0.0 }
 0x3b1   : > { %v3600_v44 = vpop.f32.mrf.mxu1 }
 0x3b2   : > { %v3721_v1 = vadd.f32 %v9547_v30, %v3682_v24 }
 0x3b3   : > { %v3603_v0 = vpop.f32.mrf.mxu1 }
 0x3b4   : > { %v3753_v12 = vmax.f32 %v3721_v1, 0.0  ;;  %v3683_v32 = vmul.f32 %v9533_v53, %v3603_v0 }
 0x3b5   : > { %v3605_v40 = vpop.f32.mrf.mxu1 }
 0x3b6   : > { %v3776_v31 = vpack.c.bf16 %v3753_v12, %v3752_v57  ;;  %v3722_v55 = vadd.f32 %v9547_v30, %v3683_v32 }
 0x3b7   : > { %v3606_v63 = vpop.f32.mrf.mxu1 }
 0x3b8   : > { %v3684_v4 = vmul.f32 %v9533_v53, %v3606_v63  ;;  %7237 = vmatprep.mubr.msk.bf16.mxu0 %vm3448_vm10, %v3776_v31  ;;  %v3754_v21 = vmax.f32 %v3722_v55, 0.0 }
 0x3b9   : > { %v3608_v41 = vpop.f32.mrf.mxu1 }
 0x3ba   : > { %v3723_v2 = vadd.f32 %v9547_v30, %v3684_v4 }
 0x3bc   : > { %v3755_v7 = vmax.f32 %v3723_v2, 0.0 }
 0x3be   : > { %v3777_v25 = vpack.c.bf16 %v3755_v7, %v3754_v21 }
 0x3c0   : > { %7238 = vmatmul.mubr.msk.bf16.gmra.mxu0 %vm3448_vm10, %v3777_v25 }
 0x3c1   : > { %v3611_v38 = vpop.f32.mrf.mxu1 }
 0x3c2   : > { %v3685_v49 = vmul.f32 %v9533_v53, %v3611_v38 }
 0x3c3   : > { %v3613_v3 = vpop.f32.mrf.mxu1 }
 0x3c4   : > { %v3724_v10 = vadd.f32 %v9547_v30, %v3685_v49 }
 0x3c5   : > { %v3614_v14 = vpop.f32.mrf.mxu1 }
 0x3c6   : > { %v3686_v43 = vmul.f32 %v9533_v53, %v3614_v14  ;;  %v3756_v45 = vmax.f32 %v3724_v10, 0.0  ;;  %v4228_v10 = vld [vmem:[%s11936_s10 + $0x38] sm:$0xff] }
 0x3c7   : > { %v3616_v62 = vpop.f32.mrf.mxu1 }
 0x3c8   : > { %v3725_v51 = vadd.f32 %v9547_v30, %v3686_v43  ;;  %v7591_v43 = vmov 0.0   ;;  %v4227_v62 = vld [vmem:[%s11936_s10 + $0x30] sm:$0xff] }
 0x3c9   : > { %7253 = vmatprep.subr.mxu0 %v7591_v43  ;;  %4435 = vst.msk [vmem:[#allocation4 + $0x8] sm:$0xff] %vm4433_vm12, %v7591_v43  ;;  %4439 = vst.msk [vmem:[#allocation4 + $0x20] sm:$0xff] %vm4433_vm12, %v7591_v43 }
 0x3ca   : > { %v3757_v9 = vmax.f32 %v3725_v51, 0.0  ;;  %7254 = vmatpush3.msra.mxu0 %v4228_v10  ;;  %v4224_v51 = vld [vmem:[%s11936_s10 + $0x18] sm:$0xff]  ;;  %4443 = vst.msk [vmem:[#allocation4 + $0x8] sm:$0xff] %vm4441_vm13, %v7591_v43  ;;  %4447 = vst.msk [vmem:[#allocation4 + $0x20] sm:$0xff] %vm4441_vm13, %v7591_v43 }
 0x3cb   : > { %7255 = vmatprep.subr.mxu0 %v7591_v43 }
 0x3cc   : > { %v3778_v52 = vpack.c.bf16 %v3757_v9, %v3756_v45  ;;  %7256 = vmatpush3.msra.mxu0 %v4227_v62 }
 0x3cd   : > { %7257 = vmatprep.subr.mxu0 %v7591_v43 }
 0x3ce   : > { %7241 = vmatprep.mubr.msk.bf16.mxu0 %vm3448_vm10, %v3778_v52  ;;  %v4223_v52 = vld [vmem:[%s11936_s10 + $0x10] sm:$0xff] }
 0x3cf   : > { %v7223_v45 = vpop.f32.mrf.mxu0 }
 0x3d1   : > { %v3874_v9 = vpop.f32.mrf.mxu0 }
 0x3dd   : > { %v3619_v48 = vpop.f32.mrf.mxu1 }
 0x3de   : > { %v3687_v47 = vmul.f32 %v9533_v53, %v3619_v48  ;;  %v4222_v48 = vld [vmem:[%s11936_s10 + $0x8] sm:$0xff] }
 0x3df   : > { %v3621_v11 = vpop.f32.mrf.mxu1 }
 0x3e0   : > { %v3726_v19 = vadd.f32 %v9547_v30, %v3687_v47  ;;  %v4221_v47 = vld [vmem:[%s11936_s10] sm:$0xff]  ;;  %v7224_v11 = vpop.f32.mrf.mxu0 }
 0x3e1   : > { %v3622_v50 = vpop.f32.mrf.mxu1 }
 0x3e2   : > { %v3688_v46 = vmul.f32 %v9533_v53, %v3622_v50  ;;  %v3758_v42 = vmax.f32 %v3726_v19, 0.0  ;;  %v3877_v50 = vpop.f32.mrf.mxu0 }
 0x3e3   : > { %v3624_v20 = vpop.f32.mrf.mxu1 }
 0x3e4   : > { %v3727_v5 = vadd.f32 %v9547_v30, %v3688_v46 }
 0x3e6   : > { %v3759_v17 = vmax.f32 %v3727_v5, 0.0  ;;  %v9859_v5 = vld [vmem:[%s11934_s8] ss:$0 sm:$0xff] }
 0x3e8   : > { %v3779_v22 = vpack.c.bf16 %v3759_v17, %v3758_v42  ;;  %v4009_v17 = vmul.f32 %v9859_v5, %v3877_v50 }
 0x3ea   : > { %7242 = vmatmul.mubr.msk.bf16.gmra.mxu0 %vm3448_vm10, %v3779_v22 }
 0x3f9   : > { %v3627_v34 = vpop.f32.mrf.mxu1 }
 0x3fa   : > { %v3689_v58 = vmul.f32 %v9533_v53, %v3627_v34  ;;  %v4008_v34 = vmul.f32 %v9859_v5, %v3874_v9 }
 0x3fb   : > { %v3629_v37 = vpop.f32.mrf.mxu1 }
 0x3fc   : > { %v3728_v18 = vadd.f32 %v9547_v30, %v3689_v58  ;;  %v9866_v58 = vld [vmem:[%s11935_s9] ss:$0 sm:$0xff] }
 0x3fd   : > { %v3630_v60 = vpop.f32.mrf.mxu1  ;;  %v9869_v37 = vadd.f32 %v9866_v58, %v4009_v17 }
 0x3fe   : > { %v3690_v36 = vmul.f32 %v9533_v53, %v3630_v60  ;;  %v3760_v28 = vmax.f32 %v3728_v18, 0.0  ;;  %v4010_v18 = vmul.f32 %v7223_v45, %v9859_v5 }
 0x3ff   : > { %v3632_v61 = vpop.f32.mrf.mxu1 }
 0x400   : > { %v3729_v54 = vadd.f32 %v9547_v30, %v3690_v36  ;;  %v9873_v36 = vadd.f32 %v9866_v58, %v4008_v34  ;;  %v4080_v61 = vsel %vm554_vm0, %v9869_v37, 0.0 }
 0x402   : > { %v3761_v23 = vmax.f32 %v3729_v54, 0.0 }
 0x404   : > { %v3780_v59 = vpack.c.bf16 %v3761_v23, %v3760_v28  ;;  %v7227_v19 = vpop.f32.mrf.mxu0  ;;  %v9878_v28 = vadd.f32 %v9866_v58, %v4010_v18  ;;  %v4079_v23 = vsel %vm554_vm0, %v9873_v36, 0.0 }
 0x406   : > { %7245 = vmatprep.mubr.msk.bf16.mxu0 %vm3448_vm10, %v3780_v59  ;;  %v3890_v46 = vpop.f32.mrf.mxu0  ;;  %v4011_v59 = vmul.f32 %v7224_v11, %v9859_v5 }
 0x408   : > { %v7228_v20 = vpop.f32.mrf.mxu0 }
 0x40a   : > { %v3893_v42 = vpop.f32.mrf.mxu0 }
 0x415   : > { %v3635_v27 = vpop.f32.mrf.mxu1 }
 0x416   : > { %v3691_v56 = vmul.f32 %v9533_v53, %v3635_v27  ;;  %v4012_v27 = vmul.f32 %v9859_v5, %v3890_v46 }
 0x417   : > { %v3637_v26 = vpop.f32.mrf.mxu1 }
 0x418   : > { %v3730_v33 = vadd.f32 %v9547_v30, %v3691_v56  ;;  %v4081_v56 = vadd.f32 %v4080_v61, %v4079_v23  ;;  %v4013_v26 = vmul.f32 %v9859_v5, %v3893_v42 }
 0x419   : > { %v3638_v15 = vpop.f32.mrf.mxu1 }
 0x41a   : > { %v3692_v16 = vmul.f32 %v9533_v53, %v3638_v15  ;;  %v3762_v8 = vmax.f32 %v3730_v33, 0.0  ;;  %v4082_v33 = vsel %vm554_vm0, %v9878_v28, 0.0 }
 0x41b   : > { %v3640_v13 = vpop.f32.mrf.mxu1 }
 0x41c   : > { %v3731_v6 = vadd.f32 %v9547_v30, %v3692_v16  ;;  %v9888_v16 = vadd.f32 %v9866_v58, %v4011_v59  ;;  %v9891_v13 = vadd.f32 %v9866_v58, %v4012_v27 }
 0x41e   : > { %v3763_v39 = vmax.f32 %v3731_v6, 0.0  ;;  %v4083_v6 = vadd.f32 %v4082_v33, %v4081_v56 }
 0x420   : > { %v3781_v35 = vpack.c.bf16 %v3763_v39, %v3762_v8  ;;  %v9894_v39 = vadd.f32 %v9866_v58, %v4013_v26 }
 0x422   : > { %7246 = vmatmul.mubr.msk.bf16.gmra.mxu0 %vm3448_vm10, %v3781_v35  ;;  %v4084_v35 = vsel %vm554_vm0, %v9888_v16, 0.0 }
 0x431   : > { %v3643_v29 = vpop.f32.mrf.mxu1 }
 0x432   : > { %v3693_v24 = vmul.f32 %v9533_v53, %v3643_v29  ;;  %v4014_v29 = vmul.f32 %v7227_v19, %v9859_v5 }
 0x433   : > { %v3645_v44 = vpop.f32.mrf.mxu1 }
 0x434   : > { %v3732_v0 = vadd.f32 %v9547_v30, %v3693_v24  ;;  %v4086_v24 = vsel %vm554_vm0, %v9891_v13, 0.0  ;;  %v4085_v44 = vadd.f32 %v4084_v35, %v4083_v6 }
 0x435   : > { %v3646_v1 = vpop.f32.mrf.mxu1 }
 0x436   : > { %v3694_v57 = vmul.f32 %v9533_v53, %v3646_v1  ;;  %v3764_v40 = vmax.f32 %v3732_v0, 0.0  ;;  %v4088_v0 = vsel %vm554_vm0, %v9894_v39, 0.0 }
 0x437   : > { %v3648_v12 = vpop.f32.mrf.mxu1 }
 0x438   : > { %v3733_v32 = vadd.f32 %v9547_v30, %v3694_v57  ;;  %v4087_v57 = vadd.f32 %v4086_v24, %v4085_v44  ;;  %v9904_v12 = vadd.f32 %v9866_v58, %v4014_v29 }
 0x43a   : > { %v3765_v31 = vmax.f32 %v3733_v32, 0.0  ;;  %v4015_v32 = vmul.f32 %v7228_v20, %v9859_v5 }
 0x43c   : > { %v3782_v63 = vpack.c.bf16 %v3765_v31, %v3764_v40  ;;  %v4089_v31 = vadd.f32 %v4088_v0, %v4087_v57 }
 0x43e   : > { %7249 = vmatprep.mubr.msk.bf16.mxu0 %vm3448_vm10, %v3782_v63 }
 0x43f   : > { %v7231_v22 = vpop.f32.mrf.mxu0 }
 0x441   : > { %v3906_v60 = vpop.f32.mrf.mxu0 }
 0x442   : > { %v4016_v40 = vmul.f32 %v9859_v5, %v3906_v60 }
 0x443   : > { %v7232_v54 = vpop.f32.mrf.mxu0 }
 0x444   : > { %v4019_v45 = vmul.f32 %v7232_v54, %v9859_v5 }
 0x445   : > { %v3909_v15 = vpop.f32.mrf.mxu0 }
 0x446   : > { %v9936_v50 = vadd.f32 %v9866_v58, %v4019_v45 }
 0x448   : > { %v4100_v17 = vsel %vm554_vm0, %v9936_v50, 0.0 }
 0x44b   : > { %v3651_v55 = vpop.f32.mrf.mxu1 }
 0x44c   : > { %v3695_v4 = vmul.f32 %v9533_v53, %v3651_v55  ;;  %v4017_v55 = vmul.f32 %v9859_v5, %v3909_v15 }
 0x44d   : > { %v3653_v41 = vpop.f32.mrf.mxu1 }
 0x44e   : > { %v3734_v21 = vadd.f32 %v9547_v30, %v3695_v4  ;;  %v4090_v4 = vsel %vm554_vm0, %v9904_v12, 0.0  ;;  %v9912_v41 = vadd.f32 %v9866_v58, %v4015_v32 }
 0x44f   : > { %v3654_v2 = vpop.f32.mrf.mxu1 }
 0x450   : > { %v3696_v7 = vmul.f32 %v9533_v53, %v3654_v2  ;;  %v3766_v49 = vmax.f32 %v3734_v21, 0.0  ;;  %v4226_v53 = vld [vmem:[%s11936_s10 + $0x28] sm:$0xff]  ;;  %v9915_v2 = vadd.f32 %v9866_v58, %v4016_v40  ;;  %v4091_v21 = vadd.f32 %v4090_v4, %v4089_v31 }
 0x451   : > { %v3656_v25 = vpop.f32.mrf.mxu1  ;;  %7258 = vmatpush3.msra.mxu0 %v4226_v53 }
 0x452   : > { %v3735_v38 = vadd.f32 %v9547_v30, %v3696_v7  ;;  %v4225_v30 = vld [vmem:[%s11936_s10 + $0x20] sm:$0xff]  ;;  %7259 = vmatprep.subr.mxu0 %v7591_v43  ;;  %v9918_v25 = vadd.f32 %v9866_v58, %v4017_v55 }
 0x453   : > { %7260 = vmatpush3.msra.mxu0 %v4225_v30 }
 0x454   : > { %v3767_v3 = vmax.f32 %v3735_v38, 0.0  ;;  %7261 = vmatprep.subr.mxu0 %v7591_v43  ;;  %v4096_v62 = vsel %vm554_vm0, %v9918_v25, 0.0 }
 0x455   : > { %7262 = vmatpush3.msra.mxu0 %v4224_v51 }
 0x456   : > { %v3783_v14 = vpack.c.bf16 %v3767_v3, %v3766_v49  ;;  %7263 = vmatprep.subr.mxu0 %v7591_v43  ;;  %v4092_v49 = vsel %vm554_vm0, %v9912_v41, 0.0  ;;  %v4018_v3 = vmul.f32 %v7231_v22, %v9859_v5 }
 0x457   : > { %7264 = vmatpush3.msra.mxu0 %v4223_v52  ;;  %v4093_v10 = vadd.f32 %v4092_v49, %v4091_v21 }
 0x458   : > { %7250 = vmatmul.mubr.msk.bf16.gmra.mxu0 %vm3448_vm10, %v3783_v14  ;;  %7265 = vmatprep.subr.mxu0 %v7591_v43  ;;  %v4094_v14 = vsel %vm554_vm0, %v9915_v2, 0.0  ;;  %v9928_v51 = vadd.f32 %v9866_v58, %v4018_v3  ;;  %vm4428_vm10 = vcmask 174080  }
 0x459   : > { %7269 = vmatprep.mubr.msk.f32.mxu0 %vm7592_vm1, %v7591_v43  ;;  %7266 = vmatpush3.msra.mxu0 %v4222_v48  ;;  %v4095_v53 = vadd.f32 %v4094_v14, %v4093_v10  ;;  %4429 = vst.msk [vmem:[#allocation4] sm:$0x7] %vm4428_vm10, %v7591_v43  ;;  %4430 = vst.msk [vmem:[#allocation4 + $0x18] sm:$0x7] %vm4428_vm10, %v7591_v43 }
 0x45a   : > { %7267 = vmatprep.subr.mxu0 %v7591_v43  ;;  %v4098_v11 = vsel %vm554_vm0, %v9928_v51, 0.0  ;;  %4431 = vst.msk [vmem:[#allocation4 + $0x13] sm:$0x7] %vm4428_vm10, %v7591_v43  ;;  %4432 = vst.msk [vmem:[#allocation4 + $0x2b] sm:$0x7] %vm4428_vm10, %v7591_v43  ;;  %vm5230_vm10 = vcmask 1046528  }
 0x45b   : > { %7268 = vmatpush3.msra.mxu0 %v4221_v47  ;;  %v4097_v52 = vadd.f32 %v4096_v62, %v4095_v53  ;;  %4434 = vst.msk [vmem:[#allocation4] sm:$0xff] %vm4433_vm12, %v7591_v43  ;;  %4438 = vst.msk [vmem:[#allocation4 + $0x18] sm:$0xff] %vm4433_vm12, %v7591_v43  ;;  %vm5430_vm12 = vcmask 1045504  }
 0x45c   : > { %7272 = vmatprep.subr.mxu0 %v7591_v43  ;;  %4442 = vst.msk [vmem:[#allocation4] sm:$0xff] %vm4441_vm13, %v7591_v43  ;;  %4446 = vst.msk [vmem:[#allocation4 + $0x18] sm:$0xff] %vm4441_vm13, %v7591_v43  ;;  %vm5630_vm13 = vcmask 1044480  }
 0x45d   : > { %v4099_v46 = vadd.f32 %v4098_v11, %v4097_v52  ;;  %4437 = vst.msk [vmem:[#allocation4 + $0x10] sm:$0x3f] %vm4436_vm14, %v7591_v43  ;;  %4440 = vst.msk [vmem:[#allocation4 + $0x28] sm:$0x3f] %vm4436_vm14, %v7591_v43  ;;  %vm12107_vm14 = vcmask 1042432  }
 0x45e   : > { %4445 = vst.msk [vmem:[#allocation4 + $0x10] sm:$0x3f] %vm4444_vm2, %v7591_v43  ;;  %4448 = vst.msk [vmem:[#allocation4 + $0x28] sm:$0x3f] %vm4444_vm2, %v7591_v43 }
 0x45f   : > { %v4101_v60 = vadd.f32 %v4100_v17, %v4099_v46  ;;  %vm12108_vm2 = vmmov %vm12107_vm14 }
 0x46c   : > { %v7235_v8 = vpop.f32.mrf.mxu0 }
 0x46d   : > { %v4022_v22 = vmul.f32 %v7235_v8, %v9859_v5 }
 0x46e   : > { %v3922_v1 = vpop.f32.mrf.mxu0 }
 0x46f   : > { %v4020_v9 = vmul.f32 %v9859_v5, %v3922_v1  ;;  %v9952_v23 = vadd.f32 %v9866_v58, %v4022_v22 }
 0x470   : > { %v7236_v63 = vpop.f32.mrf.mxu0 }
 0x471   : > { %v9939_v19 = vadd.f32 %v9866_v58, %v4020_v9  ;;  %v4023_v59 = vmul.f32 %v7236_v63, %v9859_v5  ;;  %v4106_v33 = vsel %vm554_vm0, %v9952_v23, 0.0 }
 0x472   : > { %v3925_v7 = vpop.f32.mrf.mxu0 }
 0x473   : > { %v4021_v48 = vmul.f32 %v9859_v5, %v3925_v7  ;;  %v4102_v34 = vsel %vm554_vm0, %v9939_v19, 0.0  ;;  %v9960_v6 = vadd.f32 %v9866_v58, %v4023_v59  ;;  %v4154_v59 = vsel %vm554_vm0, %v9891_v13, -inf }
 0x474   : > { %v4103_v54 = vadd.f32 %v4102_v34, %v4101_v60  ;;  %v4152_v60 = vsel %vm554_vm0, %v9878_v28, -inf }
 0x475   : > { %v9942_v20 = vadd.f32 %v9866_v58, %v4021_v48  ;;  %v4108_v44 = vsel %vm554_vm0, %v9960_v6, 0.0 }
 0x477   : > { %v4104_v61 = vsel %vm554_vm0, %v9942_v20, 0.0 }
 0x478   : > { %v4105_v56 = vadd.f32 %v4104_v61, %v4103_v54  ;;  %v4150_v54 = vsel %vm554_vm0, %v9873_v36, -inf }
 0x47a   : > { %v4107_v35 = vadd.f32 %v4106_v33, %v4105_v56  ;;  %v4156_v56 = vsel %vm554_vm0, %v9894_v39, -inf }
 0x47c   : > { %v4109_v57 = vadd.f32 %v4108_v44, %v4107_v35  ;;  %v4151_v44 = vsel %vm554_vm0, %v9869_v37, -inf }
 0x480   : > { %v7239_v38 = vpop.f32.mrf.mxu0 }
 0x481   : > { %v4026_v1 = vmul.f32 %v7239_v38, %v9859_v5 }
 0x482   : > { %v3938_v30 = vpop.f32.mrf.mxu0 }
 0x483   : > { %v4024_v27 = vmul.f32 %v9859_v5, %v3938_v30  ;;  %v9976_v55 = vadd.f32 %v9866_v58, %v4026_v1 }
 0x484   : > { %v7240_v47 = vpop.f32.mrf.mxu0 }
 0x485   : > { %v9963_v8 = vadd.f32 %v9866_v58, %v4024_v27  ;;  %v4027_v4 = vmul.f32 %v7240_v47, %v9859_v5  ;;  %v4114_v3 = vsel %vm554_vm0, %v9976_v55, 0.0  ;;  %v4160_v27 = vsel %vm554_vm0, %v9912_v41, -inf }
 0x486   : > { %v3941_v42 = vpop.f32.mrf.mxu0 }
 0x487   : > { %v4025_v15 = vmul.f32 %v9859_v5, %v3941_v42  ;;  %v4110_v0 = vsel %vm554_vm0, %v9963_v8, 0.0  ;;  %v9984_v14 = vadd.f32 %v9866_v58, %v4027_v4 }
 0x488   : > { %v4111_v31 = vadd.f32 %v4110_v0, %v4109_v57  ;;  %v4155_v57 = vmax.f32 %v4150_v54, %v4154_v59 }
 0x489   : > { %v9966_v24 = vadd.f32 %v9866_v58, %v4025_v15  ;;  %v4116_v45 = vsel %vm554_vm0, %v9984_v14, 0.0  ;;  %v4184_v54 = vsel %vm554_vm0, %v9984_v14, -inf }
 0x48b   : > { %v4112_v40 = vsel %vm554_vm0, %v9966_v24, 0.0  ;;  %v4180_v59 = vsel %vm554_vm0, %v9966_v24, -inf }
 0x48c   : > { %v4113_v7 = vadd.f32 %v4112_v40, %v4111_v31  ;;  %v4168_v40 = vsel %vm554_vm0, %v9936_v50, -inf }
 0x48e   : > { %v4115_v62 = vadd.f32 %v4114_v3, %v4113_v7 }
 0x490   : > { %v4117_v48 = vadd.f32 %v4116_v45, %v4115_v62 }
 0x4aa   : > { %v7243_v18 = vpop.f32.mrf.mxu0 }
 0x4ab   : > { %v4030_v9 = vmul.f32 %v7243_v18, %v9859_v5  ;;  %v4158_v18 = vsel %vm554_vm0, %v9904_v12, -inf }
 0x4ac   : > { %v3954_v26 = vpop.f32.mrf.mxu0  ;;  %v4159_v1 = vmax.f32 %v4152_v60, %v4158_v18  ;;  %v4182_v60 = vsel %vm554_vm0, %v9976_v55, -inf }
 0x4ad   : > { %v4028_v21 = vmul.f32 %v9859_v5, %v3954_v26  ;;  %v10000_v42 = vadd.f32 %v9866_v58, %v4030_v9  ;;  %v4166_v26 = vsel %vm554_vm0, %v9928_v51, -inf }
 0x4ae   : > { %v7244_v29 = vpop.f32.mrf.mxu0  ;;  %v4167_v7 = vmax.f32 %v4159_v1, %v4166_v26 }
 0x4af   : > { %v9987_v10 = vadd.f32 %v9866_v58, %v4028_v21  ;;  %v4031_v17 = vmul.f32 %v7244_v29, %v9859_v5  ;;  %v4122_v15 = vsel %vm554_vm0, %v10000_v42, 0.0  ;;  %v4153_v29 = vsel %vm554_vm0, %v9888_v16, -inf }
 0x4b0   : > { %v3957_v32 = vpop.f32.mrf.mxu0  ;;  %v4161_v4 = vmax.f32 %v4153_v29, %v4160_v27  ;;  %v4157_v21 = vmax.f32 %v4151_v44, %v4156_v56  ;;  %v4190_v44 = vsel %vm554_vm0, %v10000_v42, -inf }
 0x4b1   : > { %v4029_v38 = vmul.f32 %v9859_v5, %v3957_v32  ;;  %v4118_v52 = vsel %vm554_vm0, %v9987_v10, 0.0  ;;  %v10022_v33 = vadd.f32 %v9866_v58, %v4031_v17  ;;  %v4162_v32 = vsel %vm554_vm0, %v9915_v2, -inf }
 0x4b2   : > { %v4119_v11 = vadd.f32 %v4118_v52, %v4117_v48  ;;  %v4163_v9 = vmax.f32 %v4155_v57, %v4162_v32  ;;  %v4169_v52 = vmax.f32 %v4161_v4, %v4168_v40  ;;  %v4170_v48 = vsel %vm554_vm0, %v9939_v19, -inf }
 0x4b3   : > { %v9990_v53 = vadd.f32 %v9866_v58, %v4029_v38  ;;  %v4164_v38 = vsel %vm554_vm0, %v9918_v25, -inf  ;;  %v4124_v3 = vsel %vm554_vm0, %v10022_v33, 0.0 }
 0x4b4   : > { %v4171_v27 = vmax.f32 %v4163_v9, %v4170_v48 }
 0x4b5   : > { %v4120_v47 = vsel %vm554_vm0, %v9990_v53, 0.0 }
 0x4b6   : > { %v4121_v34 = vadd.f32 %v4120_v47, %v4119_v11  ;;  %v4176_v11 = vsel %vm554_vm0, %v9960_v6, -inf }
 0x4b7   : > { %v4177_v56 = vmax.f32 %v4169_v52, %v4176_v11 }
 0x4b8   : > { %v4123_v0 = vadd.f32 %v4122_v15, %v4121_v34 }
 0x4b9   : > { %v4185_v40 = vmax.f32 %v4177_v56, %v4184_v54 }
 0x4ba   : > { %v4125_v47 = vadd.f32 %v4124_v3, %v4123_v0 }
 0x4e2   : > { %v7247_v63 = vpop.f32.mrf.mxu0 }
 0x4e3   : > { %v4034_v62 = vmul.f32 %v7247_v63, %v9859_v5 }
 0x4e4   : > { %v3970_v49 = vpop.f32.mrf.mxu0 }
 0x4e5   : > { %v4032_v22 = vmul.f32 %v9859_v5, %v3970_v49  ;;  %v4174_v49 = vsel %vm554_vm0, %v9952_v23, -inf }
 0x4e6   : > { %v7248_v30 = vpop.f32.mrf.mxu0  ;;  %v4175_v34 = vmax.f32 %v4167_v7, %v4174_v49  ;;  %v4186_v7 = vsel %vm554_vm0, %v9987_v10, -inf }
 0x4e7   : > { %v10025_v35 = vadd.f32 %v9866_v58, %v4032_v22  ;;  %v4035_v17 = vmul.f32 %v7248_v30, %v9859_v5  ;;  %v4165_v22 = vmax.f32 %v4157_v21, %v4164_v38  ;;  %v10065_v30 = vadd.f32 %v9866_v58, %v4034_v62 }
 0x4e8   : > { %v3973_v46 = vpop.f32.mrf.mxu0  ;;  %v4183_v57 = vmax.f32 %v4175_v34, %v4182_v60  ;;  %v4192_v38 = vsel %vm554_vm0, %v10022_v33, -inf }
 0x4e9   : > { %v4033_v61 = vmul.f32 %v9859_v5, %v3973_v46  ;;  %v4126_v45 = vsel %vm554_vm0, %v10025_v35, 0.0  ;;  %v4172_v46 = vsel %vm554_vm0, %v9942_v20, -inf  ;;  %v10070_v1 = vadd.f32 %v9866_v58, %v4035_v17 }
 0x4ea   : > { %v4127_v18 = vadd.f32 %v4126_v45, %v4125_v47  ;;  %v4173_v26 = vmax.f32 %v4165_v22, %v4172_v46  ;;  %v4130_v49 = vsel %vm554_vm0, %v10065_v30, 0.0  ;;  %v4191_v62 = vmax.f32 %v4183_v57, %v4190_v44 }
 0x4eb   : > { %v10036_v31 = vadd.f32 %v9866_v58, %v4033_v61  ;;  %v4178_v61 = vsel %vm554_vm0, %v9963_v8, -inf  ;;  %v4188_v45 = vsel %vm554_vm0, %v9990_v53, -inf  ;;  %v4198_v9 = vsel %vm554_vm0, %v10065_v30, -inf }
 0x4ec   : > { %v4179_v32 = vmax.f32 %v4171_v27, %v4178_v61  ;;  %v4181_v4 = vmax.f32 %v4173_v26, %v4180_v59  ;;  %v4200_v47 = vsel %vm554_vm0, %v10070_v1, -inf  ;;  %v4193_v22 = vmax.f32 %v4185_v40, %v4192_v38 }
 0x4ed   : > { %v4128_v63 = vsel %vm554_vm0, %v10036_v31, 0.0  ;;  %v4194_v34 = vsel %vm554_vm0, %v10025_v35, -inf  ;;  %v4132_v60 = vsel %vm554_vm0, %v10070_v1, 0.0  ;;  %v4196_v61 = vsel %vm554_vm0, %v10036_v31, -inf }
 0x4ee   : > { %v4129_v15 = vadd.f32 %v4128_v63, %v4127_v18  ;;  %v4187_v63 = vmax.f32 %v4179_v32, %v4186_v7  ;;  %v4189_v56 = vmax.f32 %v4181_v4, %v4188_v45  ;;  %v4199_v26 = vmax.f32 %v4191_v62, %v4198_v9 }
 0x4f0   : > { %v4131_v52 = vadd.f32 %v4130_v49, %v4129_v15  ;;  %v4201_v15 = vmax.f32 %v4193_v22, %v4200_v47  ;;  %v4195_v40 = vmax.f32 %v4187_v63, %v4194_v34 }
 0x518   : > { %v7251_v29 = vpop.f32.mrf.mxu0 }
 0x519   : > { %v4038_v0 = vmul.f32 %v7251_v29, %v9859_v5  ;;  %v4133_v29 = vadd.f32 %v4132_v60, %v4131_v52 }
 0x51a   : > { %v3986_v21 = vpop.f32.mrf.mxu0 }
 0x51b   : > { %v4036_v3 = vmul.f32 %v9859_v5, %v3986_v21  ;;  %v10087_v11 = vadd.f32 %v9866_v58, %v4038_v0  ;;  %v4197_v21 = vmax.f32 %v4189_v56, %v4196_v61 }
 0x51c   : > { %v7252_v48 = vpop.f32.mrf.mxu0 }
 0x51d   : > { %v10090_v46 = vadd.f32 %v9866_v58, %v4036_v3  ;;  %v4039_v17 = vmul.f32 %v7252_v48, %v9859_v5  ;;  %v4206_v44 = vsel %vm554_vm0, %v10087_v11, -inf  ;;  %v4138_v9 = vsel %vm554_vm0, %v10087_v11, 0.0 }
 0x51e   : > { %v3989_v18 = vpop.f32.mrf.mxu0  ;;  %v4207_v49 = vmax.f32 %v4199_v26, %v4206_v44 }
 0x51f   : > { %v4134_v54 = vsel %vm554_vm0, %v10090_v46, 0.0  ;;  %v10102_v59 = vadd.f32 %v9866_v58, %v4039_v17  ;;  %v4037_v27 = vmul.f32 %v9859_v5, %v3989_v18  ;;  %v4202_v0 = vsel %vm554_vm0, %v10090_v46, -inf }
 0x520   : > { %v4135_v7 = vadd.f32 %v4134_v54, %v4133_v29  ;;  %v4203_v3 = vmax.f32 %v4195_v40, %v4202_v0 }
 0x521   : > { %v4208_v57 = vsel %vm554_vm0, %v10102_v59, -inf  ;;  %v10112_v32 = vadd.f32 %v9866_v58, %v4037_v27  ;;  %v4140_v47 = vsel %vm554_vm0, %v10102_v59, 0.0 }
 0x522   : > { %v4209_v5 = vmax.f32 %v4201_v15, %v4208_v57  ;;  %v4303_v57 = vld [vmem:[%s11937_s11] sm:$0xf] }
 0x523   : > { %v4136_v4 = vsel %vm554_vm0, %v10112_v32, 0.0  ;;  %v4204_v38 = vsel %vm554_vm0, %v10112_v32, -inf }
 0x524   : > { %v4137_v62 = vadd.f32 %v4136_v4, %v4135_v7  ;;  %v4205_v45 = vmax.f32 %v4197_v21, %v4204_v38  ;;  %v4211_v52 = vmax.f32 %v4207_v49, %v4209_v5 }
 0x526   : > { %v4139_v58 = vadd.f32 %v4138_v9, %v4137_v62  ;;  %v4210_v48 = vmax.f32 %v4203_v3, %v4205_v45 }
 0x528   : > { %v4141_v17 = vadd.f32 %v4140_v47, %v4139_v58  ;;  %v4212_v63 = vmax.f32 %v4210_v48, %v4211_v52  ;;  %v11975_v52 = vlaneseq }
 0x52a   : > { %v4142_v22 = vrot.slane %v4141_v17, 4  ;;  %v4213_v34 = vrot.slane %v4212_v63, 4  ;;  %v10130_v58 = vshrl.u32 %v11975_v52, 7 }
 0x52c   : > { %v4143_v60 = vadd.f32 %v4142_v22, %v4141_v17  ;;  %v4214_v18 = vmax.f32 %v4212_v63, %v4213_v34  ;;  %v10133_v48 = vsub.s32 0, %v10130_v58 }
 0x52e   : > { %v4144_v61 = vrot.slane %v4143_v60, 2  ;;  %v4215_v54 = vrot.slane %v4214_v18, 2 }
 0x530   : > { %v4145_v27 = vadd.f32 %v4144_v61, %v4143_v60  ;;  %v4216_v56 = vmax.f32 %v4214_v18, %v4215_v54 }
 0x532   : > { %v4146_v26 = vrot.slane %v4145_v27, 1  ;;  %v4217_v15 = vrot.slane %v4216_v56, 1 }
 0x534   : > { %v4147_v29 = vadd.f32 %v4146_v26, %v4145_v27  ;;  %v4218_v0 = vmax.f32 %v4216_v56, %v4217_v15 }
 0x536   : > { %v4149_v44 = vmul.f32 0.00390625, %v4147_v29 }
 0x538   : > { %v4220_v40 = vsel %vm4219_vm5, %v4149_v44, %v4218_v0  ;;  %vm4771_vm5 = vcmask 1047559  }
 0x539   : > { %7270 = vmatmul.mubr.msk.f32.vlgmr.msra.gmra.mxu0 %vm554_vm0, %v4220_v40 }
 0x53a   : > { %7273 = vmatpush3.msk.msra.mxu0 %vm4308_vm6, %v4303_v57  ;;  %7274 = vmatprep.mubr.msk.f32.mxu0 %vm7592_vm1, %v7591_v43  ;;  %vm4769_vm1 = vcmask 1046534  }
 0x5f9   : > { %v4298_v21 = vpop.f32.mrf.mxu0 }
 0x5fa   : > { %v4302_v7 = vmax.f32 %v4298_v21, 0.0 }
 0x5fb   : > { %v7271_v5 = vpop.f32.mrf.mxu0 }
 0x5fc   : > { %7275 = vmatmul.mubr.msk.f32.vlgmr.msra.gmra.mxu0 %vm4304_vm9, %v4302_v7  ;;  %vm4782_vm9 = vcmask 154648  }
 0x6bc   : > { %v4378_v4 = vpop.f32.mrf.mxu0 }
 0x6bd   : > { %v4383_v38 = vrot.slane %v4378_v4, 1 }
 0x6be   : > { %v7276_v49 = vpop.f32.mrf.mxu0 }
 0x6bf   : > { %v4385_v3 = vadd.f32 %v4383_v38, %v4378_v4 }
 0x6c1   : > { %v6992_v62 = vmul.f32 -1.442695, %v4385_v3 }
 0x6c3   : > { %7409 = vpow2.f32 %v6992_v62 }
 0x6d0   : > { %v7410_v45 = vpop.eup %7409 }
 0x6d1   : > { %v4389_v9 = vadd.f32 1.0, %v7410_v45 }
 0x6d3   : > { %7411 = vrcp.f32 %v4389_v9 }
 0x6e0   : > { %v7412_v47 = vpop.eup %7411 }
 0x6e1   : > { %v10136_v17 = vrot.slane %v7412_v47, %v10133_v48 }
 0x6e3   : > { %v10140_v63 = vmul.f32 %v10136_v17, %v9869_v37  ;;  %v10144_v22 = vmul.f32 %v10136_v17, %v9873_v36  ;;  %v10152_v18 = vmul.f32 %v10136_v17, %v9891_v13  ;;  %v10156_v61 = vmul.f32 %v10136_v17, %v9878_v28 }
 0x6e4   : > { %v10164_v54 = vmul.f32 %v10136_v17, %v9904_v12  ;;  %v10168_v13 = vmul.f32 %v10136_v17, %v9888_v16  ;;  %v10176_v56 = vmul.f32 %v10136_v17, %v9915_v2  ;;  %v10180_v12 = vmul.f32 %v10136_v17, %v9894_v39 }
 0x6e5   : > { %v4452_v34 = vsel %vm554_vm0, %v10140_v63, 0.0  ;;  %v4449_v60 = vsel %vm554_vm0, %v10144_v22, 0.0  ;;  %12077 = vst [vmem:[#allocation21_spill] sm:$0xff] %v10152_v18  ;;  %v4461_v37 = vsel %vm554_vm0, %v10152_v18, 0.0  ;;  %v4455_v36 = vsel %vm554_vm0, %v10156_v61, 0.0 }
 0x6e6   : > { %4453 = vadd.xlane.f32.xlu1 %v4452_v34  ;;  %4450 = vadd.xlane.f32.xlu0 %v4449_v60  ;;  %12078 = vst [vmem:[#allocation27_spill] sm:$0xff] %v10164_v54  ;;  %v4467_v28 = vsel %vm554_vm0, %v10164_v54, 0.0  ;;  %v4458_v27 = vsel %vm554_vm0, %v10168_v13, 0.0  ;;  %12079 = vst [vmem:[#allocation22_spill] sm:$0xff] %v10176_v56  ;;  %v4473_v16 = vsel %vm554_vm0, %v10176_v56, 0.0  ;;  %v4464_v26 = vsel %vm554_vm0, %v10180_v12, 0.0 }
 0x6e7   : > { %12080 = vst [vmem:[#allocation20_spill] sm:$0xff] %v10180_v12  ;;  %v10188_v15 = vmul.f32 %v10136_v17, %v9928_v51  ;;  %v10192_v2 = vmul.f32 %v10136_v17, %v9912_v41  ;;  %v10200_v44 = vmul.f32 %v10136_v17, %v9966_v24  ;;  %v10204_v51 = vmul.f32 %v10136_v17, %v9918_v25 }
 0x6e8   : > { %v10212_v57 = vmul.f32 %v10136_v17, %v9984_v14  ;;  %v10216_v24 = vmul.f32 %v10136_v17, %v9963_v8  ;;  %v10224_v21 = vmul.f32 %v10136_v17, %v9990_v53  ;;  %v10228_v14 = vmul.f32 %v10136_v17, %v9976_v55 }
 0x6e9   : > { %12081 = vst [vmem:[#allocation23_spill] sm:$0xff] %v10188_v15  ;;  %12082 = vst [vmem:[#allocation24_spill] sm:$0xff] %v10192_v2  ;;  %v4479_v39 = vsel %vm554_vm0, %v10188_v15, 0.0  ;;  %v4470_v29 = vsel %vm554_vm0, %v10192_v2, 0.0  ;;  %v4500_v41 = vsel %vm554_vm0, %v10200_v44, 0.0  ;;  %v4476_v0 = vsel %vm554_vm0, %v10204_v51, 0.0 }
 0x6ea   : > { %4462 = vadd.xlane.f32.xlu1 %v4461_v37  ;;  %4456 = vadd.xlane.f32.xlu0 %v4455_v36  ;;  %12083 = vst [vmem:[#allocation28_spill] sm:$0xff] %v10200_v44  ;;  %12084 = vst [vmem:[#allocation25_spill] sm:$0xff] %v10204_v51  ;;  %v4506_v25 = vsel %vm554_vm0, %v10212_v57, 0.0  ;;  %v4497_v40 = vsel %vm554_vm0, %v10216_v24, 0.0  ;;  %v4512_v8 = vsel %vm554_vm0, %v10224_v21, 0.0  ;;  %v4503_v7 = vsel %vm554_vm0, %v10228_v14, 0.0 }
 0x6eb   : > { %12085 = vst [vmem:[#allocation26_spill] sm:$0xff] %v10212_v57  ;;  %12086 = vst [vmem:[#allocation29_spill] sm:$0xff] %v10216_v24  ;;  %v10236_v5 = vmul.f32 %v10136_v17, %v10022_v33  ;;  %v10240_v53 = vmul.f32 %v10136_v17, %v9987_v10  ;;  %v10248_v38 = vmul.f32 %v10136_v17, %v10000_v42  ;;  %v4788_v33 = vsel %vm554_vm0, %v10140_v63, -inf }
 0x6ec   : > { %12087 = vst [vmem:[#allocation30_spill] sm:$0xff] %v10224_v21  ;;  %12088 = vst [vmem:[#allocation31_spill] sm:$0xff] %v10228_v14  ;;  %v4794_v49 = vsel %vm554_vm0, %v10168_v13, -inf  ;;  %v4785_v3 = vsel %vm554_vm0, %v10144_v22, -inf  ;;  %v4836_v42 = vsel %vm554_vm0, %v10200_v44, -inf  ;;  %v4791_v62 = vsel %vm554_vm0, %v10156_v61, -inf }
 0x6ed   : > { %12089 = vst [vmem:[#allocation32_spill] sm:$0xff] %v10236_v5  ;;  %12090 = vst [vmem:[#allocation33_spill] sm:$0xff] %v10240_v53  ;;  %v4518_v55 = vsel %vm554_vm0, %v10236_v5, 0.0  ;;  %v4509_v4 = vsel %vm554_vm0, %v10240_v53, 0.0  ;;  %v4515_v10 = vsel %vm554_vm0, %v10248_v38, 0.0  ;;  %v4842_v45 = vsel %vm554_vm0, %v10212_v57, -inf }
 0x6ee   : > { %4468 = vadd.xlane.f32.xlu1 %v4467_v28  ;;  %4459 = vadd.xlane.f32.xlu0 %v4458_v27  ;;  %12091 = vst [vmem:[#allocation34_spill] sm:$0xff] %v10248_v38  ;;  %v4833_v9 = vsel %vm554_vm0, %v10216_v24, -inf  ;;  %v10268_v47 = vmul.f32 %v10136_v17, %v10036_v31  ;;  %v4839_v60 = vsel %vm554_vm0, %v10228_v14, -inf  ;;  %v10276_v37 = vmul.f32 %v10136_v17, %v10025_v35 }
 0x6ef   : > { %v4800_v36 = vsel %vm554_vm0, %v10180_v12, -inf  ;;  %v4848_v28 = vsel %vm554_vm0, %v10224_v21, -inf  ;;  %v4797_v27 = vsel %vm554_vm0, %v10152_v18, -inf  ;;  %v10288_v35 = vmul.f32 %v10136_v17, %v10065_v30 }
 0x6f0   : > { %12092 = vst [vmem:[#allocation35_spill] sm:$0xff] %v10268_v47  ;;  %v4524_v34 = vsel %vm554_vm0, %v10268_v47, 0.0  ;;  %12093 = vst [vmem:[#allocation36_spill] sm:$0xff] %v10276_v37  ;;  %v4521_v31 = vsel %vm554_vm0, %v10276_v37, 0.0 }
 0x6f1   : > { %12094 = vst [vmem:[#allocation37_spill] sm:$0xff] %v10288_v35 }
 0x6f2   : > { %4474 = vadd.xlane.f32.xlu1 %v4473_v16  ;;  %4465 = vadd.xlane.f32.xlu0 %v4464_v26  ;;  %v4527_v16 = vsel %vm554_vm0, %v10288_v35, 0.0  ;;  %v4845_v26 = vsel %vm554_vm0, %v10240_v53, -inf }
 0x6f6   : > { %4480 = vadd.xlane.f32.xlu1 %v4479_v39  ;;  %4471 = vadd.xlane.f32.xlu0 %v4470_v29  ;;  %v10296_v39 = vmul.f32 %v10136_v17, %v9936_v50  ;;  %v4803_v29 = vsel %vm554_vm0, %v10164_v54, -inf }
 0x6f8   : > { %12095 = vst [vmem:[#allocation38_spill] sm:$0xff] %v10296_v39  ;;  %v4482_v30 = vsel %vm554_vm0, %v10296_v39, 0.0 }
 0x6fa   : > { %4501 = vadd.xlane.f32.xlu1 %v4500_v41  ;;  %4477 = vadd.xlane.f32.xlu0 %v4476_v0  ;;  %v10304_v41 = vmul.f32 %v10136_v17, %v10070_v1  ;;  %v4851_v0 = vsel %vm554_vm0, %v10248_v38, -inf  ;;  %v4806_v1 = vsel %vm554_vm0, %v10192_v2, -inf  ;;  %v12105_v38 = vlaneseq }
 0x6fc   : > { %12096 = vst [vmem:[#allocation39_spill] sm:$0xff] %v10304_v41  ;;  %v4530_v50 = vsel %vm554_vm0, %v10304_v41, 0.0 }
 0x6fe   : > { %4507 = vadd.xlane.f32.xlu1 %v4506_v25  ;;  %4498 = vadd.xlane.f32.xlu0 %v4497_v40  ;;  %v10312_v25 = vmul.f32 %v10136_v17, %v9939_v19  ;;  %v4854_v19 = vsel %vm554_vm0, %v10236_v5, -inf  ;;  %v4611_v5 = vand.u32 127, %v12105_v38 }
 0x700   : > { %12097 = vst [vmem:[#allocation40_spill] sm:$0xff] %v10312_v25  ;;  %v4485_v40 = vsel %vm554_vm0, %v10312_v25, 0.0  ;;  %v4612_v14 = vadd.s32 4294967293, %v4611_v5  ;;  %v4617_v57 = vadd.s32 4294967285, %v4611_v5 }
 0x702   : > { %4513 = vadd.xlane.f32.xlu1 %v4512_v8  ;;  %4504 = vadd.xlane.f32.xlu0 %v4503_v7  ;;  %v10320_v8 = vmul.f32 %v10136_v17, %v10090_v46 }
 0x704   : > { %12098 = vst [vmem:[#allocation41_spill] sm:$0xff] %v10320_v8  ;;  %v4533_v7 = vsel %vm554_vm0, %v10320_v8, 0.0 }
 0x706   : > { %4519 = vadd.xlane.f32.xlu1 %v4518_v55  ;;  %4510 = vadd.xlane.f32.xlu0 %v4509_v4  ;;  %v10328_v55 = vmul.f32 %v10136_v17, %v9942_v20  ;;  %v4809_v4 = vsel %vm554_vm0, %v10176_v56, -inf }
 0x708   : > { %12099 = vst [vmem:[#allocation42_spill] sm:$0xff] %v10328_v55  ;;  %v4488_v46 = vsel %vm554_vm0, %v10328_v55, 0.0 }
 0x70a   : > { %4789 = vmax.xlane.f32.xlu1 %v4788_v33  ;;  %4516 = vadd.xlane.f32.xlu0 %v4515_v10  ;;  %v10336_v33 = vmul.f32 %v10136_v17, %v10112_v32  ;;  %v4857_v10 = vsel %vm554_vm0, %v10276_v37, -inf  ;;  %v4812_v32 = vsel %vm554_vm0, %v10204_v51, -inf }
 0x70c   : > { %12100 = vst [vmem:[#allocation43_spill] sm:$0xff] %v10336_v33  ;;  %v4536_v20 = vsel %vm554_vm0, %v10336_v33, 0.0 }
 0x70e   : > { %4795 = vmax.xlane.f32.xlu1 %v4794_v49  ;;  %4786 = vmax.xlane.f32.xlu0 %v4785_v3  ;;  %v10344_v49 = vmul.f32 %v10136_v17, %v9952_v23  ;;  %v4860_v23 = vsel %vm554_vm0, %v10268_v47, -inf }
 0x710   : > { %12101 = vst [vmem:[#allocation44_spill] sm:$0xff] %v10344_v49  ;;  %v4491_v3 = vsel %vm554_vm0, %v10344_v49, 0.0 }
 0x712   : > { %4837 = vmax.xlane.f32.xlu1 %v4836_v42  ;;  %4792 = vmax.xlane.f32.xlu0 %v4791_v62  ;;  %v10352_v42 = vmul.f32 %v10136_v17, %v10087_v11 }
 0x714   : > { %12102 = vst [vmem:[#allocation45_spill] sm:$0xff] %v10352_v42  ;;  %v4539_v62 = vsel %vm554_vm0, %v10352_v42, 0.0 }
 0x716   : > { %4843 = vmax.xlane.f32.xlu1 %v4842_v45  ;;  %4834 = vmax.xlane.f32.xlu0 %v4833_v9  ;;  %v10360_v45 = vmul.f32 %v10136_v17, %v9960_v6  ;;  %v4815_v9 = vsel %vm554_vm0, %v10188_v15, -inf }
 0x718   : > { %12103 = vst [vmem:[#allocation46_spill] sm:$0xff] %v10360_v45  ;;  %v4494_v11 = vsel %vm554_vm0, %v10360_v45, 0.0 }
 0x71a   : > { %4525 = vadd.xlane.f32.xlu1 %v4524_v34  ;;  %4840 = vmax.xlane.f32.xlu0 %v4839_v60  ;;  %v10368_v34 = vmul.f32 %v10136_v17, %v10102_v59  ;;  %v4863_v60 = vsel %vm554_vm0, %v10288_v35, -inf  ;;  %v4869_v59 = vsel %vm554_vm0, %v10320_v8, -inf  ;;  %v4866_v17 = vsel %vm554_vm0, %v10304_v41, -inf }
 0x71c   : > { %12104 = vst [vmem:[#allocation47_spill] sm:$0xff] %v10368_v34  ;;  %v4542_v6 = vsel %vm554_vm0, %v10368_v34, 0.0 }
 0x71e   : > { %4801 = vmax.xlane.f32.xlu1 %v4800_v36  ;;  %4522 = vadd.xlane.f32.xlu0 %v4521_v31  ;;  %v4821_v36 = vsel %vm554_vm0, %v10312_v25, -inf  ;;  %v4818_v31 = vsel %vm554_vm0, %v10296_v39, -inf  ;;  %v10477_v25 = vsub.s32 %v4612_v14, %v10130_v58 }
 0x722   : > { %4849 = vmax.xlane.f32.xlu1 %v4848_v28  ;;  %4798 = vmax.xlane.f32.xlu0 %v4797_v27  ;;  %v4827_v28 = vsel %vm554_vm0, %v10344_v49, -inf  ;;  %v4824_v27 = vsel %vm554_vm0, %v10328_v55, -inf }
 0x726   : > { %4528 = vadd.xlane.f32.xlu1 %v4527_v16  ;;  %4846 = vmax.xlane.f32.xlu0 %v4845_v26  ;;  %v4875_v16 = vsel %vm554_vm0, %v10352_v42, -inf  ;;  %v4872_v26 = vsel %vm554_vm0, %v10336_v33, -inf }
 0x72a   : > { %4804 = vmax.xlane.f32.xlu1 %v4803_v29  ;;  %4483 = vadd.xlane.f32.xlu0 %v4482_v30  ;;  %v4830_v29 = vsel %vm554_vm0, %v10360_v45, -inf  ;;  %v4878_v30 = vsel %vm554_vm0, %v10368_v34, -inf  ;;  %v10474_v45 = vsub.s32 %v4617_v57, %v10130_v58 }
 0x72e   : > { %4852 = vmax.xlane.f32.xlu1 %v4851_v0  ;;  %4531 = vadd.xlane.f32.xlu0 %v4530_v50 }
 0x732   : > { %4486 = vadd.xlane.f32.xlu1 %v4485_v40  ;;  %4807 = vmax.xlane.f32.xlu0 %v4806_v1 }
 0x736   : > { %4534 = vadd.xlane.f32.xlu1 %v4533_v7  ;;  %4855 = vmax.xlane.f32.xlu0 %v4854_v19 }
 0x73a   : > { %4810 = vmax.xlane.f32.xlu1 %v4809_v4  ;;  %4489 = vadd.xlane.f32.xlu0 %v4488_v46 }
 0x73e   : > { %4858 = vmax.xlane.f32.xlu1 %v4857_v10  ;;  %4537 = vadd.xlane.f32.xlu0 %v4536_v20 }
 0x742   : > { %4492 = vadd.xlane.f32.xlu1 %v4491_v3  ;;  %4813 = vmax.xlane.f32.xlu0 %v4812_v32 }
 0x746   : > { %4540 = vadd.xlane.f32.xlu1 %v4539_v62  ;;  %4861 = vmax.xlane.f32.xlu0 %v4860_v23 }
 0x74a   : > { %4816 = vmax.xlane.f32.xlu1 %v4815_v9  ;;  %4495 = vadd.xlane.f32.xlu0 %v4494_v11 }
 0x74e   : > { %4864 = vmax.xlane.f32.xlu1 %v4863_v60  ;;  %4543 = vadd.xlane.f32.xlu0 %v4542_v6 }
 0x752   : > { %4822 = vmax.xlane.f32.xlu1 %v4821_v36  ;;  %4819 = vmax.xlane.f32.xlu0 %v4818_v31 }
 0x756   : > { %4870 = vmax.xlane.f32.xlu1 %v4869_v59  ;;  %4867 = vmax.xlane.f32.xlu0 %v4866_v17 }
 0x75a   : > { %4828 = vmax.xlane.f32.xlu1 %v4827_v28  ;;  %4825 = vmax.xlane.f32.xlu0 %v4824_v27 }
 0x75e   : > { %4876 = vmax.xlane.f32.xlu1 %v4875_v16  ;;  %4873 = vmax.xlane.f32.xlu0 %v4872_v26 }
 0x762   : > { %4831 = vmax.xlane.f32.xlu0 %v4830_v29 }
 0x766   : > { %4879 = vmax.xlane.f32.xlu0 %v4878_v30 }
 0x76f   : > { %v4454_v0 = vpop.xlane.xlu1 %4453  ;;  %v4451_v50 = vpop.xlane.xlu0 %4450 }
 0x770   : > { %v4547_v15 = vmul.f32 0.015625, %v4454_v0  ;;  %v4546_v38 = vmul.f32 0.015625, %v4451_v50 }
 0x772   : > { %v4621_v14 = vrot.slane %v4547_v15, %v10474_v45 }
 0x773   : > { %v4463_v40 = vpop.xlane.xlu1 %4462  ;;  %v4457_v1 = vpop.xlane.xlu0 %4456 }
 0x774   : > { %v4548_v39 = vmul.f32 0.015625, %v4457_v1  ;;  %v4550_v51 = vmul.f32 0.015625, %v4463_v40 }
 0x776   : > { %v4627_v0 = vrot.slane %v4548_v39, %v10477_v25  ;;  %v4636_v40 = vrot.slane %v4550_v51, %v10477_v25 }
 0x777   : > { %v4469_v7 = vpop.xlane.xlu1 %4468  ;;  %v4460_v19 = vpop.xlane.xlu0 %4459 }
 0x778   : > { %v4549_v49 = vmul.f32 0.015625, %v4460_v19  ;;  %v4552_v18 = vmul.f32 0.015625, %v4469_v7 }
 0x77a   : > { %v4631_v12 = vrot.slane %v4549_v49, %v10474_v45 }
 0x77b   : > { %v4475_v4 = vpop.xlane.xlu1 %4474  ;;  %v4466_v46 = vpop.xlane.xlu0 %4465 }
 0x77c   : > { %v4551_v55 = vmul.f32 0.015625, %v4466_v46  ;;  %v4554_v19 = vmul.f32 0.015625, %v4475_v4  ;;  %v4616_v46 = vrot.slane %v4546_v38, %v10477_v25  ;;  %v4645_v4 = vrot.slane %v4552_v18, %v10477_v25 }
 0x77e   : > { %v4640_v57 = vrot.slane %v4551_v55, %v10474_v45  ;;  %v4632_v55 = vsel %vm4622_vm4, %v4631_v12, %v4627_v0  ;;  %v4623_v51 = vsel %vm4622_vm4, %v4621_v14, %v4616_v46 }
 0x77f   : > { %v10414_v10 = vpop.xlane.xlu1 %4480  ;;  %v4472_v20 = vpop.xlane.xlu0 %4471  ;;  %v4760_v18 = vsel %vm4759_vm3, %v4632_v55, %v4623_v51 }
 0x780   : > { %v4553_v56 = vmul.f32 0.015625, %v4472_v20  ;;  %v4641_v39 = vsel %vm4622_vm4, %v4640_v57, %v4636_v40 }
 0x782   : > { %v4649_v50 = vrot.slane %v4553_v56, %v10474_v45 }
 0x783   : > { %v10416_v3 = vpop.xlane.xlu1 %4501  ;;  %v4478_v32 = vpop.xlane.xlu0 %4477 }
 0x784   : > { %v4555_v54 = vmul.f32 0.015625, %v4478_v32  ;;  %v4654_v32 = vrot.slane %v4554_v19, %v10477_v25  ;;  %v4563_v38 = vmul.f32 0.015625, %v10416_v3 }
 0x786   : > { %v4658_v1 = vrot.slane %v4555_v54, %v10474_v45  ;;  %v4556_v54 = vmul.f32 0.015625, %v10414_v10 }
 0x787   : > { %v10418_v62 = vpop.xlane.xlu1 %4507  ;;  %v4499_v43 = vpop.xlane.xlu0 %4498 }
 0x788   : > { %v4562_v15 = vmul.f32 0.015625, %v4499_v43  ;;  %v4565_v56 = vmul.f32 0.015625, %v10418_v62  ;;  %v4659_v12 = vsel %vm4622_vm4, %v4658_v1, %v4654_v32  ;;  %v4762_v62 = vsel %vm4761_vm7, %v4641_v39, %v4760_v18 }
 0x789   : > { %v4663_v1 = vrot.slane %v4556_v54, %v10477_v25 }
 0x78a   : > { %v4690_v14 = vrot.slane %v4562_v15, %v10477_v25  ;;  %v4703_v0 = vrot.slane %v4565_v56, %v10474_v45 }
 0x78b   : > { %v10420_v23 = vpop.xlane.xlu1 %4513  ;;  %v4505_v9 = vpop.xlane.xlu0 %4504 }
 0x78c   : > { %v4564_v7 = vmul.f32 0.015625, %v4505_v9  ;;  %v4650_v9 = vsel %vm4622_vm4, %v4649_v50, %v4645_v4  ;;  %v4567_v55 = vmul.f32 0.015625, %v10420_v23 }
 0x78d   : > { %v4764_v3 = vsel %vm4763_vm8, %v4650_v9, %v4762_v62 }
 0x78e   : > { %v4699_v43 = vrot.slane %v4564_v7, %v10477_v25  ;;  %v4694_v7 = vrot.slane %v4563_v38, %v10474_v45  ;;  %v4766_v4 = vsel %vm4765_vm11, %v4659_v12, %v4764_v3 }
 0x78f   : > { %v10422_v11 = vpop.xlane.xlu1 %4519  ;;  %v10424_v60 = vpop.xlane.xlu0 %4510 }
 0x790   : > { %v4566_v10 = vmul.f32 0.015625, %v10424_v60  ;;  %v4704_v60 = vsel %vm4622_vm4, %v4703_v0, %v4699_v43 }
 0x792   : > { %v4708_v56 = vrot.slane %v4566_v10, %v10477_v25 }
 0x793   : > { %v10426_v6 = vpop.xlane.xlu1 %4789  ;;  %v10428_v36 = vpop.xlane.xlu0 %4516 }
 0x794   : > { %v4568_v50 = vmul.f32 0.015625, %v10428_v36 }
 0x796   : > { %v4717_v54 = vrot.slane %v4568_v50, %v10477_v25 }
 0x797   : > { %v10430_v31 = vpop.xlane.xlu1 %4795  ;;  %v10432_v59 = vpop.xlane.xlu0 %4786 }
 0x79b   : > { %v10434_v17 = vpop.xlane.xlu1 %4837  ;;  %v10436_v28 = vpop.xlane.xlu0 %4792 }
 0x79f   : > { %v10438_v27 = vpop.xlane.xlu1 %4843  ;;  %v10440_v16 = vpop.xlane.xlu0 %4834 }
 0x7a3   : > { %v10442_v26 = vpop.xlane.xlu1 %4525  ;;  %v10444_v29 = vpop.xlane.xlu0 %4840 }
 0x7a7   : > { %v10446_v30 = vpop.xlane.xlu1 %4801  ;;  %v10448_v52 = vpop.xlane.xlu0 %4522 }
 0x7a8   : > { %v4570_v15 = vmul.f32 0.015625, %v10448_v52 }
 0x7aa   : > { %v4726_v62 = vrot.slane %v4570_v15, %v10477_v25 }
 0x7ab   : > { %v10450_v42 = vpop.xlane.xlu1 %4849  ;;  %v10452_v34 = vpop.xlane.xlu0 %4798 }
 0x7af   : > { %v10454_v8 = vpop.xlane.xlu1 %4528  ;;  %v10456_v33 = vpop.xlane.xlu0 %4846 }
 0x7b0   : > { %v4572_v18 = vmul.f32 0.015625, %v10454_v8 }
 0x7b3   : > { %v10458_v35 = vpop.xlane.xlu1 %4804  ;;  %v4484_v41 = vpop.xlane.xlu0 %4483 }
 0x7b4   : > { %v4557_v46 = vmul.f32 0.015625, %v4484_v41  ;;  %v4569_v41 = vmul.f32 0.015625, %v10422_v11  ;;  %v4571_v11 = vmul.f32 0.015625, %v10442_v26 }
 0x7b6   : > { %v4667_v51 = vrot.slane %v4557_v46, %v10474_v45  ;;  %v4721_v43 = vrot.slane %v4569_v41, %v10474_v45 }
 0x7b7   : > { %v10460_v37 = vpop.xlane.xlu1 %4852  ;;  %v10462_v47 = vpop.xlane.xlu0 %4531 }
 0x7b8   : > { %v4573_v23 = vmul.f32 0.015625, %v10462_v47  ;;  %v4668_v46 = vsel %vm4622_vm4, %v4667_v51, %v4663_v1  ;;  %v4722_v8 = vsel %vm4622_vm4, %v4721_v43, %v4717_v54 }
 0x7b9   : > { %v4768_v15 = vsel %vm4767_vm15, %v4668_v46, %v4766_v4  ;;  %v4929_v46 = vrot.slane %v10430_v31, %v10474_v45 }
 0x7ba   : > { %v4739_v3 = vrot.slane %v4573_v23, %v10474_v45 }
 0x7bb   : > { %v10465_v53 = vpop.xlane.xlu1 %4486  ;;  %v10467_v21 = vpop.xlane.xlu0 %4807 }
 0x7bc   : > { %v4558_v32 = vmul.f32 0.015625, %v10465_v53  ;;  %v4712_v53 = vrot.slane %v4567_v55, %v10474_v45  ;;  %v4947_v31 = vrot.slane %v10467_v21, %v10474_v45  ;;  %v5001_v21 = vrot.slane %v10438_v27, %v10474_v45 }
 0x7be   : > { %v4672_v47 = vrot.slane %v4558_v32, %v10477_v25 }
 0x7bf   : > { %v10469_v24 = vpop.xlane.xlu1 %4534  ;;  %v10471_v44 = vpop.xlane.xlu0 %4855 }
 0x7c3   : > { %v10479_v2 = vpop.xlane.xlu1 %4810  ;;  %v4490_v5 = vpop.xlane.xlu0 %4489 }
 0x7c4   : > { %v4559_v40 = vmul.f32 0.015625, %v4490_v5  ;;  %v4695_v5 = vsel %vm4622_vm4, %v4694_v7, %v4690_v14  ;;  %v4574_v14 = vmul.f32 0.015625, %v10469_v24  ;;  %v4735_v24 = vrot.slane %v4572_v18, %v10477_v25 }
 0x7c5   : > { %v4773_v38 = vsel %vm4759_vm3, %v4704_v60, %v4695_v5 }
 0x7c6   : > { %v4676_v52 = vrot.slane %v4559_v40, %v10474_v45  ;;  %v4744_v32 = vrot.slane %v4574_v14, %v10477_v25  ;;  %v4740_v51 = vsel %vm4622_vm4, %v4739_v3, %v4735_v24  ;;  %v4916_v3 = vrot.slane %v10432_v59, %v10477_v25 }
 0x7c7   : > { %v10489_v20 = vpop.xlane.xlu1 %4858  ;;  %v4538_v49 = vpop.xlane.xlu0 %4537 }
 0x7c8   : > { %v4575_v9 = vmul.f32 0.015625, %v4538_v49  ;;  %v4713_v49 = vsel %vm4622_vm4, %v4712_v53, %v4708_v56  ;;  %v4677_v50 = vsel %vm4622_vm4, %v4676_v52, %v4672_v47 }
 0x7c9   : > { %v4774_v1 = vsel %vm4761_vm7, %v4713_v49, %v4773_v38  ;;  %v4770_v23 = vsel %vm4769_vm1, %v4677_v50, %v4768_v15 }
 0x7ca   : > { %v4748_v40 = vrot.slane %v4575_v9, %v10474_v45 }
 0x7cb   : > { %v4493_v19 = vpop.xlane.xlu1 %4492  ;;  %v10503_v57 = vpop.xlane.xlu0 %4813 }
 0x7cc   : > { %v4560_v12 = vmul.f32 0.015625, %v4493_v19  ;;  %v4730_v19 = vrot.slane %v4571_v11, %v10474_v45  ;;  %v4775_v11 = vsel %vm4763_vm8, %v4722_v8, %v4774_v1  ;;  %v4749_v52 = vsel %vm4622_vm4, %v4748_v40, %v4744_v32 }
 0x7cd   : > { %v4938_v40 = vrot.slane %v10446_v30, %v10474_v45  ;;  %v4956_v30 = vrot.slane %v10503_v57, %v10474_v45 }
 0x7ce   : > { %v4681_v7 = vrot.slane %v4560_v12, %v10477_v25  ;;  %v4731_v41 = vsel %vm4622_vm4, %v4730_v19, %v4726_v62  ;;  %v4920_v19 = vrot.slane %v10426_v6, %v10474_v45  ;;  %v4997_v6 = vrot.slane %v10444_v29, %v10477_v25 }
 0x7cf   : > { %v4541_v36 = vpop.xlane.xlu1 %4540  ;;  %v10519_v39 = vpop.xlane.xlu0 %4861  ;;  %v4776_v4 = vsel %vm4765_vm11, %v4731_v41, %v4775_v11  ;;  %v5019_v41 = vrot.slane %v10471_v44, %v10474_v45  ;;  %v5015_v44 = vrot.slane %v10460_v37, %v10477_v25  ;;  %v5024_v37 = vrot.slane %v10489_v20, %v10477_v25 }
 0x7d0   : > { %v4576_v55 = vmul.f32 0.015625, %v4541_v36  ;;  %v4777_v18 = vsel %vm4767_vm15, %v4740_v51, %v4776_v4  ;;  %v4921_v59 = vsel %vm4622_vm4, %v4920_v19, %v4916_v3  ;;  %v5002_v27 = vsel %vm4622_vm4, %v5001_v21, %v4997_v6 }
 0x7d1   : > { %v4778_v62 = vsel %vm4769_vm1, %v4749_v52, %v4777_v18  ;;  %v5099_v6 = vstv %s10642_s13  ;;  %s10697_s13 = sld [smem:[#allocation9 + $0x1a]] }
 0x7d2   : > { %v4753_v53 = vrot.slane %v4576_v55, %v10477_v25 }
 0x7d3   : > { %v10535_v10 = vpop.xlane.xlu1 %4816  ;;  %v4496_v26 = vpop.xlane.xlu0 %4495 }
 0x7d4   : > { %v4561_v0 = vmul.f32 0.015625, %v4496_v26  ;;  %v4925_v26 = vrot.slane %v10436_v28, %v10477_v25  ;;  %v4988_v28 = vrot.slane %v10440_v16, %v10477_v25  ;;  %v4943_v16 = vrot.slane %v10458_v35, %v10477_v25 }
 0x7d5   : > { %v4952_v35 = vrot.slane %v10479_v2, %v10477_v25  ;;  %v4961_v51 = vrot.slane %v10535_v10, %v10477_v25  ;;  %v5028_v2 = vrot.slane %v10519_v39, %v10474_v45  ;;  %v5020_v10 = vsel %vm4622_vm4, %v5019_v41, %v5015_v44 }
 0x7d6   : > { %v4685_v60 = vrot.slane %v4561_v0, %v10474_v45  ;;  %v4934_v0 = vrot.slane %v10452_v34, %v10477_v25  ;;  %v4930_v50 = vsel %vm4622_vm4, %v4929_v46, %v4925_v26  ;;  %v4992_v34 = vrot.slane %v10434_v17, %v10474_v45 }
 0x7d7   : > { %v10551_v5 = vpop.xlane.xlu1 %4864  ;;  %v4544_v56 = vpop.xlane.xlu0 %4543  ;;  %v5006_v17 = vrot.slane %v10456_v33, %v10477_v25  ;;  %v4948_v1 = vsel %vm4622_vm4, %v4947_v31, %v4943_v16  ;;  %v5139_v41 = vstv %s10669_s22  ;;  %s10715_s22 = sld [smem:[#allocation9 + $0x1e]]  ;;  %v5159_v44 = vstv %s10685_s16 }
 0x7d8   : > { %v4686_v54 = vsel %vm4622_vm4, %v4685_v60, %v4681_v7  ;;  %v4577_v36 = vmul.f32 0.015625, %v4544_v56  ;;  %v5057_v7 = vsel %vm4759_vm3, %v4930_v50, %v4921_v59  ;;  %v4939_v55 = vsel %vm4622_vm4, %v4938_v40, %v4934_v0  ;;  %s10734_s16 = sld [smem:[#allocation9 + $0x15]] }
 0x7d9   : > { %v4772_v9 = vsel %vm4771_vm5, %v4686_v54, %v4770_v23  ;;  %v4993_v60 = vsel %vm4622_vm4, %v4992_v34, %v4988_v28  ;;  %v5010_v56 = vrot.slane %v10450_v42, %v10474_v45  ;;  %v5058_v33 = vsel %vm4761_vm7, %v4939_v55, %v5057_v7 }
 0x7da   : > { %4783 = vst.msk [vmem:[#allocation4 + $0x3] sm:$0xff] %vm4782_vm9, %v4772_v9  ;;  %v4757_v38 = vrot.slane %v4577_v36, %v10474_v45  ;;  %v4957_v23 = vsel %vm4622_vm4, %v4956_v30, %v4952_v35  ;;  %v5059_v11 = vsel %vm4763_vm8, %v4948_v1, %v5058_v33  ;;  %v5064_v20 = vsel %vm4759_vm3, %v5002_v27, %v4993_v60  ;;  %vm12110_vm3 = vmmov %vm12108_vm2 }
 0x7db   : > { %v4823_v12 = vpop.xlane.xlu1 %4822  ;;  %v4820_v43 = vpop.xlane.xlu0 %4819  ;;  %v5011_v36 = vsel %vm4622_vm4, %v5010_v56, %v5006_v17  ;;  %v5119_v55 = vstv %s10653_s23  ;;  %v5115_v60 = vstv %s10636_s25  ;;  %s10702_s23 = sld [smem:[#allocation9 + $0xb]] }
 0x7dc   : > { %v4758_v47 = vsel %vm4622_vm4, %v4757_v38, %v4753_v53  ;;  %v4965_v29 = vrot.slane %v4820_v43, %v10474_v45  ;;  %v4970_v54 = vrot.slane %v4823_v12, %v10477_v25  ;;  %v5060_v53 = vsel %vm4765_vm11, %v4957_v23, %v5059_v11  ;;  %s10708_s25 = sld [smem:[#allocation9 + $0xd]] }
 0x7dd   : > { %v4779_v14 = vsel %vm4771_vm5, %v4758_v47, %v4778_v62  ;;  %v5033_v38 = vrot.slane %v10551_v5, %v10477_v25  ;;  %v5029_v43 = vsel %vm4622_vm4, %v5028_v2, %v5024_v37  ;;  %v5065_v26 = vsel %vm4761_vm7, %v5011_v36, %v5064_v20  ;;  %vm12111_vm7 = vmmov %vm12108_vm2 }
 0x7de   : > { %4784 = vst.msk [vmem:[#allocation4 + $0xb] sm:$0xff] %vm4782_vm9, %v4779_v14  ;;  %v4966_v42 = vsel %vm4622_vm4, %v4965_v29, %v4961_v51  ;;  %v5066_v3 = vsel %vm4763_vm8, %v5020_v10, %v5065_v26  ;;  %v5175_v10 = vstv %s10662_s14  ;;  %v10747_v20 = vstv %s10680_s30  ;;  %s10815_s14 = sld [smem:[#allocation9 + $0x1b]]  ;;  %vm12112_vm8 = vmmov %vm12108_vm2 }
 0x7df   : > { %v4868_v49 = vpop.xlane.xlu0 %4867  ;;  %v4871_v8 = vpop.xlane.xlu1 %4870  ;;  %v5061_v62 = vsel %vm4767_vm15, %v4966_v42, %v5060_v53  ;;  %v5067_v50 = vsel %vm4765_vm11, %v5029_v43, %v5066_v3  ;;  %v5241_v53 = vstv %s10672_s20  ;;  %v10750_v43 = vstv %s10689_s15  ;;  %s7598_s15 = smov 122   ;;  %s10832_s20 = sld [smem:[#allocation9 + $0x1f]]  ;;  %vm12113_vm11 = vmmov %vm12108_vm2 }
 0x7e0   : > { %v5037_v52 = vrot.slane %v4868_v49, %v10474_v45  ;;  %v5042_v47 = vrot.slane %v4871_v8, %v10477_v25  ;;  %v10761_v3 = vstv %s10697_s13  ;;  %s10853_s30 = sld [smem:[#allocation9 + $0x21]] }
 0x7e1   : > { %v5179_v37 = vstv %s10702_s23  ;;  %s10884_s13 = sld [smem:[#allocation9 + $0x25]] }
 0x7e2   : > { %v5038_v5 = vsel %vm4622_vm4, %v5037_v52, %v5033_v38  ;;  %v5270_v38 = vstv %s10678_s24  ;;  %s10844_s24 = sld [smem:[#allocation9 + $0x2c]] }
 0x7e3   : > { %v4826_v24 = vpop.xlane.xlu0 %4825  ;;  %v4829_v15 = vpop.xlane.xlu1 %4828  ;;  %v5068_v31 = vsel %vm4767_vm15, %v5038_v5, %v5067_v50  ;;  %s10893_s23 = sld [smem:[#allocation9 + $0x27]]  ;;  %vm6229_vm15 = vcmask 1041408  }
 0x7e4   : > { %v4974_v57 = vrot.slane %v4826_v24, %v10474_v45  ;;  %v4979_v18 = vrot.slane %v4829_v15, %v10477_v25 }
 0x7e5   : > { %v10691_v21 = vld [vmem:[#allocation4 + $0x8] sm:$0xff] }
 0x7e6   : > { %v4975_v9 = vsel %vm4622_vm4, %v4974_v57, %v4970_v54  ;;  %v5117_v23 = vmul.f32 %v5115_v60, %v10691_v21  ;;  %v5155_v54 = vstv %s10659_s18  ;;  %s7595_s18 = smov 125  }
 0x7e7   : > { %v4874_v32 = vpop.xlane.xlu0 %4873  ;;  %v4877_v14 = vpop.xlane.xlu1 %4876  ;;  %v5062_v49 = vsel %vm4769_vm1, %v4975_v9, %v5061_v62  ;;  %v5195_v9 = vstv %s10666_s17  ;;  %s10823_s17 = sld [smem:[#allocation9 + $0x28]] }
 0x7e8   : > { %v5046_v4 = vrot.slane %v4874_v32, %v10474_v45  ;;  %v5051_v28 = vrot.slane %v4877_v14, %v10477_v25  ;;  %v10674_v25 = vld [vmem:[#allocation4] sm:$0xff]  ;;  %v5135_v32 = vstv %s10648_s19  ;;  %s12106_s19 = smov 127  }
 0x7e9   : > { %v5116_v35 = vmul.f32 %v5115_v60, %v10674_v25  ;;  %v5136_v2 = vmul.f32 %v5135_v32, %v10674_v25  ;;  %v5242_v60 = vmul.f32 %v5241_v53, %v10674_v25 }
 0x7ea   : > { %v5047_v0 = vsel %vm4622_vm4, %v5046_v4, %v5042_v47  ;;  %v5137_v4 = vmul.f32 %v5135_v32, %v10691_v21 }
 0x7eb   : > { %v4832_v39 = vpop.xlane.xlu0 %4831  ;;  %v5069_v24 = vsel %vm4769_vm1, %v5047_v0, %v5068_v31  ;;  %v10764_v0 = vstv %s10715_s22  ;;  %s10914_s22 = sld [smem:[#allocation9 + $0x2d]]  ;;  %vm12114_vm1 = vmmov %vm12108_vm2 }
 0x7ec   : > { %v4983_v12 = vrot.slane %v4832_v39, %v10474_v45  ;;  %v5156_v39 = vmul.f32 %v5155_v54, %v10674_v25 }
 0x7ee   : > { %v4984_v46 = vsel %vm4622_vm4, %v4983_v12, %v4979_v18  ;;  %v5199_v18 = vstv %s10708_s25  ;;  %v5246_v12 = vstv %s10711_s1  ;;  %s7596_s1 = smov 124   ;;  %s10905_s25 = sld [smem:[#allocation9 + $0x29]] }
 0x7ef   : > { %v5063_v19 = vsel %vm4771_vm5, %v4984_v46, %v5062_v49  ;;  %v4880_v8 = vpop.xlane.xlu0 %4879 }
 0x7f0   : > { %5074 = vst.msk [vmem:[#allocation4 + $0x1b] sm:$0xff] %vm4782_vm9, %v5063_v19  ;;  %v5055_v40 = vrot.slane %v4880_v8, %v10474_v45  ;;  %v5095_v45 = vstv %s10629_s12  ;;  %s10694_s12 = sld [smem:[#allocation9 + $0x18]]  ;;  %v5157_v19 = vmul.f32 %v5155_v54, %v10691_v21  ;;  %v5176_v8 = vmul.f32 %v5175_v10, %v10674_v25 }
 0x7f1   : > { %v5096_v16 = vmul.f32 %v5095_v45, %v10674_v25  ;;  %v5097_v15 = vmul.f32 %v5095_v45, %v10691_v21 }
 0x7f2   : > { %v5056_v59 = vsel %vm4622_vm4, %v5055_v40, %v5051_v28  ;;  %v10774_v28 = vstv %s10724_s3  ;;  %v10776_v40 = vld [vmem:[#allocation4 + $0x10] sm:$0x3f]  ;;  %s7597_s3 = smov 123   ;;  %vm12109_vm4 = vmmov %vm12108_vm2 }
 0x7f3   : > { %v5070_v34 = vsel %vm4771_vm5, %v5056_v59, %v5069_v24  ;;  %v5243_v24 = vmul.f32 %v5241_v53, %v10691_v21  ;;  %vm12115_vm5 = vmmov %vm12114_vm1 }
 0x7f4   : > { %5075 = vst.msk [vmem:[#allocation4 + $0x23] sm:$0xff] %vm4782_vm9, %v5070_v34  ;;  %v5275_v34 = vstv %s10727_s4  ;;  %s10797_s4 = sld [smem:[#allocation9 + $0x19]]  ;;  %vm12116_vm9 = vmmov %vm12114_vm1 }
 0x7f6   : > { %v10758_v46 = vstv %s10694_s12  ;;  %s10872_s12 = sld [smem:[#allocation9 + $0x23]] }
 0x7f7   : > { %v10682_v7 = vld [vmem:[#allocation4 + $0x18] sm:$0xff] }
 0x7f8   : > { %v5100_v30 = vmul.f32 %v5099_v6, %v10682_v7  ;;  %v5120_v29 = vmul.f32 %v5119_v55, %v10682_v7  ;;  %v5140_v51 = vmul.f32 %v5139_v41, %v10682_v7  ;;  %v5160_v52 = vmul.f32 %v5159_v44, %v10682_v7 }
 0x7f9   : > { %v5180_v26 = vmul.f32 %v5179_v37, %v10682_v7  ;;  %v5200_v31 = vmul.f32 %v5199_v18, %v10682_v7  ;;  %v5247_v59 = vmul.f32 %v5246_v12, %v10682_v7 }
 0x7fa   : > { %v5102_v17 = vadd.f32 %v5100_v30, %v5096_v16  ;;  %v5122_v27 = vadd.f32 %v5120_v29, %v5116_v35  ;;  %v5142_v11 = vadd.f32 %v5140_v51, %v5136_v2  ;;  %v5162_v47 = vadd.f32 %v5160_v52, %v5156_v39 }
 0x7fb   : > { %v10699_v1 = vld [vmem:[#allocation4 + $0x20] sm:$0xff]  ;;  %v10754_v5 = vld [vmem:[#allocation4 + $0x28] sm:$0x3f]  ;;  %v5196_v30 = vmul.f32 %v5195_v9, %v10674_v25  ;;  %v5244_v35 = vmul.f32 %v5241_v53, %v10776_v40  ;;  %v5197_v52 = vmul.f32 %v5195_v9, %v10691_v21  ;;  %v5301_v53 = vmul.f32 %v10747_v20, %v10691_v21 }
 0x7fc   : > { %5106 = vrot.lane.b32.xlu1 %v5102_v17, %s12005_s0  ;;  %v5101_v57 = vmul.f32 %v5099_v6, %v10699_v1  ;;  %v5121_v33 = vmul.f32 %v5119_v55, %v10699_v1  ;;  %s10718_s0 = sld [smem:[#allocation9 + $0x20]]  ;;  %v5141_v42 = vmul.f32 %v5139_v41, %v10699_v1  ;;  %v5161_v14 = vmul.f32 %v5159_v44, %v10699_v1 }
 0x7fd   : > { %v5248_v49 = vmul.f32 %v5246_v12, %v10699_v1  ;;  %v5182_v6 = vadd.f32 %v5180_v26, %v5176_v8  ;;  %v5181_v55 = vmul.f32 %v5179_v37, %v10699_v1  ;;  %v5249_v16 = vmul.f32 %v5246_v12, %v10754_v5 }
 0x7fe   : > { %v5103_v56 = vadd.f32 %v5101_v57, %v5097_v15  ;;  %v5123_v36 = vadd.f32 %v5121_v33, %v5117_v23  ;;  %v5143_v62 = vadd.f32 %v5141_v42, %v5137_v4  ;;  %v5163_v45 = vadd.f32 %v5161_v14, %v5157_v19 }
 0x7ff   : > { %v5251_v17 = vadd.f32 %v5248_v49, %v5243_v24  ;;  %v5277_v29 = vmul.f32 %v5275_v34, %v10699_v1  ;;  %v5177_v41 = vmul.f32 %v5175_v10, %v10691_v21  ;;  %v5304_v15 = vstv %s10734_s16  ;;  %s10931_s16 = sld [smem:[#allocation9 + $0x2e]] }
 0x800   : > { %5126 = vrot.lane.b32.xlu1 %v5122_v27, %s7594_s2  ;;  %5108 = vrot.lane.b32.xlu0 %v5103_v56, %s12106_s19  ;;  %v5333_v57 = vstv %s10742_s5  ;;  %v5202_v32 = vadd.f32 %v5200_v31, %v5196_v30  ;;  %v5250_v27 = vadd.f32 %v5247_v59, %v5242_v60  ;;  %v5272_v56 = vmul.f32 %v5270_v38, %v10691_v21  ;;  %s10805_s5 = sld [smem:[#allocation9 + $0x26]] }
 0x801   : > { %v5276_v33 = vmul.f32 %v5275_v34, %v10682_v7  ;;  %v5183_v51 = vadd.f32 %v5181_v55, %v5177_v41  ;;  %v5201_v44 = vmul.f32 %v5199_v18, %v10699_v1  ;;  %v5252_v23 = vadd.f32 %v5249_v16, %v5244_v35 }
 0x802   : > { %v10771_v50 = vstv %s10718_s0  ;;  %s10789_s0 = sld [smem:[#allocation9 + $0x24]]  ;;  %v5278_v2 = vmul.f32 %v5275_v34, %v10754_v5  ;;  %v5257_v54 = vrot.slane %v5251_v17, 1  ;;  %v5306_v42 = vmul.f32 %v5304_v15, %v10699_v1 }
 0x803   : > { %v5273_v10 = vmul.f32 %v5270_v38, %v10776_v40  ;;  %v5300_v37 = vmul.f32 %v10747_v20, %v10674_v25  ;;  %v5256_v4 = vrot.slane %v5250_v27, 1  ;;  %v5305_v18 = vmul.f32 %v5304_v15, %v10682_v7 }
 0x804   : > { %5128 = vrot.lane.b32.xlu1 %v5123_v36, %s7594_s2  ;;  %5146 = vrot.lane.b32.xlu0 %v5142_v11, %s7595_s18  ;;  %v5271_v36 = vmul.f32 %v5270_v38, %v10674_v25  ;;  %v5280_v11 = vadd.f32 %v5277_v29, %v5272_v56  ;;  %v5203_v12 = vadd.f32 %v5201_v44, %v5197_v52  ;;  %v5362_v31 = vstv %s10797_s4  ;;  %s10942_s4 = sld [smem:[#allocation9 + $0x30]] }
 0x805   : > { %v5281_v9 = vadd.f32 %v5278_v2, %v5273_v10  ;;  %v5258_v38 = vsel %vm5230_vm10, %v5256_v4, %v5257_v54  ;;  %v5309_v26 = vadd.f32 %v5306_v42, %v5301_v53  ;;  %v5335_v49 = vmul.f32 %v5333_v57, %v10699_v1 }
 0x806   : > { %v5279_v39 = vadd.f32 %v5276_v33, %v5271_v36  ;;  %v5286_v14 = vrot.slane %v5280_v11, 1  ;;  %v5302_v19 = vmul.f32 %v10747_v20, %v10776_v40  ;;  %v5329_v8 = vmul.f32 %v10750_v43, %v10674_v25 }
 0x807   : > { %v5308_v34 = vadd.f32 %v5305_v18, %v5300_v37  ;;  %v5288_v20 = vrot.slane %v5281_v9, 1  ;;  %v5336_v30 = vmul.f32 %v5333_v57, %v10754_v5  ;;  %v5315_v17 = vrot.slane %v5309_v26, 1 }
 0x808   : > { %5148 = vrot.lane.b32.xlu1 %v5143_v62, %s7595_s18  ;;  %5166 = vrot.lane.b32.xlu0 %v5162_v47, %s7596_s1  ;;  %v5259_v62 = vrot.slane %v5252_v23, 1  ;;  %v5307_v47 = vmul.f32 %v5304_v15, %v10754_v5  ;;  %v10835_v24 = vstv %s10789_s0  ;;  %v5285_v59 = vrot.slane %v5279_v39, 1  ;;  %s10936_s0 = sld [smem:[#allocation9 + $0x2f]] }
 0x809   : > { %v5364_v41 = vmul.f32 %v5362_v31, %v10699_v1  ;;  %v5331_v35 = vmul.f32 %v10750_v43, %v10776_v40  ;;  %v5358_v15 = vmul.f32 %v10758_v46, %v10674_v25  ;;  %v5314_v27 = vrot.slane %v5308_v34, 1 }
 0x80a   : > { %v5260_v55 = vsel %vm5230_vm10, %v5257_v54, %v5259_v62  ;;  %v5310_v16 = vadd.f32 %v5307_v47, %v5302_v19  ;;  %v5287_v60 = vsel %vm5230_vm10, %v5285_v59, %v5286_v14  ;;  %v5359_v33 = vmul.f32 %v10758_v46, %v10691_v21 }
 0x80b   : > { %v5289_v44 = vsel %vm5230_vm10, %v5286_v14, %v5288_v20  ;;  %v5339_v23 = vadd.f32 %v5336_v30, %v5331_v35  ;;  %v5365_v2 = vmul.f32 %v5362_v31, %v10754_v5  ;;  %v5316_v54 = vsel %vm5230_vm10, %v5314_v27, %v5315_v17 }
 0x80c   : > { %5168 = vrot.lane.b32.xlu1 %v5163_v45, %s7596_s1  ;;  %5186 = vrot.lane.b32.xlu0 %v5182_v6, %s7597_s3  ;;  %v5330_v45 = vmul.f32 %v10750_v43, %v10691_v21  ;;  %v5334_v6 = vmul.f32 %v5333_v57, %v10682_v7  ;;  %v10856_v57 = vstv %s10805_s5  ;;  %v5317_v43 = vrot.slane %v5310_v16, 1  ;;  %s10954_s5 = sld [smem:[#allocation9 + $0x31]] }
 0x80d   : > { %v5367_v11 = vadd.f32 %v5364_v41, %v5359_v33  ;;  %v5360_v52 = vmul.f32 %v10758_v46, %v10776_v40  ;;  %v5387_v10 = vmul.f32 %v10761_v3, %v10674_v25  ;;  %v5446_v37 = vstv %s10832_s20  ;;  %s10994_s20 = sld [smem:[#allocation9 + $0x34]] }
 0x80e   : > { %v5338_v29 = vadd.f32 %v5335_v49, %v5330_v45  ;;  %v5337_v56 = vadd.f32 %v5334_v6, %v5329_v8  ;;  %v10875_v4 = vstv %s10823_s17  ;;  %v5388_v18 = vmul.f32 %v10761_v3, %v10691_v21  ;;  %s10975_s17 = sld [smem:[#allocation9 + $0x33]] }
 0x80f   : > { %v5318_v62 = vsel %vm5230_vm10, %v5315_v17, %v5317_v43  ;;  %v5346_v46 = vrot.slane %v5339_v23, 1  ;;  %v5368_v9 = vadd.f32 %v5365_v2, %v5360_v52  ;;  %v5373_v14 = vrot.slane %v5367_v11, 1 }
 0x810   : > { %5188 = vrot.lane.b32.xlu1 %v5183_v51, %s7597_s3  ;;  %5206 = vrot.lane.b32.xlu0 %v5202_v32, %s7598_s15  ;;  %v5391_v32 = vstv %s10815_s14  ;;  %v5363_v51 = vmul.f32 %v5362_v31, %v10682_v7  ;;  %v5344_v36 = vrot.slane %v5338_v29, 1  ;;  %v5343_v39 = vrot.slane %v5337_v56, 1  ;;  %s10963_s14 = sld [smem:[#allocation9 + $0x32]] }
 0x811   : > { %v5393_v42 = vmul.f32 %v5391_v32, %v10699_v1  ;;  %v5394_v47 = vmul.f32 %v5391_v32, %v10754_v5  ;;  %v5448_v49 = vmul.f32 %v5446_v37, %v10699_v1  ;;  %v5389_v19 = vmul.f32 %v10761_v3, %v10776_v40 }
 0x812   : > { %v5366_v53 = vadd.f32 %v5363_v51, %v5358_v15  ;;  %v5442_v8 = vmul.f32 %v10764_v0, %v10674_v25  ;;  %v5475_v31 = vstv %s10853_s30  ;;  %v10896_v59 = vstv %s10844_s24  ;;  %s11016_s24 = sld [smem:[#allocation9 + $0x35]] }
 0x813   : > { %v5396_v26 = vadd.f32 %v5393_v42, %v5388_v18  ;;  %v5443_v6 = vmul.f32 %v10764_v0, %v10691_v21  ;;  %v5347_v20 = vsel %vm5230_vm10, %v5344_v36, %v5346_v46  ;;  %v5375_v16 = vrot.slane %v5368_v9, 1  ;;  %s11024_s30 = sld [smem:[#allocation9 + $0x36]] }
 0x814   : > { %5208 = vrot.lane.b32.xlu1 %v5203_v12, %s7598_s15  ;;  %5261 = vrot.lane.b32.xlu0 %v5258_v38, %s12106_s19  ;;  %v5392_v12 = vmul.f32 %v5391_v32, %v10682_v7  ;;  %v5345_v38 = vsel %vm5230_vm10, %v5343_v39, %v5344_v36  ;;  %v5372_v34 = vrot.slane %v5366_v53, 1  ;;  %v5397_v3 = vadd.f32 %v5394_v47, %v5389_v19 }
 0x815   : > { %v5449_v30 = vmul.f32 %v5446_v37, %v10754_v5  ;;  %v5402_v17 = vrot.slane %v5396_v26, 1  ;;  %v5451_v29 = vadd.f32 %v5448_v49, %v5443_v6  ;;  %v5477_v41 = vmul.f32 %v5475_v31, %v10699_v1 }
 0x816   : > { %v5395_v45 = vadd.f32 %v5392_v12, %v5387_v10  ;;  %v5444_v35 = vmul.f32 %v10764_v0, %v10776_v40  ;;  %v5471_v15 = vmul.f32 %v10771_v50, %v10674_v25  ;;  %v5504_v32 = vstv %s10872_s12  ;;  %s11031_s12 = sld [smem:[#allocation9 + $0x3a]] }
 0x817   : > { %v5472_v33 = vmul.f32 %v10771_v50, %v10691_v21  ;;  %v5476_v51 = vmul.f32 %v5475_v31, %v10682_v7  ;;  %v5404_v43 = vrot.slane %v5397_v3, 1  ;;  %v5478_v0 = vmul.f32 %v5475_v31, %v10754_v5 }
 0x818   : > { %5263 = vrot.lane.b32.xlu1 %v5260_v55, %s12106_s19  ;;  %5290 = vrot.lane.b32.xlu0 %v5287_v60, %s7594_s2  ;;  %v5447_v55 = vmul.f32 %v5446_v37, %v10682_v7  ;;  %v5374_v60 = vsel %vm5230_vm10, %v5372_v34, %v5373_v14  ;;  %v5401_v27 = vrot.slane %v5395_v45, 1  ;;  %v5452_v23 = vadd.f32 %v5449_v30, %v5444_v35 }
 0x819   : > { %v5480_v36 = vadd.f32 %v5477_v41, %v5472_v33  ;;  %v5506_v11 = vmul.f32 %v5504_v32, %v10699_v1  ;;  %v5473_v42 = vmul.f32 %v10771_v50, %v10776_v40  ;;  %v5500_v52 = vmul.f32 %v10774_v28, %v10674_v25 }
 0x81a   : > { %v5450_v56 = vadd.f32 %v5447_v55, %v5442_v8  ;;  %v5403_v2 = vsel %vm5230_vm10, %v5401_v27, %v5402_v17  ;;  %v5533_v10 = vstv %s10884_s13  ;;  %v5562_v37 = vstv %s10893_s23  ;;  %s11042_s13 = sld [smem:[#allocation9 + $0x3c]] }
 0x81b   : > { %v5479_v53 = vadd.f32 %v5476_v51, %v5471_v15  ;;  %v5501_v18 = vmul.f32 %v10774_v28, %v10691_v21  ;;  %v5505_v12 = vmul.f32 %v5504_v32, %v10682_v7  ;;  %v5405_v50 = vsel %vm5230_vm10, %v5402_v17, %v5404_v43  ;;  %s11052_s23 = sld [smem:[#allocation9 + $0x37]] }
 0x81c   : > { %5292 = vrot.lane.b32.xlu1 %v5289_v44, %s7594_s2  ;;  %5319 = vrot.lane.b32.xlu0 %v5316_v54, %s7595_s18  ;;  %v5376_v44 = vsel %vm5230_vm10, %v5373_v14, %v5375_v16  ;;  %v5457_v54 = vrot.slane %v5451_v29, 2  ;;  %v5456_v39 = vrot.slane %v5450_v56, 2  ;;  %v5481_v46 = vadd.f32 %v5478_v0, %v5473_v42 }
 0x81d   : > { %v5507_v9 = vmul.f32 %v5504_v32, %v10754_v5  ;;  %v5509_v14 = vadd.f32 %v5506_v11, %v5501_v18  ;;  %v5535_v26 = vmul.f32 %v5533_v10, %v10699_v1  ;;  %v5502_v49 = vmul.f32 %v10774_v28, %v10776_v40 }
 0x81e   : > { %v5458_v47 = vsel %vm5430_vm12, %v5456_v39, %v5457_v54  ;;  %v5529_v19 = vmul.f32 %v10835_v24, %v10674_v25  ;;  %v5591_v8 = vstv %s10905_s25  ;;  %v10952_v31 = vstv %s10914_s22  ;;  %s11063_s25 = sld [smem:[#allocation9 + $0x3e]] }
 0x81f   : > { %v5485_v34 = vrot.slane %v5479_v53, 2  ;;  %v5508_v45 = vadd.f32 %v5505_v12, %v5500_v52  ;;  %v5530_v6 = vmul.f32 %v10835_v24, %v10691_v21  ;;  %v5534_v55 = vmul.f32 %v5533_v10, %v10682_v7  ;;  %s11081_s22 = sld [smem:[#allocation9 + $0x3b]] }
 0x820   : > { %5321 = vrot.lane.b32.xlu1 %v5318_v62, %s7595_s18  ;;  %5348 = vrot.lane.b32.xlu0 %v5345_v38, %s7596_s1  ;;  %v5459_v62 = vrot.slane %v5452_v23, 2  ;;  %v5486_v38 = vrot.slane %v5480_v36, 2  ;;  %v5488_v16 = vrot.slane %v5481_v46, 2  ;;  %v5536_v28 = vmul.f32 %v5533_v10, %v10754_v5 }
 0x821   : > { %v5564_v3 = vmul.f32 %v5562_v37, %v10699_v1  ;;  %v5510_v17 = vadd.f32 %v5507_v9, %v5502_v49  ;;  %v5538_v29 = vadd.f32 %v5535_v26, %v5530_v6  ;;  %v5531_v41 = vmul.f32 %v10835_v24, %v10776_v40 }
 0x822   : > { %v5487_v30 = vsel %vm5430_vm12, %v5485_v34, %v5486_v38  ;;  %v5559_v35 = vmul.f32 %v10856_v57, %v10691_v21  ;;  %v5563_v15 = vmul.f32 %v5562_v37, %v10682_v7  ;;  %v10973_v32 = vstv %s10931_s16  ;;  %s11102_s16 = sld [smem:[#allocation9 + $0x3d]] }
 0x823   : > { %v5514_v27 = vrot.slane %v5508_v45, 2  ;;  %v5537_v56 = vadd.f32 %v5534_v55, %v5529_v19  ;;  %v5558_v33 = vmul.f32 %v10856_v57, %v10674_v25  ;;  %v5675_v51 = vstv %s10936_s0  ;;  %s11112_s0 = sld [smem:[#allocation9 + $0x40]] }
 0x824   : > { %5350 = vrot.lane.b32.xlu1 %v5347_v20, %s7596_s1  ;;  %5377 = vrot.lane.b32.xlu0 %v5374_v60, %s7597_s3  ;;  %v5460_v20 = vsel %vm5430_vm12, %v5457_v54, %v5459_v62  ;;  %v5515_v60 = vrot.slane %v5509_v14, 2  ;;  %v5539_v24 = vadd.f32 %v5536_v28, %v5531_v41  ;;  %v5567_v43 = vadd.f32 %v5564_v3, %v5559_v35 }
 0x825   : > { %v5565_v23 = vmul.f32 %v5562_v37, %v10754_v5  ;;  %v5544_v54 = vrot.slane %v5538_v29, 2  ;;  %v5593_v36 = vmul.f32 %v5591_v8, %v10699_v1  ;;  %v5566_v11 = vadd.f32 %v5563_v15, %v5558_v33 }
 0x826   : > { %v5516_v0 = vsel %vm5430_vm12, %v5514_v27, %v5515_v60  ;;  %v5560_v42 = vmul.f32 %v10856_v57, %v10776_v40  ;;  %v10989_v52 = vstv %s10942_s4  ;;  %v10992_v10 = vstv %s10954_s5  ;;  %s11118_s4 = sld [smem:[#allocation9 + $0x42]] }
 0x827   : > { %v5543_v37 = vrot.slane %v5537_v56, 2  ;;  %v5587_v39 = vmul.f32 %v10875_v4, %v10674_v25  ;;  %v5588_v53 = vmul.f32 %v10875_v4, %v10691_v21  ;;  %v5592_v18 = vmul.f32 %v5591_v8, %v10682_v7  ;;  %s11127_s5 = sld [smem:[#allocation9 + $0x44]] }
 0x828   : > { %5379 = vrot.lane.b32.xlu1 %v5376_v44, %s7597_s3  ;;  %5406 = vrot.lane.b32.xlu0 %v5403_v2, %s7598_s15  ;;  %v5489_v44 = vsel %vm5430_vm12, %v5486_v38, %v5488_v16  ;;  %v5517_v2 = vrot.slane %v5510_v17, 2  ;;  %v5546_v12 = vrot.slane %v5539_v24, 2  ;;  %v5568_v57 = vadd.f32 %v5565_v23, %v5560_v42 }
 0x829   : > { %v5594_v62 = vmul.f32 %v5591_v8, %v10754_v5  ;;  %v5545_v9 = vsel %vm5430_vm12, %v5543_v37, %v5544_v54  ;;  %v5648_v38 = vmul.f32 %v10952_v31, %v10699_v1  ;;  %v5572_v14 = vrot.slane %v5566_v11, 2 }
 0x82a   : > { %v5518_v46 = vsel %vm5430_vm12, %v5515_v60, %v5517_v2  ;;  %v5589_v26 = vmul.f32 %v10875_v4, %v10776_v40  ;;  %v11011_v49 = vstv %s10963_s14  ;;  %v11014_v19 = vstv %s10975_s17  ;;  %s11131_s14 = sld [smem:[#allocation9 + $0x3f]] }
 0x82b   : > { %v5595_v8 = vadd.f32 %v5592_v18, %v5587_v39  ;;  %v5642_v34 = vmul.f32 %v10896_v59, %v10674_v25  ;;  %v5643_v45 = vmul.f32 %v10896_v59, %v10691_v21  ;;  %v5647_v6 = vmul.f32 %v10952_v31, %v10682_v7  ;;  %s11149_s17 = sld [smem:[#allocation9 + $0x41]] }
 0x82c   : > { %5408 = vrot.lane.b32.xlu1 %v5405_v50, %s7598_s15  ;;  %5461 = vrot.lane.b32.xlu0 %v5458_v47, %s12106_s19  ;;  %v5573_v50 = vrot.slane %v5567_v43, 2  ;;  %v5596_v47 = vadd.f32 %v5593_v36, %v5588_v53  ;;  %v5547_v4 = vsel %vm5430_vm12, %v5544_v54, %v5546_v12  ;;  %v5597_v16 = vadd.f32 %v5594_v62, %v5589_v26 }
 0x82d   : > { %v5651_v3 = vadd.f32 %v5648_v38, %v5643_v45  ;;  %v5677_v60 = vmul.f32 %v5675_v51, %v10699_v1  ;;  %v5644_v17 = vmul.f32 %v10896_v59, %v10776_v40  ;;  %v5671_v29 = vmul.f32 %v10973_v32, %v10674_v25 }
 0x82e   : > { %v5574_v55 = vsel %vm5430_vm12, %v5572_v14, %v5573_v50  ;;  %v5602_v28 = vrot.slane %v5596_v47, 2  ;;  %v11040_v41 = vstv %s10994_s20  ;;  %v5650_v35 = vadd.f32 %v5647_v6, %v5642_v34  ;;  %s11156_s20 = sld [smem:[#allocation9 + $0x48]] }
 0x82f   : > { %v5672_v15 = vmul.f32 %v10973_v32, %v10691_v21  ;;  %v5676_v27 = vmul.f32 %v5675_v51, %v10682_v7  ;;  %v5604_v33 = vrot.slane %v5597_v16, 2  ;;  %v5678_v59 = vmul.f32 %v5675_v51, %v10754_v5 }
 0x830   : > { %5463 = vrot.lane.b32.xlu1 %v5460_v20, %s12106_s19  ;;  %5490 = vrot.lane.b32.xlu0 %v5487_v30, %s7594_s2  ;;  %v5575_v20 = vrot.slane %v5568_v57, 2  ;;  %v5649_v30 = vmul.f32 %v10952_v31, %v10754_v5  ;;  %v5601_v31 = vrot.slane %v5595_v8, 2  ;;  %v5657_v43 = vrot.slane %v5651_v3, 3 }
 0x831   : > { %v5673_v2 = vmul.f32 %v10973_v32, %v10776_v40  ;;  %v5701_v51 = vmul.f32 %v10989_v52, %v10691_v21  ;;  %v5705_v54 = vmul.f32 %v10992_v10, %v10682_v7  ;;  %v5762_v36 = vstv %s11016_s24  ;;  %s11164_s24 = sld [smem:[#allocation9 + $0x43]] }
 0x832   : > { %v5576_v56 = vsel %vm5430_vm12, %v5573_v50, %v5575_v20  ;;  %v5603_v24 = vsel %vm5430_vm12, %v5601_v31, %v5602_v28  ;;  %v5652_v23 = vadd.f32 %v5649_v30, %v5644_v17  ;;  %v5656_v11 = vrot.slane %v5650_v35, 3 }
 0x833   : > { %v5679_v42 = vadd.f32 %v5676_v27, %v5671_v29  ;;  %v5700_v37 = vmul.f32 %v10989_v52, %v10674_v25  ;;  %v5786_v39 = vstv %s11024_s30  ;;  %v5605_v53 = vsel %vm5430_vm12, %v5602_v28, %v5604_v33  ;;  %s11182_s30 = sld [smem:[#allocation9 + $0x4a]] }
 0x834   : > { %5492 = vrot.lane.b32.xlu1 %v5489_v44, %s7594_s2  ;;  %5519 = vrot.lane.b32.xlu0 %v5516_v0, %s7595_s18  ;;  %v5706_v44 = vmul.f32 %v10992_v10, %v10699_v1  ;;  %v5680_v0 = vadd.f32 %v5677_v60, %v5672_v15  ;;  %v5681_v32 = vadd.f32 %v5678_v59, %v5673_v2  ;;  %v5659_v57 = vrot.slane %v5652_v23, 3 }
 0x835   : > { %v5707_v12 = vmul.f32 %v10992_v10, %v10754_v5  ;;  %v5658_v50 = vsel %vm5630_vm13, %v5656_v11, %v5657_v43  ;;  %v5702_v47 = vmul.f32 %v10989_v52, %v10776_v40  ;;  %v11079_v38 = vstv %s11031_s12  ;;  %s11189_s12 = sld [smem:[#allocation9 + $0x45]] }
 0x836   : > { %v5709_v18 = vadd.f32 %v5706_v44, %v5701_v51  ;;  %v5686_v62 = vrot.slane %v5680_v0, 3  ;;  %v11084_v10 = vstv %s11042_s13  ;;  %v5685_v14 = vrot.slane %v5679_v42, 3  ;;  %s11198_s13 = sld [smem:[#allocation9 + $0x4c]] }
 0x837   : > { %v5729_v26 = vmul.f32 %v11011_v49, %v10674_v25  ;;  %v5730_v8 = vmul.f32 %v11011_v49, %v10691_v21  ;;  %v5734_v34 = vmul.f32 %v11014_v19, %v10682_v7  ;;  %v5688_v45 = vrot.slane %v5681_v32, 3 }
 0x838   : > { %5521 = vrot.lane.b32.xlu1 %v5518_v46, %s7595_s18  ;;  %5548 = vrot.lane.b32.xlu0 %v5545_v9, %s7596_s1  ;;  %v5735_v46 = vmul.f32 %v11014_v19, %v10699_v1  ;;  %v5708_v9 = vadd.f32 %v5705_v54, %v5700_v37  ;;  %v5715_v52 = vrot.slane %v5709_v18, 3  ;;  %v5710_v6 = vadd.f32 %v5707_v12, %v5702_v47 }
 0x839   : > { %v5687_v20 = vsel %vm5630_vm13, %v5685_v14, %v5686_v62  ;;  %v5764_v28 = vmul.f32 %v5762_v36, %v10699_v1  ;;  %v5731_v30 = vmul.f32 %v11011_v49, %v10776_v40  ;;  %v5791_v60 = vstv %s11052_s23  ;;  %s11207_s23 = sld [smem:[#allocation9 + $0x4e]] }
 0x83a   : > { %v5738_v16 = vadd.f32 %v5735_v46, %v5730_v8  ;;  %v5714_v3 = vrot.slane %v5708_v9, 3  ;;  %v11105_v17 = vstv %s11063_s25  ;;  %v5758_v29 = vmul.f32 %v11040_v41, %v10674_v25  ;;  %s11212_s25 = sld [smem:[#allocation9 + $0x49]] }
 0x83b   : > { %v5759_v31 = vmul.f32 %v11040_v41, %v10691_v21  ;;  %v5763_v35 = vmul.f32 %v5762_v36, %v10682_v7  ;;  %v5689_v15 = vsel %vm5630_vm13, %v5686_v62, %v5688_v45  ;;  %v5717_v27 = vrot.slane %v5710_v6, 3 }
 0x83c   : > { %5550 = vrot.lane.b32.xlu1 %v5547_v4, %s7596_s1  ;;  %5577 = vrot.lane.b32.xlu0 %v5574_v55, %s7597_s3  ;;  %v5736_v4 = vmul.f32 %v11014_v19, %v10754_v5  ;;  %v5660_v55 = vsel %vm5630_vm13, %v5657_v43, %v5659_v57  ;;  %v5737_v19 = vadd.f32 %v5734_v34, %v5729_v26  ;;  %v5744_v33 = vrot.slane %v5738_v16, 3 }
 0x83d   : > { %v5716_v49 = vsel %vm5630_vm13, %v5714_v3, %v5715_v52  ;;  %v5767_v59 = vadd.f32 %v5764_v28, %v5759_v31  ;;  %v5765_v44 = vmul.f32 %v5762_v36, %v10754_v5  ;;  %v5760_v43 = vmul.f32 %v11040_v41, %v10776_v40 }
 0x83e   : > { %v5787_v23 = vmul.f32 %v5786_v39, %v10674_v25  ;;  %v5788_v0 = vmul.f32 %v5786_v39, %v10691_v21  ;;  %v5845_v2 = vstv %s11081_s22  ;;  %v5743_v51 = vrot.slane %v5737_v19, 3  ;;  %s11230_s22 = sld [smem:[#allocation9 + $0x50]] }
 0x83f   : > { %v5766_v54 = vadd.f32 %v5763_v35, %v5758_v29  ;;  %v5792_v36 = vmul.f32 %v5791_v60, %v10682_v7  ;;  %v5789_v11 = vmul.f32 %v5786_v39, %v10776_v40  ;;  %v5718_v42 = vsel %vm5630_vm13, %v5715_v52, %v5717_v27 }
 0x840   : > { %5579 = vrot.lane.b32.xlu1 %v5576_v56, %s7597_s3  ;;  %5606 = vrot.lane.b32.xlu0 %v5603_v24, %s7598_s15  ;;  %v5739_v56 = vadd.f32 %v5736_v4, %v5731_v30  ;;  %v5793_v24 = vmul.f32 %v5791_v60, %v10699_v1  ;;  %v5794_v41 = vmul.f32 %v5791_v60, %v10754_v5  ;;  %v5773_v18 = vrot.slane %v5767_v59, 3 }
 0x841   : > { %v5745_v32 = vsel %vm5630_vm13, %v5743_v51, %v5744_v33  ;;  %v5768_v12 = vadd.f32 %v5765_v44, %v5760_v43  ;;  %v5842_v39 = vmul.f32 %v11079_v38, %v10691_v21  ;;  %v5846_v57 = vmul.f32 %v5845_v2, %v10682_v7 }
 0x842   : > { %v5746_v37 = vrot.slane %v5739_v56, 3  ;;  %v5848_v62 = vmul.f32 %v5845_v2, %v10754_v5  ;;  %v5874_v46 = vstv %s11102_s16  ;;  %v5772_v9 = vrot.slane %v5766_v54, 3  ;;  %s11233_s16 = sld [smem:[#allocation9 + $0x4b]] }
 0x843   : > { %v5795_v47 = vadd.f32 %v5792_v36, %v5787_v23  ;;  %v5841_v14 = vmul.f32 %v11079_v38, %v10674_v25  ;;  %v11147_v26 = vstv %s11112_s0  ;;  %v5797_v34 = vadd.f32 %v5794_v41, %v5789_v11  ;;  %s11251_s0 = sld [smem:[#allocation9 + $0x4d]] }
 0x844   : > { %5608 = vrot.lane.b32.xlu1 %v5605_v53, %s7598_s15  ;;  %5661 = vrot.lane.b32.xlu0 %v5658_v50, %s12106_s19  ;;  %v5847_v53 = vmul.f32 %v5845_v2, %v10699_v1  ;;  %v5796_v50 = vadd.f32 %v5793_v24, %v5788_v0  ;;  %v5747_v8 = vsel %vm5630_vm13, %v5744_v33, %v5746_v37  ;;  %v5775_v4 = vrot.slane %v5768_v12, 3 }
 0x845   : > { %v5843_v52 = vmul.f32 %v11079_v38, %v10776_v40  ;;  %v5774_v6 = vsel %vm5630_vm13, %v5772_v9, %v5773_v18  ;;  %v5849_v16 = vadd.f32 %v5846_v57, %v5841_v14  ;;  %v5875_v3 = vmul.f32 %v5874_v46, %v10682_v7 }
 0x846   : > { %v5850_v45 = vadd.f32 %v5847_v53, %v5842_v39  ;;  %v11162_v30 = vstv %s11118_s4  ;;  %v5801_v38 = vrot.slane %v5795_v47, 3  ;;  %v5871_v60 = vmul.f32 %v11084_v10, %v10691_v21  ;;  %s11270_s4 = sld [smem:[#allocation9 + $0x52]] }
 0x847   : > { %v5851_v28 = vadd.f32 %v5848_v62, %v5843_v52  ;;  %v5903_v19 = vstv %s11131_s14  ;;  %v11170_v29 = vstv %s11127_s5  ;;  %v5804_v31 = vrot.slane %v5797_v34, 3  ;;  %s11276_s5 = sld [smem:[#allocation9 + $0x4f]] }
 0x848   : > { %5663 = vrot.lane.b32.xlu1 %v5660_v55, %s12106_s19  ;;  %5690 = vrot.lane.b32.xlu0 %v5687_v20, %s7594_s2  ;;  %v5802_v55 = vrot.slane %v5796_v50, 3  ;;  %v5876_v20 = vmul.f32 %v5874_v46, %v10699_v1  ;;  %v5856_v35 = vrot.slane %v5850_v45, 4  ;;  %v5776_v27 = vsel %vm5630_vm13, %v5773_v18, %v5775_v4  ;;  %s11291_s14 = sld [smem:[#allocation9 + $0x56]] }
 0x849   : > { %v5905_v59 = vmul.f32 %v5903_v19, %v10699_v1  ;;  %v5855_v44 = vrot.slane %v5849_v16, 4  ;;  %v5858_v24 = vrot.slane %v5851_v28, 4  ;;  %v5872_v23 = vmul.f32 %v11084_v10, %v10776_v40 }
 0x84a   : > { %v5803_v56 = vsel %vm5630_vm13, %v5801_v38, %v5802_v55  ;;  %v5879_v33 = vadd.f32 %v5876_v20, %v5871_v60  ;;  %v5900_v0 = vmul.f32 %v11105_v17, %v10691_v21  ;;  %v5904_v2 = vmul.f32 %v5903_v19, %v10682_v7  ;;  %v11235_v38 = vld [vmem:[#allocation4] sm:$0xff] }
 0x84b   : > { %v5906_v51 = vmul.f32 %v5903_v19, %v10754_v5  ;;  %v5932_v54 = vstv %s11149_s17  ;;  %v5805_v36 = vsel %vm5630_vm13, %v5802_v55, %v5804_v31  ;;  %v5857_v11 = vsel %vm4308_vm6, %v5855_v44, %v5856_v35  ;;  %v11256_v44 = vld [vmem:[#allocation4 + $0x8] sm:$0xff]  ;;  %s11300_s17 = sld [smem:[#allocation9 + $0x51]] }
 0x84c   : > { %5692 = vrot.lane.b32.xlu1 %v5689_v15, %s7594_s2  ;;  %5719 = vrot.lane.b32.xlu0 %v5716_v49, %s7595_s18  ;;  %v5870_v15 = vmul.f32 %v11084_v10, %v10674_v25  ;;  %v5877_v49 = vmul.f32 %v5874_v46, %v10754_v5  ;;  %v5899_v10 = vmul.f32 %v11105_v17, %v10674_v25  ;;  %v5885_v37 = vrot.slane %v5879_v33, 4 }
 0x84d   : > { %v5908_v41 = vadd.f32 %v5905_v59, %v5900_v0  ;;  %v5901_v53 = vmul.f32 %v11105_v17, %v10776_v40  ;;  %v5859_v18 = vsel %vm4308_vm6, %v5856_v35, %v5858_v24  ;;  %v5961_v50 = vstv %s11164_s24  ;;  %s11338_s24 = sld [smem:[#allocation9 + $0x58]] }
 0x84e   : > { %v5878_v43 = vadd.f32 %v5875_v3, %v5870_v15  ;;  %v11205_v39 = vstv %s11156_s20  ;;  %v5907_v57 = vadd.f32 %v5904_v2, %v5899_v10  ;;  %v5929_v17 = vmul.f32 %v11147_v26, %v10691_v21  ;;  %v11243_v15 = vld [vmem:[#allocation4 + $0x20] sm:$0xff]  ;;  %s11319_s20 = sld [smem:[#allocation9 + $0x53]] }
 0x84f   : > { %v5909_v62 = vadd.f32 %v5906_v51, %v5901_v53  ;;  %v5933_v46 = vmul.f32 %v5932_v54, %v10682_v7  ;;  %v5928_v47 = vmul.f32 %v11147_v26, %v10674_v25  ;;  %v5935_v14 = vmul.f32 %v5932_v54, %v10754_v5 }
 0x850   : > { %5721 = vrot.lane.b32.xlu1 %v5718_v42, %s7595_s18  ;;  %5748 = vrot.lane.b32.xlu0 %v5745_v32, %s7596_s1  ;;  %v5880_v42 = vadd.f32 %v5877_v49, %v5872_v23  ;;  %v5934_v32 = vmul.f32 %v5932_v54, %v10699_v1  ;;  %v5884_v12 = vrot.slane %v5878_v43, 4  ;;  %v5914_v45 = vrot.slane %v5908_v41, 4  ;;  %v11260_v43 = vld [vmem:[#allocation4 + $0x18] sm:$0xff] }
 0x851   : > { %v5958_v4 = vmul.f32 %v11162_v30, %v10691_v21  ;;  %v5962_v25 = vmul.f32 %v5961_v50, %v10682_v7  ;;  %v5964_v55 = vmul.f32 %v5961_v50, %v10754_v5  ;;  %v11228_v20 = vstv %s11182_s30  ;;  %s11350_s30 = sld [smem:[#allocation9 + $0x5a]] }
 0x852   : > { %v5887_v9 = vrot.slane %v5880_v42, 4  ;;  %v5886_v34 = vsel %vm4308_vm6, %v5884_v12, %v5885_v37  ;;  %v5937_v52 = vadd.f32 %v5934_v32, %v5929_v17  ;;  %v5916_v16 = vrot.slane %v5909_v62, 4 }
 0x853   : > { %v5936_v28 = vadd.f32 %v5933_v46, %v5928_v47  ;;  %v5990_v3 = vstv %s11189_s12  ;;  %v5957_v7 = vmul.f32 %v11235_v38, %v11162_v30  ;;  %v5959_v60 = vmul.f32 %v11162_v30, %v10776_v40  ;;  %s11355_s12 = sld [smem:[#allocation9 + $0x57]] }
 0x854   : > { %5750 = vrot.lane.b32.xlu1 %v5747_v8, %s7596_s1  ;;  %5777 = vrot.lane.b32.xlu0 %v5774_v6, %s7597_s3  ;;  %v5963_v8 = vmul.f32 %v5961_v50, %v10699_v1  ;;  %v5930_v6 = vmul.f32 %v11147_v26, %v10776_v40  ;;  %v5913_v1 = vrot.slane %v5907_v57, 4  ;;  %v5888_v19 = vsel %vm4308_vm6, %v5885_v37, %v5887_v9 }
 0x855   : > { %v5943_v35 = vrot.slane %v5937_v52, 4  ;;  %v5992_v49 = vmul.f32 %v11243_v15, %v5990_v3  ;;  %v11249_v33 = vstv %s11198_s13  ;;  %v11254_v30 = vstv %s11207_s23  ;;  %s11378_s13 = sld [smem:[#allocation9 + $0x59]] }
 0x856   : > { %v5938_v26 = vadd.f32 %v5935_v14, %v5930_v6  ;;  %v5966_v21 = vadd.f32 %v5963_v8, %v5958_v4  ;;  %v5915_v31 = vsel %vm4308_vm6, %v5913_v1, %v5914_v45  ;;  %v5942_v59 = vrot.slane %v5936_v28, 4  ;;  %s11396_s23 = sld [smem:[#allocation9 + $0x5b]] }
 0x857   : > { %v5987_v24 = vmul.f32 %v11256_v44, %v11170_v29  ;;  %v5991_v23 = vmul.f32 %v11260_v43, %v5990_v3  ;;  %v6045_v0 = vstv %s11212_s25  ;;  %v5917_v2 = vsel %vm4308_vm6, %v5914_v45, %v5916_v16  ;;  %s11414_s25 = sld [smem:[#allocation9 + $0x5c]] }
 0x858   : > { %5779 = vrot.lane.b32.xlu1 %v5776_v27, %s7597_s3  ;;  %5806 = vrot.lane.b32.xlu0 %v5803_v56, %s7598_s15  ;;  %v5965_v27 = vadd.f32 %v5962_v25, %v5957_v7  ;;  %v5967_v56 = vadd.f32 %v5964_v55, %v5959_v60  ;;  %v5945_v51 = vrot.slane %v5938_v26, 4  ;;  %v5972_v54 = vrot.slane %v5966_v21, 4 }
 0x859   : > { %v5986_v42 = vmul.f32 %v11235_v38, %v11170_v29  ;;  %v5995_v10 = vadd.f32 %v5992_v49, %v5987_v24  ;;  %v6047_v37 = vmul.f32 %v11243_v15, %v6045_v0  ;;  %v5988_v32 = vmul.f32 %v11170_v29, %v10776_v40 }
 0x85a   : > { %v5971_v41 = vrot.slane %v5965_v27, 4  ;;  %v5974_v53 = vrot.slane %v5967_v56, 4  ;;  %v6042_v50 = vmul.f32 %v11256_v44, %v11205_v39  ;;  %v6046_v57 = vmul.f32 %v11260_v43, %v6045_v0 }
 0x85b   : > { %v5994_v12 = vadd.f32 %v5991_v23, %v5986_v42  ;;  %v6074_v62 = vstv %s11233_s16  ;;  %v5946_v17 = vsel %vm4308_vm6, %v5943_v35, %v5945_v51  ;;  %v6048_v47 = vmul.f32 %v6045_v0, %v10754_v5  ;;  %v11331_v51 = vld [vmem:[#allocation4 + $0x28] sm:$0x3f]  ;;  %s11439_s16 = sld [smem:[#allocation9 + $0x1]] }
 0x85c   : > { %5808 = vrot.lane.b32.xlu1 %v5805_v36, %s7598_s15  ;;  %5860 = vrot.lane.b32.xlu0 %v5857_v11, %s12106_s19  ;;  %v5993_v36 = vmul.f32 %v5990_v3, %v10754_v5  ;;  %v5944_v11 = vsel %vm4308_vm6, %v5942_v59, %v5943_v35  ;;  %v5973_v46 = vsel %vm4308_vm6, %v5971_v41, %v5972_v54  ;;  %v6001_v29 = vrot.slane %v5995_v10, 4  ;;  %v11342_v41 = vld [vmem:[#allocation4 + $0x10] sm:$0x3f] }
 0x85d   : > { %v6041_v14 = vmul.f32 %v11235_v38, %v11205_v39  ;;  %v6050_v8 = vadd.f32 %v6047_v37, %v6042_v50  ;;  %v5975_v45 = vsel %vm4308_vm6, %v5972_v54, %v5974_v53  ;;  %v6043_v52 = vmul.f32 %v11205_v39, %v10776_v40 }
 0x85e   : > { %v5996_v9 = vadd.f32 %v5993_v36, %v5988_v32  ;;  %v6077_v6 = vmul.f32 %v6074_v62, %v10754_v5  ;;  %v6103_v4 = vstv %s11251_s0  ;;  %v6000_v25 = vrot.slane %v5994_v12, 4  ;;  %s11450_s0 = sld [smem:[#allocation9 + $0x5f]] }
 0x85f   : > { %v6049_v55 = vadd.f32 %v6046_v57, %v6041_v14  ;;  %v6071_v1 = vmul.f32 %v11256_v44, %v11228_v20  ;;  %v6075_v16 = vmul.f32 %v11260_v43, %v6074_v62  ;;  %v6051_v26 = vadd.f32 %v6048_v47, %v6043_v52 }
 0x860   : > { %5862 = vrot.lane.b32.xlu1 %v5859_v18, %s12106_s19  ;;  %5889 = vrot.lane.b32.xlu0 %v5886_v34, %s7594_s2  ;;  %v11279_v18 = vstv %s11230_s22  ;;  %v6076_v34 = vmul.f32 %v11243_v15, %v6074_v62  ;;  %v6003_v3 = vrot.slane %v5996_v9, 4  ;;  %v6070_v39 = vmul.f32 %v11235_v38, %v11228_v20  ;;  %s11421_s22 = sld [smem:[#allocation9 + $0x5d]] }
 0x861   : > { %v6072_v5 = vmul.f32 %v11228_v20, %v10776_v40  ;;  %v6002_v7 = vsel %vm4308_vm6, %v6000_v25, %v6001_v29  ;;  %v6056_v21 = vrot.slane %v6050_v8, 5  ;;  %v6132_v35 = vstv %s11276_s5  ;;  %s11470_s5 = sld [smem:[#allocation9 + $0x60]] }
 0x862   : > { %v6079_v60 = vadd.f32 %v6076_v34, %v6071_v1  ;;  %v11317_v49 = vstv %s11270_s4  ;;  %v6055_v27 = vrot.slane %v6049_v55, 5  ;;  %v6078_v56 = vadd.f32 %v6075_v16, %v6070_v39  ;;  %s11461_s4 = sld [smem:[#allocation9 + $0x5e]] }
 0x863   : > { %v6100_v40 = vmul.f32 %v11256_v44, %v11249_v33  ;;  %v6104_v20 = vmul.f32 %v11260_v43, %v6103_v4  ;;  %v6004_v23 = vsel %vm4308_vm6, %v6001_v29, %v6003_v3  ;;  %v6058_v0 = vrot.slane %v6051_v26, 5 }
 0x864   : > { %5891 = vrot.lane.b32.xlu1 %v5888_v19, %s7594_s2  ;;  %5918 = vrot.lane.b32.xlu0 %v5915_v31, %s7595_s18  ;;  %v6105_v19 = vmul.f32 %v11243_v15, %v6103_v4  ;;  %v6080_v31 = vadd.f32 %v6077_v6, %v6072_v5  ;;  %v6106_v54 = vmul.f32 %v11331_v51, %v6103_v4  ;;  %v6161_v32 = vstv %s11300_s17  ;;  %s11488_s17 = sld [smem:[#allocation9]] }
 0x865   : > { %v6057_v36 = vsel %vm12107_vm14, %v6055_v27, %v6056_v21  ;;  %v6134_v10 = vmul.f32 %v11243_v15, %v6132_v35  ;;  %v6101_v53 = vmul.f32 %v11342_v41, %v11249_v33  ;;  %v11348_v12 = vstv %s11291_s14  ;;  %vm12117_vm14 = vmmov %vm12114_vm1  ;;  %s11483_s14 = sld [smem:[#allocation9 + $0x61]] }
 0x866   : > { %v11335_v42 = vadd.f32 %v6105_v19, %v6100_v40  ;;  %v6087_v37 = vrot.slane %v6080_v31, 5  ;;  %v6084_v50 = vrot.slane %v6078_v56, 5  ;;  %v6129_v62 = vmul.f32 %v11256_v44, %v11254_v30 }
 0x867   : > { %v6109_v47 = vadd.f32 %v6106_v54, %v6101_v53  ;;  %v6128_v29 = vmul.f32 %v11235_v38, %v11254_v30  ;;  %v6135_v14 = vmul.f32 %v11331_v51, %v6132_v35  ;;  %v6163_v52 = vmul.f32 %v11243_v15, %v6161_v32 }
 0x868   : > { %5920 = vrot.lane.b32.xlu1 %v5917_v2, %s7595_s18  ;;  %5947 = vrot.lane.b32.xlu0 %v5944_v11, %s7596_s1  ;;  %v6099_v2 = vmul.f32 %v11235_v38, %v11249_v33  ;;  %v6085_v11 = vrot.slane %v6079_v60, 5  ;;  %v6059_v33 = vsel %vm12108_vm2, %v6056_v21, %v6058_v0  ;;  %v6114_v34 = vrot.slane %v11335_v42, 5  ;;  %vm12118_vm2 = vmmov %vm12114_vm1 }
 0x869   : > { %v6130_v4 = vmul.f32 %v11342_v41, %v11254_v30  ;;  %v6164_v25 = vmul.f32 %v11331_v51, %v6161_v32  ;;  %v6190_v55 = vstv %s11319_s20  ;;  %v6158_v3 = vmul.f32 %v11256_v44, %v11279_v18  ;;  %s7006_s20 = sld [smem:[#allocation9 + $0xe]] }
 0x86a   : > { %v6107_v57 = vadd.f32 %v6104_v20, %v6099_v2  ;;  %v6086_v8 = vsel %vm12109_vm4, %v6084_v50, %v6085_v11  ;;  %v6088_v6 = vsel %vm12110_vm3, %v6085_v11, %v6087_v37  ;;  %v6162_v26 = vmul.f32 %v11260_v43, %v6161_v32 }
 0x86b   : > { %v6138_v21 = vadd.f32 %v6135_v14, %v6130_v4  ;;  %v6159_v30 = vmul.f32 %v11342_v41, %v11279_v18  ;;  %v6192_v60 = vmul.f32 %v11243_v15, %v6190_v55  ;;  %v6166_v27 = vadd.f32 %v6163_v52, %v6158_v3 }
 0x86c   : > { %5949 = vrot.lane.b32.xlu1 %v5946_v17, %s7596_s1  ;;  %5976 = vrot.lane.b32.xlu0 %v5973_v46, %s7597_s3  ;;  %v6133_v17 = vmul.f32 %v11260_v43, %v6132_v35  ;;  %v6113_v1 = vrot.slane %v6107_v57, 5  ;;  %v6157_v35 = vmul.f32 %v11235_v38, %v11279_v18  ;;  %v6187_v40 = vmul.f32 %v11256_v44, %v11317_v49 }
 0x86d   : > { %v6167_v56 = vadd.f32 %v6164_v25, %v6159_v30  ;;  %v6191_v20 = vmul.f32 %v11260_v43, %v6190_v55  ;;  %v6245_v54 = vstv %s11355_s12  ;;  %v6145_v42 = vrot.slane %v6138_v21, 5  ;;  %s7062_s12 = sld [smem:[#allocation9 + $0x46]] }
 0x86e   : > { %v11305_v28 = vpop.permute.xlu1 %5106  ;;  %v6136_v16 = vadd.f32 %v6133_v17, %v6128_v29  ;;  %v6115_v19 = vsel %vm12111_vm7, %v6113_v1, %v6114_v34  ;;  %v6165_v2 = vadd.f32 %v6162_v26, %v6157_v35  ;;  %v11408_v37 = vadd.f32 %v6192_v60, %v6187_v40 }
 0x86f   : > { %v6193_v53 = vmul.f32 %v11331_v51, %v6190_v55  ;;  %v6172_v57 = vrot.slane %v6166_v27, 5  ;;  %v6174_v17 = vrot.slane %v6167_v56, 5  ;;  %v6246_v29 = vmul.f32 %v11260_v43, %v6245_v54 }
 0x870   : > { %5978 = vrot.lane.b32.xlu1 %v5975_v45, %s7597_s3  ;;  %6005 = vrot.lane.b32.xlu0 %v6002_v7, %s7598_s15  ;;  %v6137_v45 = vadd.f32 %v6134_v10, %v6129_v62  ;;  %v6116_v7 = vrot.slane %v6109_v47, 5  ;;  %v6142_v0 = vrot.slane %v6136_v16, 5  ;;  %v6186_v10 = vmul.f32 %v11235_v38, %v11317_v49 }
 0x871   : > { %v6247_v62 = vmul.f32 %v11243_v15, %v6245_v54  ;;  %v6188_v47 = vmul.f32 %v11342_v41, %v11317_v49  ;;  %v6171_v14 = vrot.slane %v6165_v2, 5  ;;  %v6201_v4 = vrot.slane %v11408_v37, 5 }
 0x872   : > { %v11324_v59 = vpop.permute.xlu1 %5126  ;;  %v11326_v24 = vpop.permute.xlu0 %5108  ;;  %v6143_v31 = vrot.slane %v6137_v45, 5  ;;  %v6117_v32 = vsel %vm12112_vm8, %v6114_v34, %v6116_v7  ;;  %v6274_v34 = vstv %s11378_s13  ;;  %v6241_v25 = vmul.f32 %v11235_v38, %v11348_v12  ;;  %s7077_s13 = sld [smem:[#allocation9 + $0x55]] }
 0x873   : > { %v6196_v49 = vadd.f32 %v6193_v53, %v6188_v47  ;;  %v6173_v55 = vsel %vm12115_vm5, %v6171_v14, %v6172_v57  ;;  %v6248_v16 = vmul.f32 %v11331_v51, %v6245_v54  ;;  %v6276_v3 = vmul.f32 %v11243_v15, %v6274_v34 }
 0x874   : > { %6007 = vrot.lane.b32.xlu1 %v6004_v23, %s7598_s15  ;;  %6060 = vrot.lane.b32.xlu0 %v6057_v36, %s12106_s19  ;;  %v6269_v23 = vstv %s11338_s24  ;;  %v11400_v36 = vstv %s11350_s30  ;;  %v6144_v50 = vsel %vm12113_vm11, %v6142_v0, %v6143_v31  ;;  %v6175_v26 = vsel %vm12116_vm9, %v6172_v57, %v6174_v17  ;;  %s7048_s24 = sld [smem:[#allocation9 + $0x38]] }
 0x875   : > { %v6249_v21 = vadd.f32 %v6246_v29, %v6241_v25  ;;  %v6303_v30 = vstv %s11396_s23  ;;  %v6243_v60 = vmul.f32 %v11342_v41, %v11348_v12  ;;  %v6277_v35 = vmul.f32 %v11331_v51, %v6274_v34  ;;  %s7063_s30 = sld [smem:[#allocation9 + $0x47]] }
 0x876   : > { %v11357_v46 = vpop.permute.xlu1 %5128  ;;  %v11359_v9 = vpop.permute.xlu0 %5146  ;;  %v6270_v0 = vmul.f32 %v11235_v38, %v6269_v23  ;;  %v6300_v37 = vmul.f32 %v11256_v44, %v11400_v36  ;;  %v6304_v53 = vmul.f32 %v11260_v43, %v6303_v30  ;;  %v6299_v14 = vmul.f32 %v11235_v38, %v11400_v36  ;;  %s7076_s23 = sld [smem:[#allocation9 + $0x54]] }
 0x877   : > { %v6251_v54 = vadd.f32 %v6248_v16, %v6243_v60  ;;  %v6255_v57 = vrot.slane %v6249_v21, 6 }
 0x878   : > { %6062 = vrot.lane.b32.xlu1 %v6059_v33, %s12106_s19  ;;  %6089 = vrot.lane.b32.xlu0 %v6086_v8, %s7594_s2  ;;  %v6194_v33 = vadd.f32 %v6191_v20, %v6186_v10  ;;  %v6242_v8 = vmul.f32 %v11256_v44, %v11348_v12  ;;  %v6203_v20 = vrot.slane %v6196_v49, 5  ;;  %v6305_v12 = vmul.f32 %v11243_v15, %v6303_v30 }
 0x879   : > { %v6272_v10 = vmul.f32 %v11342_v41, %v6269_v23  ;;  %v6258_v49 = vrot.slane %v6251_v54, 6 }
 0x87a   : > { %v11380_v39 = vpop.permute.xlu1 %5148  ;;  %v11382_v5 = vpop.permute.xlu0 %5166  ;;  %v11435_v1 = vadd.f32 %v6247_v62, %v6242_v8  ;;  %v6200_v7 = vrot.slane %v6194_v33, 5  ;;  %v6204_v29 = vsel %vm12118_vm2, %v6201_v4, %v6203_v20  ;;  %v11480_v8 = vadd.f32 %v6305_v12, %v6300_v37 }
 0x87b   : > { %v6280_v17 = vadd.f32 %v6277_v35, %v6272_v10  ;;  %v6356_v12 = vstv %s11461_s4  ;;  %s12150_s4 = sld [smem:[#allocation18_spill]] }
 0x87c   : > { %6091 = vrot.lane.b32.xlu1 %v6088_v6, %s7594_s2  ;;  %6118 = vrot.lane.b32.xlu0 %v6115_v19, %s7595_s18  ;;  %v6146_v6 = vsel %vm12114_vm1, %v6143_v31, %v6145_v42  ;;  %v6271_v19 = vmul.f32 %v11256_v44, %v6269_v23  ;;  %v6275_v31 = vmul.f32 %v11260_v43, %v6274_v34  ;;  %v6256_v2 = vrot.slane %v11435_v1, 6 }
 0x87d   : > { %v6202_v40 = vsel %vm12117_vm14, %v6200_v7, %v6201_v4  ;;  %v6306_v23 = vmul.f32 %v11331_v51, %v6303_v30  ;;  %v5087_v4 = vstv %s11439_s16  ;;  %v6307_v1 = vadd.f32 %v6304_v53, %v6299_v14  ;;  %s7130_s16 = sshll.u32 %s7693_s29, 12  ;;  %s6730_s29 = scalar_lea.sflag [#allocation7], %s7792_s27 }
 0x87e   : > { %v11402_v18 = vpop.permute.xlu1 %5168  ;;  %v11404_v11 = vpop.permute.xlu0 %5186  ;;  %v6279_v42 = vadd.f32 %v6276_v3, %v6271_v19  ;;  %v6278_v62 = vadd.f32 %v6275_v31, %v6270_v0  ;;  %v6287_v7 = vrot.slane %v6280_v17, 6  ;;  %v6361_v30 = vstv %s11450_s0 }
 0x87f   : > { %v6314_v19 = vrot.slane %v11480_v8, 6  ;;  %v6259_v20 = vsel %vm6229_vm15, %v6256_v2, %v6258_v49  ;;  %v6363_v54 = vmul.f32 %v11243_v15, %v6361_v30  ;;  %v6385_v53 = vstv %s11470_s5 }
 0x880   : > { %6120 = vrot.lane.b32.xlu1 %v6117_v32, %s7595_s18  ;;  %6147 = vrot.lane.b32.xlu0 %v6144_v50, %s7596_s1  ;;  %v6327_v32 = vstv %s11414_s25  ;;  %v6332_v50 = vstv %s11421_s22  ;;  %v6285_v25 = vrot.slane %v6279_v42, 6  ;;  %v6313_v42 = vrot.slane %v6307_v1, 6  ;;  %s12121_s25 = sshll.u32 %s7792_s27, 8 }
 0x881   : > { %v6334_v34 = vmul.f32 %v11243_v15, %v6332_v50  ;;  %v6329_v16 = vmul.f32 %v11256_v44, %v6327_v32  ;;  %v6333_v3 = vmul.f32 %v11260_v43, %v6332_v50  ;;  %v6328_v31 = vmul.f32 %v11235_v38, %v6327_v32  ;;  %s11752_s22 = scalar_lea.vmem [#allocation10], %s12121_s25  ;;  %p12152_p0 = scmp.ne.s32.totalorder %s12150_s4, 0 }
 0x882   : > { %v11426_v45 = vpop.permute.xlu1 %5188  ;;  %v11428_v52 = vpop.permute.xlu0 %5206  ;;  %v6330_v37 = vmul.f32 %v11342_v41, %v6327_v32  ;;  %v6357_v32 = vmul.f32 %v11235_v38, %v6356_v12  ;;  %v6364_v49 = vmul.f32 %v11331_v51, %v6361_v30  ;;  %v5088_v1 = vmul.f32 %v11260_v43, %v5087_v4  ;;  %s6743_s0 = sshll.u32 %s11752_s22, 4  ;;  %s11879_s0 = int_to_ptr.vmem [resolvable:$true] %s6743_s0 }
 0x883   : > { %v6337_v35 = vadd.f32 %v6334_v34, %v6329_v16  ;;  %v6336_v10 = vadd.f32 %v6333_v3, %v6328_v31  ;;  %v6390_v34 = vstv %s11483_s14 }
 0x884   : > { %6149 = vrot.lane.b32.xlu1 %v6146_v6, %s7596_s1  ;;  %6176 = vrot.lane.b32.xlu0 %v6173_v55, %s7597_s3  ;;  %v6257_v6 = vsel %vm6229_vm15, %v6255_v57, %v6256_v2  ;;  %v6301_v55 = vmul.f32 %v11342_v41, %v11400_v36  ;;  %v6358_v57 = vmul.f32 %v11256_v44, %v6356_v12 }
 0x885   : > { %v6343_v14 = vrot.slane %v6337_v35, 6  ;;  %v6342_v16 = vrot.slane %v6336_v10, 6 }
 0x886   : > { %v11452_v27 = vpop.permute.xlu1 %5208  ;;  %v11454_v56 = vpop.permute.xlu0 %5261  ;;  %v6309_v21 = vadd.f32 %v6306_v23, %v6301_v55  ;;  %v5083_v55 = vstv %s11488_s17  ;;  %s12151_s17 = sld [smem:[#allocation55_spill]] }
 0x888   : > { %6178 = vrot.lane.b32.xlu1 %v6175_v26, %s7597_s3  ;;  %6205 = vrot.lane.b32.xlu0 %v6202_v40, %s7598_s15  ;;  %v6284_v26 = vrot.slane %v6278_v62, 6  ;;  %v6335_v40 = vmul.f32 %v11331_v51, %v6332_v50  ;;  %v6288_v50 = vsel %vm6229_vm15, %v6285_v25, %v6287_v7  ;;  %v6316_v2 = vrot.slane %v6309_v21, 6 }
 0x889   : > { %v6362_v62 = vmul.f32 %v11260_v43, %v6361_v30  ;;  %v6387_v7 = vmul.f32 %v11256_v44, %v6385_v53  ;;  %v6391_v21 = vmul.f32 %v11260_v43, %v6390_v34 }
 0x88a   : > { %v11473_v33 = vpop.permute.xlu1 %5263  ;;  %v11475_v47 = vpop.permute.xlu0 %5290  ;;  %v6286_v0 = vsel %vm6229_vm15, %v6284_v26, %v6285_v25  ;;  %v6338_v8 = vadd.f32 %v6335_v40, %v6330_v37  ;;  %v6392_v25 = vmul.f32 %v11243_v15, %v6390_v34  ;;  %v6359_v26 = vmul.f32 %v11342_v41, %v6356_v12 }
 0x88b   : > { %v6365_v3 = vadd.f32 %v6362_v62, %v6357_v32  ;;  %v6317_v35 = vsel %vm6229_vm15, %v6314_v19, %v6316_v2  ;;  %v6344_v40 = vsel %vm6229_vm15, %v6342_v16, %v6343_v14  ;;  %v6393_v12 = vmul.f32 %v11331_v51, %v6390_v34 }
 0x88c   : > { %6207 = vrot.lane.b32.xlu1 %v6204_v29, %s7598_s15  ;;  %6260 = vrot.lane.b32.xlu0 %v6257_v6, %s12106_s19  ;;  %v6315_v29 = vsel %vm6229_vm15, %v6313_v42, %v6314_v19  ;;  %v6366_v6 = vadd.f32 %v6363_v54, %v6358_v57  ;;  %v6367_v42 = vadd.f32 %v6364_v49, %v6359_v26 }
 0x88d   : > { %v6395_v10 = vadd.f32 %v6392_v25, %v6387_v7  ;;  %v5084_v37 = vmul.f32 %v11235_v38, %v5083_v55  ;;  %v6388_v2 = vmul.f32 %v11342_v41, %v6385_v53 }
 0x88e   : > { %v11496_v60 = vpop.permute.xlu1 %5292  ;;  %v11498_v36 = vpop.permute.xlu0 %5319  ;;  %v6372_v54 = vrot.slane %v6366_v6, 6  ;;  %v6374_v32 = vrot.slane %v6367_v42, 6 }
 0x88f   : > { %v5090_v57 = vadd.f32 %v5088_v1, %v5084_v37  ;;  %v6401_v6 = vrot.slane %v6395_v10, 6  ;;  %v6396_v49 = vadd.f32 %v6393_v12, %v6388_v2  ;;  %v5215_v1 = vstv %s7006_s20  ;;  %s7509_s20 = scalar_lea.vmem %s11879_s0, 4096 }
 0x890   : > { %6262 = vrot.lane.b32.xlu1 %v6259_v20, %s12106_s19  ;;  %6289 = vrot.lane.b32.xlu0 %v6286_v0, %s7594_s2  ;;  %s11529_s19 = sld [smem:[#allocation9 + $0xf]]  ;;  %v6345_v20 = vrot.slane %v6338_v8, 6  ;;  %v6386_v0 = vmul.f32 %v11235_v38, %v6385_v53  ;;  %v5216_v42 = vmul.f32 %v11235_v38, %v5215_v1  ;;  %p7510_p12 = scmp.ne.s32.totalorder %s11879_s0, %s7509_s20 }
 0x891   : > { %v5112_v25 = vadd.f32 %v11305_v28, %v5090_v57 }
 0x892   : > { %v11514_v17 = vpop.permute.xlu1 %5321  ;;  %v11516_v23 = vpop.permute.xlu0 %5348  ;;  %v6394_v19 = vadd.f32 %v6391_v21, %v6386_v0  ;;  %v6346_v8 = vsel %vm6229_vm15, %v6343_v14, %v6345_v20  ;;  %v6375_v21 = vsel %vm6229_vm15, %v6372_v54, %v6374_v32  ;;  %v5217_v20 = vmul.f32 %v11256_v44, %v5215_v1  ;;  %p7511_p2 = pnand %p7510_p12, %p12152_p0 }
 0x893   : > { %v5132_v14 = vadd.f32 %v11324_v59, %v5112_v25 }
 0x894   : > { %6291 = vrot.lane.b32.xlu1 %v6288_v50, %s7594_s2  ;;  %6318 = vrot.lane.b32.xlu0 %v6315_v29, %s7595_s18  ;;  %v6371_v50 = vrot.slane %v6365_v3, 6  ;;  %v6400_v53 = vrot.slane %v6394_v19, 6  ;;  %s7021_s2 = sld [smem:[#allocation9 + $0x1d]]  ;;  %p7512_p7 = pneg %p7511_p2 }
 0x895   : > { %v5152_v0 = vadd.f32 %v11359_v9, %v5132_v14 }
 0x896   : > { %v11534_v30 = vpop.permute.xlu1 %5350  ;;  %v11536_v31 = vpop.permute.xlu0 %5377  ;;  %v6373_v34 = vsel %vm6229_vm15, %v6371_v50, %v6372_v54  ;;  %v5220_v16 = vstv %s11529_s19  ;;  %s11877_s19 = scalar_lea.hbm %s12151_s17, %s7130_s16 }
 0x897   : > { %v5222_v3 = vmul.f32 %v11243_v15, %v5220_v16  ;;  %v5221_v28 = vmul.f32 %v11260_v43, %v5220_v16  ;;  %v5172_v12 = vadd.f32 %v11382_v5, %v5152_v0 }
 0x898   : > { %6320 = vrot.lane.b32.xlu1 %v6317_v35, %s7595_s18  ;;  %6347 = vrot.lane.b32.xlu0 %v6344_v40, %s7596_s1  ;;  %v6402_v35 = vsel %vm6229_vm15, %v6400_v53, %v6401_v6  ;;  %v6403_v40 = vrot.slane %v6396_v49, 6  ;;  %s7020_s18 = sld [smem:[#allocation9 + $0x1c]] }
 0x899   : > { %v11572_v10 = vadd.f32 %v5222_v3, %v5217_v20  ;;  %v5224_v50 = vadd.f32 %v5221_v28, %v5216_v42  ;;  %v5192_v19 = vadd.f32 %v11404_v11, %v5172_v12  ;;  %v5089_v11 = vmul.f32 %v11243_v15, %v5087_v4 }
 0x89a   : > { %v11548_v62 = vpop.permute.xlu1 %5379  ;;  %v11550_v29 = vpop.permute.xlu0 %5406  ;;  %v6404_v37 = vsel %vm6229_vm15, %v6401_v6, %v6403_v40  ;;  %v5420_v14 = vstv %s7021_s2 }
 0x89b   : > { %v5232_v9 = vrot.slane %v11572_v10, 1  ;;  %v5421_v4 = vmul.f32 %v11260_v43, %v5420_v14 }
 0x89c   : > { %6349 = vrot.lane.b32.xlu1 %v6346_v8, %s7596_s1  ;;  %6376 = vrot.lane.b32.xlu0 %v6373_v34, %s7597_s3  ;;  %v5212_v8 = vadd.f32 %v11428_v52, %v5192_v19  ;;  %v5231_v34 = vrot.slane %v5224_v50, 1  ;;  %v5085_v52 = vmul.f32 %v11256_v44, %v5083_v55  ;;  %v5218_v19 = vmul.f32 %v11342_v41, %v5215_v1  ;;  %s7035_s1 = sld [smem:[#allocation9 + $0x2b]] }
 0x89e   : > { %v11559_v26 = vpop.permute.xlu1 %5408  ;;  %v11561_v7 = vpop.permute.xlu0 %5461  ;;  %v5233_v5 = vsel %vm5230_vm10, %v5231_v34, %v5232_v9  ;;  %v5415_v20 = vstv %s7020_s18 }
 0x89f   : > { %v5238_v49 = vadd.f32 %v5233_v5, %v5212_v8  ;;  %v5417_v28 = vmul.f32 %v11256_v44, %v5415_v20  ;;  %v5416_v12 = vmul.f32 %v11235_v38, %v5415_v20 }
 0x8a0   : > { %6378 = vrot.lane.b32.xlu1 %v6375_v21, %s7597_s3  ;;  %6405 = vrot.lane.b32.xlu0 %v6402_v35, %s7598_s15  ;;  %v5422_v21 = vmul.f32 %v11243_v15, %v5420_v14  ;;  %v5091_v35 = vadd.f32 %v5089_v11, %v5085_v52  ;;  %s7034_s3 = sld [smem:[#allocation9 + $0x2a]] }
 0x8a1   : > { %v5267_v3 = vadd.f32 %v11454_v56, %v5238_v49  ;;  %v5223_v56 = vmul.f32 %v11331_v51, %v5220_v16  ;;  %v5424_v8 = vadd.f32 %v5421_v4, %v5416_v12 }
 0x8a2   : > { %v11574_v59 = vpop.permute.xlu1 %5463  ;;  %v11576_v54 = vpop.permute.xlu0 %5490  ;;  %v5113_v10 = vadd.f32 %v11326_v24, %v5091_v35 }
 0x8a3   : > { %v5296_v40 = vadd.f32 %v11475_v47, %v5267_v3  ;;  %v5226_v16 = vadd.f32 %v5223_v56, %v5218_v19  ;;  %v5423_v19 = vmul.f32 %v11331_v51, %v5420_v14 }
 0x8a4   : > { %6407 = vrot.lane.b32.xlu1 %v6404_v37, %s7598_s15  ;;  %v11614_v37 = vadd.f32 %v5422_v21, %v5417_v28  ;;  %v5133_v47 = vadd.f32 %v11357_v46, %v5113_v10  ;;  %v5620_v10 = vstv %s7035_s1  ;;  %s7049_s15 = sld [smem:[#allocation9 + $0x39]] }
 0x8a5   : > { %v5325_v55 = vadd.f32 %v11498_v36, %v5296_v40  ;;  %v5234_v21 = vrot.slane %v5226_v16, 1 }
 0x8a6   : > { %v11583_v2 = vpop.permute.xlu1 %5492  ;;  %v11585_v57 = vpop.permute.xlu0 %5519  ;;  %v5153_v24 = vadd.f32 %v11380_v39, %v5133_v47  ;;  %v5432_v49 = vrot.slane %v11614_v37, 2  ;;  %v5615_v37 = vstv %s7034_s3  ;;  %v5621_v47 = vmul.f32 %v11260_v43, %v5620_v10 }
 0x8a7   : > { %v5354_v50 = vadd.f32 %v11516_v23, %v5325_v55  ;;  %v5431_v23 = vrot.slane %v5424_v8, 2  ;;  %v5622_v55 = vmul.f32 %v11243_v15, %v5620_v10 }
 0x8a8   : > { %v5173_v11 = vadd.f32 %v11402_v18, %v5153_v24  ;;  %v5235_v18 = vsel %vm5230_vm10, %v5232_v9, %v5234_v21  ;;  %vm12119_vm10 = vmmov %vm12114_vm1 }
 0x8a9   : > { %v5383_v36 = vadd.f32 %v11536_v31, %v5354_v50  ;;  %v5433_v39 = vsel %vm5430_vm12, %v5431_v23, %v5432_v49 }
 0x8aa   : > { %v11589_v32 = vpop.permute.xlu1 %5521  ;;  %v11591_v6 = vpop.permute.xlu0 %5548  ;;  %v5193_v3 = vadd.f32 %v11426_v45, %v5173_v11  ;;  %v5418_v11 = vmul.f32 %v11342_v41, %v5415_v20 }
 0x8ab   : > { %v5412_v46 = vadd.f32 %v11550_v29, %v5383_v36 }
 0x8ac   : > { %v5213_v31 = vadd.f32 %v11452_v27, %v5193_v3  ;;  %v5617_v27 = vmul.f32 %v11256_v44, %v5615_v37  ;;  %v5426_v23 = vadd.f32 %v5423_v19, %v5418_v11 }
 0x8ad   : > { %v5438_v35 = vadd.f32 %v5433_v39, %v5412_v46 }
 0x8ae   : > { %v11596_v25 = vpop.permute.xlu1 %5550  ;;  %v11598_v53 = vpop.permute.xlu0 %5577  ;;  %v5239_v29 = vadd.f32 %v5235_v18, %v5213_v31  ;;  %v11647_v8 = vadd.f32 %v5622_v55, %v5617_v27  ;;  %v5434_v20 = vrot.slane %v5426_v23, 2  ;;  %v5820_v27 = vstv %s7049_s15 }
 0x8af   : > { %v5467_v4 = vadd.f32 %v11561_v7, %v5438_v35  ;;  %v5616_v7 = vmul.f32 %v11235_v38, %v5615_v37  ;;  %v5821_v19 = vmul.f32 %v11260_v43, %v5820_v27 }
 0x8b0   : > { %v5268_v50 = vadd.f32 %v11473_v33, %v5239_v29  ;;  %v5632_v14 = vrot.slane %v11647_v8, 3 }
 0x8b1   : > { %v5496_v12 = vadd.f32 %v11576_v54, %v5467_v4  ;;  %v5624_v46 = vadd.f32 %v5621_v47, %v5616_v7  ;;  %v5435_v4 = vsel %vm5430_vm12, %v5432_v49, %v5434_v20 }
 0x8b2   : > { %v11608_v0 = vpop.permute.xlu1 %5579  ;;  %v5607_v42 = vpop.permute.xlu0 %5606  ;;  %v5297_v54 = vadd.f32 %v11496_v60, %v5268_v50  ;;  %v5815_v50 = vstv %s7048_s24 }
 0x8b3   : > { %v5525_v9 = vadd.f32 %v11585_v57, %v5496_v12  ;;  %v5631_v60 = vrot.slane %v5624_v46, 3  ;;  %v5618_v46 = vmul.f32 %v11342_v41, %v5615_v37 }
 0x8b4   : > { %v5326_v33 = vadd.f32 %v11514_v17, %v5297_v54  ;;  %v5623_v54 = vmul.f32 %v11331_v51, %v5620_v10 }
 0x8b5   : > { %v5554_v16 = vadd.f32 %v11591_v6, %v5525_v9  ;;  %v5633_v35 = vsel %vm5630_vm13, %v5631_v60, %v5632_v14  ;;  %v5817_v9 = vmul.f32 %v11256_v44, %v5815_v50 }
 0x8b6   : > { %v11619_v34 = vpop.permute.xlu1 %5608  ;;  %v11621_v5 = vpop.permute.xlu0 %5661  ;;  %v5355_v39 = vadd.f32 %v11534_v30, %v5326_v33 }
 0x8b7   : > { %v5583_v57 = vadd.f32 %v11598_v53, %v5554_v16  ;;  %v5816_v16 = vmul.f32 %v11235_v38, %v5815_v50 }
 0x8b8   : > { %v5384_v6 = vadd.f32 %v11548_v62, %v5355_v39  ;;  %v5822_v62 = vmul.f32 %v11243_v15, %v5820_v27 }
 0x8b9   : > { %v5612_v31 = vadd.f32 %v5607_v42, %v5583_v57  ;;  %v5824_v33 = vadd.f32 %v5821_v19, %v5816_v16 }
 0x8ba   : > { %v11628_v52 = vpop.permute.xlu1 %5663  ;;  %v5691_v1 = vpop.permute.xlu0 %5690  ;;  %v5413_v18 = vadd.f32 %v11559_v26, %v5384_v6 }
 0x8bb   : > { %v5638_v29 = vadd.f32 %v5633_v35, %v5612_v31  ;;  %v5830_v6 = vrot.slane %v5824_v33, 4 }
 0x8bc   : > { %v5439_v42 = vadd.f32 %v5435_v4, %v5413_v18 }
 0x8bd   : > { %v5667_v12 = vadd.f32 %v11621_v5, %v5638_v29  ;;  %v11677_v5 = vadd.f32 %v5822_v62, %v5817_v9  ;;  %v6014_v9 = vstv %s7062_s12 }
 0x8be   : > { %v11633_v40 = vpop.permute.xlu1 %5692  ;;  %v5720_v28 = vpop.permute.xlu0 %5719  ;;  %v5468_v49 = vadd.f32 %v11574_v59, %v5439_v42  ;;  %v5626_v59 = vadd.f32 %v5623_v54, %v5618_v46  ;;  %v6019_v42 = vstv %s7063_s30  ;;  %v6016_v19 = vmul.f32 %v11256_v44, %v6014_v9 }
 0x8bf   : > { %v5696_v47 = vadd.f32 %v5691_v1, %v5667_v12  ;;  %v6021_v62 = vmul.f32 %v11243_v15, %v6019_v42  ;;  %v5823_v54 = vmul.f32 %v11331_v51, %v5820_v27 }
 0x8c0   : > { %v5497_v11 = vadd.f32 %v11583_v2, %v5468_v49  ;;  %v5634_v37 = vrot.slane %v5626_v59, 3 }
 0x8c1   : > { %v5725_v8 = vadd.f32 %v5720_v28, %v5696_v47  ;;  %v5831_v28 = vrot.slane %v11677_v5, 4 }
 0x8c2   : > { %v11638_v56 = vpop.permute.xlu1 %5721  ;;  %v5749_v45 = vpop.permute.xlu0 %5748  ;;  %v5526_v39 = vadd.f32 %v11589_v32, %v5497_v11 }
 0x8c3   : > { %v5754_v1 = vadd.f32 %v5749_v45, %v5725_v8  ;;  %v5832_v35 = vsel %vm4308_vm6, %v5830_v6, %v5831_v28 }
 0x8c4   : > { %v5555_v10 = vadd.f32 %v11596_v25, %v5526_v39  ;;  %v5635_v25 = vsel %vm5630_vm13, %v5632_v14, %v5634_v37  ;;  %v6015_v14 = vmul.f32 %v11235_v38, %v6014_v9 }
 0x8c6   : > { %v11649_v24 = vpop.permute.xlu1 %5750  ;;  %v5778_v36 = vpop.permute.xlu0 %5777  ;;  %v5584_v45 = vadd.f32 %v11608_v0, %v5555_v10 }
 0x8c7   : > { %v5783_v31 = vadd.f32 %v5778_v36, %v5754_v1  ;;  %v5818_v1 = vmul.f32 %v11342_v41, %v5815_v50 }
 0x8c8   : > { %v5613_v32 = vadd.f32 %v11619_v34, %v5584_v45  ;;  %v6020_v34 = vmul.f32 %v11260_v43, %v6019_v42 }
 0x8ca   : > { %v11657_v3 = vpop.permute.xlu1 %5779  ;;  %v5807_v21 = vpop.permute.xlu0 %5806  ;;  %v6023_v46 = vadd.f32 %v6020_v34, %v6015_v14  ;;  %v7433_v34 = vld [vmem:[#allocation4] sm:$0xff] }
 0x8cb   : > { %v5812_v60 = vadd.f32 %v5807_v21, %v5783_v31  ;;  %v5639_v21 = vadd.f32 %v5635_v25, %v5613_v32 }
 0x8cc   : > { %v6030_v10 = vrot.slane %v6023_v46, 5 }
 0x8cd   : > { %v5837_v36 = vadd.f32 %v5832_v35, %v5812_v60  ;;  %v5668_v49 = vadd.f32 %v11628_v52, %v5639_v21  ;;  %v5826_v52 = vadd.f32 %v5823_v54, %v5818_v1 }
 0x8ce   : > { %v11662_v17 = vpop.permute.xlu1 %5808  ;;  %v5861_v53 = vpop.permute.xlu0 %5860 }
 0x8cf   : > { %v5866_v4 = vadd.f32 %v5861_v53, %v5837_v36  ;;  %v11702_v53 = vadd.f32 %v6021_v62, %v6016_v19  ;;  %v5697_v11 = vadd.f32 %v11633_v40, %v5668_v49  ;;  %v6219_v36 = vstv %s7077_s13 }
 0x8d0   : > { %v6220_v62 = vmul.f32 %v11260_v43, %v6219_v36  ;;  %v6022_v19 = vmul.f32 %v11331_v51, %v6019_v42 }
 0x8d1   : > { %v5726_v33 = vadd.f32 %v11638_v56, %v5697_v11 }
 0x8d2   : > { %v11666_v55 = vpop.permute.xlu1 %5862  ;;  %v5890_v30 = vpop.permute.xlu0 %5889 }
 0x8d3   : > { %v5895_v47 = vadd.f32 %v5890_v30, %v5866_v4  ;;  %v5755_v31 = vadd.f32 %v11649_v24, %v5726_v33 }
 0x8d5   : > { %v5784_v40 = vadd.f32 %v11657_v3, %v5755_v31  ;;  %v6214_v3 = vstv %s7076_s23 }
 0x8d6   : > { %v11672_v7 = vpop.permute.xlu1 %5891  ;;  %v5919_v26 = vpop.permute.xlu0 %5918  ;;  %v6216_v4 = vmul.f32 %v11256_v44, %v6214_v3  ;;  %v6215_v49 = vmul.f32 %v7433_v34, %v6214_v3 }
 0x8d7   : > { %v5924_v8 = vadd.f32 %v5919_v26, %v5895_v47  ;;  %v6031_v26 = vrot.slane %v11702_v53, 5  ;;  %v5813_v6 = vadd.f32 %v11662_v17, %v5784_v40 }
 0x8d8   : > { %v6223_v14 = vadd.f32 %v6220_v62, %v6215_v49 }
 0x8d9   : > { %v6032_v50 = vsel %vm12119_vm10, %v6030_v10, %v6031_v26 }
 0x8da   : > { %v11681_v57 = vpop.permute.xlu1 %5920  ;;  %v5948_v23 = vpop.permute.xlu0 %5947  ;;  %v6230_v1 = vrot.slane %v6223_v14, 6  ;;  %v6438_v14 = vsub.s32 1, %v10130_v58 }
 0x8db   : > { %v5953_v30 = vadd.f32 %v5948_v23, %v5924_v8  ;;  %v5833_v23 = vrot.slane %v5826_v52, 4 }
 0x8dd   : > { %v5834_v45 = vsel %vm4308_vm6, %v5831_v28, %v5833_v23  ;;  %vm12120_vm6 = vmmov %vm12114_vm1 }
 0x8de   : > { %v11686_v20 = vpop.permute.xlu1 %5949  ;;  %v5977_v2 = vpop.permute.xlu0 %5976  ;;  %v5838_v32 = vadd.f32 %v5834_v45, %v5813_v6 }
 0x8df   : > { %v5982_v39 = vadd.f32 %v5977_v2, %v5953_v30 }
 0x8e0   : > { %v5867_v47 = vadd.f32 %v11666_v55, %v5838_v32 }
 0x8e2   : > { %v11691_v18 = vpop.permute.xlu1 %5978  ;;  %v6006_v29 = vpop.permute.xlu0 %6005 }
 0x8e3   : > { %v6011_v59 = vadd.f32 %v6006_v29, %v5982_v39  ;;  %v6221_v29 = vmul.f32 %v11243_v15, %v6219_v36  ;;  %v6017_v15 = vmul.f32 %v11342_v41, %v6014_v9 }
 0x8e5   : > { %v6037_v2 = vadd.f32 %v6032_v50, %v6011_v59  ;;  %v6224_v8 = vadd.f32 %v6221_v29, %v6216_v4  ;;  %v6025_v43 = vadd.f32 %v6022_v19, %v6017_v15 }
 0x8e6   : > { %v11694_v12 = vpop.permute.xlu1 %6007  ;;  %v6061_v0 = vpop.permute.xlu0 %6060 }
 0x8e7   : > { %v6066_v24 = vadd.f32 %v6061_v0, %v6037_v2  ;;  %v5896_v0 = vadd.f32 %v11672_v7, %v5867_v47  ;;  %v6231_v11 = vrot.slane %v6224_v8, 6  ;;  %v6033_v39 = vrot.slane %v6025_v43, 5 }
 0x8e8   : > { %v6460_v43 = vsub.s32 3, %v10130_v58 }
 0x8e9   : > { %v5925_v44 = vadd.f32 %v11681_v57, %v5896_v0  ;;  %v6232_v7 = vsel %vm6229_vm15, %v6230_v1, %v6231_v11  ;;  %v6034_v57 = vsel %vm12120_vm6, %v6031_v26, %v6033_v39  ;;  %v6493_v39 = vsub.s32 6, %v10130_v58 }
 0x8ea   : > { %v11704_v16 = vpop.permute.xlu1 %6062  ;;  %v6090_v5 = vpop.permute.xlu0 %6089 }
 0x8eb   : > { %v6095_v25 = vadd.f32 %v6090_v5, %v6066_v24  ;;  %v5954_v55 = vadd.f32 %v11686_v20, %v5925_v44  ;;  %v6449_v44 = vsub.s32 2, %v10130_v58 }
 0x8ed   : > { %v5983_v33 = vadd.f32 %v11691_v18, %v5954_v55 }
 0x8ee   : > { %v11710_v27 = vpop.permute.xlu1 %6091  ;;  %v6119_v38 = vpop.permute.xlu0 %6118 }
 0x8ef   : > { %v6124_v17 = vadd.f32 %v6119_v38, %v6095_v25  ;;  %v6012_v9 = vadd.f32 %v11694_v12, %v5983_v33  ;;  %v6217_v12 = vmul.f32 %v11342_v41, %v6214_v3 }
 0x8f1   : > { %v6038_v59 = vadd.f32 %v6034_v57, %v6012_v9  ;;  %v6504_v9 = vsub.s32 7, %v10130_v58 }
 0x8f2   : > { %v6121_v60 = vpop.permute.xlu1 %6120  ;;  %v6148_v56 = vpop.permute.xlu0 %6147 }
 0x8f3   : > { %v6153_v54 = vadd.f32 %v6148_v56, %v6124_v17  ;;  %v6067_v23 = vadd.f32 %v11704_v16, %v6038_v59  ;;  %v6222_v56 = vmul.f32 %v11331_v51, %v6219_v36 }
 0x8f5   : > { %v6096_v2 = vadd.f32 %v11710_v27, %v6067_v23  ;;  %v6225_v26 = vadd.f32 %v6222_v56, %v6217_v12 }
 0x8f6   : > { %v6150_v37 = vpop.permute.xlu1 %6149  ;;  %v6177_v35 = vpop.permute.xlu0 %6176 }
 0x8f7   : > { %v6182_v5 = vadd.f32 %v6177_v35, %v6153_v54  ;;  %v6125_v35 = vadd.f32 %v6121_v60, %v6096_v2  ;;  %v6233_v16 = vrot.slane %v6225_v26, 6 }
 0x8f9   : > { %v6154_v29 = vadd.f32 %v6150_v37, %v6125_v35  ;;  %v6234_v51 = vsel %vm6229_vm15, %v6231_v11, %v6233_v16 }
 0x8fa   : > { %v6206_v21 = vpop.permute.xlu0 %6205  ;;  %v6179_v28 = vpop.permute.xlu1 %6178 }
 0x8fb   : > { %v6211_v30 = vadd.f32 %v6206_v21, %v6182_v5  ;;  %v6183_v4 = vadd.f32 %v6179_v28, %v6154_v29 }
 0x8fd   : > { %v6237_v52 = vadd.f32 %v6232_v7, %v6211_v30 }
 0x8fe   : > { %v6261_v53 = vpop.permute.xlu0 %6260  ;;  %v6208_v42 = vpop.permute.xlu1 %6207 }
 0x8ff   : > { %v6266_v10 = vadd.f32 %v6261_v53, %v6237_v52  ;;  %v6212_v47 = vadd.f32 %v6208_v42, %v6183_v4  ;;  %v6471_v42 = vsub.s32 4, %v10130_v58 }
 0x901   : > { %v6238_v17 = vadd.f32 %v6234_v51, %v6212_v47  ;;  %v12122_v47 = vld [vmem:[#allocation20_spill] sm:$0xff] }
 0x902   : > { %v6290_v46 = vpop.permute.xlu0 %6289  ;;  %v6263_v31 = vpop.permute.xlu1 %6262 }
 0x903   : > { %v6295_v20 = vadd.f32 %v6290_v46, %v6266_v10  ;;  %v6267_v27 = vadd.f32 %v6263_v31, %v6238_v17  ;;  %v6482_v46 = vsub.s32 5, %v10130_v58 }
 0x906   : > { %v6319_v38 = vpop.permute.xlu0 %6318  ;;  %v6292_v18 = vpop.permute.xlu1 %6291 }
 0x907   : > { %v6324_v50 = vadd.f32 %v6319_v38, %v6295_v20  ;;  %v6296_v34 = vadd.f32 %v6292_v18, %v6267_v27  ;;  %v7438_v27 = vld [vmem:[%s7798_s21 + $0x28] sm:$0xff] }
 0x90a   : > { %v6348_v40 = vpop.permute.xlu0 %6347  ;;  %v6321_v21 = vpop.permute.xlu1 %6320 }
 0x90b   : > { %v6353_v45 = vadd.f32 %v6348_v40, %v6324_v50  ;;  %v6325_v41 = vadd.f32 %v6321_v21, %v6296_v34  ;;  %v7437_v21 = vld [vmem:[%s7798_s21 + $0x10] sm:$0xff]  ;;  %v7439_v34 = vld [vmem:[%s7798_s21 + $0x20] sm:$0xff] }
 0x90e   : > { %v6377_v6 = vpop.permute.xlu0 %6376  ;;  %v6350_v36 = vpop.permute.xlu1 %6349 }
 0x90f   : > { %v6382_v32 = vadd.f32 %v6377_v6, %v6353_v45  ;;  %v6354_v3 = vadd.f32 %v6350_v36, %v6325_v41  ;;  %v7434_v6 = vld [vmem:[%s7798_s21 + $0x8] sm:$0xff]  ;;  %v7435_v45 = vld [vmem:[%s7798_s21] sm:$0xff] }
 0x910   : > { %v12123_v36 = vld [vmem:[#allocation21_spill] sm:$0xff] }
 0x912   : > { %v6406_v24 = vpop.permute.xlu0 %6405  ;;  %v6379_v19 = vpop.permute.xlu1 %6378 }
 0x913   : > { %v6411_v25 = vadd.f32 %v6406_v24, %v6382_v32  ;;  %v6383_v37 = vadd.f32 %v6379_v19, %v6354_v3 }
 0x915   : > { %v7090_v62 = vmul.f32 -1.442695, %v6411_v25 }
 0x916   : > { %v6408_v8 = vpop.permute.xlu1 %6407 }
 0x917   : > { %7413 = vpow2.f32 %v7090_v62  ;;  %v6412_v0 = vadd.f32 %v6408_v8, %v6383_v37  ;;  %v12124_v37 = vld [vmem:[#allocation24_spill] sm:$0xff] }
 0x919   : > { %v7091_v28 = vmul.f32 -1.442695, %v6412_v0 }
 0x924   : > { %v7414_v60 = vpop.eup %7413 }
 0x925   : > { %v6419_v49 = vadd.f32 1.0, %v7414_v60 }
 0x927   : > { %7415 = vrcp.f32 %v6419_v49 }
 0x928   : > { %7417 = vpow2.f32 %v7091_v28  ;;  %v12125_v28 = vld [vmem:[#allocation27_spill] sm:$0xff] }
 0x934   : > { %v7416_v54 = vpop.eup %7415 }
 0x935   : > { %v6428_v15 = vrot.slane %v7416_v54, %v10133_v48  ;;  %v6439_v53 = vrot.slane %v7416_v54, %v6438_v14  ;;  %v6450_v5 = vrot.slane %v7416_v54, %v6449_v44  ;;  %v7418_v11 = vpop.eup %7417  ;;  %v6461_v30 = vrot.slane %v7416_v54, %v6460_v43 }
 0x936   : > { %v6420_v55 = vadd.f32 1.0, %v7418_v11  ;;  %v6472_v1 = vrot.slane %v7416_v54, %v6471_v42  ;;  %v6483_v33 = vrot.slane %v7416_v54, %v6482_v46  ;;  %v6494_v7 = vrot.slane %v7416_v54, %v6493_v39 }
 0x937   : > { %6434 = vbcast.lane.b32.xlu1 %v6428_v15, 264  ;;  %6430 = vbcast.lane.b32.xlu0 %v6428_v15, 256  ;;  %v6505_v52 = vrot.slane %v7416_v54, %v6504_v9  ;;  %v7440_v15 = vld [vmem:[%s7798_s21 + $0x38] sm:$0xff] }
 0x938   : > { %7419 = vrcp.f32 %v6420_v55 }
 0x93b   : > { %6445 = vbcast.lane.b32.xlu1 %v6439_v53, 264  ;;  %6441 = vbcast.lane.b32.xlu0 %v6439_v53, 256  ;;  %v7441_v53 = vld [vmem:[%s7798_s21 + $0x30] sm:$0xff] }
 0x93f   : > { %6456 = vbcast.lane.b32.xlu1 %v6450_v5, 264  ;;  %6452 = vbcast.lane.b32.xlu0 %v6450_v5, 256 }
 0x943   : > { %6467 = vbcast.lane.b32.xlu1 %v6461_v30, 264  ;;  %6463 = vbcast.lane.b32.xlu0 %v6461_v30, 256  ;;  %v12126_v30 = vld [vmem:[#allocation25_spill] sm:$0xff] }
 0x945   : > { %v7420_v38 = vpop.eup %7419 }
 0x946   : > { %v6516_v57 = vrot.slane %v7420_v38, %v10133_v48  ;;  %v6527_v31 = vrot.slane %v7420_v38, %v6438_v14  ;;  %v6538_v59 = vrot.slane %v7420_v38, %v6449_v44  ;;  %v6549_v10 = vrot.slane %v7420_v38, %v6460_v43 }
 0x947   : > { %6478 = vbcast.lane.b32.xlu1 %v6472_v1, 264  ;;  %6474 = vbcast.lane.b32.xlu0 %v6472_v1, 256  ;;  %v6560_v58 = vrot.slane %v7420_v38, %v6471_v42  ;;  %v6571_v40 = vrot.slane %v7420_v38, %v6482_v46  ;;  %v6582_v48 = vrot.slane %v7420_v38, %v6493_v39  ;;  %v12127_v1 = vld [vmem:[#allocation22_spill] sm:$0xff] }
 0x948   : > { %v6593_v20 = vrot.slane %v7420_v38, %v6504_v9 }
 0x94b   : > { %6489 = vbcast.lane.b32.xlu1 %v6483_v33, 264  ;;  %6485 = vbcast.lane.b32.xlu0 %v6483_v33, 256  ;;  %v7442_v33 = vld [vmem:[%s7798_s21 + $0x48] sm:$0xff] }
 0x94f   : > { %6500 = vbcast.lane.b32.xlu1 %v6494_v7, 264  ;;  %6496 = vbcast.lane.b32.xlu0 %v6494_v7, 256  ;;  %v7443_v7 = vld [vmem:[%s7798_s21 + $0x40] sm:$0xff] }
 0x953   : > { %6511 = vbcast.lane.b32.xlu1 %v6505_v52, 264  ;;  %6507 = vbcast.lane.b32.xlu0 %v6505_v52, 256 }
 0x957   : > { %6522 = vbcast.lane.b32.xlu1 %v6516_v57, 264  ;;  %6518 = vbcast.lane.b32.xlu0 %v6516_v57, 256 }
 0x95b   : > { %6533 = vbcast.lane.b32.xlu1 %v6527_v31, 264  ;;  %6529 = vbcast.lane.b32.xlu0 %v6527_v31, 256 }
 0x95f   : > { %6544 = vbcast.lane.b32.xlu1 %v6538_v59, 264  ;;  %6540 = vbcast.lane.b32.xlu0 %v6538_v59, 256  ;;  %v12128_v59 = vld [vmem:[#allocation38_spill] sm:$0xff] }
 0x963   : > { %6555 = vbcast.lane.b32.xlu1 %v6549_v10, 264  ;;  %6551 = vbcast.lane.b32.xlu0 %v6549_v10, 256 }
 0x967   : > { %6566 = vbcast.lane.b32.xlu1 %v6560_v58, 264  ;;  %6562 = vbcast.lane.b32.xlu0 %v6560_v58, 256  ;;  %v12129_v58 = vld [vmem:[#allocation23_spill] sm:$0xff] }
 0x96b   : > { %6577 = vbcast.lane.b32.xlu1 %v6571_v40, 264  ;;  %6573 = vbcast.lane.b32.xlu0 %v6571_v40, 256 }
 0x96f   : > { %6588 = vbcast.lane.b32.xlu1 %v6582_v48, 264  ;;  %6584 = vbcast.lane.b32.xlu0 %v6582_v48, 256  ;;  %v7444_v48 = vld [vmem:[%s7798_s21 + $0x58] sm:$0xff] }
 0x973   : > { %6599 = vbcast.lane.b32.xlu1 %v6593_v20, 264  ;;  %6595 = vbcast.lane.b32.xlu0 %v6593_v20, 256 }
 0x9a9   : > { %v6435_v23 = vpop.permute.xlu1 %6434  ;;  %v6431_v50 = vpop.permute.xlu0 %6430 }
 0x9aa   : > { %v6602_v56 = vmul.f32 %v6435_v23, %v10140_v63  ;;  %v6601_v18 = vmul.f32 %v6431_v50, %v10144_v22  ;;  %v7436_v63 = vld [vmem:[%s7798_s21 + $0x18] sm:$0xff]  ;;  %v7445_v23 = vld [vmem:[%s7798_s21 + $0x50] sm:$0xff] }
 0x9ac   : > { %v6634_v2 = vadd.f32 %v7434_v6, %v6602_v56  ;;  %v6633_v12 = vadd.f32 %v7435_v45, %v6601_v18  ;;  %v12130_v45 = vld [vmem:[#allocation42_spill] sm:$0xff] }
 0x9ad   : > { %v6446_v35 = vpop.permute.xlu1 %6445  ;;  %v6442_v32 = vpop.permute.xlu0 %6441 }
 0x9ae   : > { %v6666_v26 = vmax.f32 %v6634_v2, 0.0  ;;  %v6665_v24 = vmax.f32 %v6633_v12, 0.0  ;;  %v6604_v29 = vmul.f32 %v6446_v35, %v10168_v13  ;;  %v6603_v25 = vmul.f32 %v6442_v32, %v10156_v61  ;;  %v12131_v35 = vld [vmem:[#allocation40_spill] sm:$0xff] }
 0x9b0   : > { %6698 = vst.msk [vmem:[%s11752_s22 + $0x8] sm:$0xff] %vm554_vm0, %v6666_v26  ;;  %6697 = vst.msk [vmem:[%s11752_s22] sm:$0xff] %vm554_vm0, %v6665_v24  ;;  %v6636_v22 = vadd.f32 %v7436_v63, %v6604_v29  ;;  %v6635_v4 = vadd.f32 %v7437_v21, %v6603_v25  ;;  %v7446_v26 = vld [vmem:[%s7798_s21 + $0x68] sm:$0xff]  ;;  %v7447_v29 = vld [vmem:[%s7798_s21 + $0x60] sm:$0xff] }
 0x9b1   : > { %v6457_v13 = vpop.permute.xlu1 %6456  ;;  %v6453_v62 = vpop.permute.xlu0 %6452 }
 0x9b2   : > { %v6668_v61 = vmax.f32 %v6636_v22, 0.0  ;;  %v6667_v16 = vmax.f32 %v6635_v4, 0.0  ;;  %v6606_v51 = vmul.f32 %v6457_v13, %v12122_v47  ;;  %v6605_v17 = vmul.f32 %v6453_v62, %v12123_v36  ;;  %v12132_v13 = vld [vmem:[#allocation46_spill] sm:$0xff]  ;;  %v7448_v47 = vld [vmem:[%s7798_s21 + $0x78] sm:$0xff] }
 0x9b3   : > { %v7449_v36 = vld [vmem:[%s7798_s21 + $0x70] sm:$0xff] }
 0x9b4   : > { %6700 = vst.msk [vmem:[%s11752_s22 + $0x18] sm:$0xff] %vm554_vm0, %v6668_v61  ;;  %6699 = vst.msk [vmem:[%s11752_s22 + $0x10] sm:$0xff] %vm554_vm0, %v6667_v16  ;;  %v6638_v19 = vadd.f32 %v7438_v27, %v6606_v51  ;;  %v6637_v41 = vadd.f32 %v7439_v34, %v6605_v17  ;;  %v12133_v61 = vld [vmem:[#allocation44_spill] sm:$0xff] }
 0x9b5   : > { %v6468_v60 = vpop.permute.xlu1 %6467  ;;  %v6464_v3 = vpop.permute.xlu0 %6463 }
 0x9b6   : > { %v6670_v49 = vmax.f32 %v6638_v19, 0.0  ;;  %v6669_v8 = vmax.f32 %v6637_v41, 0.0  ;;  %v6608_v0 = vmul.f32 %v6468_v60, %v12124_v37  ;;  %v6607_v54 = vmul.f32 %v6464_v3, %v12125_v28  ;;  %v12134_v60 = vld [vmem:[#allocation28_spill] sm:$0xff]  ;;  %v7450_v37 = vld [vmem:[%s7798_s21 + $0x88] sm:$0xff] }
 0x9b7   : > { %v7451_v28 = vld [vmem:[%s7798_s21 + $0x80] sm:$0xff] }
 0x9b8   : > { %6702 = vst.msk [vmem:[%s11752_s22 + $0x28] sm:$0xff] %vm554_vm0, %v6670_v49  ;;  %6701 = vst.msk [vmem:[%s11752_s22 + $0x20] sm:$0xff] %vm554_vm0, %v6669_v8  ;;  %v6640_v14 = vadd.f32 %v7440_v15, %v6608_v0  ;;  %v6639_v44 = vadd.f32 %v7441_v53, %v6607_v54  ;;  %v12135_v49 = vld [vmem:[#allocation29_spill] sm:$0xff] }
 0x9b9   : > { %v6479_v5 = vpop.permute.xlu1 %6478  ;;  %v6475_v43 = vpop.permute.xlu0 %6474 }
 0x9ba   : > { %v6672_v11 = vmax.f32 %v6640_v14, 0.0  ;;  %v6671_v55 = vmax.f32 %v6639_v44, 0.0  ;;  %v6610_v42 = vmul.f32 %v6479_v5, %v12126_v30  ;;  %v6609_v46 = vmul.f32 %v6475_v43, %v12127_v1  ;;  %v12136_v5 = vld [vmem:[#allocation26_spill] sm:$0xff]  ;;  %v7452_v30 = vld [vmem:[%s7798_s21 + $0x98] sm:$0xff] }
 0x9bb   : > { %v7453_v1 = vld [vmem:[%s7798_s21 + $0x90] sm:$0xff] }
 0x9bc   : > { %6704 = vst.msk [vmem:[%s11752_s22 + $0x38] sm:$0xff] %vm554_vm0, %v6672_v11  ;;  %6703 = vst.msk [vmem:[%s11752_s22 + $0x30] sm:$0xff] %vm554_vm0, %v6671_v55  ;;  %v6642_v39 = vadd.f32 %v7442_v33, %v6610_v42  ;;  %v6641_v9 = vadd.f32 %v7443_v7, %v6609_v46  ;;  %v12137_v11 = vld [vmem:[#allocation31_spill] sm:$0xff] }
 0x9bd   : > { %v6490_v52 = vpop.permute.xlu1 %6489  ;;  %v6486_v38 = vpop.permute.xlu0 %6485 }
 0x9be   : > { %v6674_v57 = vmax.f32 %v6642_v39, 0.0  ;;  %v6673_v31 = vmax.f32 %v6641_v9, 0.0  ;;  %v6612_v10 = vmul.f32 %v6490_v52, %v12128_v59  ;;  %v6611_v40 = vmul.f32 %v6486_v38, %v12129_v58  ;;  %v12138_v52 = vld [vmem:[#allocation30_spill] sm:$0xff]  ;;  %v7454_v59 = vld [vmem:[%s7798_s21 + $0xa8] sm:$0xff]  ;;  %v7455_v58 = vld [vmem:[%s7798_s21 + $0xa0] sm:$0xff] }
 0x9c0   : > { %6706 = vst.msk [vmem:[%s11752_s22 + $0x48] sm:$0xff] %vm554_vm0, %v6674_v57  ;;  %6705 = vst.msk [vmem:[%s11752_s22 + $0x40] sm:$0xff] %vm554_vm0, %v6673_v31  ;;  %v6644_v20 = vadd.f32 %v7444_v48, %v6612_v10  ;;  %v6643_v50 = vadd.f32 %v7445_v23, %v6611_v40  ;;  %v12139_v57 = vld [vmem:[#allocation33_spill] sm:$0xff] }
 0x9c1   : > { %v6501_v56 = vpop.permute.xlu1 %6500  ;;  %v6497_v18 = vpop.permute.xlu0 %6496 }
 0x9c2   : > { %v6676_v6 = vmax.f32 %v6644_v20, 0.0  ;;  %v6675_v2 = vmax.f32 %v6643_v50, 0.0  ;;  %v6614_v12 = vmul.f32 %v6501_v56, %v12130_v45  ;;  %v6613_v32 = vmul.f32 %v6497_v18, %v12131_v35  ;;  %v12140_v56 = vld [vmem:[#allocation32_spill] sm:$0xff]  ;;  %v7456_v45 = vld [vmem:[%s7798_s21 + $0xb8] sm:$0xff]  ;;  %v7457_v35 = vld [vmem:[%s7798_s21 + $0xb0] sm:$0xff] }
 0x9c4   : > { %6708 = vst.msk [vmem:[%s11752_s22 + $0x58] sm:$0xff] %vm554_vm0, %v6676_v6  ;;  %6707 = vst.msk [vmem:[%s11752_s22 + $0x50] sm:$0xff] %vm554_vm0, %v6675_v2  ;;  %v6646_v24 = vadd.f32 %v7446_v26, %v6614_v12  ;;  %v6645_v25 = vadd.f32 %v7447_v29, %v6613_v32  ;;  %v12141_v6 = vld [vmem:[#allocation34_spill] sm:$0xff] }
 0x9c5   : > { %v6512_v63 = vpop.permute.xlu1 %6511  ;;  %v6508_v22 = vpop.permute.xlu0 %6507 }
 0x9c6   : > { %v6678_v21 = vmax.f32 %v6646_v24, 0.0  ;;  %v6677_v4 = vmax.f32 %v6645_v25, 0.0  ;;  %v6616_v62 = vmul.f32 %v6512_v63, %v12132_v13  ;;  %v6615_v16 = vmul.f32 %v6508_v22, %v12133_v61  ;;  %v12142_v63 = vld [vmem:[#allocation35_spill] sm:$0xff]  ;;  %v7458_v13 = vld [vmem:[%s7798_s21 + $0xc8] sm:$0xff]  ;;  %v7459_v61 = vld [vmem:[%s7798_s21 + $0xc0] sm:$0xff] }
 0x9c8   : > { %6710 = vst.msk [vmem:[%s11752_s22 + $0x68] sm:$0xff] %vm554_vm0, %v6678_v21  ;;  %6709 = vst.msk [vmem:[%s11752_s22 + $0x60] sm:$0xff] %vm554_vm0, %v6677_v4  ;;  %v6648_v51 = vadd.f32 %v7448_v47, %v6616_v62  ;;  %v6647_v17 = vadd.f32 %v7449_v36, %v6615_v16  ;;  %v12143_v21 = vld [vmem:[#allocation36_spill] sm:$0xff] }
 0x9c9   : > { %v6523_v27 = vpop.permute.xlu1 %6522  ;;  %v6519_v19 = vpop.permute.xlu0 %6518 }
 0x9ca   : > { %v6680_v34 = vmax.f32 %v6648_v51, 0.0  ;;  %v6679_v41 = vmax.f32 %v6647_v17, 0.0  ;;  %v6618_v3 = vmul.f32 %v6523_v27, %v12134_v60  ;;  %v6617_v8 = vmul.f32 %v6519_v19, %v12135_v49  ;;  %v12144_v27 = vld [vmem:[#allocation39_spill] sm:$0xff]  ;;  %v7461_v49 = vld [vmem:[%s7798_s21 + $0xd0] sm:$0xff] }
 0x9cb   : > { %v7460_v60 = vld [vmem:[%s7798_s21 + $0xd8] sm:$0xff] }
 0x9cc   : > { %6712 = vst.msk [vmem:[%s11752_s22 + $0x78] sm:$0xff] %vm554_vm0, %v6680_v34  ;;  %6711 = vst.msk [vmem:[%s11752_s22 + $0x70] sm:$0xff] %vm554_vm0, %v6679_v41  ;;  %v6650_v0 = vadd.f32 %v7450_v37, %v6618_v3  ;;  %v6649_v54 = vadd.f32 %v7451_v28, %v6617_v8  ;;  %v12145_v34 = vld [vmem:[#allocation37_spill] sm:$0xff] }
 0x9cd   : > { %v6534_v15 = vpop.permute.xlu1 %6533  ;;  %v6530_v14 = vpop.permute.xlu0 %6529 }
 0x9ce   : > { %v6682_v53 = vmax.f32 %v6650_v0, 0.0  ;;  %v6681_v44 = vmax.f32 %v6649_v54, 0.0  ;;  %v6620_v43 = vmul.f32 %v6534_v15, %v12136_v5  ;;  %v6619_v55 = vmul.f32 %v6530_v14, %v12137_v11  ;;  %v12146_v15 = vld [vmem:[#allocation43_spill] sm:$0xff]  ;;  %v7462_v5 = vld [vmem:[%s7798_s21 + $0xe8] sm:$0xff]  ;;  %v7463_v11 = vld [vmem:[%s7798_s21 + $0xe0] sm:$0xff] }
 0x9d0   : > { %6714 = vst.msk [vmem:[%s11752_s22 + $0x88] sm:$0xff] %vm554_vm0, %v6682_v53  ;;  %6713 = vst.msk [vmem:[%s11752_s22 + $0x80] sm:$0xff] %vm554_vm0, %v6681_v44  ;;  %v6652_v42 = vadd.f32 %v7452_v30, %v6620_v43  ;;  %v6651_v46 = vadd.f32 %v7453_v1, %v6619_v55  ;;  %v12147_v53 = vld [vmem:[#allocation41_spill] sm:$0xff] }
 0x9d1   : > { %v6545_v33 = vpop.permute.xlu1 %6544  ;;  %v6541_v39 = vpop.permute.xlu0 %6540 }
 0x9d2   : > { %v6684_v7 = vmax.f32 %v6652_v42, 0.0  ;;  %v6683_v9 = vmax.f32 %v6651_v46, 0.0  ;;  %v6622_v38 = vmul.f32 %v6545_v33, %v12138_v52  ;;  %v6621_v31 = vmul.f32 %v6541_v39, %v12139_v57  ;;  %v12148_v33 = vld [vmem:[#allocation47_spill] sm:$0xff]  ;;  %v7465_v57 = vld [vmem:[%s7798_s21 + $0xf0] sm:$0xff] }
 0x9d3   : > { %v7464_v52 = vld [vmem:[%s7798_s21 + $0xf8] sm:$0xff]  ;;  %s7599_s21 = smov [#allocation10]  }
 0x9d4   : > { %6716 = vst.msk [vmem:[%s11752_s22 + $0x98] sm:$0xff] %vm554_vm0, %v6684_v7  ;;  %6715 = vst.msk [vmem:[%s11752_s22 + $0x90] sm:$0xff] %vm554_vm0, %v6683_v9  ;;  %v6654_v10 = vadd.f32 %v7454_v59, %v6622_v38  ;;  %v6653_v40 = vadd.f32 %v7455_v58, %v6621_v31  ;;  %v12149_v7 = vld [vmem:[#allocation45_spill] sm:$0xff]  ;;  %s7513_s2 = sshll.u32 %s7599_s21, 4  ;;  %s7514_s2 = int_to_ptr.vmem [resolvable:$false] %s7513_s2 }
 0x9d5   : > { %v6556_v48 = vpop.permute.xlu1 %6555  ;;  %v6552_v20 = vpop.permute.xlu0 %6551  ;;  %s7515_s18 = scalar_lea.vmem %s7514_s2, 8192  ;;  %p7516_p8 = scmp.lt.s32.totalorder %s11879_s0, %s7514_s2 }
 0x9d6   : > { %v6686_v23 = vmax.f32 %v6654_v10, 0.0  ;;  %v6685_v50 = vmax.f32 %v6653_v40, 0.0  ;;  %v6624_v18 = vmul.f32 %v6556_v48, %v12140_v56  ;;  %v6623_v2 = vmul.f32 %v6552_v20, %v12141_v6  ;;  %p7517_p9 = scmp.lt.s32.totalorder %s7515_s18, %s7509_s20 }
 0x9d8   : > { %6718 = vst.msk [vmem:[%s11752_s22 + $0xa8] sm:$0xff] %vm554_vm0, %v6686_v23  ;;  %6717 = vst.msk [vmem:[%s11752_s22 + $0xa0] sm:$0xff] %vm554_vm0, %v6685_v50  ;;  %v6656_v12 = vadd.f32 %v7456_v45, %v6624_v18  ;;  %v6655_v32 = vadd.f32 %v7457_v35, %v6623_v2  ;;  %p7518_p10 = por %p7517_p9, %p7516_p8 }
 0x9d9   : > { %v6567_v26 = vpop.permute.xlu1 %6566  ;;  %v6563_v24 = vpop.permute.xlu0 %6562 }
 0x9da   : > { %v6688_v29 = vmax.f32 %v6656_v12, 0.0  ;;  %v6687_v25 = vmax.f32 %v6655_v32, 0.0  ;;  %v6626_v22 = vmul.f32 %v6567_v26, %v12142_v63  ;;  %v6625_v4 = vmul.f32 %v6563_v24, %v12143_v21  ;;  %p7519_p1 = pnand %p7518_p10, %p7512_p7 }
 0x9dc   : > { %6720 = vst.msk [vmem:[%s11752_s22 + $0xb8] sm:$0xff] %vm554_vm0, %v6688_v29  ;;  %6719 = vst.msk [vmem:[%s11752_s22 + $0xb0] sm:$0xff] %vm554_vm0, %v6687_v25  ;;  %v6658_v62 = vadd.f32 %v7458_v13, %v6626_v22  ;;  %v6657_v16 = vadd.f32 %v7459_v61, %v6625_v4 }
 0x9dd   : > { %v6578_v47 = vpop.permute.xlu1 %6577  ;;  %v6574_v51 = vpop.permute.xlu0 %6573 }
 0x9de   : > { %v6690_v36 = vmax.f32 %v6658_v62, 0.0  ;;  %v6689_v17 = vmax.f32 %v6657_v16, 0.0  ;;  %v6628_v19 = vmul.f32 %v6578_v47, %v12144_v27  ;;  %v6627_v41 = vmul.f32 %v6574_v51, %v12145_v34 }
 0x9e0   : > { %6722 = vst.msk [vmem:[%s11752_s22 + $0xc8] sm:$0xff] %vm554_vm0, %v6690_v36  ;;  %6721 = vst.msk [vmem:[%s11752_s22 + $0xc0] sm:$0xff] %vm554_vm0, %v6689_v17  ;;  %v6660_v3 = vadd.f32 %v7460_v60, %v6628_v19  ;;  %v6659_v8 = vadd.f32 %v7461_v49, %v6627_v41 }
 0x9e1   : > { %v6589_v37 = vpop.permute.xlu1 %6588  ;;  %v6585_v0 = vpop.permute.xlu0 %6584 }
 0x9e2   : > { %v6692_v28 = vmax.f32 %v6660_v3, 0.0  ;;  %v6691_v54 = vmax.f32 %v6659_v8, 0.0  ;;  %v6630_v14 = vmul.f32 %v6589_v37, %v12146_v15  ;;  %v6629_v44 = vmul.f32 %v6585_v0, %v12147_v53 }
 0x9e4   : > { %6724 = vst.msk [vmem:[%s11752_s22 + $0xd8] sm:$0xff] %vm554_vm0, %v6692_v28  ;;  %6723 = vst.msk [vmem:[%s11752_s22 + $0xd0] sm:$0xff] %vm554_vm0, %v6691_v54  ;;  %v6662_v43 = vadd.f32 %v7462_v5, %v6630_v14  ;;  %v6661_v55 = vadd.f32 %v7463_v11, %v6629_v44 }
 0x9e5   : > { %v6600_v30 = vpop.permute.xlu1 %6599  ;;  %v6596_v42 = vpop.permute.xlu0 %6595 }
 0x9e6   : > { %v6694_v1 = vmax.f32 %v6662_v43, 0.0  ;;  %v6693_v46 = vmax.f32 %v6661_v55, 0.0  ;;  %v6632_v39 = vmul.f32 %v6600_v30, %v12148_v33  ;;  %v6631_v9 = vmul.f32 %v6596_v42, %v12149_v7 }
 0x9e8   : > { %6726 = vst.msk [vmem:[%s11752_s22 + $0xe8] sm:$0xff] %vm554_vm0, %v6694_v1  ;;  %6725 = vst.msk [vmem:[%s11752_s22 + $0xe0] sm:$0xff] %vm554_vm0, %v6693_v46  ;;  %v6664_v38 = vadd.f32 %v7464_v52, %v6632_v39  ;;  %v6663_v31 = vadd.f32 %v7465_v57, %v6631_v9 }
 0x9ea   : > { %v6696_v59 = vmax.f32 %v6664_v38, 0.0  ;;  %v6695_v10 = vmax.f32 %v6663_v31, 0.0 }
 0x9ec   : > { %6728 = vst.msk [vmem:[%s11752_s22 + $0xf8] sm:$0xff] %vm554_vm0, %v6696_v59  ;;  %6727 = vst.msk [vmem:[%s11752_s22 + $0xf0] sm:$0xff] %vm554_vm0, %v6695_v10 }
 0x9ed   : > { %7522 = shalt.err (!%p7519_p1)
}
 0x9ee   : > { %s7523_s1 = scalar_lea.hbm %s11877_s19, 4096  ;;  %s7527_s24 = scalar_lea.hbm %s12151_s17, 8192 }
 0x9ef   : > { %p7524_p4 = scmp.ne.s32.totalorder %s11877_s19, %s7523_s1  ;;  %p7528_p6 = scmp.lt.s32.totalorder %s11877_s19, %s12151_s17 }
 0x9f0   : > { %p7529_p13 = scmp.lt.s32.totalorder %s7527_s24, %s7523_s1 }
 0x9f1   : > { %p7525_p11 = pnand %p7524_p4, %p12152_p0 }
 0x9f2   : > { %p7530_p3 = por %p7529_p13, %p7528_p6 }
 0x9f3   : > { %p7526_p5 = pneg %p7525_p11 }
 0x9f5   : > { %p7531_p12 = pnand %p7530_p3, %p7526_p5 }
 0x9f7   : > { %7534 = shalt.err (!%p7531_p12)
}
 0x9f8   : > { %s7600_s13 = smov 128   ;;  %s7601_s23 = smov 8  }
 0x9f9   : > { %7283 = dma.vmem_to_hbm [thread:$0]  (%p12152_p0), %s11879_s0, 4096, %s11877_s19, %s6730_s29, %s7600_s13, %s7600_s13, %s7601_s23  }
 0x9fa PF: > { %s12153_s25 = sld [smem:[#allocation14_spill]]  ;;  %p12156_p7 = scmp.ge.s32.totalorder %s7577_s28, 2 }
 0x9fb   : > { %s12154_s22 = sld [smem:[#allocation19_spill]] }
 0xa00   : > { %s6758_s16 = sand.u32 1, %s12153_s25  }
 0xa01   : > { %p12155_p2 = scmp.ne.s32.totalorder %s12154_s22, 0  ;;  %s6759_s5 = scalar_lea.sflag [#allocation7], %s6758_s16 }
 0xa03   : > { %p7294_p8 = pnand %p12156_p7, %p12155_p2 }
 0xa05   : > { %p7295_p9 = pneg %p7294_p8 }
 0xa07   : > { %7560 = dma.done.wait (%p7295_p9), %s6759_s5, 4096  }
 0xa08   : > { %7562 = vsyncadd (%p7295_p9), %s6759_s5, 4294963200  ;;  %s12157_s28 = sld [smem:[#allocation16_spill]]  ;;  %s12160_s25 = smov %s7569_s26 }
 0xa09   : > { %s12158_s14 = sld [smem:[#allocation15_spill]] }
 0xa0a   : > { %s12159_s27 = sld [smem:[#allocation17_spill]] }
 0xa0e   : > { %p27_p10 = scmp.ge.s32.totalorder %s12157_s28, 4  }
 0xa0f   : > { %s12161_s26 = smov %s12158_s14 }
 0xa10   :  { %29 = sbr.rel (!%p27_p10) target bundleno = 15 (0xf), region = 125 }
 0xa15   :  { %6764 = vsyncpa [#allocation6], 1 }
 0xa16   :  { %6766 = vsyncpa [#allocation6 + $0x1], 1 }
 0xa17   :  { %6767 = vsyncpa [#allocation7], 1 }
 0xa18   :  { %6769 = vsyncpa [#allocation7 + $0x1], 1 }
 0xa19   :  { %6770 = vsyncpa [#allocation8], 1 }
 0xa1a   :  { %6772 = vsyncpa [#allocation8 + $0x1], 1 }

</bundles_post_ra>
